<compile_context>
chip_gen: v7x
topology: tpu7x:2x2x1
jax: 0.10.0
libtpu: 0.0.40
codegen_flags: <defaults>
</compile_context>

<pallas_src>
import jax
import jax.numpy as jnp
from jax import lax
from jax.experimental import pallas as pl
from jax.experimental.pallas import tpu as pltpu


# ----------------------------------------------------------------------------
# Fused Pallas kernel: 2-layer BiLSTM + mean-over-time + Linear
# (one grid step == one batch block)
# ----------------------------------------------------------------------------
def _bilstm_fused_kernel(x_ref, wih1_ref, whh1_ref, b1_ref,
                         wih2_ref, whh2_ref, b2_ref,
                         fcw_ref, fcb_ref,
                         out_ref,
                         seqf_sc, seqb_sc, xgf_sc, xgb_sc):
    """H = hidden, Bb = batch block, D = input dim, C = classes, gates (i,f,g,o).

    x_ref    : (T, Bb, D)   bf16  time-major input block
    wih1_ref : (D, 8H)      bf16  layer-1 input->hidden, [fwd | bwd] columns
    whh1_ref : (2, H, 4H)   bf16  layer-1 hidden->hidden [fwd, bwd]
    b1_ref   : (1, 8H)      f32   layer-1 fused bias (b_ih + b_hh), [fwd | bwd]
    wih2_ref : (2H, 8H)     bf16  layer-2 input->hidden
    whh2_ref : (2, H, 4H)   bf16
    b2_ref   : (1, 8H)      f32
    fcw_ref  : (2H, C)      bf16
    fcb_ref  : (1, C)       f32
    out_ref  : (Bb, C)      f32   logits
    seqf_sc / seqb_sc : (T, Bb, H)  bf16 VMEM  layer-1 per-direction hidden states
    xgf_sc  / xgb_sc  : (T, Bb, 4H) f32  VMEM  staged gate pre-activations
    """
    T, B, D = x_ref.shape
    H = whh1_ref.shape[1]
    G = 4 * H
    bf16 = jnp.bfloat16
    unroll = True if T <= 8 else 8        # full unroll only for short sequences

    def mxu(a, b):
        return jnp.dot(a, b, preferred_element_type=jnp.float32)

    def sig(v):
        # sigmoid(x) == 0.5 * tanh(0.5 * x) + 0.5 : one EUP push instead of exp+recip
        return 0.5 * jnp.tanh(0.5 * v) + 0.5

    def cell(gates, c):
        i = sig(gates[:, 0 * H:1 * H])
        f = sig(gates[:, 1 * H:2 * H])
        g = jnp.tanh(gates[:, 2 * H:3 * H])
        o = sig(gates[:, 3 * H:4 * H])
        c = f * c + i * g
        return o * jnp.tanh(c), c

    def stage_gates(proj):
        # proj: (T*Bb, 8H) f32 -> split (lane-aligned) into per-direction staging.
        xgf_sc[...] = proj[:, :G].reshape(T, B, G)
        xgb_sc[...] = proj[:, G:].reshape(T, B, G)

    def birecurrence(whh_ref, *, store_seq):
        """Both directions of one layer, interleaved in a single loop.

        store_seq=True  -> write per-step hidden states to seqf/seqb (layer 1).
        store_seq=False -> accumulate the time-sum of h (layer 2, feeds mean-pool).
        """
        accumulate = not store_seq

        def step(s, carry):
            if accumulate:
                hf, cf, af, hb, cb, ab = carry
            else:
                hf, cf, hb, cb = carry
            tb = T - 1 - s
            # two independent (Bb,H)x(H,4H) matmuls + independent gate chains
            gf = xgf_sc[s] + mxu(hf.astype(bf16), whh_ref[0])
            gb = xgb_sc[tb] + mxu(hb.astype(bf16), whh_ref[1])
            hf, cf = cell(gf, cf)
            hb, cb = cell(gb, cb)
            if store_seq:
                seqf_sc[s] = hf.astype(seqf_sc.dtype)
                seqb_sc[tb] = hb.astype(seqb_sc.dtype)
            if accumulate:
                return hf, cf, af + hf, hb, cb, ab + hb
            return hf, cf, hb, cb

        z = jnp.zeros((B, H), jnp.float32)
        init = (z,) * (6 if accumulate else 4)
        carry = lax.fori_loop(0, T, step, init, unroll=unroll)
        if accumulate:
            return carry[2], carry[5]
        return None

    # ---------------- layer 1: one fused input projection + interleaved recurrence ----
    x_flat = x_ref[...].reshape(T * B, D)
    stage_gates(mxu(x_flat, wih1_ref[...]) + b1_ref[...])      # (T*Bb, D) x (D, 8H)
    birecurrence(whh1_ref, store_seq=True)

    # ---------------- layer 2 (inter-layer dropout = identity at inference) ----------
    sf = seqf_sc[...].reshape(T * B, H)                         # bf16 MXU operands
    sb = seqb_sc[...].reshape(T * B, H)
    stage_gates(mxu(sf, wih2_ref[:H, :]) + mxu(sb, wih2_ref[H:, :]) + b2_ref[...])
    acc_f, acc_b = birecurrence(whh2_ref, store_seq=False)

    # ---------------- mean-over-time + fc head (pre-fc dropout = identity) -----------
    inv_t = 1.0 / T
    logits = (mxu((acc_f * inv_t).astype(bf16), fcw_ref[:H, :])
              + mxu((acc_b * inv_t).astype(bf16), fcw_ref[H:, :])
              + fcb_ref[...])
    out_ref[...] = logits.astype(out_ref.dtype)


# ----------------------------------------------------------------------------
# Wrapper
# ----------------------------------------------------------------------------
def bilstm_model_forward(x_btd, params, *, batch_block=None):
    """Full BiLSTMModel forward.  x_btd: (B, T, input_dim) -> (B, num_classes) f32."""
    assert len(params["lstm"]) == 2, "fused kernel is specialized for num_layers=2"
    bf16 = jnp.bfloat16

    x = jnp.transpose(x_btd, (1, 0, 2)).astype(bf16)            # (T, B, D) time-major
    T, B, D = x.shape
    H = params["lstm"][0]["fwd"]["w_hh"].shape[0]
    C = params["fc_w"].shape[1]
    l1, l2 = params["lstm"]

    # Batch-parallel grid: one block per TensorCore on v7x (megacore); the
    # recurrence is serial in T but independent in B, so no cross-core sync.
    if batch_block is None:
        batch_block = B // 2 if (B >= 16 and (B // 2) % 8 == 0) else B
    assert B % batch_block == 0 and batch_block % 8 == 0
    nb = B // batch_block
    Bb = batch_block

    def cat_ih(layer):   # (D_in, 8H): [fwd | bwd] columns -> one fused input projection
        return jnp.concatenate(
            [layer["fwd"]["w_ih"], layer["bwd"]["w_ih"]], axis=1).astype(bf16)

    def stk_hh(layer):   # (2, H, 4H)
        return jnp.stack([layer["fwd"]["w_hh"], layer["bwd"]["w_hh"]]).astype(bf16)

    def cat_b(layer):    # (1, 8H) fused bias b_ih + b_hh (zero for this model)
        return jnp.concatenate(
            [layer["fwd"]["b"], layer["bwd"]["b"]], axis=1).astype(jnp.float32)

    wih1, whh1, b1 = cat_ih(l1), stk_hh(l1), cat_b(l1)
    wih2, whh2, b2 = cat_ih(l2), stk_hh(l2), cat_b(l2)
    fcw = params["fc_w"].astype(bf16)
    fcb = params["fc_b"].astype(jnp.float32)

    def full(arr):       # whole-array block, same block index for every grid step
        n = arr.ndim
        return pl.BlockSpec(arr.shape, lambda i: (0,) * n)

    # Demo-size VMEM footprint is ~1.5 MiB per block.  NOTE: at production T*B,
    # re-derive against v7x's 64 MiB VMEM and T-tile the staging (see TODOs).
    return pl.pallas_call(
        _bilstm_fused_kernel,
        out_shape=jax.ShapeDtypeStruct((B, C), jnp.float32),
        grid_spec=pltpu.PrefetchScalarGridSpec(
            num_scalar_prefetch=0,
            grid=(nb,),
            in_specs=[
                pl.BlockSpec((T, Bb, D), lambda i: (0, i, 0)),   # x: block the batch axis
                full(wih1), full(whh1), full(b1),
                full(wih2), full(whh2), full(b2),
                full(fcw), full(fcb),
            ],
            out_specs=pl.BlockSpec((Bb, C), lambda i: (i, 0)),
            scratch_shapes=[
                pltpu.VMEM((T, Bb, H), bf16),             # layer-1 fwd hidden states
                pltpu.VMEM((T, Bb, H), bf16),             # layer-1 bwd hidden states
                pltpu.VMEM((T, Bb, 4 * H), jnp.float32),  # fwd gate pre-activations
                pltpu.VMEM((T, Bb, 4 * H), jnp.float32),  # bwd gate pre-activations
            ]),
        compiler_params=pltpu.CompilerParams(
            dimension_semantics=("parallel",)),
    )(x, wih1, whh1, b1, wih2, whh2, b2, fcw, fcb)


# ----------------------------------------------------------------------------
# Deterministic parameter init (mirrors xavier_uniform_ weights / zero biases)
# ----------------------------------------------------------------------------
def init_params(key, input_dim, hidden_dim, num_layers, num_classes):
    def xavier(key, shape, fan_in, fan_out):
        bound = (6.0 / (fan_in + fan_out)) ** 0.5
        return jax.random.uniform(key, shape, jnp.float32, -bound, bound)

    params = {"lstm": []}
    H = hidden_dim
    for layer in range(num_layers):
        D = input_dim if layer == 0 else 2 * hidden_dim
        layer_p = {}
        for dname in ("fwd", "bwd"):
            key, k1, k2 = jax.random.split(key, 3)
            layer_p[dname] = {
                # stored transposed relative to PyTorch: (D, 4H) and (H, 4H)
                "w_ih": xavier(k1, (D, 4 * H), D, 4 * H),
                "w_hh": xavier(k2, (H, 4 * H), H, 4 * H),
                "b": jnp.zeros((1, 4 * H), jnp.float32),  # b_ih + b_hh (module zeros them)
            }
        params["lstm"].append(layer_p)

    key, kf = jax.random.split(key)
    params["fc_w"] = xavier(kf, (2 * H, num_classes), 2 * H, num_classes)
    params["fc_b"] = jnp.zeros((1, num_classes), jnp.float32)
    return params


# ----------------------------------------------------------------------------
# Pure-JAX references (for correctness checking)
# ----------------------------------------------------------------------------
def _reference_forward(x_btd, params, matmul_dtype=jnp.float32):
    """matmul_dtype=bf16 emulates the kernel's MXU-operand rounding."""
    def mm(a, b):
        return jnp.dot(a.astype(matmul_dtype), b.astype(matmul_dtype),
                       preferred_element_type=jnp.float32)

    def run_dir(x_tbd, p, reverse):
        T, B, _ = x_tbd.shape
        H = p["w_hh"].shape[0]
        xs = x_tbd[::-1] if reverse else x_tbd

        def step(carry, x_t):
            h, c = carry
            gates = mm(x_t, p["w_ih"]) + mm(h, p["w_hh"]) + p["b"]
            i = jax.nn.sigmoid(gates[:, 0 * H:1 * H])
            f = jax.nn.sigmoid(gates[:, 1 * H:2 * H])
            g = jnp.tanh(gates[:, 2 * H:3 * H])
            o = jax.nn.sigmoid(gates[:, 3 * H:4 * H])
            c = f * c + i * g
            h = o * jnp.tanh(c)
            return (h, c), h

        init = (jnp.zeros((B, H), jnp.float32), jnp.zeros((B, H), jnp.float32))
        _, hs = lax.scan(step, init, xs)
        return hs[::-1] if reverse else hs

    x = jnp.transpose(x_btd, (1, 0, 2)).astype(jnp.float32)
    for layer in params["lstm"]:
        hf = run_dir(x, layer["fwd"], False)
        hb = run_dir(x, layer["bwd"], True)
        x = jnp.concatenate([hf, hb], axis=-1)
    pooled = jnp.mean(x, axis=0)
    return mm(pooled, params["fc_w"]) + params["fc_b"]


# ----------------------------------------------------------------------------
if __name__ == "__main__":
    # Small shapes consistent with the module (hidden_dim=128, num_layers=2,
    # num_classes=3).  B=32 / batch_block=16 exercises the 2-block parallel grid
    # with fully lane/sublane-aligned (16,128) bf16 scratch tiles; T=8, D=64.
    B, T, D = 32, 8, 64
    HIDDEN, LAYERS, CLASSES = 128, 2, 3

    key = jax.random.PRNGKey(0)
    kx, kp = jax.random.split(key)
    x = jax.random.normal(kx, (B, T, D), jnp.float32)
    params = init_params(kp, D, HIDDEN, LAYERS, CLASSES)

    fwd = jax.jit(bilstm_model_forward)
    out = jax.block_until_ready(fwd(x, params))
    assert out.shape == (B, CLASSES)

    # 1) Implementation check: reference with the same bf16 MXU-operand rounding.
    ref_bf16 = _reference_forward(x, params, matmul_dtype=jnp.bfloat16)
    assert jnp.allclose(out, ref_bf16, atol=5e-3, rtol=5e-3), (
        "mismatch vs bf16-emulating reference: "
        f"max abs err {float(jnp.max(jnp.abs(out - ref_bf16)))}")

    # 2) Semantic sanity check vs the full-f32 LSTM (bf16 operand rounding only).
    ref_f32 = _reference_forward(x, params, matmul_dtype=jnp.float32)
    assert jnp.allclose(out, ref_f32, atol=1e-1, rtol=1e-1), (
        "mismatch vs f32 reference: "
        f"max abs err {float(jnp.max(jnp.abs(out - ref_f32)))}")

    print("KERNEL_OK")
</pallas_src>

<mosaic_0001>
module attributes {stable_mosaic.version = 11 : i64} {
  func.func @_bilstm_fused_kernel(%arg0: i32, %arg1: memref<8x16x64xbf16, #tpu.memory_space<vmem>>, %arg2: memref<64x1024xbf16, #tpu.memory_space<vmem>>, %arg3: memref<2x128x512xbf16, #tpu.memory_space<vmem>>, %arg4: memref<1x1024xf32, #tpu.memory_space<vmem>>, %arg5: memref<256x1024xbf16, #tpu.memory_space<vmem>>, %arg6: memref<2x128x512xbf16, #tpu.memory_space<vmem>>, %arg7: memref<1x1024xf32, #tpu.memory_space<vmem>>, %arg8: memref<256x3xbf16, #tpu.memory_space<vmem>>, %arg9: memref<1x3xf32, #tpu.memory_space<vmem>>, %arg10: memref<16x3xf32, #tpu.memory_space<vmem>>, %arg11: memref<8x16x128xbf16, #tpu.memory_space<vmem>>, %arg12: memref<8x16x128xbf16, #tpu.memory_space<vmem>>, %arg13: memref<8x16x512xf32, #tpu.memory_space<vmem>>, %arg14: memref<8x16x512xf32, #tpu.memory_space<vmem>>) attributes {dimension_semantics = [#tpu.dimension_semantics<parallel>], iteration_bounds = array<i64: 2>, scalar_prefetch = 0 : i64, scratch_operands = 4 : i64, tpu.core_type = #tpu.core_type<tc>, window_params = [{transform_indices = @transform_0, window_bounds = array<i64: 8, 16, 64>}, {pipeline_mode = #tpu.pipeline_mode<synchronous>, transform_indices = @transform_1, window_bounds = array<i64: 64, 1024>}, {pipeline_mode = #tpu.pipeline_mode<synchronous>, transform_indices = @transform_2, window_bounds = array<i64: 2, 128, 512>}, {pipeline_mode = #tpu.pipeline_mode<synchronous>, transform_indices = @transform_3, window_bounds = array<i64: 1, 1024>}, {pipeline_mode = #tpu.pipeline_mode<synchronous>, transform_indices = @transform_4, window_bounds = array<i64: 256, 1024>}, {pipeline_mode = #tpu.pipeline_mode<synchronous>, transform_indices = @transform_5, window_bounds = array<i64: 2, 128, 512>}, {pipeline_mode = #tpu.pipeline_mode<synchronous>, transform_indices = @transform_6, window_bounds = array<i64: 1, 1024>}, {pipeline_mode = #tpu.pipeline_mode<synchronous>, transform_indices = @transform_7, window_bounds = array<i64: 256, 3>}, {pipeline_mode = #tpu.pipeline_mode<synchronous>, transform_indices = @transform_8, window_bounds = array<i64: 1, 3>}, {transform_indices = @transform_9, window_bounds = array<i64: 16, 3>}]} {
    %c0 = arith.constant 0 : index
    %c0_0 = arith.constant 0 : index
    %c0_1 = arith.constant 0 : index
    %0 = vector.load %arg1[%c0, %c0_0, %c0_1] : memref<8x16x64xbf16, #tpu.memory_space<vmem>>, vector<8x16x64xbf16>
    %1 = vector.shape_cast %0 : vector<8x16x64xbf16> to vector<128x64xbf16>
    %c0_2 = arith.constant 0 : index
    %c0_3 = arith.constant 0 : index
    %2 = vector.load %arg2[%c0_2, %c0_3] : memref<64x1024xbf16, #tpu.memory_space<vmem>>, vector<64x1024xbf16>
    %cst = arith.constant dense<0.000000e+00> : vector<128x1024xf32>
    %3 = tpu.matmul %1, %2, %cst {dimension_numbers = #tpu.dot_dimension_numbers<[1], [0], [0], [1], [0, 0, 1, 1], [], []>} : vector<128x64xbf16>, vector<64x1024xbf16>, vector<128x1024xf32> -> vector<128x1024xf32>
    %c0_4 = arith.constant 0 : index
    %c0_5 = arith.constant 0 : index
    %4 = vector.load %arg4[%c0_4, %c0_5] : memref<1x1024xf32, #tpu.memory_space<vmem>>, vector<1x1024xf32>
    %5 = vector.broadcast %4 : vector<1x1024xf32> to vector<128x1024xf32>
    %6 = arith.addf %3, %5 : vector<128x1024xf32>
    %7 = vector.extract_strided_slice %6 {offsets = [0, 0], sizes = [128, 512], strides = [1, 1]} : vector<128x1024xf32> to vector<128x512xf32>
    %8 = vector.shape_cast %7 : vector<128x512xf32> to vector<8x16x512xf32>
    %c0_6 = arith.constant 0 : index
    %c0_7 = arith.constant 0 : index
    %c0_8 = arith.constant 0 : index
    %9 = vector.load %arg13[%c0_6, %c0_7, %c0_8] : memref<8x16x512xf32, #tpu.memory_space<vmem>>, vector<8x16x512xf32>
    tpu.vector_store %arg13[%c0_6, %c0_7, %c0_8], %8 {strides = array<i32>} : memref<8x16x512xf32, #tpu.memory_space<vmem>>, vector<8x16x512xf32>,
    %10 = vector.extract_strided_slice %6 {offsets = [0, 512], sizes = [128, 512], strides = [1, 1]} : vector<128x1024xf32> to vector<128x512xf32>
    %11 = vector.shape_cast %10 : vector<128x512xf32> to vector<8x16x512xf32>
    %c0_9 = arith.constant 0 : index
    %c0_10 = arith.constant 0 : index
    %c0_11 = arith.constant 0 : index
    %12 = vector.load %arg14[%c0_9, %c0_10, %c0_11] : memref<8x16x512xf32, #tpu.memory_space<vmem>>, vector<8x16x512xf32>
    tpu.vector_store %arg14[%c0_9, %c0_10, %c0_11], %11 {strides = array<i32>} : memref<8x16x512xf32, #tpu.memory_space<vmem>>, vector<8x16x512xf32>,
    %cst_12 = arith.constant 0.000000e+00 : f32
    %13 = vector.broadcast %cst_12 : f32 to vector<16x128xf32>
    %c0_i32 = arith.constant 0 : i32
    %c7_i32 = arith.constant 7 : i32
    %14 = arith.subi %c7_i32, %c0_i32 : i32
    %15 = arith.index_cast %c0_i32 : i32 to index
    %c0_13 = arith.constant 0 : index
    %c0_14 = arith.constant 0 : index
    %16 = vector.load %arg13[%15, %c0_13, %c0_14] : memref<8x16x512xf32, #tpu.memory_space<vmem>>, vector<1x16x512xf32>
    %17 = vector.shape_cast %16 : vector<1x16x512xf32> to vector<16x512xf32>
    %18 = arith.truncf %13 : vector<16x128xf32> to vector<16x128xbf16>
    %c0_15 = arith.constant 0 : index
    %c0_16 = arith.constant 0 : index
    %c0_17 = arith.constant 0 : index
    %19 = vector.load %arg3[%c0_15, %c0_16, %c0_17] : memref<2x128x512xbf16, #tpu.memory_space<vmem>>, vector<1x128x512xbf16>
    %20 = vector.shape_cast %19 : vector<1x128x512xbf16> to vector<128x512xbf16>
    %cst_18 = arith.constant dense<0.000000e+00> : vector<16x512xf32>
    %21 = tpu.matmul %18, %20, %cst_18 {dimension_numbers = #tpu.dot_dimension_numbers<[1], [0], [0], [1], [0, 0, 1, 1], [], []>} : vector<16x128xbf16>, vector<128x512xbf16>, vector<16x512xf32> -> vector<16x512xf32>
    %22 = arith.addf %17, %21 : vector<16x512xf32>
    %23 = arith.index_cast %14 : i32 to index
    %c0_19 = arith.constant 0 : index
    %c0_20 = arith.constant 0 : index
    %24 = vector.load %arg14[%23, %c0_19, %c0_20] : memref<8x16x512xf32, #tpu.memory_space<vmem>>, vector<1x16x512xf32>
    %25 = vector.shape_cast %24 : vector<1x16x512xf32> to vector<16x512xf32>
    %26 = arith.truncf %13 : vector<16x128xf32> to vector<16x128xbf16>
    %c1 = arith.constant 1 : index
    %c0_21 = arith.constant 0 : index
    %c0_22 = arith.constant 0 : index
    %27 = vector.load %arg3[%c1, %c0_21, %c0_22] : memref<2x128x512xbf16, #tpu.memory_space<vmem>>, vector<1x128x512xbf16>
    %28 = vector.shape_cast %27 : vector<1x128x512xbf16> to vector<128x512xbf16>
    %cst_23 = arith.constant dense<0.000000e+00> : vector<16x512xf32>
    %29 = tpu.matmul %26, %28, %cst_23 {dimension_numbers = #tpu.dot_dimension_numbers<[1], [0], [0], [1], [0, 0, 1, 1], [], []>} : vector<16x128xbf16>, vector<128x512xbf16>, vector<16x512xf32> -> vector<16x512xf32>
    %30 = arith.addf %25, %29 : vector<16x512xf32>
    %31 = vector.extract_strided_slice %22 {offsets = [0, 0], sizes = [16, 128], strides = [1, 1]} : vector<16x512xf32> to vector<16x128xf32>
    %cst_24 = arith.constant 5.000000e-01 : f32
    %32 = vector.broadcast %cst_24 : f32 to vector<16x128xf32>
    %33 = arith.mulf %32, %31 : vector<16x128xf32>
    %34 = math.tanh %33 : vector<16x128xf32>
    %cst_25 = arith.constant 5.000000e-01 : f32
    %35 = vector.broadcast %cst_25 : f32 to vector<16x128xf32>
    %36 = arith.mulf %35, %34 : vector<16x128xf32>
    %cst_26 = arith.constant 5.000000e-01 : f32
    %37 = vector.broadcast %cst_26 : f32 to vector<16x128xf32>
    %38 = arith.addf %36, %37 : vector<16x128xf32>
    %39 = vector.extract_strided_slice %22 {offsets = [0, 128], sizes = [16, 128], strides = [1, 1]} : vector<16x512xf32> to vector<16x128xf32>
    %cst_27 = arith.constant 5.000000e-01 : f32
    %40 = vector.broadcast %cst_27 : f32 to vector<16x128xf32>
    %41 = arith.mulf %40, %39 : vector<16x128xf32>
    %42 = math.tanh %41 : vector<16x128xf32>
    %cst_28 = arith.constant 5.000000e-01 : f32
    %43 = vector.broadcast %cst_28 : f32 to vector<16x128xf32>
    %44 = arith.mulf %43, %42 : vector<16x128xf32>
    %cst_29 = arith.constant 5.000000e-01 : f32
    %45 = vector.broadcast %cst_29 : f32 to vector<16x128xf32>
    %46 = arith.addf %44, %45 : vector<16x128xf32>
    %47 = vector.extract_strided_slice %22 {offsets = [0, 256], sizes = [16, 128], strides = [1, 1]} : vector<16x512xf32> to vector<16x128xf32>
    %48 = math.tanh %47 : vector<16x128xf32>
    %49 = vector.extract_strided_slice %22 {offsets = [0, 384], sizes = [16, 128], strides = [1, 1]} : vector<16x512xf32> to vector<16x128xf32>
    %cst_30 = arith.constant 5.000000e-01 : f32
    %50 = vector.broadcast %cst_30 : f32 to vector<16x128xf32>
    %51 = arith.mulf %50, %49 : vector<16x128xf32>
    %52 = math.tanh %51 : vector<16x128xf32>
    %cst_31 = arith.constant 5.000000e-01 : f32
    %53 = vector.broadcast %cst_31 : f32 to vector<16x128xf32>
    %54 = arith.mulf %53, %52 : vector<16x128xf32>
    %cst_32 = arith.constant 5.000000e-01 : f32
    %55 = vector.broadcast %cst_32 : f32 to vector<16x128xf32>
    %56 = arith.addf %54, %55 : vector<16x128xf32>
    %57 = arith.mulf %46, %13 : vector<16x128xf32>
    %58 = arith.mulf %38, %48 : vector<16x128xf32>
    %59 = arith.addf %57, %58 : vector<16x128xf32>
    %60 = math.tanh %59 : vector<16x128xf32>
    %61 = arith.mulf %56, %60 : vector<16x128xf32>
    %62 = vector.extract_strided_slice %30 {offsets = [0, 0], sizes = [16, 128], strides = [1, 1]} : vector<16x512xf32> to vector<16x128xf32>
    %cst_33 = arith.constant 5.000000e-01 : f32
    %63 = vector.broadcast %cst_33 : f32 to vector<16x128xf32>
    %64 = arith.mulf %63, %62 : vector<16x128xf32>
    %65 = math.tanh %64 : vector<16x128xf32>
    %cst_34 = arith.constant 5.000000e-01 : f32
    %66 = vector.broadcast %cst_34 : f32 to vector<16x128xf32>
    %67 = arith.mulf %66, %65 : vector<16x128xf32>
    %cst_35 = arith.constant 5.000000e-01 : f32
    %68 = vector.broadcast %cst_35 : f32 to vector<16x128xf32>
    %69 = arith.addf %67, %68 : vector<16x128xf32>
    %70 = vector.extract_strided_slice %30 {offsets = [0, 128], sizes = [16, 128], strides = [1, 1]} : vector<16x512xf32> to vector<16x128xf32>
    %cst_36 = arith.constant 5.000000e-01 : f32
    %71 = vector.broadcast %cst_36 : f32 to vector<16x128xf32>
    %72 = arith.mulf %71, %70 : vector<16x128xf32>
    %73 = math.tanh %72 : vector<16x128xf32>
    %cst_37 = arith.constant 5.000000e-01 : f32
    %74 = vector.broadcast %cst_37 : f32 to vector<16x128xf32>
    %75 = arith.mulf %74, %73 : vector<16x128xf32>
    %cst_38 = arith.constant 5.000000e-01 : f32
    %76 = vector.broadcast %cst_38 : f32 to vector<16x128xf32>
    %77 = arith.addf %75, %76 : vector<16x128xf32>
    %78 = vector.extract_strided_slice %30 {offsets = [0, 256], sizes = [16, 128], strides = [1, 1]} : vector<16x512xf32> to vector<16x128xf32>
    %79 = math.tanh %78 : vector<16x128xf32>
    %80 = vector.extract_strided_slice %30 {offsets = [0, 384], sizes = [16, 128], strides = [1, 1]} : vector<16x512xf32> to vector<16x128xf32>
    %cst_39 = arith.constant 5.000000e-01 : f32
    %81 = vector.broadcast %cst_39 : f32 to vector<16x128xf32>
    %82 = arith.mulf %81, %80 : vector<16x128xf32>
    %83 = math.tanh %82 : vector<16x128xf32>
    %cst_40 = arith.constant 5.000000e-01 : f32
    %84 = vector.broadcast %cst_40 : f32 to vector<16x128xf32>
    %85 = arith.mulf %84, %83 : vector<16x128xf32>
    %cst_41 = arith.constant 5.000000e-01 : f32
    %86 = vector.broadcast %cst_41 : f32 to vector<16x128xf32>
    %87 = arith.addf %85, %86 : vector<16x128xf32>
    %88 = arith.mulf %77, %13 : vector<16x128xf32>
    %89 = arith.mulf %69, %79 : vector<16x128xf32>
    %90 = arith.addf %88, %89 : vector<16x128xf32>
    %91 = math.tanh %90 : vector<16x128xf32>
    %92 = arith.mulf %87, %91 : vector<16x128xf32>
    %93 = arith.truncf %61 : vector<16x128xf32> to vector<16x128xbf16>
    %94 = arith.index_cast %c0_i32 : i32 to index
    %c0_42 = arith.constant 0 : index
    %c0_43 = arith.constant 0 : index
    %95 = vector.load %arg11[%94, %c0_42, %c0_43] : memref<8x16x128xbf16, #tpu.memory_space<vmem>>, vector<1x16x128xbf16>
    %96 = vector.shape_cast %95 : vector<1x16x128xbf16> to vector<16x128xbf16>
    %97 = vector.shape_cast %93 : vector<16x128xbf16> to vector<1x16x128xbf16>
    tpu.vector_store %arg11[%94, %c0_42, %c0_43], %97 {strides = array<i32>} : memref<8x16x128xbf16, #tpu.memory_space<vmem>>, vector<1x16x128xbf16>,
    %98 = arith.truncf %92 : vector<16x128xf32> to vector<16x128xbf16>
    %99 = arith.index_cast %14 : i32 to index
    %c0_44 = arith.constant 0 : index
    %c0_45 = arith.constant 0 : index
    %100 = vector.load %arg12[%99, %c0_44, %c0_45] : memref<8x16x128xbf16, #tpu.memory_space<vmem>>, vector<1x16x128xbf16>
    %101 = vector.shape_cast %100 : vector<1x16x128xbf16> to vector<16x128xbf16>
    %102 = vector.shape_cast %98 : vector<16x128xbf16> to vector<1x16x128xbf16>
    tpu.vector_store %arg12[%99, %c0_44, %c0_45], %102 {strides = array<i32>} : memref<8x16x128xbf16, #tpu.memory_space<vmem>>, vector<1x16x128xbf16>,
    %c1_i32 = arith.constant 1 : i32
    %c7_i32_46 = arith.constant 7 : i32
    %103 = arith.subi %c7_i32_46, %c1_i32 : i32
    %104 = arith.index_cast %c1_i32 : i32 to index
    %c0_47 = arith.constant 0 : index
    %c0_48 = arith.constant 0 : index
    %105 = vector.load %arg13[%104, %c0_47, %c0_48] : memref<8x16x512xf32, #tpu.memory_space<vmem>>, vector<1x16x512xf32>
    %106 = vector.shape_cast %105 : vector<1x16x512xf32> to vector<16x512xf32>
    %107 = arith.truncf %61 : vector<16x128xf32> to vector<16x128xbf16>
    %c0_49 = arith.constant 0 : index
    %c0_50 = arith.constant 0 : index
    %c0_51 = arith.constant 0 : index
    %108 = vector.load %arg3[%c0_49, %c0_50, %c0_51] : memref<2x128x512xbf16, #tpu.memory_space<vmem>>, vector<1x128x512xbf16>
    %109 = vector.shape_cast %108 : vector<1x128x512xbf16> to vector<128x512xbf16>
    %cst_52 = arith.constant dense<0.000000e+00> : vector<16x512xf32>
    %110 = tpu.matmul %107, %109, %cst_52 {dimension_numbers = #tpu.dot_dimension_numbers<[1], [0], [0], [1], [0, 0, 1, 1], [], []>} : vector<16x128xbf16>, vector<128x512xbf16>, vector<16x512xf32> -> vector<16x512xf32>
    %111 = arith.addf %106, %110 : vector<16x512xf32>
    %112 = arith.index_cast %103 : i32 to index
    %c0_53 = arith.constant 0 : index
    %c0_54 = arith.constant 0 : index
    %113 = vector.load %arg14[%112, %c0_53, %c0_54] : memref<8x16x512xf32, #tpu.memory_space<vmem>>, vector<1x16x512xf32>
    %114 = vector.shape_cast %113 : vector<1x16x512xf32> to vector<16x512xf32>
    %115 = arith.truncf %92 : vector<16x128xf32> to vector<16x128xbf16>
    %c1_55 = arith.constant 1 : index
    %c0_56 = arith.constant 0 : index
    %c0_57 = arith.constant 0 : index
    %116 = vector.load %arg3[%c1_55, %c0_56, %c0_57] : memref<2x128x512xbf16, #tpu.memory_space<vmem>>, vector<1x128x512xbf16>
    %117 = vector.shape_cast %116 : vector<1x128x512xbf16> to vector<128x512xbf16>
    %cst_58 = arith.constant dense<0.000000e+00> : vector<16x512xf32>
    %118 = tpu.matmul %115, %117, %cst_58 {dimension_numbers = #tpu.dot_dimension_numbers<[1], [0], [0], [1], [0, 0, 1, 1], [], []>} : vector<16x128xbf16>, vector<128x512xbf16>, vector<16x512xf32> -> vector<16x512xf32>
    %119 = arith.addf %114, %118 : vector<16x512xf32>
    %120 = vector.extract_strided_slice %111 {offsets = [0, 0], sizes = [16, 128], strides = [1, 1]} : vector<16x512xf32> to vector<16x128xf32>
    %cst_59 = arith.constant 5.000000e-01 : f32
    %121 = vector.broadcast %cst_59 : f32 to vector<16x128xf32>
    %122 = arith.mulf %121, %120 : vector<16x128xf32>
    %123 = math.tanh %122 : vector<16x128xf32>
    %cst_60 = arith.constant 5.000000e-01 : f32
    %124 = vector.broadcast %cst_60 : f32 to vector<16x128xf32>
    %125 = arith.mulf %124, %123 : vector<16x128xf32>
    %cst_61 = arith.constant 5.000000e-01 : f32
    %126 = vector.broadcast %cst_61 : f32 to vector<16x128xf32>
    %127 = arith.addf %125, %126 : vector<16x128xf32>
    %128 = vector.extract_strided_slice %111 {offsets = [0, 128], sizes = [16, 128], strides = [1, 1]} : vector<16x512xf32> to vector<16x128xf32>
    %cst_62 = arith.constant 5.000000e-01 : f32
    %129 = vector.broadcast %cst_62 : f32 to vector<16x128xf32>
    %130 = arith.mulf %129, %128 : vector<16x128xf32>
    %131 = math.tanh %130 : vector<16x128xf32>
    %cst_63 = arith.constant 5.000000e-01 : f32
    %132 = vector.broadcast %cst_63 : f32 to vector<16x128xf32>
    %133 = arith.mulf %132, %131 : vector<16x128xf32>
    %cst_64 = arith.constant 5.000000e-01 : f32
    %134 = vector.broadcast %cst_64 : f32 to vector<16x128xf32>
    %135 = arith.addf %133, %134 : vector<16x128xf32>
    %136 = vector.extract_strided_slice %111 {offsets = [0, 256], sizes = [16, 128], strides = [1, 1]} : vector<16x512xf32> to vector<16x128xf32>
    %137 = math.tanh %136 : vector<16x128xf32>
    %138 = vector.extract_strided_slice %111 {offsets = [0, 384], sizes = [16, 128], strides = [1, 1]} : vector<16x512xf32> to vector<16x128xf32>
    %cst_65 = arith.constant 5.000000e-01 : f32
    %139 = vector.broadcast %cst_65 : f32 to vector<16x128xf32>
    %140 = arith.mulf %139, %138 : vector<16x128xf32>
    %141 = math.tanh %140 : vector<16x128xf32>
    %cst_66 = arith.constant 5.000000e-01 : f32
    %142 = vector.broadcast %cst_66 : f32 to vector<16x128xf32>
    %143 = arith.mulf %142, %141 : vector<16x128xf32>
    %cst_67 = arith.constant 5.000000e-01 : f32
    %144 = vector.broadcast %cst_67 : f32 to vector<16x128xf32>
    %145 = arith.addf %143, %144 : vector<16x128xf32>
    %146 = arith.mulf %135, %59 : vector<16x128xf32>
    %147 = arith.mulf %127, %137 : vector<16x128xf32>
    %148 = arith.addf %146, %147 : vector<16x128xf32>
    %149 = math.tanh %148 : vector<16x128xf32>
    %150 = arith.mulf %145, %149 : vector<16x128xf32>
    %151 = vector.extract_strided_slice %119 {offsets = [0, 0], sizes = [16, 128], strides = [1, 1]} : vector<16x512xf32> to vector<16x128xf32>
    %cst_68 = arith.constant 5.000000e-01 : f32
    %152 = vector.broadcast %cst_68 : f32 to vector<16x128xf32>
    %153 = arith.mulf %152, %151 : vector<16x128xf32>
    %154 = math.tanh %153 : vector<16x128xf32>
    %cst_69 = arith.constant 5.000000e-01 : f32
    %155 = vector.broadcast %cst_69 : f32 to vector<16x128xf32>
    %156 = arith.mulf %155, %154 : vector<16x128xf32>
    %cst_70 = arith.constant 5.000000e-01 : f32
    %157 = vector.broadcast %cst_70 : f32 to vector<16x128xf32>
    %158 = arith.addf %156, %157 : vector<16x128xf32>
    %159 = vector.extract_strided_slice %119 {offsets = [0, 128], sizes = [16, 128], strides = [1, 1]} : vector<16x512xf32> to vector<16x128xf32>
    %cst_71 = arith.constant 5.000000e-01 : f32
    %160 = vector.broadcast %cst_71 : f32 to vector<16x128xf32>
    %161 = arith.mulf %160, %159 : vector<16x128xf32>
    %162 = math.tanh %161 : vector<16x128xf32>
    %cst_72 = arith.constant 5.000000e-01 : f32
    %163 = vector.broadcast %cst_72 : f32 to vector<16x128xf32>
    %164 = arith.mulf %163, %162 : vector<16x128xf32>
    %cst_73 = arith.constant 5.000000e-01 : f32
    %165 = vector.broadcast %cst_73 : f32 to vector<16x128xf32>
    %166 = arith.addf %164, %165 : vector<16x128xf32>
    %167 = vector.extract_strided_slice %119 {offsets = [0, 256], sizes = [16, 128], strides = [1, 1]} : vector<16x512xf32> to vector<16x128xf32>
    %168 = math.tanh %167 : vector<16x128xf32>
    %169 = vector.extract_strided_slice %119 {offsets = [0, 384], sizes = [16, 128], strides = [1, 1]} : vector<16x512xf32> to vector<16x128xf32>
    %cst_74 = arith.constant 5.000000e-01 : f32
    %170 = vector.broadcast %cst_74 : f32 to vector<16x128xf32>
    %171 = arith.mulf %170, %169 : vector<16x128xf32>
    %172 = math.tanh %171 : vector<16x128xf32>
    %cst_75 = arith.constant 5.000000e-01 : f32
    %173 = vector.broadcast %cst_75 : f32 to vector<16x128xf32>
    %174 = arith.mulf %173, %172 : vector<16x128xf32>
    %cst_76 = arith.constant 5.000000e-01 : f32
    %175 = vector.broadcast %cst_76 : f32 to vector<16x128xf32>
    %176 = arith.addf %174, %175 : vector<16x128xf32>
    %177 = arith.mulf %166, %90 : vector<16x128xf32>
    %178 = arith.mulf %158, %168 : vector<16x128xf32>
    %179 = arith.addf %177, %178 : vector<16x128xf32>
    %180 = math.tanh %179 : vector<16x128xf32>
    %181 = arith.mulf %176, %180 : vector<16x128xf32>
    %182 = arith.truncf %150 : vector<16x128xf32> to vector<16x128xbf16>
    %183 = arith.index_cast %c1_i32 : i32 to index
    %c0_77 = arith.constant 0 : index
    %c0_78 = arith.constant 0 : index
    %184 = vector.load %arg11[%183, %c0_77, %c0_78] : memref<8x16x128xbf16, #tpu.memory_space<vmem>>, vector<1x16x128xbf16>
    %185 = vector.shape_cast %184 : vector<1x16x128xbf16> to vector<16x128xbf16>
    %186 = vector.shape_cast %182 : vector<16x128xbf16> to vector<1x16x128xbf16>
    tpu.vector_store %arg11[%183, %c0_77, %c0_78], %186 {strides = array<i32>} : memref<8x16x128xbf16, #tpu.memory_space<vmem>>, vector<1x16x128xbf16>,
    %187 = arith.truncf %181 : vector<16x128xf32> to vector<16x128xbf16>
    %188 = arith.index_cast %103 : i32 to index
    %c0_79 = arith.constant 0 : index
    %c0_80 = arith.constant 0 : index
    %189 = vector.load %arg12[%188, %c0_79, %c0_80] : memref<8x16x128xbf16, #tpu.memory_space<vmem>>, vector<1x16x128xbf16>
    %190 = vector.shape_cast %189 : vector<1x16x128xbf16> to vector<16x128xbf16>
    %191 = vector.shape_cast %187 : vector<16x128xbf16> to vector<1x16x128xbf16>
    tpu.vector_store %arg12[%188, %c0_79, %c0_80], %191 {strides = array<i32>} : memref<8x16x128xbf16, #tpu.memory_space<vmem>>, vector<1x16x128xbf16>,
    %c2_i32 = arith.constant 2 : i32
    %c7_i32_81 = arith.constant 7 : i32
    %192 = arith.subi %c7_i32_81, %c2_i32 : i32
    %193 = arith.index_cast %c2_i32 : i32 to index
    %c0_82 = arith.constant 0 : index
    %c0_83 = arith.constant 0 : index
    %194 = vector.load %arg13[%193, %c0_82, %c0_83] : memref<8x16x512xf32, #tpu.memory_space<vmem>>, vector<1x16x512xf32>
    %195 = vector.shape_cast %194 : vector<1x16x512xf32> to vector<16x512xf32>
    %196 = arith.truncf %150 : vector<16x128xf32> to vector<16x128xbf16>
    %c0_84 = arith.constant 0 : index
    %c0_85 = arith.constant 0 : index
    %c0_86 = arith.constant 0 : index
    %197 = vector.load %arg3[%c0_84, %c0_85, %c0_86] : memref<2x128x512xbf16, #tpu.memory_space<vmem>>, vector<1x128x512xbf16>
    %198 = vector.shape_cast %197 : vector<1x128x512xbf16> to vector<128x512xbf16>
    %cst_87 = arith.constant dense<0.000000e+00> : vector<16x512xf32>
    %199 = tpu.matmul %196, %198, %cst_87 {dimension_numbers = #tpu.dot_dimension_numbers<[1], [0], [0], [1], [0, 0, 1, 1], [], []>} : vector<16x128xbf16>, vector<128x512xbf16>, vector<16x512xf32> -> vector<16x512xf32>
    %200 = arith.addf %195, %199 : vector<16x512xf32>
    %201 = arith.index_cast %192 : i32 to index
    %c0_88 = arith.constant 0 : index
    %c0_89 = arith.constant 0 : index
    %202 = vector.load %arg14[%201, %c0_88, %c0_89] : memref<8x16x512xf32, #tpu.memory_space<vmem>>, vector<1x16x512xf32>
    %203 = vector.shape_cast %202 : vector<1x16x512xf32> to vector<16x512xf32>
    %204 = arith.truncf %181 : vector<16x128xf32> to vector<16x128xbf16>
    %c1_90 = arith.constant 1 : index
    %c0_91 = arith.constant 0 : index
    %c0_92 = arith.constant 0 : index
    %205 = vector.load %arg3[%c1_90, %c0_91, %c0_92] : memref<2x128x512xbf16, #tpu.memory_space<vmem>>, vector<1x128x512xbf16>
    %206 = vector.shape_cast %205 : vector<1x128x512xbf16> to vector<128x512xbf16>
    %cst_93 = arith.constant dense<0.000000e+00> : vector<16x512xf32>
    %207 = tpu.matmul %204, %206, %cst_93 {dimension_numbers = #tpu.dot_dimension_numbers<[1], [0], [0], [1], [0, 0, 1, 1], [], []>} : vector<16x128xbf16>, vector<128x512xbf16>, vector<16x512xf32> -> vector<16x512xf32>
    %208 = arith.addf %203, %207 : vector<16x512xf32>
    %209 = vector.extract_strided_slice %200 {offsets = [0, 0], sizes = [16, 128], strides = [1, 1]} : vector<16x512xf32> to vector<16x128xf32>
    %cst_94 = arith.constant 5.000000e-01 : f32
    %210 = vector.broadcast %cst_94 : f32 to vector<16x128xf32>
    %211 = arith.mulf %210, %209 : vector<16x128xf32>
    %212 = math.tanh %211 : vector<16x128xf32>
    %cst_95 = arith.constant 5.000000e-01 : f32
    %213 = vector.broadcast %cst_95 : f32 to vector<16x128xf32>
    %214 = arith.mulf %213, %212 : vector<16x128xf32>
    %cst_96 = arith.constant 5.000000e-01 : f32
    %215 = vector.broadcast %cst_96 : f32 to vector<16x128xf32>
    %216 = arith.addf %214, %215 : vector<16x128xf32>
    %217 = vector.extract_strided_slice %200 {offsets = [0, 128], sizes = [16, 128], strides = [1, 1]} : vector<16x512xf32> to vector<16x128xf32>
    %cst_97 = arith.constant 5.000000e-01 : f32
    %218 = vector.broadcast %cst_97 : f32 to vector<16x128xf32>
    %219 = arith.mulf %218, %217 : vector<16x128xf32>
    %220 = math.tanh %219 : vector<16x128xf32>
    %cst_98 = arith.constant 5.000000e-01 : f32
    %221 = vector.broadcast %cst_98 : f32 to vector<16x128xf32>
    %222 = arith.mulf %221, %220 : vector<16x128xf32>
    %cst_99 = arith.constant 5.000000e-01 : f32
    %223 = vector.broadcast %cst_99 : f32 to vector<16x128xf32>
    %224 = arith.addf %222, %223 : vector<16x128xf32>
    %225 = vector.extract_strided_slice %200 {offsets = [0, 256], sizes = [16, 128], strides = [1, 1]} : vector<16x512xf32> to vector<16x128xf32>
    %226 = math.tanh %225 : vector<16x128xf32>
    %227 = vector.extract_strided_slice %200 {offsets = [0, 384], sizes = [16, 128], strides = [1, 1]} : vector<16x512xf32> to vector<16x128xf32>
    %cst_100 = arith.constant 5.000000e-01 : f32
    %228 = vector.broadcast %cst_100 : f32 to vector<16x128xf32>
    %229 = arith.mulf %228, %227 : vector<16x128xf32>
    %230 = math.tanh %229 : vector<16x128xf32>
    %cst_101 = arith.constant 5.000000e-01 : f32
    %231 = vector.broadcast %cst_101 : f32 to vector<16x128xf32>
    %232 = arith.mulf %231, %230 : vector<16x128xf32>
    %cst_102 = arith.constant 5.000000e-01 : f32
    %233 = vector.broadcast %cst_102 : f32 to vector<16x128xf32>
    %234 = arith.addf %232, %233 : vector<16x128xf32>
    %235 = arith.mulf %224, %148 : vector<16x128xf32>
    %236 = arith.mulf %216, %226 : vector<16x128xf32>
    %237 = arith.addf %235, %236 : vector<16x128xf32>
    %238 = math.tanh %237 : vector<16x128xf32>
    %239 = arith.mulf %234, %238 : vector<16x128xf32>
    %240 = vector.extract_strided_slice %208 {offsets = [0, 0], sizes = [16, 128], strides = [1, 1]} : vector<16x512xf32> to vector<16x128xf32>
    %cst_103 = arith.constant 5.000000e-01 : f32
    %241 = vector.broadcast %cst_103 : f32 to vector<16x128xf32>
    %242 = arith.mulf %241, %240 : vector<16x128xf32>
    %243 = math.tanh %242 : vector<16x128xf32>
    %cst_104 = arith.constant 5.000000e-01 : f32
    %244 = vector.broadcast %cst_104 : f32 to vector<16x128xf32>
    %245 = arith.mulf %244, %243 : vector<16x128xf32>
    %cst_105 = arith.constant 5.000000e-01 : f32
    %246 = vector.broadcast %cst_105 : f32 to vector<16x128xf32>
    %247 = arith.addf %245, %246 : vector<16x128xf32>
    %248 = vector.extract_strided_slice %208 {offsets = [0, 128], sizes = [16, 128], strides = [1, 1]} : vector<16x512xf32> to vector<16x128xf32>
    %cst_106 = arith.constant 5.000000e-01 : f32
    %249 = vector.broadcast %cst_106 : f32 to vector<16x128xf32>
    %250 = arith.mulf %249, %248 : vector<16x128xf32>
    %251 = math.tanh %250 : vector<16x128xf32>
    %cst_107 = arith.constant 5.000000e-01 : f32
    %252 = vector.broadcast %cst_107 : f32 to vector<16x128xf32>
    %253 = arith.mulf %252, %251 : vector<16x128xf32>
    %cst_108 = arith.constant 5.000000e-01 : f32
    %254 = vector.broadcast %cst_108 : f32 to vector<16x128xf32>
    %255 = arith.addf %253, %254 : vector<16x128xf32>
    %256 = vector.extract_strided_slice %208 {offsets = [0, 256], sizes = [16, 128], strides = [1, 1]} : vector<16x512xf32> to vector<16x128xf32>
    %257 = math.tanh %256 : vector<16x128xf32>
    %258 = vector.extract_strided_slice %208 {offsets = [0, 384], sizes = [16, 128], strides = [1, 1]} : vector<16x512xf32> to vector<16x128xf32>
    %cst_109 = arith.constant 5.000000e-01 : f32
    %259 = vector.broadcast %cst_109 : f32 to vector<16x128xf32>
    %260 = arith.mulf %259, %258 : vector<16x128xf32>
    %261 = math.tanh %260 : vector<16x128xf32>
    %cst_110 = arith.constant 5.000000e-01 : f32
    %262 = vector.broadcast %cst_110 : f32 to vector<16x128xf32>
    %263 = arith.mulf %262, %261 : vector<16x128xf32>
    %cst_111 = arith.constant 5.000000e-01 : f32
    %264 = vector.broadcast %cst_111 : f32 to vector<16x128xf32>
    %265 = arith.addf %263, %264 : vector<16x128xf32>
    %266 = arith.mulf %255, %179 : vector<16x128xf32>
    %267 = arith.mulf %247, %257 : vector<16x128xf32>
    %268 = arith.addf %266, %267 : vector<16x128xf32>
    %269 = math.tanh %268 : vector<16x128xf32>
    %270 = arith.mulf %265, %269 : vector<16x128xf32>
    %271 = arith.truncf %239 : vector<16x128xf32> to vector<16x128xbf16>
    %272 = arith.index_cast %c2_i32 : i32 to index
    %c0_112 = arith.constant 0 : index
    %c0_113 = arith.constant 0 : index
    %273 = vector.load %arg11[%272, %c0_112, %c0_113] : memref<8x16x128xbf16, #tpu.memory_space<vmem>>, vector<1x16x128xbf16>
    %274 = vector.shape_cast %273 : vector<1x16x128xbf16> to vector<16x128xbf16>
    %275 = vector.shape_cast %271 : vector<16x128xbf16> to vector<1x16x128xbf16>
    tpu.vector_store %arg11[%272, %c0_112, %c0_113], %275 {strides = array<i32>} : memref<8x16x128xbf16, #tpu.memory_space<vmem>>, vector<1x16x128xbf16>,
    %276 = arith.truncf %270 : vector<16x128xf32> to vector<16x128xbf16>
    %277 = arith.index_cast %192 : i32 to index
    %c0_114 = arith.constant 0 : index
    %c0_115 = arith.constant 0 : index
    %278 = vector.load %arg12[%277, %c0_114, %c0_115] : memref<8x16x128xbf16, #tpu.memory_space<vmem>>, vector<1x16x128xbf16>
    %279 = vector.shape_cast %278 : vector<1x16x128xbf16> to vector<16x128xbf16>
    %280 = vector.shape_cast %276 : vector<16x128xbf16> to vector<1x16x128xbf16>
    tpu.vector_store %arg12[%277, %c0_114, %c0_115], %280 {strides = array<i32>} : memref<8x16x128xbf16, #tpu.memory_space<vmem>>, vector<1x16x128xbf16>,
    %c3_i32 = arith.constant 3 : i32
    %c7_i32_116 = arith.constant 7 : i32
    %281 = arith.subi %c7_i32_116, %c3_i32 : i32
    %282 = arith.index_cast %c3_i32 : i32 to index
    %c0_117 = arith.constant 0 : index
    %c0_118 = arith.constant 0 : index
    %283 = vector.load %arg13[%282, %c0_117, %c0_118] : memref<8x16x512xf32, #tpu.memory_space<vmem>>, vector<1x16x512xf32>
    %284 = vector.shape_cast %283 : vector<1x16x512xf32> to vector<16x512xf32>
    %285 = arith.truncf %239 : vector<16x128xf32> to vector<16x128xbf16>
    %c0_119 = arith.constant 0 : index
    %c0_120 = arith.constant 0 : index
    %c0_121 = arith.constant 0 : index
    %286 = vector.load %arg3[%c0_119, %c0_120, %c0_121] : memref<2x128x512xbf16, #tpu.memory_space<vmem>>, vector<1x128x512xbf16>
    %287 = vector.shape_cast %286 : vector<1x128x512xbf16> to vector<128x512xbf16>
    %cst_122 = arith.constant dense<0.000000e+00> : vector<16x512xf32>
    %288 = tpu.matmul %285, %287, %cst_122 {dimension_numbers = #tpu.dot_dimension_numbers<[1], [0], [0], [1], [0, 0, 1, 1], [], []>} : vector<16x128xbf16>, vector<128x512xbf16>, vector<16x512xf32> -> vector<16x512xf32>
    %289 = arith.addf %284, %288 : vector<16x512xf32>
    %290 = arith.index_cast %281 : i32 to index
    %c0_123 = arith.constant 0 : index
    %c0_124 = arith.constant 0 : index
    %291 = vector.load %arg14[%290, %c0_123, %c0_124] : memref<8x16x512xf32, #tpu.memory_space<vmem>>, vector<1x16x512xf32>
    %292 = vector.shape_cast %291 : vector<1x16x512xf32> to vector<16x512xf32>
    %293 = arith.truncf %270 : vector<16x128xf32> to vector<16x128xbf16>
    %c1_125 = arith.constant 1 : index
    %c0_126 = arith.constant 0 : index
    %c0_127 = arith.constant 0 : index
    %294 = vector.load %arg3[%c1_125, %c0_126, %c0_127] : memref<2x128x512xbf16, #tpu.memory_space<vmem>>, vector<1x128x512xbf16>
    %295 = vector.shape_cast %294 : vector<1x128x512xbf16> to vector<128x512xbf16>
    %cst_128 = arith.constant dense<0.000000e+00> : vector<16x512xf32>
    %296 = tpu.matmul %293, %295, %cst_128 {dimension_numbers = #tpu.dot_dimension_numbers<[1], [0], [0], [1], [0, 0, 1, 1], [], []>} : vector<16x128xbf16>, vector<128x512xbf16>, vector<16x512xf32> -> vector<16x512xf32>
    %297 = arith.addf %292, %296 : vector<16x512xf32>
    %298 = vector.extract_strided_slice %289 {offsets = [0, 0], sizes = [16, 128], strides = [1, 1]} : vector<16x512xf32> to vector<16x128xf32>
    %cst_129 = arith.constant 5.000000e-01 : f32
    %299 = vector.broadcast %cst_129 : f32 to vector<16x128xf32>
    %300 = arith.mulf %299, %298 : vector<16x128xf32>
    %301 = math.tanh %300 : vector<16x128xf32>
    %cst_130 = arith.constant 5.000000e-01 : f32
    %302 = vector.broadcast %cst_130 : f32 to vector<16x128xf32>
    %303 = arith.mulf %302, %301 : vector<16x128xf32>
    %cst_131 = arith.constant 5.000000e-01 : f32
    %304 = vector.broadcast %cst_131 : f32 to vector<16x128xf32>
    %305 = arith.addf %303, %304 : vector<16x128xf32>
    %306 = vector.extract_strided_slice %289 {offsets = [0, 128], sizes = [16, 128], strides = [1, 1]} : vector<16x512xf32> to vector<16x128xf32>
    %cst_132 = arith.constant 5.000000e-01 : f32
    %307 = vector.broadcast %cst_132 : f32 to vector<16x128xf32>
    %308 = arith.mulf %307, %306 : vector<16x128xf32>
    %309 = math.tanh %308 : vector<16x128xf32>
    %cst_133 = arith.constant 5.000000e-01 : f32
    %310 = vector.broadcast %cst_133 : f32 to vector<16x128xf32>
    %311 = arith.mulf %310, %309 : vector<16x128xf32>
    %cst_134 = arith.constant 5.000000e-01 : f32
    %312 = vector.broadcast %cst_134 : f32 to vector<16x128xf32>
    %313 = arith.addf %311, %312 : vector<16x128xf32>
    %314 = vector.extract_strided_slice %289 {offsets = [0, 256], sizes = [16, 128], strides = [1, 1]} : vector<16x512xf32> to vector<16x128xf32>
    %315 = math.tanh %314 : vector<16x128xf32>
    %316 = vector.extract_strided_slice %289 {offsets = [0, 384], sizes = [16, 128], strides = [1, 1]} : vector<16x512xf32> to vector<16x128xf32>
    %cst_135 = arith.constant 5.000000e-01 : f32
    %317 = vector.broadcast %cst_135 : f32 to vector<16x128xf32>
    %318 = arith.mulf %317, %316 : vector<16x128xf32>
    %319 = math.tanh %318 : vector<16x128xf32>
    %cst_136 = arith.constant 5.000000e-01 : f32
    %320 = vector.broadcast %cst_136 : f32 to vector<16x128xf32>
    %321 = arith.mulf %320, %319 : vector<16x128xf32>
    %cst_137 = arith.constant 5.000000e-01 : f32
    %322 = vector.broadcast %cst_137 : f32 to vector<16x128xf32>
    %323 = arith.addf %321, %322 : vector<16x128xf32>
    %324 = arith.mulf %313, %237 : vector<16x128xf32>
    %325 = arith.mulf %305, %315 : vector<16x128xf32>
    %326 = arith.addf %324, %325 : vector<16x128xf32>
    %327 = math.tanh %326 : vector<16x128xf32>
    %328 = arith.mulf %323, %327 : vector<16x128xf32>
    %329 = vector.extract_strided_slice %297 {offsets = [0, 0], sizes = [16, 128], strides = [1, 1]} : vector<16x512xf32> to vector<16x128xf32>
    %cst_138 = arith.constant 5.000000e-01 : f32
    %330 = vector.broadcast %cst_138 : f32 to vector<16x128xf32>
    %331 = arith.mulf %330, %329 : vector<16x128xf32>
    %332 = math.tanh %331 : vector<16x128xf32>
    %cst_139 = arith.constant 5.000000e-01 : f32
    %333 = vector.broadcast %cst_139 : f32 to vector<16x128xf32>
    %334 = arith.mulf %333, %332 : vector<16x128xf32>
    %cst_140 = arith.constant 5.000000e-01 : f32
    %335 = vector.broadcast %cst_140 : f32 to vector<16x128xf32>
    %336 = arith.addf %334, %335 : vector<16x128xf32>
    %337 = vector.extract_strided_slice %297 {offsets = [0, 128], sizes = [16, 128], strides = [1, 1]} : vector<16x512xf32> to vector<16x128xf32>
    %cst_141 = arith.constant 5.000000e-01 : f32
    %338 = vector.broadcast %cst_141 : f32 to vector<16x128xf32>
    %339 = arith.mulf %338, %337 : vector<16x128xf32>
    %340 = math.tanh %339 : vector<16x128xf32>
    %cst_142 = arith.constant 5.000000e-01 : f32
    %341 = vector.broadcast %cst_142 : f32 to vector<16x128xf32>
    %342 = arith.mulf %341, %340 : vector<16x128xf32>
    %cst_143 = arith.constant 5.000000e-01 : f32
    %343 = vector.broadcast %cst_143 : f32 to vector<16x128xf32>
    %344 = arith.addf %342, %343 : vector<16x128xf32>
    %345 = vector.extract_strided_slice %297 {offsets = [0, 256], sizes = [16, 128], strides = [1, 1]} : vector<16x512xf32> to vector<16x128xf32>
    %346 = math.tanh %345 : vector<16x128xf32>
    %347 = vector.extract_strided_slice %297 {offsets = [0, 384], sizes = [16, 128], strides = [1, 1]} : vector<16x512xf32> to vector<16x128xf32>
    %cst_144 = arith.constant 5.000000e-01 : f32
    %348 = vector.broadcast %cst_144 : f32 to vector<16x128xf32>
    %349 = arith.mulf %348, %347 : vector<16x128xf32>
    %350 = math.tanh %349 : vector<16x128xf32>
    %cst_145 = arith.constant 5.000000e-01 : f32
    %351 = vector.broadcast %cst_145 : f32 to vector<16x128xf32>
    %352 = arith.mulf %351, %350 : vector<16x128xf32>
    %cst_146 = arith.constant 5.000000e-01 : f32
    %353 = vector.broadcast %cst_146 : f32 to vector<16x128xf32>
    %354 = arith.addf %352, %353 : vector<16x128xf32>
    %355 = arith.mulf %344, %268 : vector<16x128xf32>
    %356 = arith.mulf %336, %346 : vector<16x128xf32>
    %357 = arith.addf %355, %356 : vector<16x128xf32>
    %358 = math.tanh %357 : vector<16x128xf32>
    %359 = arith.mulf %354, %358 : vector<16x128xf32>
    %360 = arith.truncf %328 : vector<16x128xf32> to vector<16x128xbf16>
    %361 = arith.index_cast %c3_i32 : i32 to index
    %c0_147 = arith.constant 0 : index
    %c0_148 = arith.constant 0 : index
    %362 = vector.load %arg11[%361, %c0_147, %c0_148] : memref<8x16x128xbf16, #tpu.memory_space<vmem>>, vector<1x16x128xbf16>
    %363 = vector.shape_cast %362 : vector<1x16x128xbf16> to vector<16x128xbf16>
    %364 = vector.shape_cast %360 : vector<16x128xbf16> to vector<1x16x128xbf16>
    tpu.vector_store %arg11[%361, %c0_147, %c0_148], %364 {strides = array<i32>} : memref<8x16x128xbf16, #tpu.memory_space<vmem>>, vector<1x16x128xbf16>,
    %365 = arith.truncf %359 : vector<16x128xf32> to vector<16x128xbf16>
    %366 = arith.index_cast %281 : i32 to index
    %c0_149 = arith.constant 0 : index
    %c0_150 = arith.constant 0 : index
    %367 = vector.load %arg12[%366, %c0_149, %c0_150] : memref<8x16x128xbf16, #tpu.memory_space<vmem>>, vector<1x16x128xbf16>
    %368 = vector.shape_cast %367 : vector<1x16x128xbf16> to vector<16x128xbf16>
    %369 = vector.shape_cast %365 : vector<16x128xbf16> to vector<1x16x128xbf16>
    tpu.vector_store %arg12[%366, %c0_149, %c0_150], %369 {strides = array<i32>} : memref<8x16x128xbf16, #tpu.memory_space<vmem>>, vector<1x16x128xbf16>,
    %c4_i32 = arith.constant 4 : i32
    %c7_i32_151 = arith.constant 7 : i32
    %370 = arith.subi %c7_i32_151, %c4_i32 : i32
    %371 = arith.index_cast %c4_i32 : i32 to index
    %c0_152 = arith.constant 0 : index
    %c0_153 = arith.constant 0 : index
    %372 = vector.load %arg13[%371, %c0_152, %c0_153] : memref<8x16x512xf32, #tpu.memory_space<vmem>>, vector<1x16x512xf32>
    %373 = vector.shape_cast %372 : vector<1x16x512xf32> to vector<16x512xf32>
    %374 = arith.truncf %328 : vector<16x128xf32> to vector<16x128xbf16>
    %c0_154 = arith.constant 0 : index
    %c0_155 = arith.constant 0 : index
    %c0_156 = arith.constant 0 : index
    %375 = vector.load %arg3[%c0_154, %c0_155, %c0_156] : memref<2x128x512xbf16, #tpu.memory_space<vmem>>, vector<1x128x512xbf16>
    %376 = vector.shape_cast %375 : vector<1x128x512xbf16> to vector<128x512xbf16>
    %cst_157 = arith.constant dense<0.000000e+00> : vector<16x512xf32>
    %377 = tpu.matmul %374, %376, %cst_157 {dimension_numbers = #tpu.dot_dimension_numbers<[1], [0], [0], [1], [0, 0, 1, 1], [], []>} : vector<16x128xbf16>, vector<128x512xbf16>, vector<16x512xf32> -> vector<16x512xf32>
    %378 = arith.addf %373, %377 : vector<16x512xf32>
    %379 = arith.index_cast %370 : i32 to index
    %c0_158 = arith.constant 0 : index
    %c0_159 = arith.constant 0 : index
    %380 = vector.load %arg14[%379, %c0_158, %c0_159] : memref<8x16x512xf32, #tpu.memory_space<vmem>>, vector<1x16x512xf32>
    %381 = vector.shape_cast %380 : vector<1x16x512xf32> to vector<16x512xf32>
    %382 = arith.truncf %359 : vector<16x128xf32> to vector<16x128xbf16>
    %c1_160 = arith.constant 1 : index
    %c0_161 = arith.constant 0 : index
    %c0_162 = arith.constant 0 : index
    %383 = vector.load %arg3[%c1_160, %c0_161, %c0_162] : memref<2x128x512xbf16, #tpu.memory_space<vmem>>, vector<1x128x512xbf16>
    %384 = vector.shape_cast %383 : vector<1x128x512xbf16> to vector<128x512xbf16>
    %cst_163 = arith.constant dense<0.000000e+00> : vector<16x512xf32>
    %385 = tpu.matmul %382, %384, %cst_163 {dimension_numbers = #tpu.dot_dimension_numbers<[1], [0], [0], [1], [0, 0, 1, 1], [], []>} : vector<16x128xbf16>, vector<128x512xbf16>, vector<16x512xf32> -> vector<16x512xf32>
    %386 = arith.addf %381, %385 : vector<16x512xf32>
    %387 = vector.extract_strided_slice %378 {offsets = [0, 0], sizes = [16, 128], strides = [1, 1]} : vector<16x512xf32> to vector<16x128xf32>
    %cst_164 = arith.constant 5.000000e-01 : f32
    %388 = vector.broadcast %cst_164 : f32 to vector<16x128xf32>
    %389 = arith.mulf %388, %387 : vector<16x128xf32>
    %390 = math.tanh %389 : vector<16x128xf32>
    %cst_165 = arith.constant 5.000000e-01 : f32
    %391 = vector.broadcast %cst_165 : f32 to vector<16x128xf32>
    %392 = arith.mulf %391, %390 : vector<16x128xf32>
    %cst_166 = arith.constant 5.000000e-01 : f32
    %393 = vector.broadcast %cst_166 : f32 to vector<16x128xf32>
    %394 = arith.addf %392, %393 : vector<16x128xf32>
    %395 = vector.extract_strided_slice %378 {offsets = [0, 128], sizes = [16, 128], strides = [1, 1]} : vector<16x512xf32> to vector<16x128xf32>
    %cst_167 = arith.constant 5.000000e-01 : f32
    %396 = vector.broadcast %cst_167 : f32 to vector<16x128xf32>
    %397 = arith.mulf %396, %395 : vector<16x128xf32>
    %398 = math.tanh %397 : vector<16x128xf32>
    %cst_168 = arith.constant 5.000000e-01 : f32
    %399 = vector.broadcast %cst_168 : f32 to vector<16x128xf32>
    %400 = arith.mulf %399, %398 : vector<16x128xf32>
    %cst_169 = arith.constant 5.000000e-01 : f32
    %401 = vector.broadcast %cst_169 : f32 to vector<16x128xf32>
    %402 = arith.addf %400, %401 : vector<16x128xf32>
    %403 = vector.extract_strided_slice %378 {offsets = [0, 256], sizes = [16, 128], strides = [1, 1]} : vector<16x512xf32> to vector<16x128xf32>
    %404 = math.tanh %403 : vector<16x128xf32>
    %405 = vector.extract_strided_slice %378 {offsets = [0, 384], sizes = [16, 128], strides = [1, 1]} : vector<16x512xf32> to vector<16x128xf32>
    %cst_170 = arith.constant 5.000000e-01 : f32
    %406 = vector.broadcast %cst_170 : f32 to vector<16x128xf32>
    %407 = arith.mulf %406, %405 : vector<16x128xf32>
    %408 = math.tanh %407 : vector<16x128xf32>
    %cst_171 = arith.constant 5.000000e-01 : f32
    %409 = vector.broadcast %cst_171 : f32 to vector<16x128xf32>
    %410 = arith.mulf %409, %408 : vector<16x128xf32>
    %cst_172 = arith.constant 5.000000e-01 : f32
    %411 = vector.broadcast %cst_172 : f32 to vector<16x128xf32>
    %412 = arith.addf %410, %411 : vector<16x128xf32>
    %413 = arith.mulf %402, %326 : vector<16x128xf32>
    %414 = arith.mulf %394, %404 : vector<16x128xf32>
    %415 = arith.addf %413, %414 : vector<16x128xf32>
    %416 = math.tanh %415 : vector<16x128xf32>
    %417 = arith.mulf %412, %416 : vector<16x128xf32>
    %418 = vector.extract_strided_slice %386 {offsets = [0, 0], sizes = [16, 128], strides = [1, 1]} : vector<16x512xf32> to vector<16x128xf32>
    %cst_173 = arith.constant 5.000000e-01 : f32
    %419 = vector.broadcast %cst_173 : f32 to vector<16x128xf32>
    %420 = arith.mulf %419, %418 : vector<16x128xf32>
    %421 = math.tanh %420 : vector<16x128xf32>
    %cst_174 = arith.constant 5.000000e-01 : f32
    %422 = vector.broadcast %cst_174 : f32 to vector<16x128xf32>
    %423 = arith.mulf %422, %421 : vector<16x128xf32>
    %cst_175 = arith.constant 5.000000e-01 : f32
    %424 = vector.broadcast %cst_175 : f32 to vector<16x128xf32>
    %425 = arith.addf %423, %424 : vector<16x128xf32>
    %426 = vector.extract_strided_slice %386 {offsets = [0, 128], sizes = [16, 128], strides = [1, 1]} : vector<16x512xf32> to vector<16x128xf32>
    %cst_176 = arith.constant 5.000000e-01 : f32
    %427 = vector.broadcast %cst_176 : f32 to vector<16x128xf32>
    %428 = arith.mulf %427, %426 : vector<16x128xf32>
    %429 = math.tanh %428 : vector<16x128xf32>
    %cst_177 = arith.constant 5.000000e-01 : f32
    %430 = vector.broadcast %cst_177 : f32 to vector<16x128xf32>
    %431 = arith.mulf %430, %429 : vector<16x128xf32>
    %cst_178 = arith.constant 5.000000e-01 : f32
    %432 = vector.broadcast %cst_178 : f32 to vector<16x128xf32>
    %433 = arith.addf %431, %432 : vector<16x128xf32>
    %434 = vector.extract_strided_slice %386 {offsets = [0, 256], sizes = [16, 128], strides = [1, 1]} : vector<16x512xf32> to vector<16x128xf32>
    %435 = math.tanh %434 : vector<16x128xf32>
    %436 = vector.extract_strided_slice %386 {offsets = [0, 384], sizes = [16, 128], strides = [1, 1]} : vector<16x512xf32> to vector<16x128xf32>
    %cst_179 = arith.constant 5.000000e-01 : f32
    %437 = vector.broadcast %cst_179 : f32 to vector<16x128xf32>
    %438 = arith.mulf %437, %436 : vector<16x128xf32>
    %439 = math.tanh %438 : vector<16x128xf32>
    %cst_180 = arith.constant 5.000000e-01 : f32
    %440 = vector.broadcast %cst_180 : f32 to vector<16x128xf32>
    %441 = arith.mulf %440, %439 : vector<16x128xf32>
    %cst_181 = arith.constant 5.000000e-01 : f32
    %442 = vector.broadcast %cst_181 : f32 to vector<16x128xf32>
    %443 = arith.addf %441, %442 : vector<16x128xf32>
    %444 = arith.mulf %433, %357 : vector<16x128xf32>
    %445 = arith.mulf %425, %435 : vector<16x128xf32>
    %446 = arith.addf %444, %445 : vector<16x128xf32>
    %447 = math.tanh %446 : vector<16x128xf32>
    %448 = arith.mulf %443, %447 : vector<16x128xf32>
    %449 = arith.truncf %417 : vector<16x128xf32> to vector<16x128xbf16>
    %450 = arith.index_cast %c4_i32 : i32 to index
    %c0_182 = arith.constant 0 : index
    %c0_183 = arith.constant 0 : index
    %451 = vector.load %arg11[%450, %c0_182, %c0_183] : memref<8x16x128xbf16, #tpu.memory_space<vmem>>, vector<1x16x128xbf16>
    %452 = vector.shape_cast %451 : vector<1x16x128xbf16> to vector<16x128xbf16>
    %453 = vector.shape_cast %449 : vector<16x128xbf16> to vector<1x16x128xbf16>
    tpu.vector_store %arg11[%450, %c0_182, %c0_183], %453 {strides = array<i32>} : memref<8x16x128xbf16, #tpu.memory_space<vmem>>, vector<1x16x128xbf16>,
    %454 = arith.truncf %448 : vector<16x128xf32> to vector<16x128xbf16>
    %455 = arith.index_cast %370 : i32 to index
    %c0_184 = arith.constant 0 : index
    %c0_185 = arith.constant 0 : index
    %456 = vector.load %arg12[%455, %c0_184, %c0_185] : memref<8x16x128xbf16, #tpu.memory_space<vmem>>, vector<1x16x128xbf16>
    %457 = vector.shape_cast %456 : vector<1x16x128xbf16> to vector<16x128xbf16>
    %458 = vector.shape_cast %454 : vector<16x128xbf16> to vector<1x16x128xbf16>
    tpu.vector_store %arg12[%455, %c0_184, %c0_185], %458 {strides = array<i32>} : memref<8x16x128xbf16, #tpu.memory_space<vmem>>, vector<1x16x128xbf16>,
    %c5_i32 = arith.constant 5 : i32
    %c7_i32_186 = arith.constant 7 : i32
    %459 = arith.subi %c7_i32_186, %c5_i32 : i32
    %460 = arith.index_cast %c5_i32 : i32 to index
    %c0_187 = arith.constant 0 : index
    %c0_188 = arith.constant 0 : index
    %461 = vector.load %arg13[%460, %c0_187, %c0_188] : memref<8x16x512xf32, #tpu.memory_space<vmem>>, vector<1x16x512xf32>
    %462 = vector.shape_cast %461 : vector<1x16x512xf32> to vector<16x512xf32>
    %463 = arith.truncf %417 : vector<16x128xf32> to vector<16x128xbf16>
    %c0_189 = arith.constant 0 : index
    %c0_190 = arith.constant 0 : index
    %c0_191 = arith.constant 0 : index
    %464 = vector.load %arg3[%c0_189, %c0_190, %c0_191] : memref<2x128x512xbf16, #tpu.memory_space<vmem>>, vector<1x128x512xbf16>
    %465 = vector.shape_cast %464 : vector<1x128x512xbf16> to vector<128x512xbf16>
    %cst_192 = arith.constant dense<0.000000e+00> : vector<16x512xf32>
    %466 = tpu.matmul %463, %465, %cst_192 {dimension_numbers = #tpu.dot_dimension_numbers<[1], [0], [0], [1], [0, 0, 1, 1], [], []>} : vector<16x128xbf16>, vector<128x512xbf16>, vector<16x512xf32> -> vector<16x512xf32>
    %467 = arith.addf %462, %466 : vector<16x512xf32>
    %468 = arith.index_cast %459 : i32 to index
    %c0_193 = arith.constant 0 : index
    %c0_194 = arith.constant 0 : index
    %469 = vector.load %arg14[%468, %c0_193, %c0_194] : memref<8x16x512xf32, #tpu.memory_space<vmem>>, vector<1x16x512xf32>
    %470 = vector.shape_cast %469 : vector<1x16x512xf32> to vector<16x512xf32>
    %471 = arith.truncf %448 : vector<16x128xf32> to vector<16x128xbf16>
    %c1_195 = arith.constant 1 : index
    %c0_196 = arith.constant 0 : index
    %c0_197 = arith.constant 0 : index
    %472 = vector.load %arg3[%c1_195, %c0_196, %c0_197] : memref<2x128x512xbf16, #tpu.memory_space<vmem>>, vector<1x128x512xbf16>
    %473 = vector.shape_cast %472 : vector<1x128x512xbf16> to vector<128x512xbf16>
    %cst_198 = arith.constant dense<0.000000e+00> : vector<16x512xf32>
    %474 = tpu.matmul %471, %473, %cst_198 {dimension_numbers = #tpu.dot_dimension_numbers<[1], [0], [0], [1], [0, 0, 1, 1], [], []>} : vector<16x128xbf16>, vector<128x512xbf16>, vector<16x512xf32> -> vector<16x512xf32>
    %475 = arith.addf %470, %474 : vector<16x512xf32>
    %476 = vector.extract_strided_slice %467 {offsets = [0, 0], sizes = [16, 128], strides = [1, 1]} : vector<16x512xf32> to vector<16x128xf32>
    %cst_199 = arith.constant 5.000000e-01 : f32
    %477 = vector.broadcast %cst_199 : f32 to vector<16x128xf32>
    %478 = arith.mulf %477, %476 : vector<16x128xf32>
    %479 = math.tanh %478 : vector<16x128xf32>
    %cst_200 = arith.constant 5.000000e-01 : f32
    %480 = vector.broadcast %cst_200 : f32 to vector<16x128xf32>
    %481 = arith.mulf %480, %479 : vector<16x128xf32>
    %cst_201 = arith.constant 5.000000e-01 : f32
    %482 = vector.broadcast %cst_201 : f32 to vector<16x128xf32>
    %483 = arith.addf %481, %482 : vector<16x128xf32>
    %484 = vector.extract_strided_slice %467 {offsets = [0, 128], sizes = [16, 128], strides = [1, 1]} : vector<16x512xf32> to vector<16x128xf32>
    %cst_202 = arith.constant 5.000000e-01 : f32
    %485 = vector.broadcast %cst_202 : f32 to vector<16x128xf32>
    %486 = arith.mulf %485, %484 : vector<16x128xf32>
    %487 = math.tanh %486 : vector<16x128xf32>
    %cst_203 = arith.constant 5.000000e-01 : f32
    %488 = vector.broadcast %cst_203 : f32 to vector<16x128xf32>
    %489 = arith.mulf %488, %487 : vector<16x128xf32>
    %cst_204 = arith.constant 5.000000e-01 : f32
    %490 = vector.broadcast %cst_204 : f32 to vector<16x128xf32>
    %491 = arith.addf %489, %490 : vector<16x128xf32>
    %492 = vector.extract_strided_slice %467 {offsets = [0, 256], sizes = [16, 128], strides = [1, 1]} : vector<16x512xf32> to vector<16x128xf32>
    %493 = math.tanh %492 : vector<16x128xf32>
    %494 = vector.extract_strided_slice %467 {offsets = [0, 384], sizes = [16, 128], strides = [1, 1]} : vector<16x512xf32> to vector<16x128xf32>
    %cst_205 = arith.constant 5.000000e-01 : f32
    %495 = vector.broadcast %cst_205 : f32 to vector<16x128xf32>
    %496 = arith.mulf %495, %494 : vector<16x128xf32>
    %497 = math.tanh %496 : vector<16x128xf32>
    %cst_206 = arith.constant 5.000000e-01 : f32
    %498 = vector.broadcast %cst_206 : f32 to vector<16x128xf32>
    %499 = arith.mulf %498, %497 : vector<16x128xf32>
    %cst_207 = arith.constant 5.000000e-01 : f32
    %500 = vector.broadcast %cst_207 : f32 to vector<16x128xf32>
    %501 = arith.addf %499, %500 : vector<16x128xf32>
    %502 = arith.mulf %491, %415 : vector<16x128xf32>
    %503 = arith.mulf %483, %493 : vector<16x128xf32>
    %504 = arith.addf %502, %503 : vector<16x128xf32>
    %505 = math.tanh %504 : vector<16x128xf32>
    %506 = arith.mulf %501, %505 : vector<16x128xf32>
    %507 = vector.extract_strided_slice %475 {offsets = [0, 0], sizes = [16, 128], strides = [1, 1]} : vector<16x512xf32> to vector<16x128xf32>
    %cst_208 = arith.constant 5.000000e-01 : f32
    %508 = vector.broadcast %cst_208 : f32 to vector<16x128xf32>
    %509 = arith.mulf %508, %507 : vector<16x128xf32>
    %510 = math.tanh %509 : vector<16x128xf32>
    %cst_209 = arith.constant 5.000000e-01 : f32
    %511 = vector.broadcast %cst_209 : f32 to vector<16x128xf32>
    %512 = arith.mulf %511, %510 : vector<16x128xf32>
    %cst_210 = arith.constant 5.000000e-01 : f32
    %513 = vector.broadcast %cst_210 : f32 to vector<16x128xf32>
    %514 = arith.addf %512, %513 : vector<16x128xf32>
    %515 = vector.extract_strided_slice %475 {offsets = [0, 128], sizes = [16, 128], strides = [1, 1]} : vector<16x512xf32> to vector<16x128xf32>
    %cst_211 = arith.constant 5.000000e-01 : f32
    %516 = vector.broadcast %cst_211 : f32 to vector<16x128xf32>
    %517 = arith.mulf %516, %515 : vector<16x128xf32>
    %518 = math.tanh %517 : vector<16x128xf32>
    %cst_212 = arith.constant 5.000000e-01 : f32
    %519 = vector.broadcast %cst_212 : f32 to vector<16x128xf32>
    %520 = arith.mulf %519, %518 : vector<16x128xf32>
    %cst_213 = arith.constant 5.000000e-01 : f32
    %521 = vector.broadcast %cst_213 : f32 to vector<16x128xf32>
    %522 = arith.addf %520, %521 : vector<16x128xf32>
    %523 = vector.extract_strided_slice %475 {offsets = [0, 256], sizes = [16, 128], strides = [1, 1]} : vector<16x512xf32> to vector<16x128xf32>
    %524 = math.tanh %523 : vector<16x128xf32>
    %525 = vector.extract_strided_slice %475 {offsets = [0, 384], sizes = [16, 128], strides = [1, 1]} : vector<16x512xf32> to vector<16x128xf32>
    %cst_214 = arith.constant 5.000000e-01 : f32
    %526 = vector.broadcast %cst_214 : f32 to vector<16x128xf32>
    %527 = arith.mulf %526, %525 : vector<16x128xf32>
    %528 = math.tanh %527 : vector<16x128xf32>
    %cst_215 = arith.constant 5.000000e-01 : f32
    %529 = vector.broadcast %cst_215 : f32 to vector<16x128xf32>
    %530 = arith.mulf %529, %528 : vector<16x128xf32>
    %cst_216 = arith.constant 5.000000e-01 : f32
    %531 = vector.broadcast %cst_216 : f32 to vector<16x128xf32>
    %532 = arith.addf %530, %531 : vector<16x128xf32>
    %533 = arith.mulf %522, %446 : vector<16x128xf32>
    %534 = arith.mulf %514, %524 : vector<16x128xf32>
    %535 = arith.addf %533, %534 : vector<16x128xf32>
    %536 = math.tanh %535 : vector<16x128xf32>
    %537 = arith.mulf %532, %536 : vector<16x128xf32>
    %538 = arith.truncf %506 : vector<16x128xf32> to vector<16x128xbf16>
    %539 = arith.index_cast %c5_i32 : i32 to index
    %c0_217 = arith.constant 0 : index
    %c0_218 = arith.constant 0 : index
    %540 = vector.load %arg11[%539, %c0_217, %c0_218] : memref<8x16x128xbf16, #tpu.memory_space<vmem>>, vector<1x16x128xbf16>
    %541 = vector.shape_cast %540 : vector<1x16x128xbf16> to vector<16x128xbf16>
    %542 = vector.shape_cast %538 : vector<16x128xbf16> to vector<1x16x128xbf16>
    tpu.vector_store %arg11[%539, %c0_217, %c0_218], %542 {strides = array<i32>} : memref<8x16x128xbf16, #tpu.memory_space<vmem>>, vector<1x16x128xbf16>,
    %543 = arith.truncf %537 : vector<16x128xf32> to vector<16x128xbf16>
    %544 = arith.index_cast %459 : i32 to index
    %c0_219 = arith.constant 0 : index
    %c0_220 = arith.constant 0 : index
    %545 = vector.load %arg12[%544, %c0_219, %c0_220] : memref<8x16x128xbf16, #tpu.memory_space<vmem>>, vector<1x16x128xbf16>
    %546 = vector.shape_cast %545 : vector<1x16x128xbf16> to vector<16x128xbf16>
    %547 = vector.shape_cast %543 : vector<16x128xbf16> to vector<1x16x128xbf16>
    tpu.vector_store %arg12[%544, %c0_219, %c0_220], %547 {strides = array<i32>} : memref<8x16x128xbf16, #tpu.memory_space<vmem>>, vector<1x16x128xbf16>,
    %c6_i32 = arith.constant 6 : i32
    %c7_i32_221 = arith.constant 7 : i32
    %548 = arith.subi %c7_i32_221, %c6_i32 : i32
    %549 = arith.index_cast %c6_i32 : i32 to index
    %c0_222 = arith.constant 0 : index
    %c0_223 = arith.constant 0 : index
    %550 = vector.load %arg13[%549, %c0_222, %c0_223] : memref<8x16x512xf32, #tpu.memory_space<vmem>>, vector<1x16x512xf32>
    %551 = vector.shape_cast %550 : vector<1x16x512xf32> to vector<16x512xf32>
    %552 = arith.truncf %506 : vector<16x128xf32> to vector<16x128xbf16>
    %c0_224 = arith.constant 0 : index
    %c0_225 = arith.constant 0 : index
    %c0_226 = arith.constant 0 : index
    %553 = vector.load %arg3[%c0_224, %c0_225, %c0_226] : memref<2x128x512xbf16, #tpu.memory_space<vmem>>, vector<1x128x512xbf16>
    %554 = vector.shape_cast %553 : vector<1x128x512xbf16> to vector<128x512xbf16>
    %cst_227 = arith.constant dense<0.000000e+00> : vector<16x512xf32>
    %555 = tpu.matmul %552, %554, %cst_227 {dimension_numbers = #tpu.dot_dimension_numbers<[1], [0], [0], [1], [0, 0, 1, 1], [], []>} : vector<16x128xbf16>, vector<128x512xbf16>, vector<16x512xf32> -> vector<16x512xf32>
    %556 = arith.addf %551, %555 : vector<16x512xf32>
    %557 = arith.index_cast %548 : i32 to index
    %c0_228 = arith.constant 0 : index
    %c0_229 = arith.constant 0 : index
    %558 = vector.load %arg14[%557, %c0_228, %c0_229] : memref<8x16x512xf32, #tpu.memory_space<vmem>>, vector<1x16x512xf32>
    %559 = vector.shape_cast %558 : vector<1x16x512xf32> to vector<16x512xf32>
    %560 = arith.truncf %537 : vector<16x128xf32> to vector<16x128xbf16>
    %c1_230 = arith.constant 1 : index
    %c0_231 = arith.constant 0 : index
    %c0_232 = arith.constant 0 : index
    %561 = vector.load %arg3[%c1_230, %c0_231, %c0_232] : memref<2x128x512xbf16, #tpu.memory_space<vmem>>, vector<1x128x512xbf16>
    %562 = vector.shape_cast %561 : vector<1x128x512xbf16> to vector<128x512xbf16>
    %cst_233 = arith.constant dense<0.000000e+00> : vector<16x512xf32>
    %563 = tpu.matmul %560, %562, %cst_233 {dimension_numbers = #tpu.dot_dimension_numbers<[1], [0], [0], [1], [0, 0, 1, 1], [], []>} : vector<16x128xbf16>, vector<128x512xbf16>, vector<16x512xf32> -> vector<16x512xf32>
    %564 = arith.addf %559, %563 : vector<16x512xf32>
    %565 = vector.extract_strided_slice %556 {offsets = [0, 0], sizes = [16, 128], strides = [1, 1]} : vector<16x512xf32> to vector<16x128xf32>
    %cst_234 = arith.constant 5.000000e-01 : f32
    %566 = vector.broadcast %cst_234 : f32 to vector<16x128xf32>
    %567 = arith.mulf %566, %565 : vector<16x128xf32>
    %568 = math.tanh %567 : vector<16x128xf32>
    %cst_235 = arith.constant 5.000000e-01 : f32
    %569 = vector.broadcast %cst_235 : f32 to vector<16x128xf32>
    %570 = arith.mulf %569, %568 : vector<16x128xf32>
    %cst_236 = arith.constant 5.000000e-01 : f32
    %571 = vector.broadcast %cst_236 : f32 to vector<16x128xf32>
    %572 = arith.addf %570, %571 : vector<16x128xf32>
    %573 = vector.extract_strided_slice %556 {offsets = [0, 128], sizes = [16, 128], strides = [1, 1]} : vector<16x512xf32> to vector<16x128xf32>
    %cst_237 = arith.constant 5.000000e-01 : f32
    %574 = vector.broadcast %cst_237 : f32 to vector<16x128xf32>
    %575 = arith.mulf %574, %573 : vector<16x128xf32>
    %576 = math.tanh %575 : vector<16x128xf32>
    %cst_238 = arith.constant 5.000000e-01 : f32
    %577 = vector.broadcast %cst_238 : f32 to vector<16x128xf32>
    %578 = arith.mulf %577, %576 : vector<16x128xf32>
    %cst_239 = arith.constant 5.000000e-01 : f32
    %579 = vector.broadcast %cst_239 : f32 to vector<16x128xf32>
    %580 = arith.addf %578, %579 : vector<16x128xf32>
    %581 = vector.extract_strided_slice %556 {offsets = [0, 256], sizes = [16, 128], strides = [1, 1]} : vector<16x512xf32> to vector<16x128xf32>
    %582 = math.tanh %581 : vector<16x128xf32>
    %583 = vector.extract_strided_slice %556 {offsets = [0, 384], sizes = [16, 128], strides = [1, 1]} : vector<16x512xf32> to vector<16x128xf32>
    %cst_240 = arith.constant 5.000000e-01 : f32
    %584 = vector.broadcast %cst_240 : f32 to vector<16x128xf32>
    %585 = arith.mulf %584, %583 : vector<16x128xf32>
    %586 = math.tanh %585 : vector<16x128xf32>
    %cst_241 = arith.constant 5.000000e-01 : f32
    %587 = vector.broadcast %cst_241 : f32 to vector<16x128xf32>
    %588 = arith.mulf %587, %586 : vector<16x128xf32>
    %cst_242 = arith.constant 5.000000e-01 : f32
    %589 = vector.broadcast %cst_242 : f32 to vector<16x128xf32>
    %590 = arith.addf %588, %589 : vector<16x128xf32>
    %591 = arith.mulf %580, %504 : vector<16x128xf32>
    %592 = arith.mulf %572, %582 : vector<16x128xf32>
    %593 = arith.addf %591, %592 : vector<16x128xf32>
    %594 = math.tanh %593 : vector<16x128xf32>
    %595 = arith.mulf %590, %594 : vector<16x128xf32>
    %596 = vector.extract_strided_slice %564 {offsets = [0, 0], sizes = [16, 128], strides = [1, 1]} : vector<16x512xf32> to vector<16x128xf32>
    %cst_243 = arith.constant 5.000000e-01 : f32
    %597 = vector.broadcast %cst_243 : f32 to vector<16x128xf32>
    %598 = arith.mulf %597, %596 : vector<16x128xf32>
    %599 = math.tanh %598 : vector<16x128xf32>
    %cst_244 = arith.constant 5.000000e-01 : f32
    %600 = vector.broadcast %cst_244 : f32 to vector<16x128xf32>
    %601 = arith.mulf %600, %599 : vector<16x128xf32>
    %cst_245 = arith.constant 5.000000e-01 : f32
    %602 = vector.broadcast %cst_245 : f32 to vector<16x128xf32>
    %603 = arith.addf %601, %602 : vector<16x128xf32>
    %604 = vector.extract_strided_slice %564 {offsets = [0, 128], sizes = [16, 128], strides = [1, 1]} : vector<16x512xf32> to vector<16x128xf32>
    %cst_246 = arith.constant 5.000000e-01 : f32
    %605 = vector.broadcast %cst_246 : f32 to vector<16x128xf32>
    %606 = arith.mulf %605, %604 : vector<16x128xf32>
    %607 = math.tanh %606 : vector<16x128xf32>
    %cst_247 = arith.constant 5.000000e-01 : f32
    %608 = vector.broadcast %cst_247 : f32 to vector<16x128xf32>
    %609 = arith.mulf %608, %607 : vector<16x128xf32>
    %cst_248 = arith.constant 5.000000e-01 : f32
    %610 = vector.broadcast %cst_248 : f32 to vector<16x128xf32>
    %611 = arith.addf %609, %610 : vector<16x128xf32>
    %612 = vector.extract_strided_slice %564 {offsets = [0, 256], sizes = [16, 128], strides = [1, 1]} : vector<16x512xf32> to vector<16x128xf32>
    %613 = math.tanh %612 : vector<16x128xf32>
    %614 = vector.extract_strided_slice %564 {offsets = [0, 384], sizes = [16, 128], strides = [1, 1]} : vector<16x512xf32> to vector<16x128xf32>
    %cst_249 = arith.constant 5.000000e-01 : f32
    %615 = vector.broadcast %cst_249 : f32 to vector<16x128xf32>
    %616 = arith.mulf %615, %614 : vector<16x128xf32>
    %617 = math.tanh %616 : vector<16x128xf32>
    %cst_250 = arith.constant 5.000000e-01 : f32
    %618 = vector.broadcast %cst_250 : f32 to vector<16x128xf32>
    %619 = arith.mulf %618, %617 : vector<16x128xf32>
    %cst_251 = arith.constant 5.000000e-01 : f32
    %620 = vector.broadcast %cst_251 : f32 to vector<16x128xf32>
    %621 = arith.addf %619, %620 : vector<16x128xf32>
    %622 = arith.mulf %611, %535 : vector<16x128xf32>
    %623 = arith.mulf %603, %613 : vector<16x128xf32>
    %624 = arith.addf %622, %623 : vector<16x128xf32>
    %625 = math.tanh %624 : vector<16x128xf32>
    %626 = arith.mulf %621, %625 : vector<16x128xf32>
    %627 = arith.truncf %595 : vector<16x128xf32> to vector<16x128xbf16>
    %628 = arith.index_cast %c6_i32 : i32 to index
    %c0_252 = arith.constant 0 : index
    %c0_253 = arith.constant 0 : index
    %629 = vector.load %arg11[%628, %c0_252, %c0_253] : memref<8x16x128xbf16, #tpu.memory_space<vmem>>, vector<1x16x128xbf16>
    %630 = vector.shape_cast %629 : vector<1x16x128xbf16> to vector<16x128xbf16>
    %631 = vector.shape_cast %627 : vector<16x128xbf16> to vector<1x16x128xbf16>
    tpu.vector_store %arg11[%628, %c0_252, %c0_253], %631 {strides = array<i32>} : memref<8x16x128xbf16, #tpu.memory_space<vmem>>, vector<1x16x128xbf16>,
    %632 = arith.truncf %626 : vector<16x128xf32> to vector<16x128xbf16>
    %633 = arith.index_cast %548 : i32 to index
    %c0_254 = arith.constant 0 : index
    %c0_255 = arith.constant 0 : index
    %634 = vector.load %arg12[%633, %c0_254, %c0_255] : memref<8x16x128xbf16, #tpu.memory_space<vmem>>, vector<1x16x128xbf16>
    %635 = vector.shape_cast %634 : vector<1x16x128xbf16> to vector<16x128xbf16>
    %636 = vector.shape_cast %632 : vector<16x128xbf16> to vector<1x16x128xbf16>
    tpu.vector_store %arg12[%633, %c0_254, %c0_255], %636 {strides = array<i32>} : memref<8x16x128xbf16, #tpu.memory_space<vmem>>, vector<1x16x128xbf16>,
    %c7_i32_256 = arith.constant 7 : i32
    %c7_i32_257 = arith.constant 7 : i32
    %637 = arith.subi %c7_i32_257, %c7_i32_256 : i32
    %638 = arith.index_cast %c7_i32_256 : i32 to index
    %c0_258 = arith.constant 0 : index
    %c0_259 = arith.constant 0 : index
    %639 = vector.load %arg13[%638, %c0_258, %c0_259] : memref<8x16x512xf32, #tpu.memory_space<vmem>>, vector<1x16x512xf32>
    %640 = vector.shape_cast %639 : vector<1x16x512xf32> to vector<16x512xf32>
    %641 = arith.truncf %595 : vector<16x128xf32> to vector<16x128xbf16>
    %c0_260 = arith.constant 0 : index
    %c0_261 = arith.constant 0 : index
    %c0_262 = arith.constant 0 : index
    %642 = vector.load %arg3[%c0_260, %c0_261, %c0_262] : memref<2x128x512xbf16, #tpu.memory_space<vmem>>, vector<1x128x512xbf16>
    %643 = vector.shape_cast %642 : vector<1x128x512xbf16> to vector<128x512xbf16>
    %cst_263 = arith.constant dense<0.000000e+00> : vector<16x512xf32>
    %644 = tpu.matmul %641, %643, %cst_263 {dimension_numbers = #tpu.dot_dimension_numbers<[1], [0], [0], [1], [0, 0, 1, 1], [], []>} : vector<16x128xbf16>, vector<128x512xbf16>, vector<16x512xf32> -> vector<16x512xf32>
    %645 = arith.addf %640, %644 : vector<16x512xf32>
    %646 = arith.index_cast %637 : i32 to index
    %c0_264 = arith.constant 0 : index
    %c0_265 = arith.constant 0 : index
    %647 = vector.load %arg14[%646, %c0_264, %c0_265] : memref<8x16x512xf32, #tpu.memory_space<vmem>>, vector<1x16x512xf32>
    %648 = vector.shape_cast %647 : vector<1x16x512xf32> to vector<16x512xf32>
    %649 = arith.truncf %626 : vector<16x128xf32> to vector<16x128xbf16>
    %c1_266 = arith.constant 1 : index
    %c0_267 = arith.constant 0 : index
    %c0_268 = arith.constant 0 : index
    %650 = vector.load %arg3[%c1_266, %c0_267, %c0_268] : memref<2x128x512xbf16, #tpu.memory_space<vmem>>, vector<1x128x512xbf16>
    %651 = vector.shape_cast %650 : vector<1x128x512xbf16> to vector<128x512xbf16>
    %cst_269 = arith.constant dense<0.000000e+00> : vector<16x512xf32>
    %652 = tpu.matmul %649, %651, %cst_269 {dimension_numbers = #tpu.dot_dimension_numbers<[1], [0], [0], [1], [0, 0, 1, 1], [], []>} : vector<16x128xbf16>, vector<128x512xbf16>, vector<16x512xf32> -> vector<16x512xf32>
    %653 = arith.addf %648, %652 : vector<16x512xf32>
    %654 = vector.extract_strided_slice %645 {offsets = [0, 0], sizes = [16, 128], strides = [1, 1]} : vector<16x512xf32> to vector<16x128xf32>
    %cst_270 = arith.constant 5.000000e-01 : f32
    %655 = vector.broadcast %cst_270 : f32 to vector<16x128xf32>
    %656 = arith.mulf %655, %654 : vector<16x128xf32>
    %657 = math.tanh %656 : vector<16x128xf32>
    %cst_271 = arith.constant 5.000000e-01 : f32
    %658 = vector.broadcast %cst_271 : f32 to vector<16x128xf32>
    %659 = arith.mulf %658, %657 : vector<16x128xf32>
    %cst_272 = arith.constant 5.000000e-01 : f32
    %660 = vector.broadcast %cst_272 : f32 to vector<16x128xf32>
    %661 = arith.addf %659, %660 : vector<16x128xf32>
    %662 = vector.extract_strided_slice %645 {offsets = [0, 128], sizes = [16, 128], strides = [1, 1]} : vector<16x512xf32> to vector<16x128xf32>
    %cst_273 = arith.constant 5.000000e-01 : f32
    %663 = vector.broadcast %cst_273 : f32 to vector<16x128xf32>
    %664 = arith.mulf %663, %662 : vector<16x128xf32>
    %665 = math.tanh %664 : vector<16x128xf32>
    %cst_274 = arith.constant 5.000000e-01 : f32
    %666 = vector.broadcast %cst_274 : f32 to vector<16x128xf32>
    %667 = arith.mulf %666, %665 : vector<16x128xf32>
    %cst_275 = arith.constant 5.000000e-01 : f32
    %668 = vector.broadcast %cst_275 : f32 to vector<16x128xf32>
    %669 = arith.addf %667, %668 : vector<16x128xf32>
    %670 = vector.extract_strided_slice %645 {offsets = [0, 256], sizes = [16, 128], strides = [1, 1]} : vector<16x512xf32> to vector<16x128xf32>
    %671 = math.tanh %670 : vector<16x128xf32>
    %672 = vector.extract_strided_slice %645 {offsets = [0, 384], sizes = [16, 128], strides = [1, 1]} : vector<16x512xf32> to vector<16x128xf32>
    %cst_276 = arith.constant 5.000000e-01 : f32
    %673 = vector.broadcast %cst_276 : f32 to vector<16x128xf32>
    %674 = arith.mulf %673, %672 : vector<16x128xf32>
    %675 = math.tanh %674 : vector<16x128xf32>
    %cst_277 = arith.constant 5.000000e-01 : f32
    %676 = vector.broadcast %cst_277 : f32 to vector<16x128xf32>
    %677 = arith.mulf %676, %675 : vector<16x128xf32>
    %cst_278 = arith.constant 5.000000e-01 : f32
    %678 = vector.broadcast %cst_278 : f32 to vector<16x128xf32>
    %679 = arith.addf %677, %678 : vector<16x128xf32>
    %680 = arith.mulf %669, %593 : vector<16x128xf32>
    %681 = arith.mulf %661, %671 : vector<16x128xf32>
    %682 = arith.addf %680, %681 : vector<16x128xf32>
    %683 = math.tanh %682 : vector<16x128xf32>
    %684 = arith.mulf %679, %683 : vector<16x128xf32>
    %685 = vector.extract_strided_slice %653 {offsets = [0, 0], sizes = [16, 128], strides = [1, 1]} : vector<16x512xf32> to vector<16x128xf32>
    %cst_279 = arith.constant 5.000000e-01 : f32
    %686 = vector.broadcast %cst_279 : f32 to vector<16x128xf32>
    %687 = arith.mulf %686, %685 : vector<16x128xf32>
    %688 = math.tanh %687 : vector<16x128xf32>
    %cst_280 = arith.constant 5.000000e-01 : f32
    %689 = vector.broadcast %cst_280 : f32 to vector<16x128xf32>
    %690 = arith.mulf %689, %688 : vector<16x128xf32>
    %cst_281 = arith.constant 5.000000e-01 : f32
    %691 = vector.broadcast %cst_281 : f32 to vector<16x128xf32>
    %692 = arith.addf %690, %691 : vector<16x128xf32>
    %693 = vector.extract_strided_slice %653 {offsets = [0, 128], sizes = [16, 128], strides = [1, 1]} : vector<16x512xf32> to vector<16x128xf32>
    %cst_282 = arith.constant 5.000000e-01 : f32
    %694 = vector.broadcast %cst_282 : f32 to vector<16x128xf32>
    %695 = arith.mulf %694, %693 : vector<16x128xf32>
    %696 = math.tanh %695 : vector<16x128xf32>
    %cst_283 = arith.constant 5.000000e-01 : f32
    %697 = vector.broadcast %cst_283 : f32 to vector<16x128xf32>
    %698 = arith.mulf %697, %696 : vector<16x128xf32>
    %cst_284 = arith.constant 5.000000e-01 : f32
    %699 = vector.broadcast %cst_284 : f32 to vector<16x128xf32>
    %700 = arith.addf %698, %699 : vector<16x128xf32>
    %701 = vector.extract_strided_slice %653 {offsets = [0, 256], sizes = [16, 128], strides = [1, 1]} : vector<16x512xf32> to vector<16x128xf32>
    %702 = math.tanh %701 : vector<16x128xf32>
    %703 = vector.extract_strided_slice %653 {offsets = [0, 384], sizes = [16, 128], strides = [1, 1]} : vector<16x512xf32> to vector<16x128xf32>
    %cst_285 = arith.constant 5.000000e-01 : f32
    %704 = vector.broadcast %cst_285 : f32 to vector<16x128xf32>
    %705 = arith.mulf %704, %703 : vector<16x128xf32>
    %706 = math.tanh %705 : vector<16x128xf32>
    %cst_286 = arith.constant 5.000000e-01 : f32
    %707 = vector.broadcast %cst_286 : f32 to vector<16x128xf32>
    %708 = arith.mulf %707, %706 : vector<16x128xf32>
    %cst_287 = arith.constant 5.000000e-01 : f32
    %709 = vector.broadcast %cst_287 : f32 to vector<16x128xf32>
    %710 = arith.addf %708, %709 : vector<16x128xf32>
    %711 = arith.mulf %700, %624 : vector<16x128xf32>
    %712 = arith.mulf %692, %702 : vector<16x128xf32>
    %713 = arith.addf %711, %712 : vector<16x128xf32>
    %714 = math.tanh %713 : vector<16x128xf32>
    %715 = arith.mulf %710, %714 : vector<16x128xf32>
    %716 = arith.truncf %684 : vector<16x128xf32> to vector<16x128xbf16>
    %717 = arith.index_cast %c7_i32_256 : i32 to index
    %c0_288 = arith.constant 0 : index
    %c0_289 = arith.constant 0 : index
    %718 = vector.load %arg11[%717, %c0_288, %c0_289] : memref<8x16x128xbf16, #tpu.memory_space<vmem>>, vector<1x16x128xbf16>
    %719 = vector.shape_cast %718 : vector<1x16x128xbf16> to vector<16x128xbf16>
    %720 = vector.shape_cast %716 : vector<16x128xbf16> to vector<1x16x128xbf16>
    tpu.vector_store %arg11[%717, %c0_288, %c0_289], %720 {strides = array<i32>} : memref<8x16x128xbf16, #tpu.memory_space<vmem>>, vector<1x16x128xbf16>,
    %721 = arith.truncf %715 : vector<16x128xf32> to vector<16x128xbf16>
    %722 = arith.index_cast %637 : i32 to index
    %c0_290 = arith.constant 0 : index
    %c0_291 = arith.constant 0 : index
    %723 = vector.load %arg12[%722, %c0_290, %c0_291] : memref<8x16x128xbf16, #tpu.memory_space<vmem>>, vector<1x16x128xbf16>
    %724 = vector.shape_cast %723 : vector<1x16x128xbf16> to vector<16x128xbf16>
    %725 = vector.shape_cast %721 : vector<16x128xbf16> to vector<1x16x128xbf16>
    tpu.vector_store %arg12[%722, %c0_290, %c0_291], %725 {strides = array<i32>} : memref<8x16x128xbf16, #tpu.memory_space<vmem>>, vector<1x16x128xbf16>,
    %c8_i32 = arith.constant 8 : i32
    %c0_292 = arith.constant 0 : index
    %c0_293 = arith.constant 0 : index
    %c0_294 = arith.constant 0 : index
    %726 = vector.load %arg11[%c0_292, %c0_293, %c0_294] : memref<8x16x128xbf16, #tpu.memory_space<vmem>>, vector<8x16x128xbf16>
    %727 = vector.shape_cast %726 : vector<8x16x128xbf16> to vector<128x128xbf16>
    %c0_295 = arith.constant 0 : index
    %c0_296 = arith.constant 0 : index
    %c0_297 = arith.constant 0 : index
    %728 = vector.load %arg12[%c0_295, %c0_296, %c0_297] : memref<8x16x128xbf16, #tpu.memory_space<vmem>>, vector<8x16x128xbf16>
    %729 = vector.shape_cast %728 : vector<8x16x128xbf16> to vector<128x128xbf16>
    %c0_298 = arith.constant 0 : index
    %c0_299 = arith.constant 0 : index
    %730 = vector.load %arg5[%c0_298, %c0_299] : memref<256x1024xbf16, #tpu.memory_space<vmem>>, vector<128x1024xbf16>
    %cst_300 = arith.constant dense<0.000000e+00> : vector<128x1024xf32>
    %731 = tpu.matmul %727, %730, %cst_300 {dimension_numbers = #tpu.dot_dimension_numbers<[1], [0], [0], [1], [0, 0, 1, 1], [], []>} : vector<128x128xbf16>, vector<128x1024xbf16>, vector<128x1024xf32> -> vector<128x1024xf32>
    %c128 = arith.constant 128 : index
    %c0_301 = arith.constant 0 : index
    %732 = vector.load %arg5[%c128, %c0_301] : memref<256x1024xbf16, #tpu.memory_space<vmem>>, vector<128x1024xbf16>
    %cst_302 = arith.constant dense<0.000000e+00> : vector<128x1024xf32>
    %733 = tpu.matmul %729, %732, %cst_302 {dimension_numbers = #tpu.dot_dimension_numbers<[1], [0], [0], [1], [0, 0, 1, 1], [], []>} : vector<128x128xbf16>, vector<128x1024xbf16>, vector<128x1024xf32> -> vector<128x1024xf32>
    %734 = arith.addf %731, %733 : vector<128x1024xf32>
    %c0_303 = arith.constant 0 : index
    %c0_304 = arith.constant 0 : index
    %735 = vector.load %arg7[%c0_303, %c0_304] : memref<1x1024xf32, #tpu.memory_space<vmem>>, vector<1x1024xf32>
    %736 = vector.broadcast %735 : vector<1x1024xf32> to vector<128x1024xf32>
    %737 = arith.addf %734, %736 : vector<128x1024xf32>
    %738 = vector.extract_strided_slice %737 {offsets = [0, 0], sizes = [128, 512], strides = [1, 1]} : vector<128x1024xf32> to vector<128x512xf32>
    %739 = vector.shape_cast %738 : vector<128x512xf32> to vector<8x16x512xf32>
    %c0_305 = arith.constant 0 : index
    %c0_306 = arith.constant 0 : index
    %c0_307 = arith.constant 0 : index
    %740 = vector.load %arg13[%c0_305, %c0_306, %c0_307] : memref<8x16x512xf32, #tpu.memory_space<vmem>>, vector<8x16x512xf32>
    tpu.vector_store %arg13[%c0_305, %c0_306, %c0_307], %739 {strides = array<i32>} : memref<8x16x512xf32, #tpu.memory_space<vmem>>, vector<8x16x512xf32>,
    %741 = vector.extract_strided_slice %737 {offsets = [0, 512], sizes = [128, 512], strides = [1, 1]} : vector<128x1024xf32> to vector<128x512xf32>
    %742 = vector.shape_cast %741 : vector<128x512xf32> to vector<8x16x512xf32>
    %c0_308 = arith.constant 0 : index
    %c0_309 = arith.constant 0 : index
    %c0_310 = arith.constant 0 : index
    %743 = vector.load %arg14[%c0_308, %c0_309, %c0_310] : memref<8x16x512xf32, #tpu.memory_space<vmem>>, vector<8x16x512xf32>
    tpu.vector_store %arg14[%c0_308, %c0_309, %c0_310], %742 {strides = array<i32>} : memref<8x16x512xf32, #tpu.memory_space<vmem>>, vector<8x16x512xf32>,
    %cst_311 = arith.constant 0.000000e+00 : f32
    %744 = vector.broadcast %cst_311 : f32 to vector<16x128xf32>
    %c0_i32_312 = arith.constant 0 : i32
    %c7_i32_313 = arith.constant 7 : i32
    %745 = arith.subi %c7_i32_313, %c0_i32_312 : i32
    %746 = arith.index_cast %c0_i32_312 : i32 to index
    %c0_314 = arith.constant 0 : index
    %c0_315 = arith.constant 0 : index
    %747 = vector.load %arg13[%746, %c0_314, %c0_315] : memref<8x16x512xf32, #tpu.memory_space<vmem>>, vector<1x16x512xf32>
    %748 = vector.shape_cast %747 : vector<1x16x512xf32> to vector<16x512xf32>
    %749 = arith.truncf %744 : vector<16x128xf32> to vector<16x128xbf16>
    %c0_316 = arith.constant 0 : index
    %c0_317 = arith.constant 0 : index
    %c0_318 = arith.constant 0 : index
    %750 = vector.load %arg6[%c0_316, %c0_317, %c0_318] : memref<2x128x512xbf16, #tpu.memory_space<vmem>>, vector<1x128x512xbf16>
    %751 = vector.shape_cast %750 : vector<1x128x512xbf16> to vector<128x512xbf16>
    %cst_319 = arith.constant dense<0.000000e+00> : vector<16x512xf32>
    %752 = tpu.matmul %749, %751, %cst_319 {dimension_numbers = #tpu.dot_dimension_numbers<[1], [0], [0], [1], [0, 0, 1, 1], [], []>} : vector<16x128xbf16>, vector<128x512xbf16>, vector<16x512xf32> -> vector<16x512xf32>
    %753 = arith.addf %748, %752 : vector<16x512xf32>
    %754 = arith.index_cast %745 : i32 to index
    %c0_320 = arith.constant 0 : index
    %c0_321 = arith.constant 0 : index
    %755 = vector.load %arg14[%754, %c0_320, %c0_321] : memref<8x16x512xf32, #tpu.memory_space<vmem>>, vector<1x16x512xf32>
    %756 = vector.shape_cast %755 : vector<1x16x512xf32> to vector<16x512xf32>
    %757 = arith.truncf %744 : vector<16x128xf32> to vector<16x128xbf16>
    %c1_322 = arith.constant 1 : index
    %c0_323 = arith.constant 0 : index
    %c0_324 = arith.constant 0 : index
    %758 = vector.load %arg6[%c1_322, %c0_323, %c0_324] : memref<2x128x512xbf16, #tpu.memory_space<vmem>>, vector<1x128x512xbf16>
    %759 = vector.shape_cast %758 : vector<1x128x512xbf16> to vector<128x512xbf16>
    %cst_325 = arith.constant dense<0.000000e+00> : vector<16x512xf32>
    %760 = tpu.matmul %757, %759, %cst_325 {dimension_numbers = #tpu.dot_dimension_numbers<[1], [0], [0], [1], [0, 0, 1, 1], [], []>} : vector<16x128xbf16>, vector<128x512xbf16>, vector<16x512xf32> -> vector<16x512xf32>
    %761 = arith.addf %756, %760 : vector<16x512xf32>
    %762 = vector.extract_strided_slice %753 {offsets = [0, 0], sizes = [16, 128], strides = [1, 1]} : vector<16x512xf32> to vector<16x128xf32>
    %cst_326 = arith.constant 5.000000e-01 : f32
    %763 = vector.broadcast %cst_326 : f32 to vector<16x128xf32>
    %764 = arith.mulf %763, %762 : vector<16x128xf32>
    %765 = math.tanh %764 : vector<16x128xf32>
    %cst_327 = arith.constant 5.000000e-01 : f32
    %766 = vector.broadcast %cst_327 : f32 to vector<16x128xf32>
    %767 = arith.mulf %766, %765 : vector<16x128xf32>
    %cst_328 = arith.constant 5.000000e-01 : f32
    %768 = vector.broadcast %cst_328 : f32 to vector<16x128xf32>
    %769 = arith.addf %767, %768 : vector<16x128xf32>
    %770 = vector.extract_strided_slice %753 {offsets = [0, 128], sizes = [16, 128], strides = [1, 1]} : vector<16x512xf32> to vector<16x128xf32>
    %cst_329 = arith.constant 5.000000e-01 : f32
    %771 = vector.broadcast %cst_329 : f32 to vector<16x128xf32>
    %772 = arith.mulf %771, %770 : vector<16x128xf32>
    %773 = math.tanh %772 : vector<16x128xf32>
    %cst_330 = arith.constant 5.000000e-01 : f32
    %774 = vector.broadcast %cst_330 : f32 to vector<16x128xf32>
    %775 = arith.mulf %774, %773 : vector<16x128xf32>
    %cst_331 = arith.constant 5.000000e-01 : f32
    %776 = vector.broadcast %cst_331 : f32 to vector<16x128xf32>
    %777 = arith.addf %775, %776 : vector<16x128xf32>
    %778 = vector.extract_strided_slice %753 {offsets = [0, 256], sizes = [16, 128], strides = [1, 1]} : vector<16x512xf32> to vector<16x128xf32>
    %779 = math.tanh %778 : vector<16x128xf32>
    %780 = vector.extract_strided_slice %753 {offsets = [0, 384], sizes = [16, 128], strides = [1, 1]} : vector<16x512xf32> to vector<16x128xf32>
    %cst_332 = arith.constant 5.000000e-01 : f32
    %781 = vector.broadcast %cst_332 : f32 to vector<16x128xf32>
    %782 = arith.mulf %781, %780 : vector<16x128xf32>
    %783 = math.tanh %782 : vector<16x128xf32>
    %cst_333 = arith.constant 5.000000e-01 : f32
    %784 = vector.broadcast %cst_333 : f32 to vector<16x128xf32>
    %785 = arith.mulf %784, %783 : vector<16x128xf32>
    %cst_334 = arith.constant 5.000000e-01 : f32
    %786 = vector.broadcast %cst_334 : f32 to vector<16x128xf32>
    %787 = arith.addf %785, %786 : vector<16x128xf32>
    %788 = arith.mulf %777, %744 : vector<16x128xf32>
    %789 = arith.mulf %769, %779 : vector<16x128xf32>
    %790 = arith.addf %788, %789 : vector<16x128xf32>
    %791 = math.tanh %790 : vector<16x128xf32>
    %792 = arith.mulf %787, %791 : vector<16x128xf32>
    %793 = vector.extract_strided_slice %761 {offsets = [0, 0], sizes = [16, 128], strides = [1, 1]} : vector<16x512xf32> to vector<16x128xf32>
    %cst_335 = arith.constant 5.000000e-01 : f32
    %794 = vector.broadcast %cst_335 : f32 to vector<16x128xf32>
    %795 = arith.mulf %794, %793 : vector<16x128xf32>
    %796 = math.tanh %795 : vector<16x128xf32>
    %cst_336 = arith.constant 5.000000e-01 : f32
    %797 = vector.broadcast %cst_336 : f32 to vector<16x128xf32>
    %798 = arith.mulf %797, %796 : vector<16x128xf32>
    %cst_337 = arith.constant 5.000000e-01 : f32
    %799 = vector.broadcast %cst_337 : f32 to vector<16x128xf32>
    %800 = arith.addf %798, %799 : vector<16x128xf32>
    %801 = vector.extract_strided_slice %761 {offsets = [0, 128], sizes = [16, 128], strides = [1, 1]} : vector<16x512xf32> to vector<16x128xf32>
    %cst_338 = arith.constant 5.000000e-01 : f32
    %802 = vector.broadcast %cst_338 : f32 to vector<16x128xf32>
    %803 = arith.mulf %802, %801 : vector<16x128xf32>
    %804 = math.tanh %803 : vector<16x128xf32>
    %cst_339 = arith.constant 5.000000e-01 : f32
    %805 = vector.broadcast %cst_339 : f32 to vector<16x128xf32>
    %806 = arith.mulf %805, %804 : vector<16x128xf32>
    %cst_340 = arith.constant 5.000000e-01 : f32
    %807 = vector.broadcast %cst_340 : f32 to vector<16x128xf32>
    %808 = arith.addf %806, %807 : vector<16x128xf32>
    %809 = vector.extract_strided_slice %761 {offsets = [0, 256], sizes = [16, 128], strides = [1, 1]} : vector<16x512xf32> to vector<16x128xf32>
    %810 = math.tanh %809 : vector<16x128xf32>
    %811 = vector.extract_strided_slice %761 {offsets = [0, 384], sizes = [16, 128], strides = [1, 1]} : vector<16x512xf32> to vector<16x128xf32>
    %cst_341 = arith.constant 5.000000e-01 : f32
    %812 = vector.broadcast %cst_341 : f32 to vector<16x128xf32>
    %813 = arith.mulf %812, %811 : vector<16x128xf32>
    %814 = math.tanh %813 : vector<16x128xf32>
    %cst_342 = arith.constant 5.000000e-01 : f32
    %815 = vector.broadcast %cst_342 : f32 to vector<16x128xf32>
    %816 = arith.mulf %815, %814 : vector<16x128xf32>
    %cst_343 = arith.constant 5.000000e-01 : f32
    %817 = vector.broadcast %cst_343 : f32 to vector<16x128xf32>
    %818 = arith.addf %816, %817 : vector<16x128xf32>
    %819 = arith.mulf %808, %744 : vector<16x128xf32>
    %820 = arith.mulf %800, %810 : vector<16x128xf32>
    %821 = arith.addf %819, %820 : vector<16x128xf32>
    %822 = math.tanh %821 : vector<16x128xf32>
    %823 = arith.mulf %818, %822 : vector<16x128xf32>
    %824 = arith.addf %744, %792 : vector<16x128xf32>
    %825 = arith.addf %744, %823 : vector<16x128xf32>
    %c1_i32_344 = arith.constant 1 : i32
    %c7_i32_345 = arith.constant 7 : i32
    %826 = arith.subi %c7_i32_345, %c1_i32_344 : i32
    %827 = arith.index_cast %c1_i32_344 : i32 to index
    %c0_346 = arith.constant 0 : index
    %c0_347 = arith.constant 0 : index
    %828 = vector.load %arg13[%827, %c0_346, %c0_347] : memref<8x16x512xf32, #tpu.memory_space<vmem>>, vector<1x16x512xf32>
    %829 = vector.shape_cast %828 : vector<1x16x512xf32> to vector<16x512xf32>
    %830 = arith.truncf %792 : vector<16x128xf32> to vector<16x128xbf16>
    %c0_348 = arith.constant 0 : index
    %c0_349 = arith.constant 0 : index
    %c0_350 = arith.constant 0 : index
    %831 = vector.load %arg6[%c0_348, %c0_349, %c0_350] : memref<2x128x512xbf16, #tpu.memory_space<vmem>>, vector<1x128x512xbf16>
    %832 = vector.shape_cast %831 : vector<1x128x512xbf16> to vector<128x512xbf16>
    %cst_351 = arith.constant dense<0.000000e+00> : vector<16x512xf32>
    %833 = tpu.matmul %830, %832, %cst_351 {dimension_numbers = #tpu.dot_dimension_numbers<[1], [0], [0], [1], [0, 0, 1, 1], [], []>} : vector<16x128xbf16>, vector<128x512xbf16>, vector<16x512xf32> -> vector<16x512xf32>
    %834 = arith.addf %829, %833 : vector<16x512xf32>
    %835 = arith.index_cast %826 : i32 to index
    %c0_352 = arith.constant 0 : index
    %c0_353 = arith.constant 0 : index
    %836 = vector.load %arg14[%835, %c0_352, %c0_353] : memref<8x16x512xf32, #tpu.memory_space<vmem>>, vector<1x16x512xf32>
    %837 = vector.shape_cast %836 : vector<1x16x512xf32> to vector<16x512xf32>
    %838 = arith.truncf %823 : vector<16x128xf32> to vector<16x128xbf16>
    %c1_354 = arith.constant 1 : index
    %c0_355 = arith.constant 0 : index
    %c0_356 = arith.constant 0 : index
    %839 = vector.load %arg6[%c1_354, %c0_355, %c0_356] : memref<2x128x512xbf16, #tpu.memory_space<vmem>>, vector<1x128x512xbf16>
    %840 = vector.shape_cast %839 : vector<1x128x512xbf16> to vector<128x512xbf16>
    %cst_357 = arith.constant dense<0.000000e+00> : vector<16x512xf32>
    %841 = tpu.matmul %838, %840, %cst_357 {dimension_numbers = #tpu.dot_dimension_numbers<[1], [0], [0], [1], [0, 0, 1, 1], [], []>} : vector<16x128xbf16>, vector<128x512xbf16>, vector<16x512xf32> -> vector<16x512xf32>
    %842 = arith.addf %837, %841 : vector<16x512xf32>
    %843 = vector.extract_strided_slice %834 {offsets = [0, 0], sizes = [16, 128], strides = [1, 1]} : vector<16x512xf32> to vector<16x128xf32>
    %cst_358 = arith.constant 5.000000e-01 : f32
    %844 = vector.broadcast %cst_358 : f32 to vector<16x128xf32>
    %845 = arith.mulf %844, %843 : vector<16x128xf32>
    %846 = math.tanh %845 : vector<16x128xf32>
    %cst_359 = arith.constant 5.000000e-01 : f32
    %847 = vector.broadcast %cst_359 : f32 to vector<16x128xf32>
    %848 = arith.mulf %847, %846 : vector<16x128xf32>
    %cst_360 = arith.constant 5.000000e-01 : f32
    %849 = vector.broadcast %cst_360 : f32 to vector<16x128xf32>
    %850 = arith.addf %848, %849 : vector<16x128xf32>
    %851 = vector.extract_strided_slice %834 {offsets = [0, 128], sizes = [16, 128], strides = [1, 1]} : vector<16x512xf32> to vector<16x128xf32>
    %cst_361 = arith.constant 5.000000e-01 : f32
    %852 = vector.broadcast %cst_361 : f32 to vector<16x128xf32>
    %853 = arith.mulf %852, %851 : vector<16x128xf32>
    %854 = math.tanh %853 : vector<16x128xf32>
    %cst_362 = arith.constant 5.000000e-01 : f32
    %855 = vector.broadcast %cst_362 : f32 to vector<16x128xf32>
    %856 = arith.mulf %855, %854 : vector<16x128xf32>
    %cst_363 = arith.constant 5.000000e-01 : f32
    %857 = vector.broadcast %cst_363 : f32 to vector<16x128xf32>
    %858 = arith.addf %856, %857 : vector<16x128xf32>
    %859 = vector.extract_strided_slice %834 {offsets = [0, 256], sizes = [16, 128], strides = [1, 1]} : vector<16x512xf32> to vector<16x128xf32>
    %860 = math.tanh %859 : vector<16x128xf32>
    %861 = vector.extract_strided_slice %834 {offsets = [0, 384], sizes = [16, 128], strides = [1, 1]} : vector<16x512xf32> to vector<16x128xf32>
    %cst_364 = arith.constant 5.000000e-01 : f32
    %862 = vector.broadcast %cst_364 : f32 to vector<16x128xf32>
    %863 = arith.mulf %862, %861 : vector<16x128xf32>
    %864 = math.tanh %863 : vector<16x128xf32>
    %cst_365 = arith.constant 5.000000e-01 : f32
    %865 = vector.broadcast %cst_365 : f32 to vector<16x128xf32>
    %866 = arith.mulf %865, %864 : vector<16x128xf32>
    %cst_366 = arith.constant 5.000000e-01 : f32
    %867 = vector.broadcast %cst_366 : f32 to vector<16x128xf32>
    %868 = arith.addf %866, %867 : vector<16x128xf32>
    %869 = arith.mulf %858, %790 : vector<16x128xf32>
    %870 = arith.mulf %850, %860 : vector<16x128xf32>
    %871 = arith.addf %869, %870 : vector<16x128xf32>
    %872 = math.tanh %871 : vector<16x128xf32>
    %873 = arith.mulf %868, %872 : vector<16x128xf32>
    %874 = vector.extract_strided_slice %842 {offsets = [0, 0], sizes = [16, 128], strides = [1, 1]} : vector<16x512xf32> to vector<16x128xf32>
    %cst_367 = arith.constant 5.000000e-01 : f32
    %875 = vector.broadcast %cst_367 : f32 to vector<16x128xf32>
    %876 = arith.mulf %875, %874 : vector<16x128xf32>
    %877 = math.tanh %876 : vector<16x128xf32>
    %cst_368 = arith.constant 5.000000e-01 : f32
    %878 = vector.broadcast %cst_368 : f32 to vector<16x128xf32>
    %879 = arith.mulf %878, %877 : vector<16x128xf32>
    %cst_369 = arith.constant 5.000000e-01 : f32
    %880 = vector.broadcast %cst_369 : f32 to vector<16x128xf32>
    %881 = arith.addf %879, %880 : vector<16x128xf32>
    %882 = vector.extract_strided_slice %842 {offsets = [0, 128], sizes = [16, 128], strides = [1, 1]} : vector<16x512xf32> to vector<16x128xf32>
    %cst_370 = arith.constant 5.000000e-01 : f32
    %883 = vector.broadcast %cst_370 : f32 to vector<16x128xf32>
    %884 = arith.mulf %883, %882 : vector<16x128xf32>
    %885 = math.tanh %884 : vector<16x128xf32>
    %cst_371 = arith.constant 5.000000e-01 : f32
    %886 = vector.broadcast %cst_371 : f32 to vector<16x128xf32>
    %887 = arith.mulf %886, %885 : vector<16x128xf32>
    %cst_372 = arith.constant 5.000000e-01 : f32
    %888 = vector.broadcast %cst_372 : f32 to vector<16x128xf32>
    %889 = arith.addf %887, %888 : vector<16x128xf32>
    %890 = vector.extract_strided_slice %842 {offsets = [0, 256], sizes = [16, 128], strides = [1, 1]} : vector<16x512xf32> to vector<16x128xf32>
    %891 = math.tanh %890 : vector<16x128xf32>
    %892 = vector.extract_strided_slice %842 {offsets = [0, 384], sizes = [16, 128], strides = [1, 1]} : vector<16x512xf32> to vector<16x128xf32>
    %cst_373 = arith.constant 5.000000e-01 : f32
    %893 = vector.broadcast %cst_373 : f32 to vector<16x128xf32>
    %894 = arith.mulf %893, %892 : vector<16x128xf32>
    %895 = math.tanh %894 : vector<16x128xf32>
    %cst_374 = arith.constant 5.000000e-01 : f32
    %896 = vector.broadcast %cst_374 : f32 to vector<16x128xf32>
    %897 = arith.mulf %896, %895 : vector<16x128xf32>
    %cst_375 = arith.constant 5.000000e-01 : f32
    %898 = vector.broadcast %cst_375 : f32 to vector<16x128xf32>
    %899 = arith.addf %897, %898 : vector<16x128xf32>
    %900 = arith.mulf %889, %821 : vector<16x128xf32>
    %901 = arith.mulf %881, %891 : vector<16x128xf32>
    %902 = arith.addf %900, %901 : vector<16x128xf32>
    %903 = math.tanh %902 : vector<16x128xf32>
    %904 = arith.mulf %899, %903 : vector<16x128xf32>
    %905 = arith.addf %824, %873 : vector<16x128xf32>
    %906 = arith.addf %825, %904 : vector<16x128xf32>
    %c2_i32_376 = arith.constant 2 : i32
    %c7_i32_377 = arith.constant 7 : i32
    %907 = arith.subi %c7_i32_377, %c2_i32_376 : i32
    %908 = arith.index_cast %c2_i32_376 : i32 to index
    %c0_378 = arith.constant 0 : index
    %c0_379 = arith.constant 0 : index
    %909 = vector.load %arg13[%908, %c0_378, %c0_379] : memref<8x16x512xf32, #tpu.memory_space<vmem>>, vector<1x16x512xf32>
    %910 = vector.shape_cast %909 : vector<1x16x512xf32> to vector<16x512xf32>
    %911 = arith.truncf %873 : vector<16x128xf32> to vector<16x128xbf16>
    %c0_380 = arith.constant 0 : index
    %c0_381 = arith.constant 0 : index
    %c0_382 = arith.constant 0 : index
    %912 = vector.load %arg6[%c0_380, %c0_381, %c0_382] : memref<2x128x512xbf16, #tpu.memory_space<vmem>>, vector<1x128x512xbf16>
    %913 = vector.shape_cast %912 : vector<1x128x512xbf16> to vector<128x512xbf16>
    %cst_383 = arith.constant dense<0.000000e+00> : vector<16x512xf32>
    %914 = tpu.matmul %911, %913, %cst_383 {dimension_numbers = #tpu.dot_dimension_numbers<[1], [0], [0], [1], [0, 0, 1, 1], [], []>} : vector<16x128xbf16>, vector<128x512xbf16>, vector<16x512xf32> -> vector<16x512xf32>
    %915 = arith.addf %910, %914 : vector<16x512xf32>
    %916 = arith.index_cast %907 : i32 to index
    %c0_384 = arith.constant 0 : index
    %c0_385 = arith.constant 0 : index
    %917 = vector.load %arg14[%916, %c0_384, %c0_385] : memref<8x16x512xf32, #tpu.memory_space<vmem>>, vector<1x16x512xf32>
    %918 = vector.shape_cast %917 : vector<1x16x512xf32> to vector<16x512xf32>
    %919 = arith.truncf %904 : vector<16x128xf32> to vector<16x128xbf16>
    %c1_386 = arith.constant 1 : index
    %c0_387 = arith.constant 0 : index
    %c0_388 = arith.constant 0 : index
    %920 = vector.load %arg6[%c1_386, %c0_387, %c0_388] : memref<2x128x512xbf16, #tpu.memory_space<vmem>>, vector<1x128x512xbf16>
    %921 = vector.shape_cast %920 : vector<1x128x512xbf16> to vector<128x512xbf16>
    %cst_389 = arith.constant dense<0.000000e+00> : vector<16x512xf32>
    %922 = tpu.matmul %919, %921, %cst_389 {dimension_numbers = #tpu.dot_dimension_numbers<[1], [0], [0], [1], [0, 0, 1, 1], [], []>} : vector<16x128xbf16>, vector<128x512xbf16>, vector<16x512xf32> -> vector<16x512xf32>
    %923 = arith.addf %918, %922 : vector<16x512xf32>
    %924 = vector.extract_strided_slice %915 {offsets = [0, 0], sizes = [16, 128], strides = [1, 1]} : vector<16x512xf32> to vector<16x128xf32>
    %cst_390 = arith.constant 5.000000e-01 : f32
    %925 = vector.broadcast %cst_390 : f32 to vector<16x128xf32>
    %926 = arith.mulf %925, %924 : vector<16x128xf32>
    %927 = math.tanh %926 : vector<16x128xf32>
    %cst_391 = arith.constant 5.000000e-01 : f32
    %928 = vector.broadcast %cst_391 : f32 to vector<16x128xf32>
    %929 = arith.mulf %928, %927 : vector<16x128xf32>
    %cst_392 = arith.constant 5.000000e-01 : f32
    %930 = vector.broadcast %cst_392 : f32 to vector<16x128xf32>
    %931 = arith.addf %929, %930 : vector<16x128xf32>
    %932 = vector.extract_strided_slice %915 {offsets = [0, 128], sizes = [16, 128], strides = [1, 1]} : vector<16x512xf32> to vector<16x128xf32>
    %cst_393 = arith.constant 5.000000e-01 : f32
    %933 = vector.broadcast %cst_393 : f32 to vector<16x128xf32>
    %934 = arith.mulf %933, %932 : vector<16x128xf32>
    %935 = math.tanh %934 : vector<16x128xf32>
    %cst_394 = arith.constant 5.000000e-01 : f32
    %936 = vector.broadcast %cst_394 : f32 to vector<16x128xf32>
    %937 = arith.mulf %936, %935 : vector<16x128xf32>
    %cst_395 = arith.constant 5.000000e-01 : f32
    %938 = vector.broadcast %cst_395 : f32 to vector<16x128xf32>
    %939 = arith.addf %937, %938 : vector<16x128xf32>
    %940 = vector.extract_strided_slice %915 {offsets = [0, 256], sizes = [16, 128], strides = [1, 1]} : vector<16x512xf32> to vector<16x128xf32>
    %941 = math.tanh %940 : vector<16x128xf32>
    %942 = vector.extract_strided_slice %915 {offsets = [0, 384], sizes = [16, 128], strides = [1, 1]} : vector<16x512xf32> to vector<16x128xf32>
    %cst_396 = arith.constant 5.000000e-01 : f32
    %943 = vector.broadcast %cst_396 : f32 to vector<16x128xf32>
    %944 = arith.mulf %943, %942 : vector<16x128xf32>
    %945 = math.tanh %944 : vector<16x128xf32>
    %cst_397 = arith.constant 5.000000e-01 : f32
    %946 = vector.broadcast %cst_397 : f32 to vector<16x128xf32>
    %947 = arith.mulf %946, %945 : vector<16x128xf32>
    %cst_398 = arith.constant 5.000000e-01 : f32
    %948 = vector.broadcast %cst_398 : f32 to vector<16x128xf32>
    %949 = arith.addf %947, %948 : vector<16x128xf32>
    %950 = arith.mulf %939, %871 : vector<16x128xf32>
    %951 = arith.mulf %931, %941 : vector<16x128xf32>
    %952 = arith.addf %950, %951 : vector<16x128xf32>
    %953 = math.tanh %952 : vector<16x128xf32>
    %954 = arith.mulf %949, %953 : vector<16x128xf32>
    %955 = vector.extract_strided_slice %923 {offsets = [0, 0], sizes = [16, 128], strides = [1, 1]} : vector<16x512xf32> to vector<16x128xf32>
    %cst_399 = arith.constant 5.000000e-01 : f32
    %956 = vector.broadcast %cst_399 : f32 to vector<16x128xf32>
    %957 = arith.mulf %956, %955 : vector<16x128xf32>
    %958 = math.tanh %957 : vector<16x128xf32>
    %cst_400 = arith.constant 5.000000e-01 : f32
    %959 = vector.broadcast %cst_400 : f32 to vector<16x128xf32>
    %960 = arith.mulf %959, %958 : vector<16x128xf32>
    %cst_401 = arith.constant 5.000000e-01 : f32
    %961 = vector.broadcast %cst_401 : f32 to vector<16x128xf32>
    %962 = arith.addf %960, %961 : vector<16x128xf32>
    %963 = vector.extract_strided_slice %923 {offsets = [0, 128], sizes = [16, 128], strides = [1, 1]} : vector<16x512xf32> to vector<16x128xf32>
    %cst_402 = arith.constant 5.000000e-01 : f32
    %964 = vector.broadcast %cst_402 : f32 to vector<16x128xf32>
    %965 = arith.mulf %964, %963 : vector<16x128xf32>
    %966 = math.tanh %965 : vector<16x128xf32>
    %cst_403 = arith.constant 5.000000e-01 : f32
    %967 = vector.broadcast %cst_403 : f32 to vector<16x128xf32>
    %968 = arith.mulf %967, %966 : vector<16x128xf32>
    %cst_404 = arith.constant 5.000000e-01 : f32
    %969 = vector.broadcast %cst_404 : f32 to vector<16x128xf32>
    %970 = arith.addf %968, %969 : vector<16x128xf32>
    %971 = vector.extract_strided_slice %923 {offsets = [0, 256], sizes = [16, 128], strides = [1, 1]} : vector<16x512xf32> to vector<16x128xf32>
    %972 = math.tanh %971 : vector<16x128xf32>
    %973 = vector.extract_strided_slice %923 {offsets = [0, 384], sizes = [16, 128], strides = [1, 1]} : vector<16x512xf32> to vector<16x128xf32>
    %cst_405 = arith.constant 5.000000e-01 : f32
    %974 = vector.broadcast %cst_405 : f32 to vector<16x128xf32>
    %975 = arith.mulf %974, %973 : vector<16x128xf32>
    %976 = math.tanh %975 : vector<16x128xf32>
    %cst_406 = arith.constant 5.000000e-01 : f32
    %977 = vector.broadcast %cst_406 : f32 to vector<16x128xf32>
    %978 = arith.mulf %977, %976 : vector<16x128xf32>
    %cst_407 = arith.constant 5.000000e-01 : f32
    %979 = vector.broadcast %cst_407 : f32 to vector<16x128xf32>
    %980 = arith.addf %978, %979 : vector<16x128xf32>
    %981 = arith.mulf %970, %902 : vector<16x128xf32>
    %982 = arith.mulf %962, %972 : vector<16x128xf32>
    %983 = arith.addf %981, %982 : vector<16x128xf32>
    %984 = math.tanh %983 : vector<16x128xf32>
    %985 = arith.mulf %980, %984 : vector<16x128xf32>
    %986 = arith.addf %905, %954 : vector<16x128xf32>
    %987 = arith.addf %906, %985 : vector<16x128xf32>
    %c3_i32_408 = arith.constant 3 : i32
    %c7_i32_409 = arith.constant 7 : i32
    %988 = arith.subi %c7_i32_409, %c3_i32_408 : i32
    %989 = arith.index_cast %c3_i32_408 : i32 to index
    %c0_410 = arith.constant 0 : index
    %c0_411 = arith.constant 0 : index
    %990 = vector.load %arg13[%989, %c0_410, %c0_411] : memref<8x16x512xf32, #tpu.memory_space<vmem>>, vector<1x16x512xf32>
    %991 = vector.shape_cast %990 : vector<1x16x512xf32> to vector<16x512xf32>
    %992 = arith.truncf %954 : vector<16x128xf32> to vector<16x128xbf16>
    %c0_412 = arith.constant 0 : index
    %c0_413 = arith.constant 0 : index
    %c0_414 = arith.constant 0 : index
    %993 = vector.load %arg6[%c0_412, %c0_413, %c0_414] : memref<2x128x512xbf16, #tpu.memory_space<vmem>>, vector<1x128x512xbf16>
    %994 = vector.shape_cast %993 : vector<1x128x512xbf16> to vector<128x512xbf16>
    %cst_415 = arith.constant dense<0.000000e+00> : vector<16x512xf32>
    %995 = tpu.matmul %992, %994, %cst_415 {dimension_numbers = #tpu.dot_dimension_numbers<[1], [0], [0], [1], [0, 0, 1, 1], [], []>} : vector<16x128xbf16>, vector<128x512xbf16>, vector<16x512xf32> -> vector<16x512xf32>
    %996 = arith.addf %991, %995 : vector<16x512xf32>
    %997 = arith.index_cast %988 : i32 to index
    %c0_416 = arith.constant 0 : index
    %c0_417 = arith.constant 0 : index
    %998 = vector.load %arg14[%997, %c0_416, %c0_417] : memref<8x16x512xf32, #tpu.memory_space<vmem>>, vector<1x16x512xf32>
    %999 = vector.shape_cast %998 : vector<1x16x512xf32> to vector<16x512xf32>
    %1000 = arith.truncf %985 : vector<16x128xf32> to vector<16x128xbf16>
    %c1_418 = arith.constant 1 : index
    %c0_419 = arith.constant 0 : index
    %c0_420 = arith.constant 0 : index
    %1001 = vector.load %arg6[%c1_418, %c0_419, %c0_420] : memref<2x128x512xbf16, #tpu.memory_space<vmem>>, vector<1x128x512xbf16>
    %1002 = vector.shape_cast %1001 : vector<1x128x512xbf16> to vector<128x512xbf16>
    %cst_421 = arith.constant dense<0.000000e+00> : vector<16x512xf32>
    %1003 = tpu.matmul %1000, %1002, %cst_421 {dimension_numbers = #tpu.dot_dimension_numbers<[1], [0], [0], [1], [0, 0, 1, 1], [], []>} : vector<16x128xbf16>, vector<128x512xbf16>, vector<16x512xf32> -> vector<16x512xf32>
    %1004 = arith.addf %999, %1003 : vector<16x512xf32>
    %1005 = vector.extract_strided_slice %996 {offsets = [0, 0], sizes = [16, 128], strides = [1, 1]} : vector<16x512xf32> to vector<16x128xf32>
    %cst_422 = arith.constant 5.000000e-01 : f32
    %1006 = vector.broadcast %cst_422 : f32 to vector<16x128xf32>
    %1007 = arith.mulf %1006, %1005 : vector<16x128xf32>
    %1008 = math.tanh %1007 : vector<16x128xf32>
    %cst_423 = arith.constant 5.000000e-01 : f32
    %1009 = vector.broadcast %cst_423 : f32 to vector<16x128xf32>
    %1010 = arith.mulf %1009, %1008 : vector<16x128xf32>
    %cst_424 = arith.constant 5.000000e-01 : f32
    %1011 = vector.broadcast %cst_424 : f32 to vector<16x128xf32>
    %1012 = arith.addf %1010, %1011 : vector<16x128xf32>
    %1013 = vector.extract_strided_slice %996 {offsets = [0, 128], sizes = [16, 128], strides = [1, 1]} : vector<16x512xf32> to vector<16x128xf32>
    %cst_425 = arith.constant 5.000000e-01 : f32
    %1014 = vector.broadcast %cst_425 : f32 to vector<16x128xf32>
    %1015 = arith.mulf %1014, %1013 : vector<16x128xf32>
    %1016 = math.tanh %1015 : vector<16x128xf32>
    %cst_426 = arith.constant 5.000000e-01 : f32
    %1017 = vector.broadcast %cst_426 : f32 to vector<16x128xf32>
    %1018 = arith.mulf %1017, %1016 : vector<16x128xf32>
    %cst_427 = arith.constant 5.000000e-01 : f32
    %1019 = vector.broadcast %cst_427 : f32 to vector<16x128xf32>
    %1020 = arith.addf %1018, %1019 : vector<16x128xf32>
    %1021 = vector.extract_strided_slice %996 {offsets = [0, 256], sizes = [16, 128], strides = [1, 1]} : vector<16x512xf32> to vector<16x128xf32>
    %1022 = math.tanh %1021 : vector<16x128xf32>
    %1023 = vector.extract_strided_slice %996 {offsets = [0, 384], sizes = [16, 128], strides = [1, 1]} : vector<16x512xf32> to vector<16x128xf32>
    %cst_428 = arith.constant 5.000000e-01 : f32
    %1024 = vector.broadcast %cst_428 : f32 to vector<16x128xf32>
    %1025 = arith.mulf %1024, %1023 : vector<16x128xf32>
    %1026 = math.tanh %1025 : vector<16x128xf32>
    %cst_429 = arith.constant 5.000000e-01 : f32
    %1027 = vector.broadcast %cst_429 : f32 to vector<16x128xf32>
    %1028 = arith.mulf %1027, %1026 : vector<16x128xf32>
    %cst_430 = arith.constant 5.000000e-01 : f32
    %1029 = vector.broadcast %cst_430 : f32 to vector<16x128xf32>
    %1030 = arith.addf %1028, %1029 : vector<16x128xf32>
    %1031 = arith.mulf %1020, %952 : vector<16x128xf32>
    %1032 = arith.mulf %1012, %1022 : vector<16x128xf32>
    %1033 = arith.addf %1031, %1032 : vector<16x128xf32>
    %1034 = math.tanh %1033 : vector<16x128xf32>
    %1035 = arith.mulf %1030, %1034 : vector<16x128xf32>
    %1036 = vector.extract_strided_slice %1004 {offsets = [0, 0], sizes = [16, 128], strides = [1, 1]} : vector<16x512xf32> to vector<16x128xf32>
    %cst_431 = arith.constant 5.000000e-01 : f32
    %1037 = vector.broadcast %cst_431 : f32 to vector<16x128xf32>
    %1038 = arith.mulf %1037, %1036 : vector<16x128xf32>
    %1039 = math.tanh %1038 : vector<16x128xf32>
    %cst_432 = arith.constant 5.000000e-01 : f32
    %1040 = vector.broadcast %cst_432 : f32 to vector<16x128xf32>
    %1041 = arith.mulf %1040, %1039 : vector<16x128xf32>
    %cst_433 = arith.constant 5.000000e-01 : f32
    %1042 = vector.broadcast %cst_433 : f32 to vector<16x128xf32>
    %1043 = arith.addf %1041, %1042 : vector<16x128xf32>
    %1044 = vector.extract_strided_slice %1004 {offsets = [0, 128], sizes = [16, 128], strides = [1, 1]} : vector<16x512xf32> to vector<16x128xf32>
    %cst_434 = arith.constant 5.000000e-01 : f32
    %1045 = vector.broadcast %cst_434 : f32 to vector<16x128xf32>
    %1046 = arith.mulf %1045, %1044 : vector<16x128xf32>
    %1047 = math.tanh %1046 : vector<16x128xf32>
    %cst_435 = arith.constant 5.000000e-01 : f32
    %1048 = vector.broadcast %cst_435 : f32 to vector<16x128xf32>
    %1049 = arith.mulf %1048, %1047 : vector<16x128xf32>
    %cst_436 = arith.constant 5.000000e-01 : f32
    %1050 = vector.broadcast %cst_436 : f32 to vector<16x128xf32>
    %1051 = arith.addf %1049, %1050 : vector<16x128xf32>
    %1052 = vector.extract_strided_slice %1004 {offsets = [0, 256], sizes = [16, 128], strides = [1, 1]} : vector<16x512xf32> to vector<16x128xf32>
    %1053 = math.tanh %1052 : vector<16x128xf32>
    %1054 = vector.extract_strided_slice %1004 {offsets = [0, 384], sizes = [16, 128], strides = [1, 1]} : vector<16x512xf32> to vector<16x128xf32>
    %cst_437 = arith.constant 5.000000e-01 : f32
    %1055 = vector.broadcast %cst_437 : f32 to vector<16x128xf32>
    %1056 = arith.mulf %1055, %1054 : vector<16x128xf32>
    %1057 = math.tanh %1056 : vector<16x128xf32>
    %cst_438 = arith.constant 5.000000e-01 : f32
    %1058 = vector.broadcast %cst_438 : f32 to vector<16x128xf32>
    %1059 = arith.mulf %1058, %1057 : vector<16x128xf32>
    %cst_439 = arith.constant 5.000000e-01 : f32
    %1060 = vector.broadcast %cst_439 : f32 to vector<16x128xf32>
    %1061 = arith.addf %1059, %1060 : vector<16x128xf32>
    %1062 = arith.mulf %1051, %983 : vector<16x128xf32>
    %1063 = arith.mulf %1043, %1053 : vector<16x128xf32>
    %1064 = arith.addf %1062, %1063 : vector<16x128xf32>
    %1065 = math.tanh %1064 : vector<16x128xf32>
    %1066 = arith.mulf %1061, %1065 : vector<16x128xf32>
    %1067 = arith.addf %986, %1035 : vector<16x128xf32>
    %1068 = arith.addf %987, %1066 : vector<16x128xf32>
    %c4_i32_440 = arith.constant 4 : i32
    %c7_i32_441 = arith.constant 7 : i32
    %1069 = arith.subi %c7_i32_441, %c4_i32_440 : i32
    %1070 = arith.index_cast %c4_i32_440 : i32 to index
    %c0_442 = arith.constant 0 : index
    %c0_443 = arith.constant 0 : index
    %1071 = vector.load %arg13[%1070, %c0_442, %c0_443] : memref<8x16x512xf32, #tpu.memory_space<vmem>>, vector<1x16x512xf32>
    %1072 = vector.shape_cast %1071 : vector<1x16x512xf32> to vector<16x512xf32>
    %1073 = arith.truncf %1035 : vector<16x128xf32> to vector<16x128xbf16>
    %c0_444 = arith.constant 0 : index
    %c0_445 = arith.constant 0 : index
    %c0_446 = arith.constant 0 : index
    %1074 = vector.load %arg6[%c0_444, %c0_445, %c0_446] : memref<2x128x512xbf16, #tpu.memory_space<vmem>>, vector<1x128x512xbf16>
    %1075 = vector.shape_cast %1074 : vector<1x128x512xbf16> to vector<128x512xbf16>
    %cst_447 = arith.constant dense<0.000000e+00> : vector<16x512xf32>
    %1076 = tpu.matmul %1073, %1075, %cst_447 {dimension_numbers = #tpu.dot_dimension_numbers<[1], [0], [0], [1], [0, 0, 1, 1], [], []>} : vector<16x128xbf16>, vector<128x512xbf16>, vector<16x512xf32> -> vector<16x512xf32>
    %1077 = arith.addf %1072, %1076 : vector<16x512xf32>
    %1078 = arith.index_cast %1069 : i32 to index
    %c0_448 = arith.constant 0 : index
    %c0_449 = arith.constant 0 : index
    %1079 = vector.load %arg14[%1078, %c0_448, %c0_449] : memref<8x16x512xf32, #tpu.memory_space<vmem>>, vector<1x16x512xf32>
    %1080 = vector.shape_cast %1079 : vector<1x16x512xf32> to vector<16x512xf32>
    %1081 = arith.truncf %1066 : vector<16x128xf32> to vector<16x128xbf16>
    %c1_450 = arith.constant 1 : index
    %c0_451 = arith.constant 0 : index
    %c0_452 = arith.constant 0 : index
    %1082 = vector.load %arg6[%c1_450, %c0_451, %c0_452] : memref<2x128x512xbf16, #tpu.memory_space<vmem>>, vector<1x128x512xbf16>
    %1083 = vector.shape_cast %1082 : vector<1x128x512xbf16> to vector<128x512xbf16>
    %cst_453 = arith.constant dense<0.000000e+00> : vector<16x512xf32>
    %1084 = tpu.matmul %1081, %1083, %cst_453 {dimension_numbers = #tpu.dot_dimension_numbers<[1], [0], [0], [1], [0, 0, 1, 1], [], []>} : vector<16x128xbf16>, vector<128x512xbf16>, vector<16x512xf32> -> vector<16x512xf32>
    %1085 = arith.addf %1080, %1084 : vector<16x512xf32>
    %1086 = vector.extract_strided_slice %1077 {offsets = [0, 0], sizes = [16, 128], strides = [1, 1]} : vector<16x512xf32> to vector<16x128xf32>
    %cst_454 = arith.constant 5.000000e-01 : f32
    %1087 = vector.broadcast %cst_454 : f32 to vector<16x128xf32>
    %1088 = arith.mulf %1087, %1086 : vector<16x128xf32>
    %1089 = math.tanh %1088 : vector<16x128xf32>
    %cst_455 = arith.constant 5.000000e-01 : f32
    %1090 = vector.broadcast %cst_455 : f32 to vector<16x128xf32>
    %1091 = arith.mulf %1090, %1089 : vector<16x128xf32>
    %cst_456 = arith.constant 5.000000e-01 : f32
    %1092 = vector.broadcast %cst_456 : f32 to vector<16x128xf32>
    %1093 = arith.addf %1091, %1092 : vector<16x128xf32>
    %1094 = vector.extract_strided_slice %1077 {offsets = [0, 128], sizes = [16, 128], strides = [1, 1]} : vector<16x512xf32> to vector<16x128xf32>
    %cst_457 = arith.constant 5.000000e-01 : f32
    %1095 = vector.broadcast %cst_457 : f32 to vector<16x128xf32>
    %1096 = arith.mulf %1095, %1094 : vector<16x128xf32>
    %1097 = math.tanh %1096 : vector<16x128xf32>
    %cst_458 = arith.constant 5.000000e-01 : f32
    %1098 = vector.broadcast %cst_458 : f32 to vector<16x128xf32>
    %1099 = arith.mulf %1098, %1097 : vector<16x128xf32>
    %cst_459 = arith.constant 5.000000e-01 : f32
    %1100 = vector.broadcast %cst_459 : f32 to vector<16x128xf32>
    %1101 = arith.addf %1099, %1100 : vector<16x128xf32>
    %1102 = vector.extract_strided_slice %1077 {offsets = [0, 256], sizes = [16, 128], strides = [1, 1]} : vector<16x512xf32> to vector<16x128xf32>
    %1103 = math.tanh %1102 : vector<16x128xf32>
    %1104 = vector.extract_strided_slice %1077 {offsets = [0, 384], sizes = [16, 128], strides = [1, 1]} : vector<16x512xf32> to vector<16x128xf32>
    %cst_460 = arith.constant 5.000000e-01 : f32
    %1105 = vector.broadcast %cst_460 : f32 to vector<16x128xf32>
    %1106 = arith.mulf %1105, %1104 : vector<16x128xf32>
    %1107 = math.tanh %1106 : vector<16x128xf32>
    %cst_461 = arith.constant 5.000000e-01 : f32
    %1108 = vector.broadcast %cst_461 : f32 to vector<16x128xf32>
    %1109 = arith.mulf %1108, %1107 : vector<16x128xf32>
    %cst_462 = arith.constant 5.000000e-01 : f32
    %1110 = vector.broadcast %cst_462 : f32 to vector<16x128xf32>
    %1111 = arith.addf %1109, %1110 : vector<16x128xf32>
    %1112 = arith.mulf %1101, %1033 : vector<16x128xf32>
    %1113 = arith.mulf %1093, %1103 : vector<16x128xf32>
    %1114 = arith.addf %1112, %1113 : vector<16x128xf32>
    %1115 = math.tanh %1114 : vector<16x128xf32>
    %1116 = arith.mulf %1111, %1115 : vector<16x128xf32>
    %1117 = vector.extract_strided_slice %1085 {offsets = [0, 0], sizes = [16, 128], strides = [1, 1]} : vector<16x512xf32> to vector<16x128xf32>
    %cst_463 = arith.constant 5.000000e-01 : f32
    %1118 = vector.broadcast %cst_463 : f32 to vector<16x128xf32>
    %1119 = arith.mulf %1118, %1117 : vector<16x128xf32>
    %1120 = math.tanh %1119 : vector<16x128xf32>
    %cst_464 = arith.constant 5.000000e-01 : f32
    %1121 = vector.broadcast %cst_464 : f32 to vector<16x128xf32>
    %1122 = arith.mulf %1121, %1120 : vector<16x128xf32>
    %cst_465 = arith.constant 5.000000e-01 : f32
    %1123 = vector.broadcast %cst_465 : f32 to vector<16x128xf32>
    %1124 = arith.addf %1122, %1123 : vector<16x128xf32>
    %1125 = vector.extract_strided_slice %1085 {offsets = [0, 128], sizes = [16, 128], strides = [1, 1]} : vector<16x512xf32> to vector<16x128xf32>
    %cst_466 = arith.constant 5.000000e-01 : f32
    %1126 = vector.broadcast %cst_466 : f32 to vector<16x128xf32>
    %1127 = arith.mulf %1126, %1125 : vector<16x128xf32>
    %1128 = math.tanh %1127 : vector<16x128xf32>
    %cst_467 = arith.constant 5.000000e-01 : f32
    %1129 = vector.broadcast %cst_467 : f32 to vector<16x128xf32>
    %1130 = arith.mulf %1129, %1128 : vector<16x128xf32>
    %cst_468 = arith.constant 5.000000e-01 : f32
    %1131 = vector.broadcast %cst_468 : f32 to vector<16x128xf32>
    %1132 = arith.addf %1130, %1131 : vector<16x128xf32>
    %1133 = vector.extract_strided_slice %1085 {offsets = [0, 256], sizes = [16, 128], strides = [1, 1]} : vector<16x512xf32> to vector<16x128xf32>
    %1134 = math.tanh %1133 : vector<16x128xf32>
    %1135 = vector.extract_strided_slice %1085 {offsets = [0, 384], sizes = [16, 128], strides = [1, 1]} : vector<16x512xf32> to vector<16x128xf32>
    %cst_469 = arith.constant 5.000000e-01 : f32
    %1136 = vector.broadcast %cst_469 : f32 to vector<16x128xf32>
    %1137 = arith.mulf %1136, %1135 : vector<16x128xf32>
    %1138 = math.tanh %1137 : vector<16x128xf32>
    %cst_470 = arith.constant 5.000000e-01 : f32
    %1139 = vector.broadcast %cst_470 : f32 to vector<16x128xf32>
    %1140 = arith.mulf %1139, %1138 : vector<16x128xf32>
    %cst_471 = arith.constant 5.000000e-01 : f32
    %1141 = vector.broadcast %cst_471 : f32 to vector<16x128xf32>
    %1142 = arith.addf %1140, %1141 : vector<16x128xf32>
    %1143 = arith.mulf %1132, %1064 : vector<16x128xf32>
    %1144 = arith.mulf %1124, %1134 : vector<16x128xf32>
    %1145 = arith.addf %1143, %1144 : vector<16x128xf32>
    %1146 = math.tanh %1145 : vector<16x128xf32>
    %1147 = arith.mulf %1142, %1146 : vector<16x128xf32>
    %1148 = arith.addf %1067, %1116 : vector<16x128xf32>
    %1149 = arith.addf %1068, %1147 : vector<16x128xf32>
    %c5_i32_472 = arith.constant 5 : i32
    %c7_i32_473 = arith.constant 7 : i32
    %1150 = arith.subi %c7_i32_473, %c5_i32_472 : i32
    %1151 = arith.index_cast %c5_i32_472 : i32 to index
    %c0_474 = arith.constant 0 : index
    %c0_475 = arith.constant 0 : index
    %1152 = vector.load %arg13[%1151, %c0_474, %c0_475] : memref<8x16x512xf32, #tpu.memory_space<vmem>>, vector<1x16x512xf32>
    %1153 = vector.shape_cast %1152 : vector<1x16x512xf32> to vector<16x512xf32>
    %1154 = arith.truncf %1116 : vector<16x128xf32> to vector<16x128xbf16>
    %c0_476 = arith.constant 0 : index
    %c0_477 = arith.constant 0 : index
    %c0_478 = arith.constant 0 : index
    %1155 = vector.load %arg6[%c0_476, %c0_477, %c0_478] : memref<2x128x512xbf16, #tpu.memory_space<vmem>>, vector<1x128x512xbf16>
    %1156 = vector.shape_cast %1155 : vector<1x128x512xbf16> to vector<128x512xbf16>
    %cst_479 = arith.constant dense<0.000000e+00> : vector<16x512xf32>
    %1157 = tpu.matmul %1154, %1156, %cst_479 {dimension_numbers = #tpu.dot_dimension_numbers<[1], [0], [0], [1], [0, 0, 1, 1], [], []>} : vector<16x128xbf16>, vector<128x512xbf16>, vector<16x512xf32> -> vector<16x512xf32>
    %1158 = arith.addf %1153, %1157 : vector<16x512xf32>
    %1159 = arith.index_cast %1150 : i32 to index
    %c0_480 = arith.constant 0 : index
    %c0_481 = arith.constant 0 : index
    %1160 = vector.load %arg14[%1159, %c0_480, %c0_481] : memref<8x16x512xf32, #tpu.memory_space<vmem>>, vector<1x16x512xf32>
    %1161 = vector.shape_cast %1160 : vector<1x16x512xf32> to vector<16x512xf32>
    %1162 = arith.truncf %1147 : vector<16x128xf32> to vector<16x128xbf16>
    %c1_482 = arith.constant 1 : index
    %c0_483 = arith.constant 0 : index
    %c0_484 = arith.constant 0 : index
    %1163 = vector.load %arg6[%c1_482, %c0_483, %c0_484] : memref<2x128x512xbf16, #tpu.memory_space<vmem>>, vector<1x128x512xbf16>
    %1164 = vector.shape_cast %1163 : vector<1x128x512xbf16> to vector<128x512xbf16>
    %cst_485 = arith.constant dense<0.000000e+00> : vector<16x512xf32>
    %1165 = tpu.matmul %1162, %1164, %cst_485 {dimension_numbers = #tpu.dot_dimension_numbers<[1], [0], [0], [1], [0, 0, 1, 1], [], []>} : vector<16x128xbf16>, vector<128x512xbf16>, vector<16x512xf32> -> vector<16x512xf32>
    %1166 = arith.addf %1161, %1165 : vector<16x512xf32>
    %1167 = vector.extract_strided_slice %1158 {offsets = [0, 0], sizes = [16, 128], strides = [1, 1]} : vector<16x512xf32> to vector<16x128xf32>
    %cst_486 = arith.constant 5.000000e-01 : f32
    %1168 = vector.broadcast %cst_486 : f32 to vector<16x128xf32>
    %1169 = arith.mulf %1168, %1167 : vector<16x128xf32>
    %1170 = math.tanh %1169 : vector<16x128xf32>
    %cst_487 = arith.constant 5.000000e-01 : f32
    %1171 = vector.broadcast %cst_487 : f32 to vector<16x128xf32>
    %1172 = arith.mulf %1171, %1170 : vector<16x128xf32>
    %cst_488 = arith.constant 5.000000e-01 : f32
    %1173 = vector.broadcast %cst_488 : f32 to vector<16x128xf32>
    %1174 = arith.addf %1172, %1173 : vector<16x128xf32>
    %1175 = vector.extract_strided_slice %1158 {offsets = [0, 128], sizes = [16, 128], strides = [1, 1]} : vector<16x512xf32> to vector<16x128xf32>
    %cst_489 = arith.constant 5.000000e-01 : f32
    %1176 = vector.broadcast %cst_489 : f32 to vector<16x128xf32>
    %1177 = arith.mulf %1176, %1175 : vector<16x128xf32>
    %1178 = math.tanh %1177 : vector<16x128xf32>
    %cst_490 = arith.constant 5.000000e-01 : f32
    %1179 = vector.broadcast %cst_490 : f32 to vector<16x128xf32>
    %1180 = arith.mulf %1179, %1178 : vector<16x128xf32>
    %cst_491 = arith.constant 5.000000e-01 : f32
    %1181 = vector.broadcast %cst_491 : f32 to vector<16x128xf32>
    %1182 = arith.addf %1180, %1181 : vector<16x128xf32>
    %1183 = vector.extract_strided_slice %1158 {offsets = [0, 256], sizes = [16, 128], strides = [1, 1]} : vector<16x512xf32> to vector<16x128xf32>
    %1184 = math.tanh %1183 : vector<16x128xf32>
    %1185 = vector.extract_strided_slice %1158 {offsets = [0, 384], sizes = [16, 128], strides = [1, 1]} : vector<16x512xf32> to vector<16x128xf32>
    %cst_492 = arith.constant 5.000000e-01 : f32
    %1186 = vector.broadcast %cst_492 : f32 to vector<16x128xf32>
    %1187 = arith.mulf %1186, %1185 : vector<16x128xf32>
    %1188 = math.tanh %1187 : vector<16x128xf32>
    %cst_493 = arith.constant 5.000000e-01 : f32
    %1189 = vector.broadcast %cst_493 : f32 to vector<16x128xf32>
    %1190 = arith.mulf %1189, %1188 : vector<16x128xf32>
    %cst_494 = arith.constant 5.000000e-01 : f32
    %1191 = vector.broadcast %cst_494 : f32 to vector<16x128xf32>
    %1192 = arith.addf %1190, %1191 : vector<16x128xf32>
    %1193 = arith.mulf %1182, %1114 : vector<16x128xf32>
    %1194 = arith.mulf %1174, %1184 : vector<16x128xf32>
    %1195 = arith.addf %1193, %1194 : vector<16x128xf32>
    %1196 = math.tanh %1195 : vector<16x128xf32>
    %1197 = arith.mulf %1192, %1196 : vector<16x128xf32>
    %1198 = vector.extract_strided_slice %1166 {offsets = [0, 0], sizes = [16, 128], strides = [1, 1]} : vector<16x512xf32> to vector<16x128xf32>
    %cst_495 = arith.constant 5.000000e-01 : f32
    %1199 = vector.broadcast %cst_495 : f32 to vector<16x128xf32>
    %1200 = arith.mulf %1199, %1198 : vector<16x128xf32>
    %1201 = math.tanh %1200 : vector<16x128xf32>
    %cst_496 = arith.constant 5.000000e-01 : f32
    %1202 = vector.broadcast %cst_496 : f32 to vector<16x128xf32>
    %1203 = arith.mulf %1202, %1201 : vector<16x128xf32>
    %cst_497 = arith.constant 5.000000e-01 : f32
    %1204 = vector.broadcast %cst_497 : f32 to vector<16x128xf32>
    %1205 = arith.addf %1203, %1204 : vector<16x128xf32>
    %1206 = vector.extract_strided_slice %1166 {offsets = [0, 128], sizes = [16, 128], strides = [1, 1]} : vector<16x512xf32> to vector<16x128xf32>
    %cst_498 = arith.constant 5.000000e-01 : f32
    %1207 = vector.broadcast %cst_498 : f32 to vector<16x128xf32>
    %1208 = arith.mulf %1207, %1206 : vector<16x128xf32>
    %1209 = math.tanh %1208 : vector<16x128xf32>
    %cst_499 = arith.constant 5.000000e-01 : f32
    %1210 = vector.broadcast %cst_499 : f32 to vector<16x128xf32>
    %1211 = arith.mulf %1210, %1209 : vector<16x128xf32>
    %cst_500 = arith.constant 5.000000e-01 : f32
    %1212 = vector.broadcast %cst_500 : f32 to vector<16x128xf32>
    %1213 = arith.addf %1211, %1212 : vector<16x128xf32>
    %1214 = vector.extract_strided_slice %1166 {offsets = [0, 256], sizes = [16, 128], strides = [1, 1]} : vector<16x512xf32> to vector<16x128xf32>
    %1215 = math.tanh %1214 : vector<16x128xf32>
    %1216 = vector.extract_strided_slice %1166 {offsets = [0, 384], sizes = [16, 128], strides = [1, 1]} : vector<16x512xf32> to vector<16x128xf32>
    %cst_501 = arith.constant 5.000000e-01 : f32
    %1217 = vector.broadcast %cst_501 : f32 to vector<16x128xf32>
    %1218 = arith.mulf %1217, %1216 : vector<16x128xf32>
    %1219 = math.tanh %1218 : vector<16x128xf32>
    %cst_502 = arith.constant 5.000000e-01 : f32
    %1220 = vector.broadcast %cst_502 : f32 to vector<16x128xf32>
    %1221 = arith.mulf %1220, %1219 : vector<16x128xf32>
    %cst_503 = arith.constant 5.000000e-01 : f32
    %1222 = vector.broadcast %cst_503 : f32 to vector<16x128xf32>
    %1223 = arith.addf %1221, %1222 : vector<16x128xf32>
    %1224 = arith.mulf %1213, %1145 : vector<16x128xf32>
    %1225 = arith.mulf %1205, %1215 : vector<16x128xf32>
    %1226 = arith.addf %1224, %1225 : vector<16x128xf32>
    %1227 = math.tanh %1226 : vector<16x128xf32>
    %1228 = arith.mulf %1223, %1227 : vector<16x128xf32>
    %1229 = arith.addf %1148, %1197 : vector<16x128xf32>
    %1230 = arith.addf %1149, %1228 : vector<16x128xf32>
    %c6_i32_504 = arith.constant 6 : i32
    %c7_i32_505 = arith.constant 7 : i32
    %1231 = arith.subi %c7_i32_505, %c6_i32_504 : i32
    %1232 = arith.index_cast %c6_i32_504 : i32 to index
    %c0_506 = arith.constant 0 : index
    %c0_507 = arith.constant 0 : index
    %1233 = vector.load %arg13[%1232, %c0_506, %c0_507] : memref<8x16x512xf32, #tpu.memory_space<vmem>>, vector<1x16x512xf32>
    %1234 = vector.shape_cast %1233 : vector<1x16x512xf32> to vector<16x512xf32>
    %1235 = arith.truncf %1197 : vector<16x128xf32> to vector<16x128xbf16>
    %c0_508 = arith.constant 0 : index
    %c0_509 = arith.constant 0 : index
    %c0_510 = arith.constant 0 : index
    %1236 = vector.load %arg6[%c0_508, %c0_509, %c0_510] : memref<2x128x512xbf16, #tpu.memory_space<vmem>>, vector<1x128x512xbf16>
    %1237 = vector.shape_cast %1236 : vector<1x128x512xbf16> to vector<128x512xbf16>
    %cst_511 = arith.constant dense<0.000000e+00> : vector<16x512xf32>
    %1238 = tpu.matmul %1235, %1237, %cst_511 {dimension_numbers = #tpu.dot_dimension_numbers<[1], [0], [0], [1], [0, 0, 1, 1], [], []>} : vector<16x128xbf16>, vector<128x512xbf16>, vector<16x512xf32> -> vector<16x512xf32>
    %1239 = arith.addf %1234, %1238 : vector<16x512xf32>
    %1240 = arith.index_cast %1231 : i32 to index
    %c0_512 = arith.constant 0 : index
    %c0_513 = arith.constant 0 : index
    %1241 = vector.load %arg14[%1240, %c0_512, %c0_513] : memref<8x16x512xf32, #tpu.memory_space<vmem>>, vector<1x16x512xf32>
    %1242 = vector.shape_cast %1241 : vector<1x16x512xf32> to vector<16x512xf32>
    %1243 = arith.truncf %1228 : vector<16x128xf32> to vector<16x128xbf16>
    %c1_514 = arith.constant 1 : index
    %c0_515 = arith.constant 0 : index
    %c0_516 = arith.constant 0 : index
    %1244 = vector.load %arg6[%c1_514, %c0_515, %c0_516] : memref<2x128x512xbf16, #tpu.memory_space<vmem>>, vector<1x128x512xbf16>
    %1245 = vector.shape_cast %1244 : vector<1x128x512xbf16> to vector<128x512xbf16>
    %cst_517 = arith.constant dense<0.000000e+00> : vector<16x512xf32>
    %1246 = tpu.matmul %1243, %1245, %cst_517 {dimension_numbers = #tpu.dot_dimension_numbers<[1], [0], [0], [1], [0, 0, 1, 1], [], []>} : vector<16x128xbf16>, vector<128x512xbf16>, vector<16x512xf32> -> vector<16x512xf32>
    %1247 = arith.addf %1242, %1246 : vector<16x512xf32>
    %1248 = vector.extract_strided_slice %1239 {offsets = [0, 0], sizes = [16, 128], strides = [1, 1]} : vector<16x512xf32> to vector<16x128xf32>
    %cst_518 = arith.constant 5.000000e-01 : f32
    %1249 = vector.broadcast %cst_518 : f32 to vector<16x128xf32>
    %1250 = arith.mulf %1249, %1248 : vector<16x128xf32>
    %1251 = math.tanh %1250 : vector<16x128xf32>
    %cst_519 = arith.constant 5.000000e-01 : f32
    %1252 = vector.broadcast %cst_519 : f32 to vector<16x128xf32>
    %1253 = arith.mulf %1252, %1251 : vector<16x128xf32>
    %cst_520 = arith.constant 5.000000e-01 : f32
    %1254 = vector.broadcast %cst_520 : f32 to vector<16x128xf32>
    %1255 = arith.addf %1253, %1254 : vector<16x128xf32>
    %1256 = vector.extract_strided_slice %1239 {offsets = [0, 128], sizes = [16, 128], strides = [1, 1]} : vector<16x512xf32> to vector<16x128xf32>
    %cst_521 = arith.constant 5.000000e-01 : f32
    %1257 = vector.broadcast %cst_521 : f32 to vector<16x128xf32>
    %1258 = arith.mulf %1257, %1256 : vector<16x128xf32>
    %1259 = math.tanh %1258 : vector<16x128xf32>
    %cst_522 = arith.constant 5.000000e-01 : f32
    %1260 = vector.broadcast %cst_522 : f32 to vector<16x128xf32>
    %1261 = arith.mulf %1260, %1259 : vector<16x128xf32>
    %cst_523 = arith.constant 5.000000e-01 : f32
    %1262 = vector.broadcast %cst_523 : f32 to vector<16x128xf32>
    %1263 = arith.addf %1261, %1262 : vector<16x128xf32>
    %1264 = vector.extract_strided_slice %1239 {offsets = [0, 256], sizes = [16, 128], strides = [1, 1]} : vector<16x512xf32> to vector<16x128xf32>
    %1265 = math.tanh %1264 : vector<16x128xf32>
    %1266 = vector.extract_strided_slice %1239 {offsets = [0, 384], sizes = [16, 128], strides = [1, 1]} : vector<16x512xf32> to vector<16x128xf32>
    %cst_524 = arith.constant 5.000000e-01 : f32
    %1267 = vector.broadcast %cst_524 : f32 to vector<16x128xf32>
    %1268 = arith.mulf %1267, %1266 : vector<16x128xf32>
    %1269 = math.tanh %1268 : vector<16x128xf32>
    %cst_525 = arith.constant 5.000000e-01 : f32
    %1270 = vector.broadcast %cst_525 : f32 to vector<16x128xf32>
    %1271 = arith.mulf %1270, %1269 : vector<16x128xf32>
    %cst_526 = arith.constant 5.000000e-01 : f32
    %1272 = vector.broadcast %cst_526 : f32 to vector<16x128xf32>
    %1273 = arith.addf %1271, %1272 : vector<16x128xf32>
    %1274 = arith.mulf %1263, %1195 : vector<16x128xf32>
    %1275 = arith.mulf %1255, %1265 : vector<16x128xf32>
    %1276 = arith.addf %1274, %1275 : vector<16x128xf32>
    %1277 = math.tanh %1276 : vector<16x128xf32>
    %1278 = arith.mulf %1273, %1277 : vector<16x128xf32>
    %1279 = vector.extract_strided_slice %1247 {offsets = [0, 0], sizes = [16, 128], strides = [1, 1]} : vector<16x512xf32> to vector<16x128xf32>
    %cst_527 = arith.constant 5.000000e-01 : f32
    %1280 = vector.broadcast %cst_527 : f32 to vector<16x128xf32>
    %1281 = arith.mulf %1280, %1279 : vector<16x128xf32>
    %1282 = math.tanh %1281 : vector<16x128xf32>
    %cst_528 = arith.constant 5.000000e-01 : f32
    %1283 = vector.broadcast %cst_528 : f32 to vector<16x128xf32>
    %1284 = arith.mulf %1283, %1282 : vector<16x128xf32>
    %cst_529 = arith.constant 5.000000e-01 : f32
    %1285 = vector.broadcast %cst_529 : f32 to vector<16x128xf32>
    %1286 = arith.addf %1284, %1285 : vector<16x128xf32>
    %1287 = vector.extract_strided_slice %1247 {offsets = [0, 128], sizes = [16, 128], strides = [1, 1]} : vector<16x512xf32> to vector<16x128xf32>
    %cst_530 = arith.constant 5.000000e-01 : f32
    %1288 = vector.broadcast %cst_530 : f32 to vector<16x128xf32>
    %1289 = arith.mulf %1288, %1287 : vector<16x128xf32>
    %1290 = math.tanh %1289 : vector<16x128xf32>
    %cst_531 = arith.constant 5.000000e-01 : f32
    %1291 = vector.broadcast %cst_531 : f32 to vector<16x128xf32>
    %1292 = arith.mulf %1291, %1290 : vector<16x128xf32>
    %cst_532 = arith.constant 5.000000e-01 : f32
    %1293 = vector.broadcast %cst_532 : f32 to vector<16x128xf32>
    %1294 = arith.addf %1292, %1293 : vector<16x128xf32>
    %1295 = vector.extract_strided_slice %1247 {offsets = [0, 256], sizes = [16, 128], strides = [1, 1]} : vector<16x512xf32> to vector<16x128xf32>
    %1296 = math.tanh %1295 : vector<16x128xf32>
    %1297 = vector.extract_strided_slice %1247 {offsets = [0, 384], sizes = [16, 128], strides = [1, 1]} : vector<16x512xf32> to vector<16x128xf32>
    %cst_533 = arith.constant 5.000000e-01 : f32
    %1298 = vector.broadcast %cst_533 : f32 to vector<16x128xf32>
    %1299 = arith.mulf %1298, %1297 : vector<16x128xf32>
    %1300 = math.tanh %1299 : vector<16x128xf32>
    %cst_534 = arith.constant 5.000000e-01 : f32
    %1301 = vector.broadcast %cst_534 : f32 to vector<16x128xf32>
    %1302 = arith.mulf %1301, %1300 : vector<16x128xf32>
    %cst_535 = arith.constant 5.000000e-01 : f32
    %1303 = vector.broadcast %cst_535 : f32 to vector<16x128xf32>
    %1304 = arith.addf %1302, %1303 : vector<16x128xf32>
    %1305 = arith.mulf %1294, %1226 : vector<16x128xf32>
    %1306 = arith.mulf %1286, %1296 : vector<16x128xf32>
    %1307 = arith.addf %1305, %1306 : vector<16x128xf32>
    %1308 = math.tanh %1307 : vector<16x128xf32>
    %1309 = arith.mulf %1304, %1308 : vector<16x128xf32>
    %1310 = arith.addf %1229, %1278 : vector<16x128xf32>
    %1311 = arith.addf %1230, %1309 : vector<16x128xf32>
    %c7_i32_536 = arith.constant 7 : i32
    %c7_i32_537 = arith.constant 7 : i32
    %1312 = arith.subi %c7_i32_537, %c7_i32_536 : i32
    %1313 = arith.index_cast %c7_i32_536 : i32 to index
    %c0_538 = arith.constant 0 : index
    %c0_539 = arith.constant 0 : index
    %1314 = vector.load %arg13[%1313, %c0_538, %c0_539] : memref<8x16x512xf32, #tpu.memory_space<vmem>>, vector<1x16x512xf32>
    %1315 = vector.shape_cast %1314 : vector<1x16x512xf32> to vector<16x512xf32>
    %1316 = arith.truncf %1278 : vector<16x128xf32> to vector<16x128xbf16>
    %c0_540 = arith.constant 0 : index
    %c0_541 = arith.constant 0 : index
    %c0_542 = arith.constant 0 : index
    %1317 = vector.load %arg6[%c0_540, %c0_541, %c0_542] : memref<2x128x512xbf16, #tpu.memory_space<vmem>>, vector<1x128x512xbf16>
    %1318 = vector.shape_cast %1317 : vector<1x128x512xbf16> to vector<128x512xbf16>
    %cst_543 = arith.constant dense<0.000000e+00> : vector<16x512xf32>
    %1319 = tpu.matmul %1316, %1318, %cst_543 {dimension_numbers = #tpu.dot_dimension_numbers<[1], [0], [0], [1], [0, 0, 1, 1], [], []>} : vector<16x128xbf16>, vector<128x512xbf16>, vector<16x512xf32> -> vector<16x512xf32>
    %1320 = arith.addf %1315, %1319 : vector<16x512xf32>
    %1321 = arith.index_cast %1312 : i32 to index
    %c0_544 = arith.constant 0 : index
    %c0_545 = arith.constant 0 : index
    %1322 = vector.load %arg14[%1321, %c0_544, %c0_545] : memref<8x16x512xf32, #tpu.memory_space<vmem>>, vector<1x16x512xf32>
    %1323 = vector.shape_cast %1322 : vector<1x16x512xf32> to vector<16x512xf32>
    %1324 = arith.truncf %1309 : vector<16x128xf32> to vector<16x128xbf16>
    %c1_546 = arith.constant 1 : index
    %c0_547 = arith.constant 0 : index
    %c0_548 = arith.constant 0 : index
    %1325 = vector.load %arg6[%c1_546, %c0_547, %c0_548] : memref<2x128x512xbf16, #tpu.memory_space<vmem>>, vector<1x128x512xbf16>
    %1326 = vector.shape_cast %1325 : vector<1x128x512xbf16> to vector<128x512xbf16>
    %cst_549 = arith.constant dense<0.000000e+00> : vector<16x512xf32>
    %1327 = tpu.matmul %1324, %1326, %cst_549 {dimension_numbers = #tpu.dot_dimension_numbers<[1], [0], [0], [1], [0, 0, 1, 1], [], []>} : vector<16x128xbf16>, vector<128x512xbf16>, vector<16x512xf32> -> vector<16x512xf32>
    %1328 = arith.addf %1323, %1327 : vector<16x512xf32>
    %1329 = vector.extract_strided_slice %1320 {offsets = [0, 0], sizes = [16, 128], strides = [1, 1]} : vector<16x512xf32> to vector<16x128xf32>
    %cst_550 = arith.constant 5.000000e-01 : f32
    %1330 = vector.broadcast %cst_550 : f32 to vector<16x128xf32>
    %1331 = arith.mulf %1330, %1329 : vector<16x128xf32>
    %1332 = math.tanh %1331 : vector<16x128xf32>
    %cst_551 = arith.constant 5.000000e-01 : f32
    %1333 = vector.broadcast %cst_551 : f32 to vector<16x128xf32>
    %1334 = arith.mulf %1333, %1332 : vector<16x128xf32>
    %cst_552 = arith.constant 5.000000e-01 : f32
    %1335 = vector.broadcast %cst_552 : f32 to vector<16x128xf32>
    %1336 = arith.addf %1334, %1335 : vector<16x128xf32>
    %1337 = vector.extract_strided_slice %1320 {offsets = [0, 128], sizes = [16, 128], strides = [1, 1]} : vector<16x512xf32> to vector<16x128xf32>
    %cst_553 = arith.constant 5.000000e-01 : f32
    %1338 = vector.broadcast %cst_553 : f32 to vector<16x128xf32>
    %1339 = arith.mulf %1338, %1337 : vector<16x128xf32>
    %1340 = math.tanh %1339 : vector<16x128xf32>
    %cst_554 = arith.constant 5.000000e-01 : f32
    %1341 = vector.broadcast %cst_554 : f32 to vector<16x128xf32>
    %1342 = arith.mulf %1341, %1340 : vector<16x128xf32>
    %cst_555 = arith.constant 5.000000e-01 : f32
    %1343 = vector.broadcast %cst_555 : f32 to vector<16x128xf32>
    %1344 = arith.addf %1342, %1343 : vector<16x128xf32>
    %1345 = vector.extract_strided_slice %1320 {offsets = [0, 256], sizes = [16, 128], strides = [1, 1]} : vector<16x512xf32> to vector<16x128xf32>
    %1346 = math.tanh %1345 : vector<16x128xf32>
    %1347 = vector.extract_strided_slice %1320 {offsets = [0, 384], sizes = [16, 128], strides = [1, 1]} : vector<16x512xf32> to vector<16x128xf32>
    %cst_556 = arith.constant 5.000000e-01 : f32
    %1348 = vector.broadcast %cst_556 : f32 to vector<16x128xf32>
    %1349 = arith.mulf %1348, %1347 : vector<16x128xf32>
    %1350 = math.tanh %1349 : vector<16x128xf32>
    %cst_557 = arith.constant 5.000000e-01 : f32
    %1351 = vector.broadcast %cst_557 : f32 to vector<16x128xf32>
    %1352 = arith.mulf %1351, %1350 : vector<16x128xf32>
    %cst_558 = arith.constant 5.000000e-01 : f32
    %1353 = vector.broadcast %cst_558 : f32 to vector<16x128xf32>
    %1354 = arith.addf %1352, %1353 : vector<16x128xf32>
    %1355 = arith.mulf %1344, %1276 : vector<16x128xf32>
    %1356 = arith.mulf %1336, %1346 : vector<16x128xf32>
    %1357 = arith.addf %1355, %1356 : vector<16x128xf32>
    %1358 = math.tanh %1357 : vector<16x128xf32>
    %1359 = arith.mulf %1354, %1358 : vector<16x128xf32>
    %1360 = vector.extract_strided_slice %1328 {offsets = [0, 0], sizes = [16, 128], strides = [1, 1]} : vector<16x512xf32> to vector<16x128xf32>
    %cst_559 = arith.constant 5.000000e-01 : f32
    %1361 = vector.broadcast %cst_559 : f32 to vector<16x128xf32>
    %1362 = arith.mulf %1361, %1360 : vector<16x128xf32>
    %1363 = math.tanh %1362 : vector<16x128xf32>
    %cst_560 = arith.constant 5.000000e-01 : f32
    %1364 = vector.broadcast %cst_560 : f32 to vector<16x128xf32>
    %1365 = arith.mulf %1364, %1363 : vector<16x128xf32>
    %cst_561 = arith.constant 5.000000e-01 : f32
    %1366 = vector.broadcast %cst_561 : f32 to vector<16x128xf32>
    %1367 = arith.addf %1365, %1366 : vector<16x128xf32>
    %1368 = vector.extract_strided_slice %1328 {offsets = [0, 128], sizes = [16, 128], strides = [1, 1]} : vector<16x512xf32> to vector<16x128xf32>
    %cst_562 = arith.constant 5.000000e-01 : f32
    %1369 = vector.broadcast %cst_562 : f32 to vector<16x128xf32>
    %1370 = arith.mulf %1369, %1368 : vector<16x128xf32>
    %1371 = math.tanh %1370 : vector<16x128xf32>
    %cst_563 = arith.constant 5.000000e-01 : f32
    %1372 = vector.broadcast %cst_563 : f32 to vector<16x128xf32>
    %1373 = arith.mulf %1372, %1371 : vector<16x128xf32>
    %cst_564 = arith.constant 5.000000e-01 : f32
    %1374 = vector.broadcast %cst_564 : f32 to vector<16x128xf32>
    %1375 = arith.addf %1373, %1374 : vector<16x128xf32>
    %1376 = vector.extract_strided_slice %1328 {offsets = [0, 256], sizes = [16, 128], strides = [1, 1]} : vector<16x512xf32> to vector<16x128xf32>
    %1377 = math.tanh %1376 : vector<16x128xf32>
    %1378 = vector.extract_strided_slice %1328 {offsets = [0, 384], sizes = [16, 128], strides = [1, 1]} : vector<16x512xf32> to vector<16x128xf32>
    %cst_565 = arith.constant 5.000000e-01 : f32
    %1379 = vector.broadcast %cst_565 : f32 to vector<16x128xf32>
    %1380 = arith.mulf %1379, %1378 : vector<16x128xf32>
    %1381 = math.tanh %1380 : vector<16x128xf32>
    %cst_566 = arith.constant 5.000000e-01 : f32
    %1382 = vector.broadcast %cst_566 : f32 to vector<16x128xf32>
    %1383 = arith.mulf %1382, %1381 : vector<16x128xf32>
    %cst_567 = arith.constant 5.000000e-01 : f32
    %1384 = vector.broadcast %cst_567 : f32 to vector<16x128xf32>
    %1385 = arith.addf %1383, %1384 : vector<16x128xf32>
    %1386 = arith.mulf %1375, %1307 : vector<16x128xf32>
    %1387 = arith.mulf %1367, %1377 : vector<16x128xf32>
    %1388 = arith.addf %1386, %1387 : vector<16x128xf32>
    %1389 = math.tanh %1388 : vector<16x128xf32>
    %1390 = arith.mulf %1385, %1389 : vector<16x128xf32>
    %1391 = arith.addf %1310, %1359 : vector<16x128xf32>
    %1392 = arith.addf %1311, %1390 : vector<16x128xf32>
    %c8_i32_568 = arith.constant 8 : i32
    %cst_569 = arith.constant 1.250000e-01 : f32
    %1393 = vector.broadcast %cst_569 : f32 to vector<16x128xf32>
    %1394 = arith.mulf %1391, %1393 : vector<16x128xf32>
    %1395 = arith.truncf %1394 : vector<16x128xf32> to vector<16x128xbf16>
    %c0_570 = arith.constant 0 : index
    %c0_571 = arith.constant 0 : index
    %1396 = vector.load %arg8[%c0_570, %c0_571] : memref<256x3xbf16, #tpu.memory_space<vmem>>, vector<128x3xbf16>
    %cst_572 = arith.constant dense<0.000000e+00> : vector<16x3xf32>
    %1397 = tpu.matmul %1395, %1396, %cst_572 {dimension_numbers = #tpu.dot_dimension_numbers<[1], [0], [0], [1], [0, 0, 1, 1], [], []>} : vector<16x128xbf16>, vector<128x3xbf16>, vector<16x3xf32> -> vector<16x3xf32>
    %cst_573 = arith.constant 1.250000e-01 : f32
    %1398 = vector.broadcast %cst_573 : f32 to vector<16x128xf32>
    %1399 = arith.mulf %1392, %1398 : vector<16x128xf32>
    %1400 = arith.truncf %1399 : vector<16x128xf32> to vector<16x128xbf16>
    %c128_574 = arith.constant 128 : index
    %c0_575 = arith.constant 0 : index
    %1401 = vector.load %arg8[%c128_574, %c0_575] : memref<256x3xbf16, #tpu.memory_space<vmem>>, vector<128x3xbf16>
    %cst_576 = arith.constant dense<0.000000e+00> : vector<16x3xf32>
    %1402 = tpu.matmul %1400, %1401, %cst_576 {dimension_numbers = #tpu.dot_dimension_numbers<[1], [0], [0], [1], [0, 0, 1, 1], [], []>} : vector<16x128xbf16>, vector<128x3xbf16>, vector<16x3xf32> -> vector<16x3xf32>
    %1403 = arith.addf %1397, %1402 : vector<16x3xf32>
    %c0_577 = arith.constant 0 : index
    %c0_578 = arith.constant 0 : index
    %1404 = vector.load %arg9[%c0_577, %c0_578] : memref<1x3xf32, #tpu.memory_space<vmem>>, vector<1x3xf32>
    %1405 = vector.broadcast %1404 : vector<1x3xf32> to vector<16x3xf32>
    %1406 = arith.addf %1403, %1405 : vector<16x3xf32>
    %c0_579 = arith.constant 0 : index
    %c0_580 = arith.constant 0 : index
    %1407 = vector.load %arg10[%c0_579, %c0_580] : memref<16x3xf32, #tpu.memory_space<vmem>>, vector<16x3xf32>
    tpu.vector_store %arg10[%c0_579, %c0_580], %1406 {strides = array<i32>} : memref<16x3xf32, #tpu.memory_space<vmem>>, vector<16x3xf32>,
    return
  }
  func.func @transform_0(%arg0: i32) -> (i32, i32, i32) {
    %c0_i32 = arith.constant 0 : i32
    %c0_i32_0 = arith.constant 0 : i32
    %c0_i32_1 = arith.constant 0 : i32
    return %c0_i32, %arg0, %c0_i32_0 : i32, i32, i32
  }
  func.func @transform_1(%arg0: i32) -> (i32, i32) {
    %c0_i32 = arith.constant 0 : i32
    %c0_i32_0 = arith.constant 0 : i32
    %c0_i32_1 = arith.constant 0 : i32
    return %c0_i32, %c0_i32_0 : i32, i32
  }
  func.func @transform_2(%arg0: i32) -> (i32, i32, i32) {
    %c0_i32 = arith.constant 0 : i32
    %c0_i32_0 = arith.constant 0 : i32
    %c0_i32_1 = arith.constant 0 : i32
    %c0_i32_2 = arith.constant 0 : i32
    return %c0_i32, %c0_i32_0, %c0_i32_1 : i32, i32, i32
  }
  func.func @transform_3(%arg0: i32) -> (i32, i32) {
    %c0_i32 = arith.constant 0 : i32
    %c0_i32_0 = arith.constant 0 : i32
    %c0_i32_1 = arith.constant 0 : i32
    return %c0_i32, %c0_i32_0 : i32, i32
  }
  func.func @transform_4(%arg0: i32) -> (i32, i32) {
    %c0_i32 = arith.constant 0 : i32
    %c0_i32_0 = arith.constant 0 : i32
    %c0_i32_1 = arith.constant 0 : i32
    return %c0_i32, %c0_i32_0 : i32, i32
  }
  func.func @transform_5(%arg0: i32) -> (i32, i32, i32) {
    %c0_i32 = arith.constant 0 : i32
    %c0_i32_0 = arith.constant 0 : i32
    %c0_i32_1 = arith.constant 0 : i32
    %c0_i32_2 = arith.constant 0 : i32
    return %c0_i32, %c0_i32_0, %c0_i32_1 : i32, i32, i32
  }
  func.func @transform_6(%arg0: i32) -> (i32, i32) {
    %c0_i32 = arith.constant 0 : i32
    %c0_i32_0 = arith.constant 0 : i32
    %c0_i32_1 = arith.constant 0 : i32
    return %c0_i32, %c0_i32_0 : i32, i32
  }
  func.func @transform_7(%arg0: i32) -> (i32, i32) {
    %c0_i32 = arith.constant 0 : i32
    %c0_i32_0 = arith.constant 0 : i32
    %c0_i32_1 = arith.constant 0 : i32
    return %c0_i32, %c0_i32_0 : i32, i32
  }
  func.func @transform_8(%arg0: i32) -> (i32, i32) {
    %c0_i32 = arith.constant 0 : i32
    %c0_i32_0 = arith.constant 0 : i32
    %c0_i32_1 = arith.constant 0 : i32
    return %c0_i32, %c0_i32_0 : i32, i32
  }
  func.func @transform_9(%arg0: i32) -> (i32, i32) {
    %c0_i32 = arith.constant 0 : i32
    %c0_i32_0 = arith.constant 0 : i32
    return %arg0, %c0_i32 : i32, i32
  }
}

</mosaic_0001>

<bundles_post_ra>
// kernel: bilstm_model_forward.1
= control target key start
LH: loop header
LB: loop body
LE: loop exit
PB: predicated region body
PF: predicated region fallthrough
CT: control target
= control target key end

     0   :  { %s14760_s30 = smov 0   ;;  %s14762_s10 = smov 0   ;;  %s19681_s0 = inlined_call_operand.vmem [shape: bf16[8,32,64], index: 0, kind: input, shape index: {}]   ;;  %s19682_s1 = inlined_call_operand.vmem [shape: bf16[64,1024], index: 1, kind: input, shape index: {}]   ;;  %s19683_s2 = inlined_call_operand.vmem [shape: bf16[2,128,512], index: 2, kind: input, shape index: {}]   ;;  %s19684_s3 = inlined_call_operand.vmem [shape: f32[1,1024], index: 3, kind: input, shape index: {}]   ;;  %s19685_s4 = inlined_call_operand.vmem [shape: bf16[256,1024], index: 4, kind: input, shape index: {}]   ;;  %s19686_s5 = inlined_call_operand.vmem [shape: bf16[2,128,512], index: 5, kind: input, shape index: {}]   ;;  %s19687_s6 = inlined_call_operand.vmem [shape: f32[1,1024], index: 6, kind: input, shape index: {}]   ;;  %s19688_s7 = inlined_call_operand.vmem [shape: bf16[256,3], index: 7, kind: input, shape index: {}]   ;;  %s19689_s8 = inlined_call_operand.vmem [shape: f32[1,3], index: 8, kind: input, shape index: {}]   ;;  %s19690_s9 = inlined_call_operand.vmem [shape: f32[32,3], index: 9, kind: output, shape index: {}]  }
   0x1   :  { %s14764_s11 = smov 0  }
   0x2 LB: > { %s11589_s12 = sadd.s32 4294967295, %s14705_s11   ;;  %s14777_s13 = sadd.s32 1, %s14705_s11   ;;  %s14705_s11 = sphi %s14764_s11, %s20309_s11   ;;  %s14701_s10 = sphi %s14762_s10, %s20308_s10   ;;  %s14697_s30 = sphi %s14760_s30, %s20307_s30  }
   0x3   : > { %s23_s14 = ssub.s32 %s14705_s11, %s14777_s13  ;;  %s26_s15 = sadd.s32 1, %s14701_s10 }
   0x4   : > { %p24_p0 = scmp.eq.s32.totalorder %s23_s14, 0  ;;  %p33_p1 = scmp.ne.s32.totalorder %s14701_s10, %s14697_s30 }
   0x5   : > { %p34_p2 = scmp.eq.s32.totalorder %s14705_s11, 0  ;;  %p11592_p4 = scmp.ge.s32.totalorder %s14705_s11, 2 }
   0x6   : > { %s14786_s16 = scalar_select %p24_p0, %s14701_s10, %s26_s15  }
   0x7   : > { %p35_p3 = por %p34_p2, %p33_p1  ;;  %277 = sbr.rel (%p11592_p4) target bundleno = 22 (0x16), region = 48 }
   0xe   : > { %280 = sbr.rel (!%p35_p3) target bundleno = 22 (0x16), region = 52  ;;  %s282_s17 = sand.u32 (%p35_p3), 1, %s14701_s10  }
   0xf   : > { %s12683_s18 = sshll.u32 (%p35_p3), %s14705_s11, 3  ;;  %s11593_s19 = sshll.u32 (%p35_p3), %s282_s17, 6 }
  0x10   : > { %s287_s22 = scalar_lea.vmem (%p35_p3), %s19681_s0, %s12683_s18  ;;  %s284_s23 = scalar_lea.vmem (%p35_p3), [#allocation6], %s11593_s19 }
  0x11   : > { %v303_v0 = vld [vmem:[%s287_s22] sm:$0xff] (%p35_p3)   ;;  %v307_v1 = vld [vmem:[%s287_s22 + $0x10] sm:$0xff] (%p35_p3)  }
  0x12   : > { %v311_v2 = vld [vmem:[%s287_s22 + $0x20] sm:$0xff] (%p35_p3)   ;;  %304 = vst [vmem:[%s284_s23] sm:$0xff] (%p35_p3), %v303_v0   ;;  %308 = vst [vmem:[%s284_s23 + $0x8] sm:$0xff] (%p35_p3), %v307_v1   ;;  %v315_v3 = vld [vmem:[%s287_s22 + $0x30] sm:$0xff] (%p35_p3)  }
  0x13   : > { %312 = vst [vmem:[%s284_s23 + $0x10] sm:$0xff] (%p35_p3), %v311_v2   ;;  %v319_v4 = vld [vmem:[%s287_s22 + $0x40] sm:$0xff] (%p35_p3)   ;;  %v323_v5 = vld [vmem:[%s287_s22 + $0x50] sm:$0xff] (%p35_p3)   ;;  %316 = vst [vmem:[%s284_s23 + $0x18] sm:$0xff] (%p35_p3), %v315_v3  }
  0x14   : > { %320 = vst [vmem:[%s284_s23 + $0x20] sm:$0xff] (%p35_p3), %v319_v4   ;;  %324 = vst [vmem:[%s284_s23 + $0x28] sm:$0xff] (%p35_p3), %v323_v5   ;;  %v327_v6 = vld [vmem:[%s287_s22 + $0x60] sm:$0xff] (%p35_p3)   ;;  %v331_v7 = vld [vmem:[%s287_s22 + $0x70] sm:$0xff] (%p35_p3)  }
  0x15   : > { %328 = vst [vmem:[%s284_s23 + $0x30] sm:$0xff] %v327_v6   ;;  %332 = vst [vmem:[%s284_s23 + $0x38] sm:$0xff] %v331_v7  }
  0x16 PF: > { %p11596_p5 = scmp.ge.s32.totalorder %s14705_s11, 1  ;;  %p388_p6 = scmp.lt.s32.totalorder %s14705_s11, 3 }
  0x18   : > { %p389_p7 = pnand %p11596_p5, %p388_p6 }
  0x1a   : > { %392 = sbr.rel (%p389_p7) target bundleno = 4789 (0x12b5), region = 93 }
  0x21   : > { %v454_v8 = vld [vmem:[%s19682_s1] sm:$0xff]  ;;  %v455_v10 = vld [vmem:[%s19682_s1 + $0x8] sm:$0xff]  ;;  %s395_s14 = sand.u32 1, %s14697_s30   ;;  %v19691_v16 = vmov 0   ;;  %v456_v39 = vld [vmem:[%s19682_s1 + $0x10] sm:$0xff]  ;;  %vm728_vm0 = vcmask 523264  }
  0x22   : > { %v458_v9 = vld [vmem:[%s19682_s1 + $0x20] sm:$0xff]  ;;  %v459_v12 = vld [vmem:[%s19682_s1 + $0x28] sm:$0xff]  ;;  %785 = vmatprep.mubr.bf16.mxu0 %v19691_v16  ;;  %898 = vmatprep.mubr.bf16.mxu1 %v19691_v16  ;;  %s11597_s30 = sshll.u32 %s395_s14, 6  ;;  %v460_v40 = vld [vmem:[%s19682_s1 + $0x30] sm:$0xff]  ;;  %vm14709_vm1 = vmmov 0   ;;  %vm11524_vm2 = vcmask 23552  }
  0x23   : > { %v11609_v11 = vcombine.high %v454_v8, %v458_v9  ;;  %v11608_v13 = vcombine.low %v454_v8, %v458_v9  ;;  %v462_v14 = vld [vmem:[%s19682_s1 + $0x40] sm:$0xff]  ;;  %v11611_v17 = vcombine.high %v455_v10, %v459_v12  ;;  %v11610_v18 = vcombine.low %v455_v10, %v459_v12  ;;  %v463_v20 = vld [vmem:[%s19682_s1 + $0x48] sm:$0xff]  ;;  %s14835_s19 = scalar_lea.vmem [#allocation6], %s11597_s30  ;;  %v457_v41 = vld [vmem:[%s19682_s1 + $0x18] sm:$0xff] }
  0x24   : > { %v466_v15 = vld [vmem:[%s19682_s1 + $0x60] sm:$0xff]  ;;  %v467_v21 = vld [vmem:[%s19682_s1 + $0x68] sm:$0xff]  ;;  %v461_v42 = vld [vmem:[%s19682_s1 + $0x38] sm:$0xff]  ;;  %v11613_v46 = vcombine.high %v456_v39, %v460_v40  ;;  %v11612_v50 = vcombine.low %v456_v39, %v460_v40 }
  0x25   : > { %v11617_v19 = vcombine.high %v462_v14, %v466_v15  ;;  %v470_v22 = vld [vmem:[%s19682_s1 + $0x80] sm:$0xff]  ;;  %753 = vmatprep.subr.bf16.mxu0 %v11609_v11  ;;  %v11619_v23 = vcombine.high %v463_v20, %v467_v21  ;;  %v471_v25 = vld [vmem:[%s19682_s1 + $0x88] sm:$0xff]  ;;  %866 = vmatprep.subr.bf16.mxu1 %v11611_v17  ;;  %v11616_v27 = vcombine.low %v462_v14, %v466_v15  ;;  %v464_v48 = vld [vmem:[%s19682_s1 + $0x50] sm:$0xff] }
  0x26   : > { %v474_v24 = vld [vmem:[%s19682_s1 + $0xa0] sm:$0xff]  ;;  %v475_v26 = vld [vmem:[%s19682_s1 + $0xa8] sm:$0xff]  ;;  %754 = vmatpush1.bf16.msra.mxu0 %v11608_v13  ;;  %867 = vmatpush1.bf16.msra.mxu1 %v11610_v18  ;;  %v11618_v28 = vcombine.low %v463_v20, %v467_v21  ;;  %v11615_v47 = vcombine.high %v457_v41, %v461_v42  ;;  %v468_v49 = vld [vmem:[%s19682_s1 + $0x70] sm:$0xff]  ;;  %v11614_v54 = vcombine.low %v457_v41, %v461_v42 }
  0x27   : > { %755 = vmatprep.subr.bf16.mxu0 %v11617_v19  ;;  %v11625_v29 = vcombine.high %v470_v22, %v474_v24  ;;  %868 = vmatprep.subr.bf16.mxu1 %v11619_v23  ;;  %v11627_v30 = vcombine.high %v471_v25, %v475_v26  ;;  %v478_v31 = vld [vmem:[%s19682_s1 + $0xc0] sm:$0xff]  ;;  %v479_v33 = vld [vmem:[%s19682_s1 + $0xc8] sm:$0xff]  ;;  %v11624_v35 = vcombine.low %v470_v22, %v474_v24  ;;  %v465_v51 = vld [vmem:[%s19682_s1 + $0x58] sm:$0xff] }
  0x28   : > { %v482_v32 = vld [vmem:[%s19682_s1 + $0xe0] sm:$0xff]  ;;  %v483_v34 = vld [vmem:[%s19682_s1 + $0xe8] sm:$0xff]  ;;  %v11626_v36 = vcombine.low %v471_v25, %v475_v26  ;;  %v469_v52 = vld [vmem:[%s19682_s1 + $0x78] sm:$0xff]  ;;  %v11621_v55 = vcombine.high %v464_v48, %v468_v49  ;;  %v11620_v59 = vcombine.low %v464_v48, %v468_v49 }
  0x29   : > { %v11633_v37 = vcombine.high %v478_v31, %v482_v32  ;;  %v11635_v38 = vcombine.high %v479_v33, %v483_v34  ;;  %v11632_v43 = vcombine.low %v478_v31, %v482_v32  ;;  %v11634_v44 = vcombine.low %v479_v33, %v483_v34  ;;  %v14862_v45 = vld [vmem:[%s14835_s19] sm:$0xff]   ;;  %v472_v53 = vld [vmem:[%s19682_s1 + $0x90] sm:$0xff]  ;;  %v473_v58 = vld [vmem:[%s19682_s1 + $0x98] sm:$0xff] }
  0x2a   : > { %756 = vmatpush1.bf16.msra.mxu0 %v11616_v27  ;;  %869 = vmatpush1.bf16.msra.mxu1 %v11618_v28  ;;  %v476_v56 = vld [vmem:[%s19682_s1 + $0xb0] sm:$0xff]  ;;  %v11623_v57 = vcombine.high %v465_v51, %v469_v52  ;;  %v477_v60 = vld [vmem:[%s19682_s1 + $0xb8] sm:$0xff]  ;;  %v14895_v62 = vld [vmem:[%s14835_s19 + $0x8] sm:$0xff]   ;;  %v11622_v63 = vcombine.low %v465_v51, %v469_v52 }
  0x2b   : > { %757 = vmatprep.subr.bf16.mxu0 %v11625_v29  ;;  %870 = vmatprep.subr.bf16.mxu1 %v11627_v30  ;;  %v11629_v61 = vcombine.high %v472_v53, %v476_v56  ;;  %v480_v0 = vld [vmem:[%s19682_s1 + $0xd0] sm:$0xff]  ;;  %v11631_v1 = vcombine.high %v473_v58, %v477_v60  ;;  %v481_v3 = vld [vmem:[%s19682_s1 + $0xd8] sm:$0xff]  ;;  %v11628_v5 = vcombine.low %v472_v53, %v476_v56  ;;  %v14940_v15 = vld [vmem:[%s14835_s19 + $0x20] sm:$0xff]  }
  0x2c   : > { %v484_v2 = vld [vmem:[%s19682_s1 + $0xf0] sm:$0xff]  ;;  %v485_v4 = vld [vmem:[%s19682_s1 + $0xf8] sm:$0xff]  ;;  %v11630_v6 = vcombine.low %v473_v58, %v477_v60  ;;  %v14949_v17 = vld [vmem:[%s14835_s19 + $0x28] sm:$0xff]  }
  0x2d   : > { %v11637_v7 = vcombine.high %v480_v0, %v484_v2  ;;  %v11639_v8 = vcombine.high %v481_v3, %v485_v4  ;;  %v11636_v9 = vcombine.low %v480_v0, %v484_v2  ;;  %v11638_v10 = vcombine.low %v481_v3, %v485_v4  ;;  %v13419_v11 = vld [vmem:[%s19683_s2 + $0x4] ss:$16 sps:$4 sm:$0xff]   ;;  %v13422_v13 = vld [vmem:[%s19683_s2 + $0xc] ss:$16 sps:$4 sm:$0xff]   ;;  %v14978_v20 = vld [vmem:[%s19683_s2] ss:$16 sps:$4 sm:$0xff]  }
  0x2e   : > { %758 = vmatpush1.bf16.msra.mxu0 %v11624_v35  ;;  %871 = vmatpush1.bf16.msra.mxu1 %v11626_v36  ;;  %v14919_v12 = vld [vmem:[%s14835_s19 + $0x10] sm:$0xff]   ;;  %v14931_v14 = vld [vmem:[%s14835_s19 + $0x18] sm:$0xff]  }
  0x2f   : > { %759 = vmatprep.subr.bf16.mxu0 %v11633_v37  ;;  %872 = vmatprep.subr.bf16.mxu1 %v11635_v38  ;;  %v14958_v18 = vld [vmem:[%s14835_s19 + $0x30] sm:$0xff]   ;;  %v14967_v19 = vld [vmem:[%s14835_s19 + $0x38] sm:$0xff]   ;;  %s11598_s19 = sshll.u32 %s11589_s12, 1 }
  0x30   : > { %v14983_v21 = vld [vmem:[%s19683_s2 + $0x8] ss:$16 sps:$4 sm:$0xff]   ;;  %v14988_v22 = vld [vmem:[%s19683_s2 + $0x24] ss:$16 sps:$4 sm:$0xff]   ;;  %v14993_v23 = vld [vmem:[%s19683_s2 + $0x2c] ss:$16 sps:$4 sm:$0xff]  }
  0x31   : > { %v14998_v24 = vld [vmem:[%s19683_s2 + $0x20] ss:$16 sps:$4 sm:$0xff]   ;;  %v15005_v25 = vld [vmem:[%s19683_s2 + $0x44] ss:$16 sps:$4 sm:$0xff]   ;;  %v15013_v26 = vld [vmem:[%s19683_s2 + $0x28] ss:$16 sps:$4 sm:$0xff]  }
  0x32   : > { %760 = vmatpush1.bf16.msra.mxu0 %v11632_v43  ;;  %873 = vmatpush1.bf16.msra.mxu1 %v11634_v44  ;;  %v15020_v27 = vld [vmem:[%s19683_s2 + $0x4c] ss:$16 sps:$4 sm:$0xff]   ;;  %v15028_v28 = vld [vmem:[%s19683_s2 + $0x40] ss:$16 sps:$4 sm:$0xff]   ;;  %v15034_v29 = vld [vmem:[%s19683_s2 + $0x48] ss:$16 sps:$4 sm:$0xff]  }
  0x33   : > { %979 = vmatprep.subr.bf16.mxu0 %v11613_v46  ;;  %1092 = vmatprep.subr.bf16.mxu1 %v11615_v47  ;;  %v15039_v30 = vld [vmem:[%s19683_s2 + $0x64] ss:$16 sps:$4 sm:$0xff]   ;;  %v15045_v31 = vld [vmem:[%s19683_s2 + $0x6c] ss:$16 sps:$4 sm:$0xff]   ;;  %v15054_v32 = vld [vmem:[%s19683_s2 + $0x60] ss:$16 sps:$4 sm:$0xff]  }
  0x34   : > { %v15062_v33 = vld [vmem:[%s19683_s2 + $0x68] ss:$16 sps:$4 sm:$0xff]   ;;  %v15067_v34 = vld [vmem:[%s19683_s2 + $0x84] ss:$16 sps:$4 sm:$0xff]   ;;  %v15074_v35 = vld [vmem:[%s19683_s2 + $0x8c] ss:$16 sps:$4 sm:$0xff]  }
  0x35   : > { %11640 = vmatmul.mubr.msk.bf16.vlgmr.msra.gmra.mrb[0].mxu0 %vm728_vm0, %v14862_v45  ;;  %11648 = vmatmul.mubr.msk.bf16.vlgmr.msra.gmra.mrb[0].mxu1 %vm728_vm0, %v14862_v45  ;;  %v15082_v36 = vld [vmem:[%s19683_s2 + $0x80] ss:$16 sps:$4 sm:$0xff]   ;;  %v15087_v37 = vld [vmem:[%s19683_s2 + $0x88] ss:$16 sps:$4 sm:$0xff]   ;;  %v15092_v38 = vld [vmem:[%s19683_s2 + $0xa4] ss:$16 sps:$4 sm:$0xff]  }
  0x36   : > { %980 = vmatpush1.bf16.msra.mxu0 %v11612_v50  ;;  %795 = vmatprep.mubr.bf16.mxu0 %v19691_v16  ;;  %v15098_v39 = vld [vmem:[%s19683_s2 + $0xac] ss:$16 sps:$4 sm:$0xff]   ;;  %v15108_v40 = vld [vmem:[%s19683_s2 + $0xa0] ss:$16 sps:$4 sm:$0xff]   ;;  %v15116_v41 = vld [vmem:[%s19683_s2 + $0xa8] ss:$16 sps:$4 sm:$0xff]  }
  0x37   : > { %908 = vmatprep.mubr.bf16.mxu1 %v19691_v16  ;;  %1093 = vmatpush1.bf16.msra.mxu1 %v11614_v54  ;;  %v15121_v42 = vld [vmem:[%s19683_s2 + $0xc4] ss:$16 sps:$4 sm:$0xff]   ;;  %v15128_v43 = vld [vmem:[%s19683_s2 + $0xcc] ss:$16 sps:$4 sm:$0xff]   ;;  %v15136_v44 = vld [vmem:[%s19683_s2 + $0xc0] ss:$16 sps:$4 sm:$0xff]  }
  0x38   : > { %981 = vmatprep.subr.bf16.mxu0 %v11621_v55  ;;  %1094 = vmatprep.subr.bf16.mxu1 %v11623_v57  ;;  %v15146_v46 = vld [vmem:[%s19683_s2 + $0xe4] ss:$16 sps:$4 sm:$0xff]   ;;  %v15152_v47 = vld [vmem:[%s19683_s2 + $0xec] ss:$16 sps:$4 sm:$0xff]   ;;  %v15162_v48 = vld [vmem:[%s19683_s2 + $0xe0] ss:$16 sps:$4 sm:$0xff]  }
  0x39   : > { %v15170_v49 = vld [vmem:[%s19683_s2 + $0xe8] ss:$16 sps:$4 sm:$0xff]   ;;  %v15175_v50 = vld [vmem:[%s19683_s2 + $0x104] ss:$16 sps:$4 sm:$0xff]   ;;  %v15182_v51 = vld [vmem:[%s19683_s2 + $0x10c] ss:$16 sps:$4 sm:$0xff]  }
  0x3a   : > { %982 = vmatpush1.bf16.msra.mxu0 %v11620_v59  ;;  %v15218_v52 = vld [vmem:[%s19683_s2 + $0x100] ss:$16 sps:$4 sm:$0xff]   ;;  %v15223_v53 = vld [vmem:[%s19683_s2 + $0x108] ss:$16 sps:$4 sm:$0xff]   ;;  %v15228_v54 = vld [vmem:[%s19683_s2 + $0x124] ss:$16 sps:$4 sm:$0xff]  }
  0x3b   : > { %983 = vmatprep.subr.bf16.mxu0 %v11629_v61  ;;  %1095 = vmatpush1.bf16.msra.mxu1 %v11622_v63  ;;  %v15233_v55 = vld [vmem:[%s19683_s2 + $0x12c] ss:$16 sps:$4 sm:$0xff]   ;;  %v15238_v56 = vld [vmem:[%s19683_s2 + $0x120] ss:$16 sps:$4 sm:$0xff]   ;;  %v15244_v57 = vld [vmem:[%s19683_s2 + $0x128] ss:$16 sps:$4 sm:$0xff]  }
  0x3c   : > { %1096 = vmatprep.subr.bf16.mxu1 %v11631_v1  ;;  %v15249_v58 = vld [vmem:[%s19683_s2 + $0x144] ss:$16 sps:$4 sm:$0xff]   ;;  %v15256_v59 = vld [vmem:[%s19683_s2 + $0x14c] ss:$16 sps:$4 sm:$0xff]   ;;  %v15264_v60 = vld [vmem:[%s19683_s2 + $0x140] ss:$16 sps:$4 sm:$0xff]  }
  0x3d   : > { %11641 = vmatmul.mubr.msk.bf16.gmra.mrb[4].mxu0 %vm728_vm0, %v14895_v62  ;;  %11649 = vmatmul.mubr.msk.bf16.gmra.mrb[4].mxu1 %vm728_vm0, %v14895_v62  ;;  %v15270_v61 = vld [vmem:[%s19683_s2 + $0x148] ss:$16 sps:$4 sm:$0xff]   ;;  %v15282_v63 = vld [vmem:[%s19683_s2 + $0x16c] ss:$16 sps:$4 sm:$0xff]   ;;  %v15290_v0 = vld [vmem:[%s19683_s2 + $0x160] ss:$16 sps:$4 sm:$0xff]  }
  0x3e   : > { %805 = vmatprep.mubr.bf16.mxu0 %v19691_v16  ;;  %918 = vmatprep.mubr.bf16.mxu1 %v19691_v16  ;;  %v15295_v1 = vld [vmem:[%s19683_s2 + $0x168] ss:$16 sps:$4 sm:$0xff]   ;;  %v15303_v2 = vld [vmem:[%s19683_s2 + $0x184] ss:$16 sps:$4 sm:$0xff]   ;;  %v15309_v3 = vld [vmem:[%s19683_s2 + $0x18c] ss:$16 sps:$4 sm:$0xff]  }
  0x3f   : > { %984 = vmatpush1.bf16.msra.mxu0 %v11628_v5  ;;  %1097 = vmatpush1.bf16.msra.mxu1 %v11630_v6  ;;  %v15315_v4 = vld [vmem:[%s19683_s2 + $0x180] ss:$16 sps:$4 sm:$0xff]   ;;  %v15322_v5 = vld [vmem:[%s19683_s2 + $0x188] ss:$16 sps:$4 sm:$0xff]   ;;  %v15327_v6 = vld [vmem:[%s19683_s2 + $0x1a4] ss:$16 sps:$4 sm:$0xff]  }
  0x40   : > { %985 = vmatprep.subr.bf16.mxu0 %v11637_v7  ;;  %1098 = vmatprep.subr.bf16.mxu1 %v11639_v8  ;;  %v15333_v7 = vld [vmem:[%s19683_s2 + $0x1ac] ss:$16 sps:$4 sm:$0xff]   ;;  %v15339_v8 = vld [vmem:[%s19683_s2 + $0x1a0] ss:$16 sps:$4 sm:$0xff]   ;;  %p432_p8 = scmp.lt.s32.totalorder %s11598_s19, 3 }
  0x42   : > { %s20311_s19 = smov (!%p432_p8, %s11598_s19), 3 }
  0x43   : > { %986 = vmatpush1.bf16.msra.mxu0 %v11636_v9  ;;  %1099 = vmatpush1.bf16.msra.mxu1 %v11638_v10  ;;  %v15346_v9 = vld [vmem:[%s19683_s2 + $0x1a8] ss:$16 sps:$4 sm:$0xff]   ;;  %v15351_v10 = vld [vmem:[%s19683_s2 + $0x1c4] ss:$16 sps:$4 sm:$0xff]   ;;  %s11599_s23 = sshll.u32 %s20311_s19, 3 }
  0x44   : > { %1533 = vmatprep.subr.bf16.mxu0 %v13419_v11  ;;  %1576 = vmatprep.subr.bf16.mxu1 %v13422_v13  ;;  %v15357_v11 = vld [vmem:[%s19683_s2 + $0x1cc] ss:$16 sps:$4 sm:$0xff]   ;;  %v15370_v13 = vld [vmem:[%s19683_s2 + $0x1c8] ss:$16 sps:$4 sm:$0xff]   ;;  %s435_s30 = scalar_lea.vmem %s19690_s9, %s11599_s23 }
  0x45   : > { %11642 = vmatmul.mubr.msk.bf16.gmra.mrb[8].mxu0 %vm728_vm0, %v14919_v12  ;;  %11650 = vmatmul.mubr.msk.bf16.gmra.mrb[8].mxu1 %vm728_vm0, %v14919_v12 }
  0x46   : > { %815 = vmatprep.mubr.bf16.mxu0 %v19691_v16  ;;  %928 = vmatprep.mubr.bf16.mxu1 %v19691_v16 }
  0x4d   : > { %11643 = vmatmul.mubr.msk.bf16.gmra.mrb[12].mxu0 %vm728_vm0, %v14931_v14  ;;  %11651 = vmatmul.mubr.msk.bf16.gmra.mrb[12].mxu1 %vm728_vm0, %v14931_v14 }
  0x4e   : > { %825 = vmatprep.mubr.bf16.mxu0 %v19691_v16  ;;  %938 = vmatprep.mubr.bf16.mxu1 %v19691_v16 }
  0x55   : > { %11644 = vmatmul.mubr.msk.bf16.gmra.mrb[16].mxu0 %vm728_vm0, %v14940_v15  ;;  %11652 = vmatmul.mubr.msk.bf16.gmra.mrb[16].mxu1 %vm728_vm0, %v14940_v15 }
  0x56   : > { %835 = vmatprep.mubr.bf16.mxu0 %v19691_v16  ;;  %948 = vmatprep.mubr.bf16.mxu1 %v19691_v16 }
  0x5d   : > { %11645 = vmatmul.mubr.msk.bf16.gmra.mrb[20].mxu0 %vm728_vm0, %v14949_v17  ;;  %11653 = vmatmul.mubr.msk.bf16.gmra.mrb[20].mxu1 %vm728_vm0, %v14949_v17 }
  0x5e   : > { %845 = vmatprep.mubr.bf16.mxu0 %v19691_v16  ;;  %958 = vmatprep.mubr.bf16.mxu1 %v19691_v16 }
  0x65   : > { %11646 = vmatmul.mubr.msk.bf16.gmra.mrb[24].mxu0 %vm728_vm0, %v14958_v18  ;;  %11654 = vmatmul.mubr.msk.bf16.gmra.mrb[24].mxu1 %vm728_vm0, %v14958_v18 }
  0x66   : > { %855 = vmatprep.mubr.bf16.mxu0 %v19691_v16  ;;  %968 = vmatprep.mubr.bf16.mxu1 %v19691_v16 }
  0x6d   : > { %11647 = vmatmul.mubr.msk.bf16.gmra.mrb[28].mxu0 %vm728_vm0, %v14967_v19  ;;  %11655 = vmatmul.mubr.msk.bf16.gmra.mrb[28].mxu1 %vm728_vm0, %v14967_v19 }
  0x6e   : > { %1011 = vmatprep.mubr.bf16.mxu0 %v19691_v16  ;;  %1124 = vmatprep.mubr.bf16.mxu1 %v19691_v16 }
  0x75   : > { %11656 = vmatmul.mubr.msk.bf16.vlgmr.msra.gmra.mrb[32].mxu0 %vm728_vm0, %v14862_v45  ;;  %11664 = vmatmul.mubr.msk.bf16.vlgmr.msra.gmra.mrb[32].mxu1 %vm728_vm0, %v14862_v45  ;;  %v15141_v45 = vld [vmem:[%s19683_s2 + $0xc8] ss:$16 sps:$4 sm:$0xff]  }
  0x76   : > { %1534 = vmatpush1.bf16.msra.mxu0 %v14978_v20  ;;  %1021 = vmatprep.mubr.bf16.mxu0 %v19691_v16 }
  0x77   : > { %1134 = vmatprep.mubr.bf16.mxu1 %v19691_v16  ;;  %1535 = vmatprep.subr.bf16.mxu0 %v14988_v22 }
  0x78   : > { %1577 = vmatpush1.bf16.msra.mxu1 %v14983_v21 }
  0x79   : > { %1578 = vmatprep.subr.bf16.mxu1 %v14993_v23 }
  0x7a   : > { %1536 = vmatpush1.bf16.msra.mxu0 %v14998_v24 }
  0x7b   : > { %1537 = vmatprep.subr.bf16.mxu0 %v15005_v25 }
  0x7c   : > { %1579 = vmatpush1.bf16.msra.mxu1 %v15013_v26 }
  0x7d   : > { %11657 = vmatmul.mubr.msk.bf16.gmra.mrb[36].mxu0 %vm728_vm0, %v14895_v62  ;;  %1580 = vmatprep.subr.bf16.mxu1 %v15020_v27 }
  0x7e   : > { %11665 = vmatmul.mubr.msk.bf16.gmra.mrb[36].mxu1 %vm728_vm0, %v14895_v62  ;;  %1031 = vmatprep.mubr.bf16.mxu0 %v19691_v16  ;;  %v15275_v62 = vld [vmem:[%s19683_s2 + $0x164] ss:$16 sps:$4 sm:$0xff]  }
  0x7f   : > { %1144 = vmatprep.mubr.bf16.mxu1 %v19691_v16  ;;  %1538 = vmatpush1.bf16.msra.mxu0 %v15028_v28 }
  0x80   : > { %1539 = vmatprep.subr.bf16.mxu0 %v15039_v30  ;;  %1581 = vmatpush1.bf16.msra.mxu1 %v15034_v29 }
  0x81   : > { %1582 = vmatprep.subr.bf16.mxu1 %v15045_v31 }
  0x83   : > { %1540 = vmatpush1.bf16.msra.mxu0 %v15054_v32 }
  0x84   : > { %1541 = vmatprep.subr.bf16.mxu0 %v15067_v34  ;;  %1583 = vmatpush1.bf16.msra.mxu1 %v15062_v33 }
  0x85   : > { %11658 = vmatmul.mubr.msk.bf16.gmra.mrb[40].mxu0 %vm728_vm0, %v14919_v12  ;;  %1584 = vmatprep.subr.bf16.mxu1 %v15074_v35 }
  0x86   : > { %11666 = vmatmul.mubr.msk.bf16.gmra.mrb[40].mxu1 %vm728_vm0, %v14919_v12  ;;  %1041 = vmatprep.mubr.bf16.mxu0 %v19691_v16  ;;  %v15363_v12 = vld [vmem:[%s19683_s2 + $0x1c0] ss:$16 sps:$4 sm:$0xff]  }
  0x87   : > { %1154 = vmatprep.mubr.bf16.mxu1 %v19691_v16  ;;  %1542 = vmatpush1.bf16.msra.mxu0 %v15082_v36 }
  0x88   : > { %1543 = vmatprep.subr.bf16.mxu0 %v15092_v38  ;;  %1585 = vmatpush1.bf16.msra.mxu1 %v15087_v37 }
  0x89   : > { %1586 = vmatprep.subr.bf16.mxu1 %v15098_v39 }
  0x8b   : > { %1544 = vmatpush1.bf16.msra.mxu0 %v15108_v40 }
  0x8c   : > { %1545 = vmatprep.subr.bf16.mxu0 %v15121_v42  ;;  %1587 = vmatpush1.bf16.msra.mxu1 %v15116_v41 }
  0x8d   : > { %11659 = vmatmul.mubr.msk.bf16.gmra.mrb[44].mxu0 %vm728_vm0, %v14931_v14  ;;  %1588 = vmatprep.subr.bf16.mxu1 %v15128_v43 }
  0x8e   : > { %11667 = vmatmul.mubr.msk.bf16.gmra.mrb[44].mxu1 %vm728_vm0, %v14931_v14  ;;  %1051 = vmatprep.mubr.bf16.mxu0 %v19691_v16  ;;  %v15375_v14 = vld [vmem:[%s19683_s2 + $0x1e4] ss:$16 sps:$4 sm:$0xff]  }
  0x8f   : > { %1164 = vmatprep.mubr.bf16.mxu1 %v19691_v16  ;;  %1546 = vmatpush1.bf16.msra.mxu0 %v15136_v44  ;;  %19930 = vst [vmem:[#allocation7_spill] sm:$0xff] %v15375_v14 }
  0x90   : > { %1547 = vmatprep.subr.bf16.mxu0 %v15146_v46  ;;  %1589 = vmatpush1.bf16.msra.mxu1 %v15141_v45 }
  0x91   : > { %1590 = vmatprep.subr.bf16.mxu1 %v15152_v47 }
  0x93   : > { %1548 = vmatpush1.bf16.msra.mxu0 %v15162_v48 }
  0x94   : > { %1591 = vmatpush1.bf16.msra.mxu1 %v15170_v49  ;;  %1829 = vmatprep.subr.bf16.mxu0 %v15175_v50 }
  0x95   : > { %11660 = vmatmul.mubr.msk.bf16.gmra.mrb[48].mxu0 %vm728_vm0, %v14940_v15  ;;  %1872 = vmatprep.subr.bf16.mxu1 %v15182_v51 }
  0x96   : > { %11668 = vmatmul.mubr.msk.bf16.gmra.mrb[48].mxu1 %vm728_vm0, %v14940_v15  ;;  %1061 = vmatprep.mubr.bf16.mxu0 %v19691_v16  ;;  %v15381_v15 = vld [vmem:[%s19683_s2 + $0x1ec] ss:$16 sps:$4 sm:$0xff]  }
  0x97   : > { %1174 = vmatprep.mubr.bf16.mxu1 %v19691_v16 }
  0x9d   : > { %11661 = vmatmul.mubr.msk.bf16.gmra.mrb[52].mxu0 %vm728_vm0, %v14949_v17 }
  0x9e   : > { %11669 = vmatmul.mubr.msk.bf16.gmra.mrb[52].mxu1 %vm728_vm0, %v14949_v17  ;;  %1071 = vmatprep.mubr.bf16.mxu0 %v19691_v16  ;;  %v15387_v17 = vld [vmem:[%s19683_s2 + $0x1e0] ss:$16 sps:$4 sm:$0xff]  }
  0x9f   : > { %1184 = vmatprep.mubr.bf16.mxu1 %v19691_v16 }
  0xa5   : > { %11662 = vmatmul.mubr.msk.bf16.gmra.mrb[56].mxu0 %vm728_vm0, %v14958_v18 }
  0xa6   : > { %11670 = vmatmul.mubr.msk.bf16.gmra.mrb[56].mxu1 %vm728_vm0, %v14958_v18  ;;  %1081 = vmatprep.mubr.bf16.mxu0 %v19691_v16  ;;  %v15394_v18 = vld [vmem:[%s19683_s2 + $0x1e8] ss:$16 sps:$4 sm:$0xff]  }
  0xa7   : > { %1194 = vmatprep.mubr.bf16.mxu1 %v19691_v16 }
  0xad   : > { %11663 = vmatmul.mubr.msk.bf16.gmra.mrb[60].mxu0 %vm728_vm0, %v14967_v19 }
  0xae   : > { %11671 = vmatmul.mubr.msk.bf16.gmra.mrb[60].mxu1 %vm728_vm0, %v14967_v19  ;;  %1565 = vmatprep.mubr.bf16.mxu0 %v19691_v16  ;;  %v14553_v19 = vld [vmem:[%s19683_s2 + $0x4] ss:$16 sps:$4 sm:$0xff]  }
  0xaf   : > { %1608 = vmatprep.mubr.bf16.mxu1 %v19691_v16 }
  0xb5   : > { %1566 = vmatmul.mubr.bf16.vlgmr.msra.gmra.mrb[0].mxu0 %v19691_v16 }
  0xb6   : > { %1609 = vmatmul.mubr.bf16.vlgmr.msra.gmra.mrb[0].mxu1 %v19691_v16  ;;  %1830 = vmatpush1.bf16.msra.mxu0 %v15218_v52 }
  0xb7   : > { %1873 = vmatpush1.bf16.msra.mxu1 %v15223_v53  ;;  %1831 = vmatprep.subr.bf16.mxu0 %v15228_v54 }
  0xb8   : > { %1874 = vmatprep.subr.bf16.mxu1 %v15233_v55  ;;  %1861 = vmatprep.mubr.bf16.mxu0 %v19691_v16 }
  0xb9   : > { %1904 = vmatprep.mubr.bf16.mxu1 %v19691_v16  ;;  %v14554_v16 = vld [vmem:[%s19683_s2 + $0xc] ss:$16 sps:$4 sm:$0xff]  }
  0xba   : > { %1832 = vmatpush1.bf16.msra.mxu0 %v15238_v56 }
  0xbb   : > { %1875 = vmatpush1.bf16.msra.mxu1 %v15244_v57  ;;  %1833 = vmatprep.subr.bf16.mxu0 %v15249_v58 }
  0xbc   : > { %1876 = vmatprep.subr.bf16.mxu1 %v15256_v59 }
  0xbe   : > { %1834 = vmatpush1.bf16.msra.mxu0 %v15264_v60 }
  0xbf   : > { %1877 = vmatpush1.bf16.msra.mxu1 %v15270_v61  ;;  %1835 = vmatprep.subr.bf16.mxu0 %v15275_v62 }
  0xc0   : > { %1878 = vmatprep.subr.bf16.mxu1 %v15282_v63 }
  0xc2   : > { %1836 = vmatpush1.bf16.msra.mxu0 %v15290_v0 }
  0xc3   : > { %1879 = vmatpush1.bf16.msra.mxu1 %v15295_v1  ;;  %1837 = vmatprep.subr.bf16.mxu0 %v15303_v2 }
  0xc4   : > { %1880 = vmatprep.subr.bf16.mxu1 %v15309_v3 }
  0xc6   : > { %1838 = vmatpush1.bf16.msra.mxu0 %v15315_v4 }
  0xc7   : > { %1881 = vmatpush1.bf16.msra.mxu1 %v15322_v5  ;;  %1839 = vmatprep.subr.bf16.mxu0 %v15327_v6 }
  0xc8   : > { %1882 = vmatprep.subr.bf16.mxu1 %v15333_v7 }
  0xca   : > { %1840 = vmatpush1.bf16.msra.mxu0 %v15339_v8 }
  0xcb   : > { %1883 = vmatpush1.bf16.msra.mxu1 %v15346_v9  ;;  %1841 = vmatprep.subr.bf16.mxu0 %v15351_v10 }
  0xcc   : > { %1884 = vmatprep.subr.bf16.mxu1 %v15357_v11 }
  0xce   : > { %1842 = vmatpush1.bf16.msra.mxu0 %v15363_v12 }
  0xcf   : > { %1885 = vmatpush1.bf16.msra.mxu1 %v15370_v13  ;;  %1843 = vmatprep.subr.bf16.mxu0 %v15375_v14  ;;  %v19931_v14 = vmov 0  }
  0xd0   : > { %1886 = vmatprep.subr.bf16.mxu1 %v15381_v15 }
  0xd2   : > { %1844 = vmatpush1.bf16.msra.mxu0 %v15387_v17 }
  0xd3   : > { %1887 = vmatpush1.bf16.msra.mxu1 %v15394_v18  ;;  %2201 = vmatprep.subr.bf16.mxu0 %v14553_v19 }
  0xd4   : > { %2244 = vmatprep.subr.bf16.mxu1 %v14554_v16  ;;  %v488_v16 = vlaneseq }
  0xd5   : > { %1862 = vmatmul.mubr.bf16.vlgmr.msra.gmra.mrb[60].mxu0 %v19931_v14 }
  0xd6   : > { %1905 = vmatmul.mubr.bf16.vlgmr.msra.gmra.mrb[60].mxu1 %v19931_v14  ;;  %2202 = vmatpush1.bf16.msra.mxu0 %v14978_v20  ;;  %v15441_v20 = vshrl.u32 %v488_v16, 7 }
  0xd7   : > { %2245 = vmatpush1.bf16.msra.mxu1 %v14983_v21  ;;  %2203 = vmatprep.subr.bf16.mxu0 %v14988_v22  ;;  %v15447_v22 = vld [vmem:[%s19684_s3] sm:$0xff] }
  0xd8   : > { %2246 = vmatprep.subr.bf16.mxu1 %v14993_v23  ;;  %2233 = vmatprep.mubr.bf16.mxu0 %v19931_v14  ;;  %19932 = vst [vmem:[#allocation8_spill] sm:$0xff] %v15441_v20  ;;  %v19701_v21 = vsub.s32 0, %v15441_v20  ;;  %v19699_v23 = vsub.s32 1, %v15441_v20 }
  0xd9   : > { %2276 = vmatprep.mubr.bf16.mxu1 %v19931_v14 }
  0xda   : > { %2204 = vmatpush1.bf16.msra.mxu0 %v14998_v24  ;;  %v15453_v24 = vrot.slane %v15447_v22, %v19701_v21 }
  0xdb   : > { %2247 = vmatpush1.bf16.msra.mxu1 %v15013_v26  ;;  %2205 = vmatprep.subr.bf16.mxu0 %v15005_v25  ;;  %v19698_v25 = vsub.s32 2, %v15441_v20  ;;  %v15459_v26 = vrot.slane %v15447_v22, %v19699_v23 }
  0xdc   : > { %2248 = vmatprep.subr.bf16.mxu1 %v15020_v27  ;;  %19933 = vst [vmem:[#allocation9_spill] sm:$0xff] %v15453_v24 }
  0xdd   : > { %19934 = vst [vmem:[#allocation10_spill] sm:$0xff] %v15459_v26 }
  0xde   : > { %2206 = vmatpush1.bf16.msra.mxu0 %v15028_v28 }
  0xdf   : > { %2249 = vmatpush1.bf16.msra.mxu1 %v15034_v29  ;;  %2207 = vmatprep.subr.bf16.mxu0 %v15039_v30  ;;  %v15465_v29 = vrot.slane %v15447_v22, %v19698_v25 }
  0xe0   : > { %2250 = vmatprep.subr.bf16.mxu1 %v15045_v31 }
  0xe2   : > { %2208 = vmatpush1.bf16.msra.mxu0 %v15054_v32 }
  0xe3   : > { %2251 = vmatpush1.bf16.msra.mxu1 %v15062_v33  ;;  %2209 = vmatprep.subr.bf16.mxu0 %v15067_v34 }
  0xe4   : > { %2252 = vmatprep.subr.bf16.mxu1 %v15074_v35 }
  0xe6   : > { %2210 = vmatpush1.bf16.msra.mxu0 %v15082_v36 }
  0xe7   : > { %2253 = vmatpush1.bf16.msra.mxu1 %v15087_v37  ;;  %2211 = vmatprep.subr.bf16.mxu0 %v15092_v38 }
  0xe8   : > { %2254 = vmatprep.subr.bf16.mxu1 %v15098_v39 }
  0xea   : > { %2212 = vmatpush1.bf16.msra.mxu0 %v15108_v40  ;;  %v19697_v40 = vsub.s32 3, %v15441_v20 }
  0xeb   : > { %2255 = vmatpush1.bf16.msra.mxu1 %v15116_v41  ;;  %2213 = vmatprep.subr.bf16.mxu0 %v15121_v42 }
  0xec   : > { %2256 = vmatprep.subr.bf16.mxu1 %v15128_v43 }
  0xee   : > { %2214 = vmatpush1.bf16.msra.mxu0 %v15136_v44 }
  0xef   : > { %2257 = vmatpush1.bf16.msra.mxu1 %v15141_v45  ;;  %2215 = vmatprep.subr.bf16.mxu0 %v15146_v46  ;;  %v15475_v46 = vrot.slane %v15447_v22, %v19697_v40 }
  0xf0   : > { %2258 = vmatprep.subr.bf16.mxu1 %v15152_v47 }
  0xf1   : > { %19935 = vst [vmem:[#allocation11_spill] sm:$0xff] %v15475_v46 }
  0xf2   : > { %2216 = vmatpush1.bf16.msra.mxu0 %v15162_v48 }
  0xf3   : > { %2259 = vmatpush1.bf16.msra.mxu1 %v15170_v49  ;;  %2496 = vmatprep.subr.bf16.mxu0 %v15175_v50 }
  0xf4   : > { %2539 = vmatprep.subr.bf16.mxu1 %v15182_v51 }
 0x188   : > { %v1567_v27 = vpop.f32.mrb[0].mxu0 }
 0x189   : > { %v12742_v28 = vadd.f32 %v1567_v27, %v15453_v24  ;;  %v1610_v30 = vpop.f32.mrb[0].mxu1  ;;  %v1569_v31 = vpop.f32.mrb[1].mxu0 }
 0x18a   : > { %v12743_v32 = vadd.f32 %v1569_v31, %v15459_v26  ;;  %v1612_v33 = vpop.f32.mrb[1].mxu1  ;;  %v1571_v34 = vpop.f32.mrb[2].mxu0  ;;  %v12774_v43 = vadd.f32 %v1610_v30, %v15465_v29 }
 0x18b   : > { %v1923_v35 = vmul.f32 0.5, %v12742_v28  ;;  %v12744_v36 = vadd.f32 %v1571_v34, %v15453_v24  ;;  %v1614_v37 = vpop.f32.mrb[2].mxu1  ;;  %v1573_v38 = vpop.f32.mrb[3].mxu0  ;;  %v12775_v48 = vadd.f32 %v1612_v33, %v15475_v46 }
 0x18c   : > { %v1931_v39 = vmul.f32 0.5, %v12743_v32  ;;  %v12745_v41 = vadd.f32 %v1573_v38, %v15459_v26  ;;  %v1616_v42 = vpop.f32.mrb[3].mxu1  ;;  %v12776_v47 = vadd.f32 %v1614_v37, %v15465_v29 }
 0x18d   : > { %13913 = vtanh.f32 %v1923_v35  ;;  %v1924_v44 = vmul.f32 0.5, %v12744_v36  ;;  %v12777_v49 = vadd.f32 %v1616_v42, %v15475_v46  ;;  %v1941_v16 = vmul.f32 0.5, %v12775_v48 }
 0x18e   : > { %13915 = vtanh.f32 %v1931_v39  ;;  %v1932_v45 = vmul.f32 0.5, %v12745_v41  ;;  %v19694_v48 = vsub.s32 5, %v15441_v20 }
 0x18f   : > { %13917 = vtanh.f32 %v1924_v44  ;;  %v1942_v28 = vmul.f32 0.5, %v12777_v49 }
 0x190   : > { %13919 = vtanh.f32 %v12774_v43 }
 0x191   : > { %13921 = vtanh.f32 %v1932_v45 }
 0x192   : > { %13923 = vtanh.f32 %v12776_v47  ;;  %v19695_v47 = vsub.s32 4, %v15441_v20 }
 0x193   : > { %13925 = vtanh.f32 %v1941_v16  ;;  %v15497_v16 = vrot.slane %v15447_v22, %v19694_v48 }
 0x194   : > { %13927 = vtanh.f32 %v1942_v28 }
 0x197   : > { %v13914_v50 = vpop.eup %13913 }
 0x198   : > { %v13916_v51 = vpop.eup %13915  ;;  %v1927_v19 = vmul.f32 0.5, %v13914_v50  ;;  %v15491_v50 = vrot.slane %v15447_v22, %v19695_v47 }
 0x199   : > { %v1935_v27 = vmul.f32 0.5, %v13916_v51  ;;  %v13918_v30 = vpop.eup %13917  ;;  %v19696_v51 = vsub.s32 6, %v15441_v20 }
 0x19a   : > { %v1929_v31 = vadd.f32 0.5, %v1927_v19  ;;  %v13920_v32 = vpop.eup %13919  ;;  %v1928_v35 = vmul.f32 0.5, %v13918_v30 }
 0x19b   : > { %v1937_v34 = vadd.f32 0.5, %v1935_v27  ;;  %v13922_v36 = vpop.eup %13921 }
 0x19c   : > { %v1951_v37 = vmul.f32 %v13920_v32, %v1929_v31  ;;  %v1930_v39 = vadd.f32 0.5, %v1928_v35  ;;  %v1936_v33 = vmul.f32 0.5, %v13922_v36  ;;  %v13924_v41 = vpop.eup %13923  ;;  %v15503_v31 = vrot.slane %v15447_v22, %v19696_v51 }
 0x19d   : > { %v1949_v38 = vmul.f32 0.0, %v1937_v34  ;;  %v13926_v19 = vpop.eup %13925 }
 0x19e   : > { %v1938_v43 = vadd.f32 0.5, %v1936_v33  ;;  %v1952_v44 = vmul.f32 %v13924_v41, %v1930_v39  ;;  %v13928_v27 = vpop.eup %13927  ;;  %v1945_v35 = vmul.f32 0.5, %v13926_v19  ;;  %v19700_v41 = vsub.s32 7, %v15441_v20 }
 0x19f   : > { %v15480_v42 = vadd.f32 %v1951_v37, %v1949_v38  ;;  %v1946_v36 = vmul.f32 0.5, %v13928_v27 }
 0x1a0   : > { %v1950_v45 = vmul.f32 0.0, %v1938_v43  ;;  %v1947_v27 = vadd.f32 0.5, %v1945_v35 }
 0x1a1   : > { %13929 = vtanh.f32 %v15480_v42 }
 0x1a2   : > { %v15485_v49 = vadd.f32 %v1952_v44, %v1950_v45 }
 0x1a4   : > { %13931 = vtanh.f32 %v15485_v49 }
 0x1a8   : > { %v1863_v28 = vpop.f32.mrb[60].mxu0 }
 0x1a9   : > { %v12834_v30 = vadd.f32 %v1863_v28, %v15491_v50  ;;  %v1906_v32 = vpop.f32.mrb[60].mxu1  ;;  %v1865_v34 = vpop.f32.mrb[61].mxu0 }
 0x1aa   : > { %v12835_v37 = vadd.f32 %v1865_v34, %v15497_v16  ;;  %v1908_v38 = vpop.f32.mrb[61].mxu1  ;;  %v1867_v39 = vpop.f32.mrb[62].mxu0  ;;  %v12866_v51 = vadd.f32 %v1906_v32, %v15503_v31  ;;  %v1948_v34 = vadd.f32 0.5, %v1946_v36 }
 0x1ab   : > { %v1959_v33 = vmul.f32 0.5, %v12834_v30  ;;  %v12836_v43 = vadd.f32 %v1867_v39, %v15491_v50  ;;  %v1910_v44 = vpop.f32.mrb[62].mxu1  ;;  %v1869_v45 = vpop.f32.mrb[63].mxu0  ;;  %v15513_v30 = vrot.slane %v15447_v22, %v19700_v41 }
 0x1ac   : > { %v1967_v28 = vmul.f32 0.5, %v12835_v37  ;;  %v1912_v48 = vpop.f32.mrb[63].mxu1  ;;  %v13930_v47 = vpop.eup %13929  ;;  %v12837_v19 = vadd.f32 %v1869_v45, %v15497_v16 }
 0x1ad   : > { %13933 = vtanh.f32 %v1959_v33  ;;  %v1960_v40 = vmul.f32 0.5, %v12836_v43  ;;  %v1957_v23 = vmul.f32 %v13930_v47, %v1947_v27  ;;  %v12868_v33 = vadd.f32 %v1910_v44, %v15503_v31  ;;  %v15617_v27 = vld [vmem:[%s19683_s2 + $0x44] ss:$16 sps:$4 sm:$0xff]  }
 0x1ae   : > { %13935 = vtanh.f32 %v1967_v28  ;;  %v13932_v25 = vpop.eup %13931  ;;  %v1968_v39 = vmul.f32 0.5, %v12837_v19  ;;  %v12867_v35 = vadd.f32 %v1908_v38, %v15513_v30  ;;  %v12869_v22 = vadd.f32 %v1912_v48, %v15513_v30 }
 0x1af   : > { %v1958_v37 = vmul.f32 %v13932_v25, %v1948_v34  ;;  %13937 = vtanh.f32 %v1960_v40  ;;  %v15622_v34 = vld [vmem:[%s19683_s2 + $0x4c] ss:$16 sps:$4 sm:$0xff]  }
 0x1b0   : > { %13939 = vtanh.f32 %v12866_v51  ;;  %v1977_v47 = vmul.f32 0.5, %v12867_v35  ;;  %v1978_v36 = vmul.f32 0.5, %v12869_v22  ;;  %v15646_v35 = vld [vmem:[%s19683_s2 + $0x6c] ss:$16 sps:$4 sm:$0xff]   ;;  %v15651_v22 = vld [vmem:[%s19683_s2 + $0x60] ss:$16 sps:$4 sm:$0xff]  }
 0x1b1   : > { %v15516_v32 = vpack.c.bf16 %v1958_v37, %v1957_v23  ;;  %13941 = vtanh.f32 %v1968_v39  ;;  %v15627_v39 = vld [vmem:[%s19683_s2 + $0x40] ss:$16 sps:$4 sm:$0xff]   ;;  %v15632_v37 = vld [vmem:[%s19683_s2 + $0x48] ss:$16 sps:$4 sm:$0xff]  }
 0x1b2   : > { %13943 = vtanh.f32 %v12868_v33  ;;  %v15641_v33 = vld [vmem:[%s19683_s2 + $0x64] ss:$16 sps:$4 sm:$0xff]  }
 0x1b3   : > { %19936 = vst [vmem:[#allocation12_spill] sm:$0xff] %v15516_v32  ;;  %2234 = vmatmul.mubr.bf16.vlgmr.msra.gmra.mrb[4].mxu0 %v15516_v32  ;;  %2277 = vmatmul.mubr.bf16.vlgmr.msra.gmra.mrb[4].mxu1 %v15516_v32  ;;  %13945 = vtanh.f32 %v1977_v47  ;;  %v15675_v47 = vld [vmem:[%s19683_s2 + $0x80] ss:$16 sps:$4 sm:$0xff]  }
 0x1b4   : > { %2497 = vmatpush1.bf16.msra.mxu0 %v15218_v52  ;;  %2540 = vmatpush1.bf16.msra.mxu1 %v15223_v53  ;;  %13947 = vtanh.f32 %v1978_v36  ;;  %v15689_v36 = vld [vmem:[%s19683_s2 + $0xa4] ss:$16 sps:$4 sm:$0xff]  }
 0x1b5   : > { %2498 = vmatprep.subr.bf16.mxu0 %v15228_v54  ;;  %2541 = vmatprep.subr.bf16.mxu1 %v15233_v55 }
 0x1b6   : > { %2528 = vmatprep.mubr.bf16.mxu0 %v19931_v14  ;;  %2571 = vmatprep.mubr.bf16.mxu1 %v19931_v14 }
 0x1b7   : > { %v13934_v23 = vpop.eup %13933 }
 0x1b8   : > { %v13936_v25 = vpop.eup %13935  ;;  %v1963_v40 = vmul.f32 0.5, %v13934_v23  ;;  %2499 = vmatpush1.bf16.msra.mxu0 %v15238_v56  ;;  %2542 = vmatpush1.bf16.msra.mxu1 %v15244_v57  ;;  %v15656_v23 = vld [vmem:[%s19683_s2 + $0x68] ss:$16 sps:$4 sm:$0xff]  }
 0x1b9   : > { %v1971_v51 = vmul.f32 0.5, %v13936_v25  ;;  %v13938_v52 = vpop.eup %13937  ;;  %2500 = vmatprep.subr.bf16.mxu0 %v15249_v58  ;;  %2543 = vmatprep.subr.bf16.mxu1 %v15256_v59  ;;  %v15665_v25 = vld [vmem:[%s19683_s2 + $0x84] ss:$16 sps:$4 sm:$0xff]  }
 0x1ba   : > { %v1965_v53 = vadd.f32 0.5, %v1963_v40  ;;  %v13940_v54 = vpop.eup %13939  ;;  %v1964_v48 = vmul.f32 0.5, %v13938_v52  ;;  %v15670_v40 = vld [vmem:[%s19683_s2 + $0x8c] ss:$16 sps:$4 sm:$0xff]  }
 0x1bb   : > { %v1973_v55 = vadd.f32 0.5, %v1971_v51  ;;  %v13942_v38 = vpop.eup %13941  ;;  %v15680_v51 = vld [vmem:[%s19683_s2 + $0x88] ss:$16 sps:$4 sm:$0xff]   ;;  %v15694_v52 = vld [vmem:[%s19683_s2 + $0xac] ss:$16 sps:$4 sm:$0xff]  }
 0x1bc   : > { %v1987_v43 = vmul.f32 %v13940_v54, %v1965_v53  ;;  %v1966_v45 = vadd.f32 0.5, %v1964_v48  ;;  %v1972_v28 = vmul.f32 0.5, %v13942_v38  ;;  %2501 = vmatpush1.bf16.msra.mxu0 %v15264_v60  ;;  %2544 = vmatpush1.bf16.msra.mxu1 %v15270_v61  ;;  %v13944_v56 = vpop.eup %13943  ;;  %v15699_v53 = vld [vmem:[%s19683_s2 + $0xa0] ss:$16 sps:$4 sm:$0xff]   ;;  %v15704_v54 = vld [vmem:[%s19683_s2 + $0xa8] ss:$16 sps:$4 sm:$0xff]  }
 0x1bd   : > { %v1985_v44 = vmul.f32 0.0, %v1973_v55  ;;  %2502 = vmatprep.subr.bf16.mxu0 %v15275_v62  ;;  %2545 = vmatprep.subr.bf16.mxu1 %v15282_v63  ;;  %v13946_v61 = vpop.eup %13945  ;;  %v15713_v55 = vld [vmem:[%s19683_s2 + $0xc4] ss:$16 sps:$4 sm:$0xff]   ;;  %v15718_v48 = vld [vmem:[%s19683_s2 + $0xcc] ss:$16 sps:$4 sm:$0xff]  }
 0x1be   : > { %v1974_v58 = vadd.f32 0.5, %v1972_v28  ;;  %v1988_v59 = vmul.f32 %v13944_v56, %v1966_v45  ;;  %v13948_v62 = vpop.eup %13947  ;;  %v1981_v63 = vmul.f32 0.5, %v13946_v61  ;;  %v15723_v38 = vld [vmem:[%s19683_s2 + $0xc0] ss:$16 sps:$4 sm:$0xff]   ;;  %v15742_v45 = vld [vmem:[%s19683_s2 + $0xec] ss:$16 sps:$4 sm:$0xff]  }
 0x1bf   : > { %v15536_v57 = vadd.f32 %v1987_v43, %v1985_v44  ;;  %v15728_v43 = vld [vmem:[%s19683_s2 + $0xc8] ss:$16 sps:$4 sm:$0xff]   ;;  %v15737_v44 = vld [vmem:[%s19683_s2 + $0xe4] ss:$16 sps:$4 sm:$0xff]   ;;  %v15747_v28 = vld [vmem:[%s19683_s2 + $0xe0] ss:$16 sps:$4 sm:$0xff]  }
 0x1c0   : > { %v1986_v19 = vmul.f32 0.0, %v1974_v58  ;;  %2503 = vmatpush1.bf16.msra.mxu0 %v15290_v0  ;;  %2546 = vmatpush1.bf16.msra.mxu1 %v15295_v1  ;;  %v1982_v0 = vmul.f32 0.5, %v13948_v62  ;;  %v15752_v56 = vld [vmem:[%s19683_s2 + $0xe8] ss:$16 sps:$4 sm:$0xff]   ;;  %v15761_v58 = vld [vmem:[%s19683_s2 + $0x104] ss:$16 sps:$4 sm:$0xff]  }
 0x1c1   : > { %2504 = vmatprep.subr.bf16.mxu0 %v15303_v2  ;;  %2547 = vmatprep.subr.bf16.mxu1 %v15309_v3  ;;  %13949 = vtanh.f32 %v15536_v57  ;;  %v1983_v2 = vadd.f32 0.5, %v1981_v63 }
 0x1c2   : > { %v15543_v60 = vadd.f32 %v1988_v59, %v1986_v19  ;;  %v1984_v3 = vadd.f32 0.5, %v1982_v0  ;;  %v15766_v59 = vld [vmem:[%s19683_s2 + $0x10c] ss:$16 sps:$4 sm:$0xff]  }
 0x1c3   : > { %19939 = vst [vmem:[#allocation13_spill] sm:$0xff] %v15766_v59 }
 0x1c4   : > { %13951 = vtanh.f32 %v15543_v60  ;;  %2505 = vmatpush1.bf16.msra.mxu0 %v15315_v4  ;;  %2548 = vmatpush1.bf16.msra.mxu1 %v15322_v5  ;;  %v19937_v4 = vld [vmem:[#allocation7_spill] sm:$0xff] }
 0x1c5   : > { %2506 = vmatprep.subr.bf16.mxu0 %v15327_v6  ;;  %2549 = vmatprep.subr.bf16.mxu1 %v15333_v7 }
 0x1c8   : > { %2507 = vmatpush1.bf16.msra.mxu0 %v15339_v8  ;;  %2550 = vmatpush1.bf16.msra.mxu1 %v15346_v9  ;;  %v15569_v9 = vld [vmem:[%s19683_s2 + $0x4] ss:$16 sps:$4 sm:$0xff]  }
 0x1c9   : > { %2508 = vmatprep.subr.bf16.mxu0 %v15351_v10  ;;  %2551 = vmatprep.subr.bf16.mxu1 %v15357_v11  ;;  %v15574_v10 = vld [vmem:[%s19683_s2 + $0xc] ss:$16 sps:$4 sm:$0xff]   ;;  %v15579_v11 = vld [vmem:[%s19683_s2] ss:$16 sps:$4 sm:$0xff]  }
 0x1cb   : > { %v13950_v1 = vpop.eup %13949 }
 0x1cc   : > { %2509 = vmatpush1.bf16.msra.mxu0 %v15363_v12  ;;  %2552 = vmatpush1.bf16.msra.mxu1 %v15370_v13  ;;  %v1993_v6 = vmul.f32 %v13950_v1, %v1983_v2  ;;  %v15584_v12 = vld [vmem:[%s19683_s2 + $0x8] ss:$16 sps:$4 sm:$0xff]   ;;  %v15593_v13 = vld [vmem:[%s19683_s2 + $0x24] ss:$16 sps:$4 sm:$0xff]  }
 0x1cd   : > { %2510 = vmatprep.subr.bf16.mxu0 %v19937_v4  ;;  %2553 = vmatprep.subr.bf16.mxu1 %v15381_v15  ;;  %v15598_v15 = vld [vmem:[%s19683_s2 + $0x2c] ss:$16 sps:$4 sm:$0xff]  }
 0x1ce   : > { %v13952_v5 = vpop.eup %13951 }
 0x1cf   : > { %v1994_v7 = vmul.f32 %v13952_v5, %v1984_v3 }
 0x1d0   : > { %2511 = vmatpush1.bf16.msra.mxu0 %v15387_v17  ;;  %2554 = vmatpush1.bf16.msra.mxu1 %v15394_v18  ;;  %v15603_v17 = vld [vmem:[%s19683_s2 + $0x20] ss:$16 sps:$4 sm:$0xff]   ;;  %v15608_v18 = vld [vmem:[%s19683_s2 + $0x28] ss:$16 sps:$4 sm:$0xff]  }
 0x1d1   : > { %v15560_v8 = vpack.c.bf16 %v1994_v7, %v1993_v6  ;;  %2869 = vmatprep.subr.bf16.mxu0 %v15569_v9  ;;  %2912 = vmatprep.subr.bf16.mxu1 %v15574_v10 }
 0x1d3   : > { %19938 = vst [vmem:[#allocation7_spill] sm:$0xff] %v15560_v8  ;;  %2529 = vmatmul.mubr.bf16.vlgmr.msra.gmra.mrb[56].mxu0 %v15560_v8  ;;  %2572 = vmatmul.mubr.bf16.vlgmr.msra.gmra.mrb[56].mxu1 %v15560_v8 }
 0x1d4   : > { %2901 = vmatprep.mubr.bf16.mxu0 %v19931_v14  ;;  %2944 = vmatprep.mubr.bf16.mxu1 %v19931_v14 }
 0x1d5   : > { %2870 = vmatpush1.bf16.msra.mxu0 %v15579_v11  ;;  %2913 = vmatpush1.bf16.msra.mxu1 %v15584_v12 }
 0x1d6   : > { %2871 = vmatprep.subr.bf16.mxu0 %v15593_v13  ;;  %2914 = vmatprep.subr.bf16.mxu1 %v15598_v15 }
 0x1d9   : > { %2872 = vmatpush1.bf16.msra.mxu0 %v15603_v17  ;;  %2915 = vmatpush1.bf16.msra.mxu1 %v15608_v18 }
 0x1da   : > { %2873 = vmatprep.subr.bf16.mxu0 %v15617_v27  ;;  %2916 = vmatprep.subr.bf16.mxu1 %v15622_v34 }
 0x1dd   : > { %2874 = vmatpush1.bf16.msra.mxu0 %v15627_v39  ;;  %2917 = vmatpush1.bf16.msra.mxu1 %v15632_v37 }
 0x1de   : > { %2875 = vmatprep.subr.bf16.mxu0 %v15641_v33  ;;  %2918 = vmatprep.subr.bf16.mxu1 %v15646_v35 }
 0x1e1   : > { %2876 = vmatpush1.bf16.msra.mxu0 %v15651_v22  ;;  %2919 = vmatpush1.bf16.msra.mxu1 %v15656_v23 }
 0x1e2   : > { %2877 = vmatprep.subr.bf16.mxu0 %v15665_v25  ;;  %2920 = vmatprep.subr.bf16.mxu1 %v15670_v40 }
 0x1e5   : > { %2878 = vmatpush1.bf16.msra.mxu0 %v15675_v47  ;;  %2921 = vmatpush1.bf16.msra.mxu1 %v15680_v51 }
 0x1e6   : > { %2879 = vmatprep.subr.bf16.mxu0 %v15689_v36  ;;  %2922 = vmatprep.subr.bf16.mxu1 %v15694_v52 }
 0x1e9   : > { %2880 = vmatpush1.bf16.msra.mxu0 %v15699_v53  ;;  %2923 = vmatpush1.bf16.msra.mxu1 %v15704_v54 }
 0x1ea   : > { %2881 = vmatprep.subr.bf16.mxu0 %v15713_v55  ;;  %2924 = vmatprep.subr.bf16.mxu1 %v15718_v48 }
 0x1ed   : > { %2882 = vmatpush1.bf16.msra.mxu0 %v15723_v38  ;;  %2925 = vmatpush1.bf16.msra.mxu1 %v15728_v43 }
 0x1ee   : > { %2883 = vmatprep.subr.bf16.mxu0 %v15737_v44  ;;  %2926 = vmatprep.subr.bf16.mxu1 %v15742_v45 }
 0x1f1   : > { %2884 = vmatpush1.bf16.msra.mxu0 %v15747_v28  ;;  %2927 = vmatpush1.bf16.msra.mxu1 %v15752_v56 }
 0x1f2   : > { %3164 = vmatprep.subr.bf16.mxu0 %v15761_v58  ;;  %3207 = vmatprep.subr.bf16.mxu1 %v15766_v59 }
 0x286   : > { %v2235_v19 = vpop.f32.mrb[4].mxu0  ;;  %v2278_v61 = vpop.f32.mrb[4].mxu1 }
 0x287   : > { %v12746_v62 = vadd.f32 %v2235_v19, %v15453_v24  ;;  %v2237_v63 = vpop.f32.mrb[5].mxu0  ;;  %v2280_v0 = vpop.f32.mrb[5].mxu1  ;;  %v12778_v20 = vadd.f32 %v2278_v61, %v15465_v29 }
 0x288   : > { %v12747_v1 = vadd.f32 %v2237_v63, %v15459_v26  ;;  %v2239_v2 = vpop.f32.mrb[6].mxu0  ;;  %v2282_v3 = vpop.f32.mrb[6].mxu1 }
 0x289   : > { %v2590_v4 = vmul.f32 0.5, %v12746_v62  ;;  %v12748_v5 = vadd.f32 %v2239_v2, %v15453_v24  ;;  %v2241_v6 = vpop.f32.mrb[7].mxu0  ;;  %v2284_v7 = vpop.f32.mrb[7].mxu1  ;;  %v12780_v8 = vadd.f32 %v2282_v3, %v15465_v29  ;;  %v12779_v62 = vadd.f32 %v2280_v0, %v15475_v46 }
 0x28a   : > { %v2598_v41 = vmul.f32 0.5, %v12747_v1  ;;  %v12749_v21 = vadd.f32 %v2241_v6, %v15459_v26  ;;  %v12781_v63 = vadd.f32 %v2284_v7, %v15475_v46 }
 0x28b   : > { %13953 = vtanh.f32 %v2590_v4  ;;  %v2591_v32 = vmul.f32 0.5, %v12748_v5  ;;  %v2608_v6 = vmul.f32 0.5, %v12779_v62 }
 0x28c   : > { %13955 = vtanh.f32 %v2598_v41  ;;  %v2599_v19 = vmul.f32 0.5, %v12749_v21  ;;  %v2609_v26 = vmul.f32 0.5, %v12781_v63 }
 0x28d   : > { %13957 = vtanh.f32 %v2591_v32 }
 0x28e   : > { %13959 = vtanh.f32 %v12778_v20 }
 0x28f   : > { %13961 = vtanh.f32 %v2599_v19 }
 0x290   : > { %13963 = vtanh.f32 %v12780_v8 }
 0x291   : > { %13965 = vtanh.f32 %v2608_v6 }
 0x292   : > { %13967 = vtanh.f32 %v2609_v26 }
 0x295   : > { %v13954_v2 = vpop.eup %13953 }
 0x296   : > { %v13956_v1 = vpop.eup %13955  ;;  %v2594_v24 = vmul.f32 0.5, %v13954_v2 }
 0x297   : > { %v2602_v4 = vmul.f32 0.5, %v13956_v1  ;;  %v13958_v61 = vpop.eup %13957 }
 0x298   : > { %v2596_v5 = vadd.f32 0.5, %v2594_v24  ;;  %v13960_v41 = vpop.eup %13959  ;;  %v2595_v32 = vmul.f32 0.5, %v13958_v61 }
 0x299   : > { %v2604_v21 = vadd.f32 0.5, %v2602_v4  ;;  %v13962_v59 = vpop.eup %13961 }
 0x29a   : > { %v2618_v3 = vmul.f32 %v13960_v41, %v2596_v5  ;;  %v2597_v0 = vadd.f32 0.5, %v2595_v32  ;;  %v2603_v8 = vmul.f32 0.5, %v13962_v59  ;;  %v13964_v7 = vpop.eup %13963 }
 0x29b   : > { %v2616_v20 = vmul.f32 %v2604_v21, %v15480_v42  ;;  %v13966_v1 = vpop.eup %13965 }
 0x29c   : > { %v2605_v2 = vadd.f32 0.5, %v2603_v8  ;;  %v2619_v62 = vmul.f32 %v13964_v7, %v2597_v0  ;;  %v13968_v6 = vpop.eup %13967  ;;  %v2612_v5 = vmul.f32 0.5, %v13966_v1 }
 0x29d   : > { %v15779_v19 = vadd.f32 %v2618_v3, %v2616_v20  ;;  %v2613_v41 = vmul.f32 0.5, %v13968_v6 }
 0x29e   : > { %v2617_v63 = vmul.f32 %v2605_v2, %v15485_v49 }
 0x29f   : > { %19940 = vst [vmem:[#allocation14_spill] sm:$0xff] %v15779_v19  ;;  %13969 = vtanh.f32 %v15779_v19  ;;  %v2615_v1 = vadd.f32 0.5, %v2613_v41  ;;  %v15812_v41 = vld [vmem:[%s19683_s2 + $0x12c] ss:$16 sps:$4 sm:$0xff]  }
 0x2a0   : > { %v15783_v24 = vadd.f32 %v2619_v62, %v2617_v63 }
 0x2a2   : > { %19941 = vst [vmem:[#allocation15_spill] sm:$0xff] %v15783_v24  ;;  %13971 = vtanh.f32 %v15783_v24  ;;  %v2614_v24 = vadd.f32 0.5, %v2612_v5 }
 0x2a6   : > { %v2530_v4 = vpop.f32.mrb[56].mxu0  ;;  %v2573_v42 = vpop.f32.mrb[56].mxu1 }
 0x2a7   : > { %v12830_v59 = vadd.f32 %v2530_v4, %v15491_v50  ;;  %v2532_v26 = vpop.f32.mrb[57].mxu0  ;;  %v2575_v61 = vpop.f32.mrb[57].mxu1  ;;  %v12862_v63 = vadd.f32 %v2573_v42, %v15503_v31  ;;  %v15800_v42 = vld [vmem:[%s19683_s2 + $0x108] ss:$16 sps:$4 sm:$0xff]  }
 0x2a8   : > { %v12831_v21 = vadd.f32 %v2532_v26, %v15497_v16  ;;  %v2534_v32 = vpop.f32.mrb[58].mxu0  ;;  %v2577_v49 = vpop.f32.mrb[58].mxu1 }
 0x2a9   : > { %v2626_v3 = vmul.f32 0.5, %v12830_v59  ;;  %v12832_v20 = vadd.f32 %v2534_v32, %v15491_v50  ;;  %v2536_v0 = vpop.f32.mrb[59].mxu0  ;;  %v2579_v8 = vpop.f32.mrb[59].mxu1  ;;  %v12864_v59 = vadd.f32 %v2577_v49, %v15503_v31  ;;  %v12863_v32 = vadd.f32 %v2575_v61, %v15513_v30  ;;  %v15828_v61 = vld [vmem:[%s19683_s2 + $0x128] ss:$16 sps:$4 sm:$0xff]  }
 0x2aa   : > { %v2634_v7 = vmul.f32 0.5, %v12831_v21  ;;  %v12833_v2 = vadd.f32 %v2536_v0, %v15497_v16  ;;  %v13970_v62 = vpop.eup %13969  ;;  %v15795_v21 = vld [vmem:[%s19683_s2 + $0x100] ss:$16 sps:$4 sm:$0xff]   ;;  %19943 = vst [vmem:[#allocation17_spill] sm:$0xff] %v15828_v61  ;;  %v15835_v49 = vld [vmem:[%s19683_s2 + $0x144] ss:$16 sps:$4 sm:$0xff]  }
 0x2ab   : > { %13973 = vtanh.f32 %v2626_v3  ;;  %v2627_v4 = vmul.f32 0.5, %v12832_v20  ;;  %v2624_v19 = vmul.f32 %v13970_v62, %v2614_v24  ;;  %v15807_v24 = vld [vmem:[%s19683_s2 + $0x124] ss:$16 sps:$4 sm:$0xff]   ;;  %19944 = vst [vmem:[#allocation18_spill] sm:$0xff] %v15835_v49  ;;  %v15840_v3 = vld [vmem:[%s19683_s2 + $0x14c] ss:$16 sps:$4 sm:$0xff]  }
 0x2ac   : > { %13975 = vtanh.f32 %v2634_v7  ;;  %v2635_v6 = vmul.f32 0.5, %v12833_v2  ;;  %v13972_v26 = vpop.eup %13971  ;;  %19945 = vst [vmem:[#allocation19_spill] sm:$0xff] %v15840_v3  ;;  %v2644_v7 = vmul.f32 0.5, %v12863_v32 }
 0x2ad   : > { %v2625_v46 = vmul.f32 %v13972_v26, %v2615_v1  ;;  %13977 = vtanh.f32 %v2627_v4  ;;  %v15854_v4 = vld [vmem:[%s19683_s2 + $0x148] ss:$16 sps:$4 sm:$0xff]   ;;  %v15861_v26 = vld [vmem:[%s19683_s2 + $0x164] ss:$16 sps:$4 sm:$0xff]  }
 0x2ae   : > { %13979 = vtanh.f32 %v12862_v63  ;;  %v15849_v63 = vld [vmem:[%s19683_s2 + $0x140] ss:$16 sps:$4 sm:$0xff]  }
 0x2af   : > { %v15802_v5 = vpack.c.bf16 %v2625_v46, %v2624_v19  ;;  %13981 = vtanh.f32 %v2635_v6  ;;  %v12865_v46 = vadd.f32 %v2579_v8, %v15513_v30  ;;  %v15823_v19 = vld [vmem:[%s19683_s2 + $0x120] ss:$16 sps:$4 sm:$0xff]  }
 0x2b0   : > { %13983 = vtanh.f32 %v12864_v59  ;;  %v15866_v59 = vld [vmem:[%s19683_s2 + $0x16c] ss:$16 sps:$4 sm:$0xff]  }
 0x2b1   : > { %19942 = vst [vmem:[#allocation16_spill] sm:$0xff] %v15802_v5  ;;  %2902 = vmatmul.mubr.bf16.vlgmr.msra.gmra.mrb[8].mxu0 %v15802_v5  ;;  %2945 = vmatmul.mubr.bf16.vlgmr.msra.gmra.mrb[8].mxu1 %v15802_v5  ;;  %v2645_v62 = vmul.f32 0.5, %v12865_v46  ;;  %13985 = vtanh.f32 %v2644_v7 }
 0x2b2   : > { %3165 = vmatpush1.bf16.msra.mxu0 %v15795_v21  ;;  %3208 = vmatpush1.bf16.msra.mxu1 %v15800_v42 }
 0x2b3   : > { %3166 = vmatprep.subr.bf16.mxu0 %v15807_v24  ;;  %3209 = vmatprep.subr.bf16.mxu1 %v15812_v41  ;;  %13987 = vtanh.f32 %v2645_v62  ;;  %v15891_v62 = vld [vmem:[%s19683_s2 + $0x18c] ss:$16 sps:$4 sm:$0xff]  }
 0x2b4   : > { %3196 = vmatprep.mubr.bf16.mxu0 %v19931_v14  ;;  %3239 = vmatprep.mubr.bf16.mxu1 %v19931_v14  ;;  %19948 = vst [vmem:[#allocation22_spill] sm:$0xff] %v15891_v62 }
 0x2b5   : > { %v13974_v20 = vpop.eup %13973 }
 0x2b6   : > { %v13976_v0 = vpop.eup %13975  ;;  %v2630_v8 = vmul.f32 0.5, %v13974_v20  ;;  %3167 = vmatpush1.bf16.msra.mxu0 %v15823_v19  ;;  %3210 = vmatpush1.bf16.msra.mxu1 %v15828_v61  ;;  %v15874_v61 = vld [vmem:[%s19683_s2 + $0x160] ss:$16 sps:$4 sm:$0xff]  }
 0x2b7   : > { %v2638_v2 = vmul.f32 0.5, %v13976_v0  ;;  %v13978_v1 = vpop.eup %13977  ;;  %3168 = vmatprep.subr.bf16.mxu0 %v15835_v49  ;;  %3211 = vmatprep.subr.bf16.mxu1 %v15840_v3 }
 0x2b8   : > { %v2632_v6 = vadd.f32 0.5, %v2630_v8  ;;  %v13980_v32 = vpop.eup %13979  ;;  %v2631_v20 = vmul.f32 0.5, %v13978_v1 }
 0x2b9   : > { %v2640_v46 = vadd.f32 0.5, %v2638_v2  ;;  %v13982_v0 = vpop.eup %13981  ;;  %v15879_v2 = vld [vmem:[%s19683_s2 + $0x168] ss:$16 sps:$4 sm:$0xff]  }
 0x2ba   : > { %v2654_v5 = vmul.f32 %v13980_v32, %v2632_v6  ;;  %v2633_v49 = vadd.f32 0.5, %v2631_v20  ;;  %v2639_v3 = vmul.f32 0.5, %v13982_v0  ;;  %3169 = vmatpush1.bf16.msra.mxu0 %v15849_v63  ;;  %3212 = vmatpush1.bf16.msra.mxu1 %v15854_v4  ;;  %19946 = vst [vmem:[#allocation20_spill] sm:$0xff] %v15879_v2  ;;  %v13984_v7 = vpop.eup %13983  ;;  %v15901_v20 = vld [vmem:[%s19683_s2 + $0x180] ss:$16 sps:$4 sm:$0xff]  }
 0x2bb   : > { %v2652_v8 = vmul.f32 %v2640_v46, %v15536_v57  ;;  %3170 = vmatprep.subr.bf16.mxu0 %v15861_v26  ;;  %3213 = vmatprep.subr.bf16.mxu1 %v15866_v59  ;;  %v15886_v57 = vld [vmem:[%s19683_s2 + $0x184] ss:$16 sps:$4 sm:$0xff]   ;;  %19949 = vst [vmem:[#allocation23_spill] sm:$0xff] %v15901_v20  ;;  %v15906_v0 = vld [vmem:[%s19683_s2 + $0x188] ss:$16 sps:$4 sm:$0xff]  }
 0x2bc   : > { %19947 = vst [vmem:[#allocation21_spill] sm:$0xff] %v15886_v57  ;;  %v2641_v6 = vadd.f32 0.5, %v2639_v3  ;;  %v2655_v32 = vmul.f32 %v13984_v7, %v2633_v49  ;;  %19950 = vst [vmem:[#allocation24_spill] sm:$0xff] %v15906_v0  ;;  %v15929_v3 = vld [vmem:[%s19683_s2 + $0x1a0] ss:$16 sps:$4 sm:$0xff]   ;;  %v13986_v7 = vpop.eup %13985 }
 0x2bd   : > { %v15893_v1 = vadd.f32 %v2654_v5, %v2652_v8  ;;  %v15918_v5 = vld [vmem:[%s19683_s2 + $0x1ac] ss:$16 sps:$4 sm:$0xff]   ;;  %19953 = vst [vmem:[#allocation27_spill] sm:$0xff] %v15929_v3  ;;  %v15934_v8 = vld [vmem:[%s19683_s2 + $0x1a8] ss:$16 sps:$4 sm:$0xff]  }
 0x2be   : > { %v2653_v46 = vmul.f32 %v2641_v6, %v15543_v60  ;;  %3171 = vmatpush1.bf16.msra.mxu0 %v15874_v61  ;;  %3214 = vmatpush1.bf16.msra.mxu1 %v15879_v2  ;;  %v15913_v60 = vld [vmem:[%s19683_s2 + $0x1a4] ss:$16 sps:$4 sm:$0xff]   ;;  %19952 = vst [vmem:[#allocation26_spill] sm:$0xff] %v15918_v5  ;;  %19954 = vst [vmem:[#allocation28_spill] sm:$0xff] %v15934_v8 }
 0x2bf   : > { %3172 = vmatprep.subr.bf16.mxu0 %v15886_v57  ;;  %3215 = vmatprep.subr.bf16.mxu1 %v15891_v62  ;;  %19951 = vst [vmem:[#allocation25_spill] sm:$0xff] %v15913_v60  ;;  %13989 = vtanh.f32 %v15893_v1  ;;  %v15941_v6 = vld [vmem:[%s19683_s2 + $0x1c4] ss:$16 sps:$4 sm:$0xff]  }
 0x2c0   : > { %v15921_v49 = vadd.f32 %v2655_v32, %v2653_v46  ;;  %19955 = vst [vmem:[#allocation29_spill] sm:$0xff] %v15941_v6  ;;  %v15946_v32 = vld [vmem:[%s19683_s2 + $0x1cc] ss:$16 sps:$4 sm:$0xff]   ;;  %v13988_v46 = vpop.eup %13987 }
 0x2c1   : > { %19956 = vst [vmem:[#allocation30_spill] sm:$0xff] %v15946_v32 }
 0x2c2   : > { %13991 = vtanh.f32 %v15921_v49  ;;  %3173 = vmatpush1.bf16.msra.mxu0 %v15901_v20  ;;  %3216 = vmatpush1.bf16.msra.mxu1 %v15906_v0  ;;  %v2648_v0 = vmul.f32 0.5, %v13986_v7  ;;  %v2649_v20 = vmul.f32 0.5, %v13988_v46  ;;  %v15977_v7 = vld [vmem:[%s19683_s2 + $0x1e0] ss:$16 sps:$4 sm:$0xff]   ;;  %v15982_v46 = vld [vmem:[%s19683_s2 + $0x1e8] ss:$16 sps:$4 sm:$0xff]  }
 0x2c3   : > { %3174 = vmatprep.subr.bf16.mxu0 %v15913_v60  ;;  %3217 = vmatprep.subr.bf16.mxu1 %v15918_v5  ;;  %v15953_v60 = vld [vmem:[%s19683_s2 + $0x1c0] ss:$16 sps:$4 sm:$0xff]   ;;  %v15958_v5 = vld [vmem:[%s19683_s2 + $0x1c8] ss:$16 sps:$4 sm:$0xff]  }
 0x2c4   : > { %19957 = vst [vmem:[#allocation31_spill] sm:$0xff] %v15953_v60  ;;  %19958 = vst [vmem:[#allocation32_spill] sm:$0xff] %v15958_v5 }
 0x2c6   : > { %3175 = vmatpush1.bf16.msra.mxu0 %v15929_v3  ;;  %3218 = vmatpush1.bf16.msra.mxu1 %v15934_v8  ;;  %v15965_v8 = vld [vmem:[%s19683_s2 + $0x1e4] ss:$16 sps:$4 sm:$0xff]   ;;  %v15970_v3 = vld [vmem:[%s19683_s2 + $0x1ec] ss:$16 sps:$4 sm:$0xff]  }
 0x2c7   : > { %3176 = vmatprep.subr.bf16.mxu0 %v15941_v6  ;;  %3219 = vmatprep.subr.bf16.mxu1 %v15946_v32  ;;  %v2650_v32 = vadd.f32 0.5, %v2648_v0  ;;  %v2651_v6 = vadd.f32 0.5, %v2649_v20  ;;  %v19964_v0 = vld [vmem:[#allocation14_spill] sm:$0xff] }
 0x2c9   : > { %v13990_v62 = vpop.eup %13989 }
 0x2ca   : > { %3177 = vmatpush1.bf16.msra.mxu0 %v15953_v60  ;;  %3220 = vmatpush1.bf16.msra.mxu1 %v15958_v5  ;;  %v2660_v60 = vmul.f32 %v13990_v62, %v2650_v32 }
 0x2cb   : > { %3178 = vmatprep.subr.bf16.mxu0 %v15965_v8  ;;  %3221 = vmatprep.subr.bf16.mxu1 %v15970_v3 }
 0x2cc   : > { %v13992_v57 = vpop.eup %13991 }
 0x2cd   : > { %v2661_v2 = vmul.f32 %v13992_v57, %v2651_v6 }
 0x2ce   : > { %3179 = vmatpush1.bf16.msra.mxu0 %v15977_v7  ;;  %3222 = vmatpush1.bf16.msra.mxu1 %v15982_v46 }
 0x2cf   : > { %v15988_v5 = vpack.c.bf16 %v2661_v2, %v2660_v60  ;;  %3537 = vmatprep.subr.bf16.mxu0 %v15569_v9  ;;  %3580 = vmatprep.subr.bf16.mxu1 %v15574_v10  ;;  %v19960_v9 = vld [vmem:[#allocation13_spill] sm:$0xff] }
 0x2d1   : > { %19959 = vst [vmem:[#allocation33_spill] sm:$0xff] %v15988_v5  ;;  %3197 = vmatmul.mubr.bf16.vlgmr.msra.gmra.mrb[52].mxu0 %v15988_v5  ;;  %3240 = vmatmul.mubr.bf16.vlgmr.msra.gmra.mrb[52].mxu1 %v15988_v5 }
 0x2d2   : > { %3538 = vmatpush1.bf16.msra.mxu0 %v15579_v11  ;;  %3581 = vmatpush1.bf16.msra.mxu1 %v15584_v12  ;;  %v19961_v12 = vld [vmem:[#allocation9_spill] sm:$0xff] }
 0x2d3   : > { %3539 = vmatprep.subr.bf16.mxu0 %v15593_v13  ;;  %3582 = vmatprep.subr.bf16.mxu1 %v15598_v15 }
 0x2d4   : > { %3569 = vmatprep.mubr.bf16.mxu0 %v19931_v14  ;;  %3612 = vmatprep.mubr.bf16.mxu1 %v19931_v14 }
 0x2d6   : > { %3540 = vmatpush1.bf16.msra.mxu0 %v15603_v17  ;;  %3583 = vmatpush1.bf16.msra.mxu1 %v15608_v18  ;;  %v19962_v18 = vld [vmem:[#allocation10_spill] sm:$0xff] }
 0x2d7   : > { %3541 = vmatprep.subr.bf16.mxu0 %v15617_v27  ;;  %3584 = vmatprep.subr.bf16.mxu1 %v15622_v34 }
 0x2da   : > { %3542 = vmatpush1.bf16.msra.mxu0 %v15627_v39  ;;  %3585 = vmatpush1.bf16.msra.mxu1 %v15632_v37 }
 0x2db   : > { %3543 = vmatprep.subr.bf16.mxu0 %v15641_v33  ;;  %3586 = vmatprep.subr.bf16.mxu1 %v15646_v35 }
 0x2de   : > { %3544 = vmatpush1.bf16.msra.mxu0 %v15651_v22  ;;  %3587 = vmatpush1.bf16.msra.mxu1 %v15656_v23 }
 0x2df   : > { %3545 = vmatprep.subr.bf16.mxu0 %v15665_v25  ;;  %3588 = vmatprep.subr.bf16.mxu1 %v15670_v40 }
 0x2e2   : > { %3546 = vmatpush1.bf16.msra.mxu0 %v15675_v47  ;;  %3589 = vmatpush1.bf16.msra.mxu1 %v15680_v51 }
 0x2e3   : > { %3547 = vmatprep.subr.bf16.mxu0 %v15689_v36  ;;  %3590 = vmatprep.subr.bf16.mxu1 %v15694_v52  ;;  %v19963_v52 = vld [vmem:[#allocation11_spill] sm:$0xff] }
 0x2e6   : > { %3548 = vmatpush1.bf16.msra.mxu0 %v15699_v53  ;;  %3591 = vmatpush1.bf16.msra.mxu1 %v15704_v54 }
 0x2e7   : > { %3549 = vmatprep.subr.bf16.mxu0 %v15713_v55  ;;  %3592 = vmatprep.subr.bf16.mxu1 %v15718_v48 }
 0x2ea   : > { %3550 = vmatpush1.bf16.msra.mxu0 %v15723_v38  ;;  %3593 = vmatpush1.bf16.msra.mxu1 %v15728_v43 }
 0x2eb   : > { %3551 = vmatprep.subr.bf16.mxu0 %v15737_v44  ;;  %3594 = vmatprep.subr.bf16.mxu1 %v15742_v45 }
 0x2ee   : > { %3552 = vmatpush1.bf16.msra.mxu0 %v15747_v28  ;;  %3595 = vmatpush1.bf16.msra.mxu1 %v15752_v56 }
 0x2ef   : > { %3832 = vmatprep.subr.bf16.mxu0 %v15761_v58  ;;  %3875 = vmatprep.subr.bf16.mxu1 %v19960_v9 }
 0x384   : > { %v2903_v10 = vpop.f32.mrb[8].mxu0  ;;  %v2946_v11 = vpop.f32.mrb[8].mxu1 }
 0x385   : > { %v12750_v13 = vadd.f32 %v2903_v10, %v19961_v12  ;;  %v2905_v15 = vpop.f32.mrb[9].mxu0  ;;  %v2948_v17 = vpop.f32.mrb[9].mxu1  ;;  %v12782_v40 = vadd.f32 %v2946_v11, %v15465_v29 }
 0x386   : > { %v12751_v27 = vadd.f32 %v2905_v15, %v19962_v18  ;;  %v2907_v34 = vpop.f32.mrb[10].mxu0  ;;  %v2950_v39 = vpop.f32.mrb[10].mxu1  ;;  %v12783_v53 = vadd.f32 %v2948_v17, %v19963_v52  ;;  %v19965_v15 = vld [vmem:[#allocation15_spill] sm:$0xff] }
 0x387   : > { %v3258_v37 = vmul.f32 0.5, %v12750_v13  ;;  %v12752_v33 = vadd.f32 %v2907_v34, %v19961_v12  ;;  %v2909_v35 = vpop.f32.mrb[11].mxu0  ;;  %v2952_v22 = vpop.f32.mrb[11].mxu1  ;;  %v12784_v36 = vadd.f32 %v2950_v39, %v15465_v29 }
 0x388   : > { %v3266_v23 = vmul.f32 0.5, %v12751_v27  ;;  %v12753_v25 = vadd.f32 %v2909_v35, %v19962_v18  ;;  %v12785_v54 = vadd.f32 %v2952_v22, %v19963_v52  ;;  %v3276_v43 = vmul.f32 0.5, %v12783_v53 }
 0x389   : > { %13993 = vtanh.f32 %v3258_v37  ;;  %v3259_v47 = vmul.f32 0.5, %v12752_v33 }
 0x38a   : > { %13995 = vtanh.f32 %v3266_v23  ;;  %v3267_v51 = vmul.f32 0.5, %v12753_v25  ;;  %v3277_v45 = vmul.f32 0.5, %v12785_v54 }
 0x38b   : > { %13997 = vtanh.f32 %v3259_v47 }
 0x38c   : > { %13999 = vtanh.f32 %v12782_v40 }
 0x38d   : > { %14001 = vtanh.f32 %v3267_v51 }
 0x38e   : > { %14003 = vtanh.f32 %v12784_v36 }
 0x38f   : > { %14005 = vtanh.f32 %v3276_v43 }
 0x390   : > { %14007 = vtanh.f32 %v3277_v45 }
 0x393   : > { %v13994_v55 = vpop.eup %13993 }
 0x394   : > { %v13996_v48 = vpop.eup %13995  ;;  %v3262_v38 = vmul.f32 0.5, %v13994_v55 }
 0x395   : > { %v3270_v44 = vmul.f32 0.5, %v13996_v48  ;;  %v13998_v28 = vpop.eup %13997 }
 0x396   : > { %v3264_v56 = vadd.f32 0.5, %v3262_v38  ;;  %v14000_v58 = vpop.eup %13999  ;;  %v3263_v57 = vmul.f32 0.5, %v13998_v28 }
 0x397   : > { %v3272_v2 = vadd.f32 0.5, %v3270_v44  ;;  %v14002_v62 = vpop.eup %14001 }
 0x398   : > { %v3286_v20 = vmul.f32 %v14000_v58, %v3264_v56  ;;  %v3265_v6 = vadd.f32 0.5, %v3263_v57  ;;  %v3271_v32 = vmul.f32 0.5, %v14002_v62  ;;  %v14004_v9 = vpop.eup %14003 }
 0x399   : > { %v3284_v60 = vmul.f32 %v3272_v2, %v19964_v0  ;;  %v14006_v34 = vpop.eup %14005 }
 0x39a   : > { %v3273_v11 = vadd.f32 0.5, %v3271_v32  ;;  %v3287_v13 = vmul.f32 %v14004_v9, %v3265_v6  ;;  %v14008_v39 = vpop.eup %14007  ;;  %v3280_v25 = vmul.f32 0.5, %v14006_v34 }
 0x39b   : > { %v16037_v10 = vadd.f32 %v3286_v20, %v3284_v60  ;;  %v3281_v40 = vmul.f32 0.5, %v14008_v39  ;;  %v19967_v39 = vld [vmem:[#allocation17_spill] sm:$0xff] }
 0x39c   : > { %v3285_v17 = vmul.f32 %v3273_v11, %v19965_v15  ;;  %v3282_v56 = vadd.f32 0.5, %v3280_v25 }
 0x39d   : > { %14009 = vtanh.f32 %v16037_v10  ;;  %v3283_v58 = vadd.f32 0.5, %v3281_v40 }
 0x39e   : > { %v16041_v27 = vadd.f32 %v3287_v13, %v3285_v17 }
 0x3a0   : > { %14011 = vtanh.f32 %v16041_v27 }
 0x3a4   : > { %v3198_v37 = vpop.f32.mrb[52].mxu0  ;;  %v3241_v33 = vpop.f32.mrb[52].mxu1 }
 0x3a5   : > { %v12826_v35 = vadd.f32 %v3198_v37, %v15491_v50  ;;  %v3200_v22 = vpop.f32.mrb[53].mxu0  ;;  %v3243_v23 = vpop.f32.mrb[53].mxu1  ;;  %v12858_v45 = vadd.f32 %v3241_v33, %v15503_v31  ;;  %v19968_v37 = vld [vmem:[#allocation18_spill] sm:$0xff] }
 0x3a6   : > { %v12827_v47 = vadd.f32 %v3200_v22, %v15497_v16  ;;  %v3202_v51 = vpop.f32.mrb[54].mxu0  ;;  %v3245_v36 = vpop.f32.mrb[54].mxu1  ;;  %v12859_v6 = vadd.f32 %v3243_v23, %v15513_v30 }
 0x3a7   : > { %v3294_v53 = vmul.f32 0.5, %v12826_v35  ;;  %v12828_v54 = vadd.f32 %v3202_v51, %v15491_v50  ;;  %v3204_v55 = vpop.f32.mrb[55].mxu0  ;;  %v3247_v48 = vpop.f32.mrb[55].mxu1  ;;  %v12860_v0 = vadd.f32 %v3245_v36, %v15503_v31 }
 0x3a8   : > { %v3302_v38 = vmul.f32 0.5, %v12827_v47  ;;  %v12829_v43 = vadd.f32 %v3204_v55, %v15497_v16  ;;  %v14010_v44 = vpop.eup %14009  ;;  %v12861_v32 = vadd.f32 %v3247_v48, %v15513_v30  ;;  %v3312_v15 = vmul.f32 0.5, %v12859_v6  ;;  %v19971_v55 = vld [vmem:[#allocation21_spill] sm:$0xff] }
 0x3a9   : > { %14013 = vtanh.f32 %v3294_v53  ;;  %v3295_v28 = vmul.f32 0.5, %v12828_v54  ;;  %v3292_v62 = vmul.f32 %v14010_v44, %v3282_v56  ;;  %v19978_v44 = vld [vmem:[#allocation28_spill] sm:$0xff]  ;;  %v19979_v56 = vld [vmem:[#allocation29_spill] sm:$0xff] }
 0x3aa   : > { %14015 = vtanh.f32 %v3302_v38  ;;  %v3303_v2 = vmul.f32 0.5, %v12829_v43  ;;  %v14012_v57 = vpop.eup %14011  ;;  %v3313_v34 = vmul.f32 0.5, %v12861_v32  ;;  %v19977_v43 = vld [vmem:[#allocation27_spill] sm:$0xff] }
 0x3ab   : > { %v3293_v20 = vmul.f32 %v14012_v57, %v3283_v58  ;;  %14017 = vtanh.f32 %v3295_v28  ;;  %v19980_v58 = vld [vmem:[#allocation30_spill] sm:$0xff]  ;;  %v19981_v57 = vld [vmem:[#allocation31_spill] sm:$0xff] }
 0x3ac   : > { %14019 = vtanh.f32 %v12858_v45 }
 0x3ad   : > { %v16050_v60 = vpack.c.bf16 %v3293_v20, %v3292_v62  ;;  %14021 = vtanh.f32 %v3303_v2  ;;  %v19982_v62 = vld [vmem:[#allocation32_spill] sm:$0xff] }
 0x3ae   : > { %14023 = vtanh.f32 %v12860_v0 }
 0x3af   : > { %19966 = vst [vmem:[#allocation13_spill] sm:$0xff] %v16050_v60  ;;  %3570 = vmatmul.mubr.bf16.vlgmr.msra.gmra.mrb[12].mxu0 %v16050_v60  ;;  %3613 = vmatmul.mubr.bf16.vlgmr.msra.gmra.mrb[12].mxu1 %v16050_v60  ;;  %14025 = vtanh.f32 %v3312_v15  ;;  %v16134_v15 = vld [vmem:[%s19683_s2 + $0x2c] ss:$16 sps:$4 sm:$0xff]  }
 0x3b0   : > { %3833 = vmatpush1.bf16.msra.mxu0 %v15795_v21  ;;  %3876 = vmatpush1.bf16.msra.mxu1 %v15800_v42  ;;  %14027 = vtanh.f32 %v3313_v34  ;;  %v16144_v34 = vld [vmem:[%s19683_s2 + $0x28] ss:$16 sps:$4 sm:$0xff]  }
 0x3b1   : > { %3834 = vmatprep.subr.bf16.mxu0 %v15807_v24  ;;  %3877 = vmatprep.subr.bf16.mxu1 %v15812_v41  ;;  %v19969_v24 = vld [vmem:[#allocation19_spill] sm:$0xff] }
 0x3b2   : > { %3864 = vmatprep.mubr.bf16.mxu0 %v19931_v14  ;;  %3907 = vmatprep.mubr.bf16.mxu1 %v19931_v14 }
 0x3b3   : > { %v14014_v9 = vpop.eup %14013 }
 0x3b4   : > { %v14016_v11 = vpop.eup %14015  ;;  %v3298_v13 = vmul.f32 0.5, %v14014_v9  ;;  %3835 = vmatpush1.bf16.msra.mxu0 %v15823_v19  ;;  %3878 = vmatpush1.bf16.msra.mxu1 %v19967_v39  ;;  %v16153_v39 = vld [vmem:[%s19683_s2 + $0x44] ss:$16 sps:$4 sm:$0xff]  }
 0x3b5   : > { %v3306_v17 = vmul.f32 0.5, %v14016_v11  ;;  %v14018_v21 = vpop.eup %14017  ;;  %3836 = vmatprep.subr.bf16.mxu0 %v19968_v37  ;;  %3879 = vmatprep.subr.bf16.mxu1 %v19969_v24  ;;  %v16168_v37 = vld [vmem:[%s19683_s2 + $0x48] ss:$16 sps:$4 sm:$0xff]   ;;  %v16177_v24 = vld [vmem:[%s19683_s2 + $0x64] ss:$16 sps:$4 sm:$0xff]  }
 0x3b6   : > { %v3300_v42 = vadd.f32 0.5, %v3298_v13  ;;  %v14020_v41 = vpop.eup %14019  ;;  %v3299_v35 = vmul.f32 0.5, %v14018_v21  ;;  %v16129_v13 = vld [vmem:[%s19683_s2 + $0x24] ss:$16 sps:$4 sm:$0xff]   ;;  %v16158_v21 = vld [vmem:[%s19683_s2 + $0x4c] ss:$16 sps:$4 sm:$0xff]  }
 0x3b7   : > { %v3308_v33 = vadd.f32 0.5, %v3306_v17  ;;  %v14022_v22 = vpop.eup %14021  ;;  %v16139_v17 = vld [vmem:[%s19683_s2 + $0x20] ss:$16 sps:$4 sm:$0xff]  }
 0x3b8   : > { %v3322_v23 = vmul.f32 %v14020_v41, %v3300_v42  ;;  %v3301_v40 = vadd.f32 0.5, %v3299_v35  ;;  %v3307_v47 = vmul.f32 0.5, %v14022_v22  ;;  %3837 = vmatpush1.bf16.msra.mxu0 %v15849_v63  ;;  %3880 = vmatpush1.bf16.msra.mxu1 %v15854_v4  ;;  %v14024_v19 = vpop.eup %14023  ;;  %v19972_v63 = vld [vmem:[#allocation22_spill] sm:$0xff]  ;;  %v16163_v42 = vld [vmem:[%s19683_s2 + $0x40] ss:$16 sps:$4 sm:$0xff]  }
 0x3b9   : > { %v3320_v25 = vmul.f32 %v3308_v33, %v15893_v1  ;;  %3838 = vmatprep.subr.bf16.mxu0 %v15861_v26  ;;  %3881 = vmatprep.subr.bf16.mxu1 %v15866_v59  ;;  %v19970_v1 = vld [vmem:[#allocation20_spill] sm:$0xff]  ;;  %v19973_v26 = vld [vmem:[#allocation23_spill] sm:$0xff]  ;;  %v14026_v48 = vpop.eup %14025 }
 0x3ba   : > { %v3309_v36 = vadd.f32 0.5, %v3307_v47  ;;  %v3323_v53 = vmul.f32 %v14024_v19, %v3301_v40  ;;  %v19974_v59 = vld [vmem:[#allocation24_spill] sm:$0xff]  ;;  %v14028_v38 = vpop.eup %14027  ;;  %v3316_v45 = vmul.f32 0.5, %v14026_v48  ;;  %v16187_v33 = vld [vmem:[%s19683_s2 + $0x60] ss:$16 sps:$4 sm:$0xff]  }
 0x3bb   : > { %v16071_v51 = vadd.f32 %v3322_v23, %v3320_v25  ;;  %v3317_v28 = vmul.f32 0.5, %v14028_v38  ;;  %v16182_v41 = vld [vmem:[%s19683_s2 + $0x6c] ss:$16 sps:$4 sm:$0xff]   ;;  %v16192_v35 = vld [vmem:[%s19683_s2 + $0x68] ss:$16 sps:$4 sm:$0xff]  }
 0x3bc   : > { %v3321_v54 = vmul.f32 %v3309_v36, %v15921_v49  ;;  %3839 = vmatpush1.bf16.msra.mxu0 %v15874_v61  ;;  %3882 = vmatpush1.bf16.msra.mxu1 %v19970_v1  ;;  %v19975_v49 = vld [vmem:[#allocation25_spill] sm:$0xff]  ;;  %v19976_v61 = vld [vmem:[#allocation26_spill] sm:$0xff]  ;;  %v3318_v20 = vadd.f32 0.5, %v3316_v45 }
 0x3bd   : > { %3840 = vmatprep.subr.bf16.mxu0 %v19971_v55  ;;  %3883 = vmatprep.subr.bf16.mxu1 %v19972_v63  ;;  %14029 = vtanh.f32 %v16071_v51  ;;  %v3319_v0 = vadd.f32 0.5, %v3317_v28  ;;  %v16201_v22 = vld [vmem:[%s19683_s2 + $0x84] ss:$16 sps:$4 sm:$0xff]   ;;  %v16206_v23 = vld [vmem:[%s19683_s2 + $0x8c] ss:$16 sps:$4 sm:$0xff]  }
 0x3be   : > { %v16079_v4 = vadd.f32 %v3323_v53, %v3321_v54  ;;  %v16211_v25 = vld [vmem:[%s19683_s2 + $0x80] ss:$16 sps:$4 sm:$0xff]   ;;  %v16216_v40 = vld [vmem:[%s19683_s2 + $0x88] ss:$16 sps:$4 sm:$0xff]   ;;  %v16225_v47 = vld [vmem:[%s19683_s2 + $0xa4] ss:$16 sps:$4 sm:$0xff]  }
 0x3bf   : > { %v16230_v19 = vld [vmem:[%s19683_s2 + $0xac] ss:$16 sps:$4 sm:$0xff]   ;;  %v16235_v36 = vld [vmem:[%s19683_s2 + $0xa0] ss:$16 sps:$4 sm:$0xff]   ;;  %v16240_v53 = vld [vmem:[%s19683_s2 + $0xa8] ss:$16 sps:$4 sm:$0xff]  }
 0x3c0   : > { %14031 = vtanh.f32 %v16079_v4  ;;  %3841 = vmatpush1.bf16.msra.mxu0 %v19973_v26  ;;  %3884 = vmatpush1.bf16.msra.mxu1 %v19974_v59  ;;  %v16249_v54 = vld [vmem:[%s19683_s2 + $0xc4] ss:$16 sps:$4 sm:$0xff]   ;;  %v16254_v1 = vld [vmem:[%s19683_s2 + $0xcc] ss:$16 sps:$4 sm:$0xff]   ;;  %v16259_v55 = vld [vmem:[%s19683_s2 + $0xc0] ss:$16 sps:$4 sm:$0xff]  }
 0x3c1   : > { %3842 = vmatprep.subr.bf16.mxu0 %v19975_v49  ;;  %3885 = vmatprep.subr.bf16.mxu1 %v19976_v61  ;;  %v16264_v63 = vld [vmem:[%s19683_s2 + $0xc8] ss:$16 sps:$4 sm:$0xff]   ;;  %v16273_v26 = vld [vmem:[%s19683_s2 + $0xe4] ss:$16 sps:$4 sm:$0xff]   ;;  %v16278_v59 = vld [vmem:[%s19683_s2 + $0xec] ss:$16 sps:$4 sm:$0xff]  }
 0x3c2   : > { %v16283_v48 = vld [vmem:[%s19683_s2 + $0xe0] ss:$16 sps:$4 sm:$0xff]   ;;  %v16288_v49 = vld [vmem:[%s19683_s2 + $0xe8] ss:$16 sps:$4 sm:$0xff]   ;;  %v16297_v61 = vld [vmem:[%s19683_s2 + $0x104] ss:$16 sps:$4 sm:$0xff]  }
 0x3c3   : > { %v16302_v38 = vld [vmem:[%s19683_s2 + $0x10c] ss:$16 sps:$4 sm:$0xff]  }
 0x3c4   : > { %3843 = vmatpush1.bf16.msra.mxu0 %v19977_v43  ;;  %3886 = vmatpush1.bf16.msra.mxu1 %v19978_v44  ;;  %19984 = vst [vmem:[#allocation15_spill] sm:$0xff] %v16302_v38 }
 0x3c5   : > { %3844 = vmatprep.subr.bf16.mxu0 %v19979_v56  ;;  %3887 = vmatprep.subr.bf16.mxu1 %v19980_v58 }
 0x3c7   : > { %v14030_v2 = vpop.eup %14029 }
 0x3c8   : > { %3845 = vmatpush1.bf16.msra.mxu0 %v19981_v57  ;;  %3888 = vmatpush1.bf16.msra.mxu1 %v19982_v62  ;;  %v3328_v32 = vmul.f32 %v14030_v2, %v3318_v20 }
 0x3c9   : > { %3846 = vmatprep.subr.bf16.mxu0 %v15965_v8  ;;  %3889 = vmatprep.subr.bf16.mxu1 %v15970_v3  ;;  %v16105_v3 = vld [vmem:[%s19683_s2 + $0x4] ss:$16 sps:$4 sm:$0xff]   ;;  %v16110_v8 = vld [vmem:[%s19683_s2 + $0xc] ss:$16 sps:$4 sm:$0xff]  }
 0x3ca   : > { %v14032_v6 = vpop.eup %14031 }
 0x3cb   : > { %v3329_v9 = vmul.f32 %v14032_v6, %v3319_v0 }
 0x3cc   : > { %3847 = vmatpush1.bf16.msra.mxu0 %v15977_v7  ;;  %3890 = vmatpush1.bf16.msra.mxu1 %v15982_v46  ;;  %v16115_v7 = vld [vmem:[%s19683_s2] ss:$16 sps:$4 sm:$0xff]   ;;  %v16120_v46 = vld [vmem:[%s19683_s2 + $0x8] ss:$16 sps:$4 sm:$0xff]  }
 0x3cd   : > { %v16096_v11 = vpack.c.bf16 %v3329_v9, %v3328_v32  ;;  %4205 = vmatprep.subr.bf16.mxu0 %v16105_v3  ;;  %4248 = vmatprep.subr.bf16.mxu1 %v16110_v8 }
 0x3cf   : > { %19983 = vst [vmem:[#allocation14_spill] sm:$0xff] %v16096_v11  ;;  %3865 = vmatmul.mubr.bf16.vlgmr.msra.gmra.mrb[48].mxu0 %v16096_v11  ;;  %3908 = vmatmul.mubr.bf16.vlgmr.msra.gmra.mrb[48].mxu1 %v16096_v11 }
 0x3d0   : > { %4237 = vmatprep.mubr.bf16.mxu0 %v19931_v14  ;;  %4280 = vmatprep.mubr.bf16.mxu1 %v19931_v14 }
 0x3d1   : > { %4206 = vmatpush1.bf16.msra.mxu0 %v16115_v7  ;;  %4249 = vmatpush1.bf16.msra.mxu1 %v16120_v46 }
 0x3d2   : > { %4207 = vmatprep.subr.bf16.mxu0 %v16129_v13  ;;  %4250 = vmatprep.subr.bf16.mxu1 %v16134_v15 }
 0x3d5   : > { %4208 = vmatpush1.bf16.msra.mxu0 %v16139_v17  ;;  %4251 = vmatpush1.bf16.msra.mxu1 %v16144_v34 }
 0x3d6   : > { %4209 = vmatprep.subr.bf16.mxu0 %v16153_v39  ;;  %4252 = vmatprep.subr.bf16.mxu1 %v16158_v21 }
 0x3d9   : > { %4210 = vmatpush1.bf16.msra.mxu0 %v16163_v42  ;;  %4253 = vmatpush1.bf16.msra.mxu1 %v16168_v37 }
 0x3da   : > { %4211 = vmatprep.subr.bf16.mxu0 %v16177_v24  ;;  %4254 = vmatprep.subr.bf16.mxu1 %v16182_v41 }
 0x3dd   : > { %4212 = vmatpush1.bf16.msra.mxu0 %v16187_v33  ;;  %4255 = vmatpush1.bf16.msra.mxu1 %v16192_v35 }
 0x3de   : > { %4213 = vmatprep.subr.bf16.mxu0 %v16201_v22  ;;  %4256 = vmatprep.subr.bf16.mxu1 %v16206_v23 }
 0x3e1   : > { %4214 = vmatpush1.bf16.msra.mxu0 %v16211_v25  ;;  %4257 = vmatpush1.bf16.msra.mxu1 %v16216_v40 }
 0x3e2   : > { %4215 = vmatprep.subr.bf16.mxu0 %v16225_v47  ;;  %4258 = vmatprep.subr.bf16.mxu1 %v16230_v19 }
 0x3e5   : > { %4216 = vmatpush1.bf16.msra.mxu0 %v16235_v36  ;;  %4259 = vmatpush1.bf16.msra.mxu1 %v16240_v53 }
 0x3e6   : > { %4217 = vmatprep.subr.bf16.mxu0 %v16249_v54  ;;  %4260 = vmatprep.subr.bf16.mxu1 %v16254_v1 }
 0x3e9   : > { %4218 = vmatpush1.bf16.msra.mxu0 %v16259_v55  ;;  %4261 = vmatpush1.bf16.msra.mxu1 %v16264_v63 }
 0x3ea   : > { %4219 = vmatprep.subr.bf16.mxu0 %v16273_v26  ;;  %4262 = vmatprep.subr.bf16.mxu1 %v16278_v59 }
 0x3ed   : > { %4220 = vmatpush1.bf16.msra.mxu0 %v16283_v48  ;;  %4263 = vmatpush1.bf16.msra.mxu1 %v16288_v49 }
 0x3ee   : > { %4500 = vmatprep.subr.bf16.mxu0 %v16297_v61  ;;  %4543 = vmatprep.subr.bf16.mxu1 %v16302_v38 }
 0x482   : > { %v3571_v43 = vpop.f32.mrb[12].mxu0  ;;  %v3614_v44 = vpop.f32.mrb[12].mxu1 }
 0x483   : > { %v12754_v45 = vadd.f32 %v3571_v43, %v19961_v12  ;;  %v3573_v28 = vpop.f32.mrb[13].mxu0  ;;  %v3616_v56 = vpop.f32.mrb[13].mxu1  ;;  %v12786_v60 = vadd.f32 %v3614_v44, %v15465_v29 }
 0x484   : > { %v12755_v58 = vadd.f32 %v3573_v28, %v19962_v18  ;;  %v3575_v2 = vpop.f32.mrb[14].mxu0  ;;  %v3618_v57 = vpop.f32.mrb[14].mxu1 }
 0x485   : > { %v3926_v62 = vmul.f32 0.5, %v12754_v45  ;;  %v12756_v20 = vadd.f32 %v3575_v2, %v19961_v12  ;;  %v3577_v0 = vpop.f32.mrb[15].mxu0  ;;  %v3620_v6 = vpop.f32.mrb[15].mxu1  ;;  %v12788_v11 = vadd.f32 %v3618_v57, %v15465_v29  ;;  %v12787_v45 = vadd.f32 %v3616_v56, %v19963_v52 }
 0x486   : > { %v3934_v32 = vmul.f32 0.5, %v12755_v58  ;;  %v12757_v9 = vadd.f32 %v3577_v0, %v19962_v18  ;;  %v12789_v28 = vadd.f32 %v3620_v6, %v19963_v52 }
 0x487   : > { %14033 = vtanh.f32 %v3926_v62  ;;  %v3927_v5 = vmul.f32 0.5, %v12756_v20  ;;  %v3944_v0 = vmul.f32 0.5, %v12787_v45 }
 0x488   : > { %14035 = vtanh.f32 %v3934_v32  ;;  %v3935_v43 = vmul.f32 0.5, %v12757_v9  ;;  %v3945_v18 = vmul.f32 0.5, %v12789_v28 }
 0x489   : > { %14037 = vtanh.f32 %v3927_v5 }
 0x48a   : > { %14039 = vtanh.f32 %v12786_v60 }
 0x48b   : > { %14041 = vtanh.f32 %v3935_v43 }
 0x48c   : > { %14043 = vtanh.f32 %v12788_v11 }
 0x48d   : > { %14045 = vtanh.f32 %v3944_v0 }
 0x48e   : > { %14047 = vtanh.f32 %v3945_v18 }
 0x491   : > { %v14034_v2 = vpop.eup %14033 }
 0x492   : > { %v14036_v58 = vpop.eup %14035  ;;  %v3930_v12 = vmul.f32 0.5, %v14034_v2 }
 0x493   : > { %v3938_v62 = vmul.f32 0.5, %v14036_v58  ;;  %v14038_v44 = vpop.eup %14037 }
 0x494   : > { %v3932_v20 = vadd.f32 0.5, %v3930_v12  ;;  %v14040_v32 = vpop.eup %14039  ;;  %v3931_v5 = vmul.f32 0.5, %v14038_v44 }
 0x495   : > { %v3940_v9 = vadd.f32 0.5, %v3938_v62  ;;  %v14042_v38 = vpop.eup %14041 }
 0x496   : > { %v3954_v57 = vmul.f32 %v14040_v32, %v3932_v20  ;;  %v3933_v56 = vadd.f32 0.5, %v3931_v5  ;;  %v3939_v11 = vmul.f32 0.5, %v14042_v38  ;;  %v14044_v6 = vpop.eup %14043 }
 0x497   : > { %v3952_v60 = vmul.f32 %v3940_v9, %v16037_v10  ;;  %v14046_v58 = vpop.eup %14045 }
 0x498   : > { %v3941_v2 = vadd.f32 0.5, %v3939_v11  ;;  %v3955_v45 = vmul.f32 %v14044_v6, %v3933_v56  ;;  %v14048_v0 = vpop.eup %14047  ;;  %v3948_v20 = vmul.f32 0.5, %v14046_v58 }
 0x499   : > { %v16315_v43 = vadd.f32 %v3954_v57, %v3952_v60  ;;  %v3949_v32 = vmul.f32 0.5, %v14048_v0 }
 0x49a   : > { %v3953_v28 = vmul.f32 %v3941_v2, %v16041_v27 }
 0x49b   : > { %19985 = vst [vmem:[#allocation17_spill] sm:$0xff] %v16315_v43  ;;  %14049 = vtanh.f32 %v16315_v43  ;;  %v3951_v58 = vadd.f32 0.5, %v3949_v32  ;;  %v16348_v32 = vld [vmem:[%s19683_s2 + $0x12c] ss:$16 sps:$4 sm:$0xff]  }
 0x49c   : > { %v16319_v12 = vadd.f32 %v3955_v45, %v3953_v28 }
 0x49e   : > { %19986 = vst [vmem:[#allocation18_spill] sm:$0xff] %v16319_v12  ;;  %14051 = vtanh.f32 %v16319_v12  ;;  %v3950_v12 = vadd.f32 0.5, %v3948_v20 }
 0x4a2   : > { %v3866_v62 = vpop.f32.mrb[48].mxu0  ;;  %v3909_v10 = vpop.f32.mrb[48].mxu1 }
 0x4a3   : > { %v12822_v38 = vadd.f32 %v3866_v62, %v15491_v50  ;;  %v3868_v18 = vpop.f32.mrb[49].mxu0  ;;  %v3911_v44 = vpop.f32.mrb[49].mxu1  ;;  %v12854_v28 = vadd.f32 %v3909_v10, %v15503_v31  ;;  %v16336_v10 = vld [vmem:[%s19683_s2 + $0x108] ss:$16 sps:$4 sm:$0xff]  }
 0x4a4   : > { %v12823_v9 = vadd.f32 %v3868_v18, %v15497_v16  ;;  %v3870_v5 = vpop.f32.mrb[50].mxu0  ;;  %v3913_v27 = vpop.f32.mrb[50].mxu1 }
 0x4a5   : > { %v3962_v57 = vmul.f32 0.5, %v12822_v38  ;;  %v12824_v60 = vadd.f32 %v3870_v5, %v15491_v50  ;;  %v3872_v56 = vpop.f32.mrb[51].mxu0  ;;  %v3915_v11 = vpop.f32.mrb[51].mxu1  ;;  %v12856_v38 = vadd.f32 %v3913_v27, %v15503_v31  ;;  %v12855_v5 = vadd.f32 %v3911_v44, %v15513_v30  ;;  %v16364_v44 = vld [vmem:[%s19683_s2 + $0x128] ss:$16 sps:$4 sm:$0xff]  }
 0x4a6   : > { %v3970_v6 = vmul.f32 0.5, %v12823_v9  ;;  %v12825_v2 = vadd.f32 %v3872_v56, %v15497_v16  ;;  %v14050_v45 = vpop.eup %14049  ;;  %v16331_v9 = vld [vmem:[%s19683_s2 + $0x100] ss:$16 sps:$4 sm:$0xff]   ;;  %19988 = vst [vmem:[#allocation20_spill] sm:$0xff] %v16364_v44  ;;  %v16371_v27 = vld [vmem:[%s19683_s2 + $0x144] ss:$16 sps:$4 sm:$0xff]  }
 0x4a7   : > { %14053 = vtanh.f32 %v3962_v57  ;;  %v3963_v62 = vmul.f32 0.5, %v12824_v60  ;;  %v3960_v43 = vmul.f32 %v14050_v45, %v3950_v12  ;;  %v16343_v12 = vld [vmem:[%s19683_s2 + $0x124] ss:$16 sps:$4 sm:$0xff]   ;;  %19989 = vst [vmem:[#allocation21_spill] sm:$0xff] %v16371_v27  ;;  %v16376_v57 = vld [vmem:[%s19683_s2 + $0x14c] ss:$16 sps:$4 sm:$0xff]  }
 0x4a8   : > { %14055 = vtanh.f32 %v3970_v6  ;;  %v3971_v0 = vmul.f32 0.5, %v12825_v2  ;;  %v14052_v18 = vpop.eup %14051  ;;  %19990 = vst [vmem:[#allocation22_spill] sm:$0xff] %v16376_v57  ;;  %v3980_v6 = vmul.f32 0.5, %v12855_v5 }
 0x4a9   : > { %v3961_v52 = vmul.f32 %v14052_v18, %v3951_v58  ;;  %14057 = vtanh.f32 %v3963_v62  ;;  %v16390_v62 = vld [vmem:[%s19683_s2 + $0x148] ss:$16 sps:$4 sm:$0xff]   ;;  %v16397_v18 = vld [vmem:[%s19683_s2 + $0x164] ss:$16 sps:$4 sm:$0xff]  }
 0x4aa   : > { %14059 = vtanh.f32 %v12854_v28  ;;  %v16385_v28 = vld [vmem:[%s19683_s2 + $0x140] ss:$16 sps:$4 sm:$0xff]  }
 0x4ab   : > { %v16338_v20 = vpack.c.bf16 %v3961_v52, %v3960_v43  ;;  %14061 = vtanh.f32 %v3971_v0  ;;  %v12857_v52 = vadd.f32 %v3915_v11, %v15513_v30  ;;  %v16359_v43 = vld [vmem:[%s19683_s2 + $0x120] ss:$16 sps:$4 sm:$0xff]  }
 0x4ac   : > { %14063 = vtanh.f32 %v12856_v38  ;;  %v16402_v38 = vld [vmem:[%s19683_s2 + $0x16c] ss:$16 sps:$4 sm:$0xff]  }
 0x4ad   : > { %19987 = vst [vmem:[#allocation19_spill] sm:$0xff] %v16338_v20  ;;  %4238 = vmatmul.mubr.bf16.vlgmr.msra.gmra.mrb[16].mxu0 %v16338_v20  ;;  %4281 = vmatmul.mubr.bf16.vlgmr.msra.gmra.mrb[16].mxu1 %v16338_v20  ;;  %v3981_v45 = vmul.f32 0.5, %v12857_v52  ;;  %14065 = vtanh.f32 %v3980_v6 }
 0x4ae   : > { %4501 = vmatpush1.bf16.msra.mxu0 %v16331_v9  ;;  %4544 = vmatpush1.bf16.msra.mxu1 %v16336_v10 }
 0x4af   : > { %4502 = vmatprep.subr.bf16.mxu0 %v16343_v12  ;;  %4545 = vmatprep.subr.bf16.mxu1 %v16348_v32  ;;  %14067 = vtanh.f32 %v3981_v45  ;;  %v16427_v45 = vld [vmem:[%s19683_s2 + $0x18c] ss:$16 sps:$4 sm:$0xff]  }
 0x4b0   : > { %4532 = vmatprep.mubr.bf16.mxu0 %v19931_v14  ;;  %4575 = vmatprep.mubr.bf16.mxu1 %v19931_v14  ;;  %19993 = vst [vmem:[#allocation25_spill] sm:$0xff] %v16427_v45 }
 0x4b1   : > { %v14054_v60 = vpop.eup %14053 }
 0x4b2   : > { %v14056_v56 = vpop.eup %14055  ;;  %v3966_v11 = vmul.f32 0.5, %v14054_v60  ;;  %4503 = vmatpush1.bf16.msra.mxu0 %v16359_v43  ;;  %4546 = vmatpush1.bf16.msra.mxu1 %v16364_v44  ;;  %v16410_v44 = vld [vmem:[%s19683_s2 + $0x160] ss:$16 sps:$4 sm:$0xff]  }
 0x4b3   : > { %v3974_v2 = vmul.f32 0.5, %v14056_v56  ;;  %v14058_v58 = vpop.eup %14057  ;;  %4504 = vmatprep.subr.bf16.mxu0 %v16371_v27  ;;  %4547 = vmatprep.subr.bf16.mxu1 %v16376_v57 }
 0x4b4   : > { %v3968_v0 = vadd.f32 0.5, %v3966_v11  ;;  %v14060_v5 = vpop.eup %14059  ;;  %v3967_v60 = vmul.f32 0.5, %v14058_v58 }
 0x4b5   : > { %v3976_v52 = vadd.f32 0.5, %v3974_v2  ;;  %v14062_v56 = vpop.eup %14061  ;;  %v16415_v2 = vld [vmem:[%s19683_s2 + $0x168] ss:$16 sps:$4 sm:$0xff]  }
 0x4b6   : > { %v3990_v20 = vmul.f32 %v14060_v5, %v3968_v0  ;;  %v3969_v27 = vadd.f32 0.5, %v3967_v60  ;;  %v3975_v57 = vmul.f32 0.5, %v14062_v56  ;;  %4505 = vmatpush1.bf16.msra.mxu0 %v16385_v28  ;;  %4548 = vmatpush1.bf16.msra.mxu1 %v16390_v62  ;;  %19991 = vst [vmem:[#allocation23_spill] sm:$0xff] %v16415_v2  ;;  %v14064_v6 = vpop.eup %14063  ;;  %v16437_v60 = vld [vmem:[%s19683_s2 + $0x180] ss:$16 sps:$4 sm:$0xff]  }
 0x4b7   : > { %v3988_v11 = vmul.f32 %v3976_v52, %v16071_v51  ;;  %4506 = vmatprep.subr.bf16.mxu0 %v16397_v18  ;;  %4549 = vmatprep.subr.bf16.mxu1 %v16402_v38  ;;  %v16422_v51 = vld [vmem:[%s19683_s2 + $0x184] ss:$16 sps:$4 sm:$0xff]   ;;  %19994 = vst [vmem:[#allocation26_spill] sm:$0xff] %v16437_v60  ;;  %v16442_v56 = vld [vmem:[%s19683_s2 + $0x188] ss:$16 sps:$4 sm:$0xff]  }
 0x4b8   : > { %19992 = vst [vmem:[#allocation24_spill] sm:$0xff] %v16422_v51  ;;  %v3977_v0 = vadd.f32 0.5, %v3975_v57  ;;  %v3991_v5 = vmul.f32 %v14064_v6, %v3969_v27  ;;  %19995 = vst [vmem:[#allocation27_spill] sm:$0xff] %v16442_v56  ;;  %v16465_v57 = vld [vmem:[%s19683_s2 + $0x1a0] ss:$16 sps:$4 sm:$0xff]   ;;  %v14066_v6 = vpop.eup %14065 }
 0x4b9   : > { %v16429_v58 = vadd.f32 %v3990_v20, %v3988_v11  ;;  %v16454_v20 = vld [vmem:[%s19683_s2 + $0x1ac] ss:$16 sps:$4 sm:$0xff]   ;;  %19998 = vst [vmem:[#allocation30_spill] sm:$0xff] %v16465_v57  ;;  %v16470_v11 = vld [vmem:[%s19683_s2 + $0x1a8] ss:$16 sps:$4 sm:$0xff]  }
 0x4ba   : > { %v3989_v52 = vmul.f32 %v3977_v0, %v16079_v4  ;;  %4507 = vmatpush1.bf16.msra.mxu0 %v16410_v44  ;;  %4550 = vmatpush1.bf16.msra.mxu1 %v16415_v2  ;;  %v16449_v4 = vld [vmem:[%s19683_s2 + $0x1a4] ss:$16 sps:$4 sm:$0xff]   ;;  %19997 = vst [vmem:[#allocation29_spill] sm:$0xff] %v16454_v20  ;;  %19999 = vst [vmem:[#allocation31_spill] sm:$0xff] %v16470_v11 }
 0x4bb   : > { %4508 = vmatprep.subr.bf16.mxu0 %v16422_v51  ;;  %4551 = vmatprep.subr.bf16.mxu1 %v16427_v45  ;;  %19996 = vst [vmem:[#allocation28_spill] sm:$0xff] %v16449_v4  ;;  %14069 = vtanh.f32 %v16429_v58  ;;  %v16477_v0 = vld [vmem:[%s19683_s2 + $0x1c4] ss:$16 sps:$4 sm:$0xff]  }
 0x4bc   : > { %v16457_v27 = vadd.f32 %v3991_v5, %v3989_v52  ;;  %20000 = vst [vmem:[#allocation32_spill] sm:$0xff] %v16477_v0  ;;  %v16482_v5 = vld [vmem:[%s19683_s2 + $0x1cc] ss:$16 sps:$4 sm:$0xff]   ;;  %v14068_v52 = vpop.eup %14067 }
 0x4bd   : > { %20001 = vst [vmem:[#allocation34_spill] sm:$0xff] %v16482_v5 }
 0x4be   : > { %14071 = vtanh.f32 %v16457_v27  ;;  %4509 = vmatpush1.bf16.msra.mxu0 %v16437_v60  ;;  %4552 = vmatpush1.bf16.msra.mxu1 %v16442_v56  ;;  %v3984_v56 = vmul.f32 0.5, %v14066_v6  ;;  %v3985_v60 = vmul.f32 0.5, %v14068_v52  ;;  %v16513_v6 = vld [vmem:[%s19683_s2 + $0x1e0] ss:$16 sps:$4 sm:$0xff]   ;;  %v16518_v52 = vld [vmem:[%s19683_s2 + $0x1e8] ss:$16 sps:$4 sm:$0xff]  }
 0x4bf   : > { %4510 = vmatprep.subr.bf16.mxu0 %v16449_v4  ;;  %4553 = vmatprep.subr.bf16.mxu1 %v16454_v20  ;;  %v16489_v4 = vld [vmem:[%s19683_s2 + $0x1c0] ss:$16 sps:$4 sm:$0xff]   ;;  %v16494_v20 = vld [vmem:[%s19683_s2 + $0x1c8] ss:$16 sps:$4 sm:$0xff]  }
 0x4c0   : > { %20002 = vst [vmem:[#allocation35_spill] sm:$0xff] %v16489_v4  ;;  %20003 = vst [vmem:[#allocation36_spill] sm:$0xff] %v16494_v20 }
 0x4c2   : > { %4511 = vmatpush1.bf16.msra.mxu0 %v16465_v57  ;;  %4554 = vmatpush1.bf16.msra.mxu1 %v16470_v11  ;;  %v16501_v11 = vld [vmem:[%s19683_s2 + $0x1e4] ss:$16 sps:$4 sm:$0xff]   ;;  %v16506_v57 = vld [vmem:[%s19683_s2 + $0x1ec] ss:$16 sps:$4 sm:$0xff]  }
 0x4c3   : > { %4512 = vmatprep.subr.bf16.mxu0 %v16477_v0  ;;  %4555 = vmatprep.subr.bf16.mxu1 %v16482_v5  ;;  %v3986_v5 = vadd.f32 0.5, %v3984_v56  ;;  %v3987_v0 = vadd.f32 0.5, %v3985_v60  ;;  %v20009_v56 = vld [vmem:[#allocation17_spill] sm:$0xff] }
 0x4c5   : > { %v14070_v45 = vpop.eup %14069 }
 0x4c6   : > { %4513 = vmatpush1.bf16.msra.mxu0 %v16489_v4  ;;  %4556 = vmatpush1.bf16.msra.mxu1 %v16494_v20  ;;  %v3996_v4 = vmul.f32 %v14070_v45, %v3986_v5 }
 0x4c7   : > { %4514 = vmatprep.subr.bf16.mxu0 %v16501_v11  ;;  %4557 = vmatprep.subr.bf16.mxu1 %v16506_v57 }
 0x4c8   : > { %v14072_v51 = vpop.eup %14071 }
 0x4c9   : > { %v3997_v2 = vmul.f32 %v14072_v51, %v3987_v0 }
 0x4ca   : > { %4515 = vmatpush1.bf16.msra.mxu0 %v16513_v6  ;;  %4558 = vmatpush1.bf16.msra.mxu1 %v16518_v52 }
 0x4cb   : > { %v16524_v20 = vpack.c.bf16 %v3997_v2, %v3996_v4  ;;  %4873 = vmatprep.subr.bf16.mxu0 %v16105_v3  ;;  %4916 = vmatprep.subr.bf16.mxu1 %v16110_v8  ;;  %v20005_v3 = vld [vmem:[#allocation15_spill] sm:$0xff] }
 0x4cd   : > { %20004 = vst [vmem:[#allocation37_spill] sm:$0xff] %v16524_v20  ;;  %4533 = vmatmul.mubr.bf16.vlgmr.msra.gmra.mrb[44].mxu0 %v16524_v20  ;;  %4576 = vmatmul.mubr.bf16.vlgmr.msra.gmra.mrb[44].mxu1 %v16524_v20 }
 0x4ce   : > { %4874 = vmatpush1.bf16.msra.mxu0 %v16115_v7  ;;  %4917 = vmatpush1.bf16.msra.mxu1 %v16120_v46  ;;  %v20006_v46 = vld [vmem:[#allocation9_spill] sm:$0xff] }
 0x4cf   : > { %4875 = vmatprep.subr.bf16.mxu0 %v16129_v13  ;;  %4918 = vmatprep.subr.bf16.mxu1 %v16134_v15 }
 0x4d0   : > { %4905 = vmatprep.mubr.bf16.mxu0 %v19931_v14  ;;  %4948 = vmatprep.mubr.bf16.mxu1 %v19931_v14 }
 0x4d2   : > { %4876 = vmatpush1.bf16.msra.mxu0 %v16139_v17  ;;  %4919 = vmatpush1.bf16.msra.mxu1 %v16144_v34  ;;  %v20007_v34 = vld [vmem:[#allocation10_spill] sm:$0xff] }
 0x4d3   : > { %4877 = vmatprep.subr.bf16.mxu0 %v16153_v39  ;;  %4920 = vmatprep.subr.bf16.mxu1 %v16158_v21 }
 0x4d6   : > { %4878 = vmatpush1.bf16.msra.mxu0 %v16163_v42  ;;  %4921 = vmatpush1.bf16.msra.mxu1 %v16168_v37 }
 0x4d7   : > { %4879 = vmatprep.subr.bf16.mxu0 %v16177_v24  ;;  %4922 = vmatprep.subr.bf16.mxu1 %v16182_v41 }
 0x4da   : > { %4880 = vmatpush1.bf16.msra.mxu0 %v16187_v33  ;;  %4923 = vmatpush1.bf16.msra.mxu1 %v16192_v35 }
 0x4db   : > { %4881 = vmatprep.subr.bf16.mxu0 %v16201_v22  ;;  %4924 = vmatprep.subr.bf16.mxu1 %v16206_v23 }
 0x4de   : > { %4882 = vmatpush1.bf16.msra.mxu0 %v16211_v25  ;;  %4925 = vmatpush1.bf16.msra.mxu1 %v16216_v40 }
 0x4df   : > { %4883 = vmatprep.subr.bf16.mxu0 %v16225_v47  ;;  %4926 = vmatprep.subr.bf16.mxu1 %v16230_v19  ;;  %v20008_v19 = vld [vmem:[#allocation11_spill] sm:$0xff] }
 0x4e2   : > { %4884 = vmatpush1.bf16.msra.mxu0 %v16235_v36  ;;  %4927 = vmatpush1.bf16.msra.mxu1 %v16240_v53 }
 0x4e3   : > { %4885 = vmatprep.subr.bf16.mxu0 %v16249_v54  ;;  %4928 = vmatprep.subr.bf16.mxu1 %v16254_v1 }
 0x4e6   : > { %4886 = vmatpush1.bf16.msra.mxu0 %v16259_v55  ;;  %4929 = vmatpush1.bf16.msra.mxu1 %v16264_v63 }
 0x4e7   : > { %4887 = vmatprep.subr.bf16.mxu0 %v16273_v26  ;;  %4930 = vmatprep.subr.bf16.mxu1 %v16278_v59 }
 0x4ea   : > { %4888 = vmatpush1.bf16.msra.mxu0 %v16283_v48  ;;  %4931 = vmatpush1.bf16.msra.mxu1 %v16288_v49 }
 0x4eb   : > { %5168 = vmatprep.subr.bf16.mxu0 %v16297_v61  ;;  %5211 = vmatprep.subr.bf16.mxu1 %v20005_v3 }
 0x580   : > { %v4239_v8 = vpop.f32.mrb[16].mxu0  ;;  %v4282_v7 = vpop.f32.mrb[16].mxu1 }
 0x581   : > { %v12758_v13 = vadd.f32 %v4239_v8, %v20006_v46  ;;  %v4241_v15 = vpop.f32.mrb[17].mxu0  ;;  %v4284_v17 = vpop.f32.mrb[17].mxu1  ;;  %v12790_v23 = vadd.f32 %v4282_v7, %v15465_v29 }
 0x582   : > { %v12759_v39 = vadd.f32 %v4241_v15, %v20007_v34  ;;  %v4243_v21 = vpop.f32.mrb[18].mxu0  ;;  %v4286_v42 = vpop.f32.mrb[18].mxu1  ;;  %v12791_v36 = vadd.f32 %v4284_v17, %v20008_v19  ;;  %v20010_v15 = vld [vmem:[#allocation18_spill] sm:$0xff] }
 0x583   : > { %v4594_v37 = vmul.f32 0.5, %v12758_v13  ;;  %v12760_v24 = vadd.f32 %v4243_v21, %v20006_v46  ;;  %v4245_v41 = vpop.f32.mrb[19].mxu0  ;;  %v4288_v33 = vpop.f32.mrb[19].mxu1  ;;  %v12792_v47 = vadd.f32 %v4286_v42, %v15465_v29 }
 0x584   : > { %v4602_v35 = vmul.f32 0.5, %v12759_v39  ;;  %v12761_v22 = vadd.f32 %v4245_v41, %v20007_v34  ;;  %v12793_v53 = vadd.f32 %v4288_v33, %v20008_v19  ;;  %v4612_v63 = vmul.f32 0.5, %v12791_v36 }
 0x585   : > { %14073 = vtanh.f32 %v4594_v37  ;;  %v4595_v25 = vmul.f32 0.5, %v12760_v24 }
 0x586   : > { %14075 = vtanh.f32 %v4602_v35  ;;  %v4603_v40 = vmul.f32 0.5, %v12761_v22  ;;  %v4613_v59 = vmul.f32 0.5, %v12793_v53 }
 0x587   : > { %14077 = vtanh.f32 %v4595_v25 }
 0x588   : > { %14079 = vtanh.f32 %v12790_v23 }
 0x589   : > { %14081 = vtanh.f32 %v4603_v40 }
 0x58a   : > { %14083 = vtanh.f32 %v12792_v47 }
 0x58b   : > { %14085 = vtanh.f32 %v4612_v63 }
 0x58c   : > { %14087 = vtanh.f32 %v4613_v59 }
 0x58f   : > { %v14074_v54 = vpop.eup %14073 }
 0x590   : > { %v14076_v1 = vpop.eup %14075  ;;  %v4598_v55 = vmul.f32 0.5, %v14074_v54 }
 0x591   : > { %v4606_v26 = vmul.f32 0.5, %v14076_v1  ;;  %v14078_v48 = vpop.eup %14077 }
 0x592   : > { %v4600_v49 = vadd.f32 0.5, %v4598_v55  ;;  %v14080_v61 = vpop.eup %14079  ;;  %v4599_v51 = vmul.f32 0.5, %v14078_v48 }
 0x593   : > { %v4608_v2 = vadd.f32 0.5, %v4606_v26  ;;  %v14082_v45 = vpop.eup %14081 }
 0x594   : > { %v4622_v60 = vmul.f32 %v14080_v61, %v4600_v49  ;;  %v4601_v0 = vadd.f32 0.5, %v4599_v51  ;;  %v4607_v5 = vmul.f32 0.5, %v14082_v45  ;;  %v14084_v3 = vpop.eup %14083 }
 0x595   : > { %v4620_v4 = vmul.f32 %v4608_v2, %v20009_v56  ;;  %v14086_v21 = vpop.eup %14085 }
 0x596   : > { %v4609_v7 = vadd.f32 0.5, %v4607_v5  ;;  %v4623_v13 = vmul.f32 %v14084_v3, %v4601_v0  ;;  %v14088_v42 = vpop.eup %14087  ;;  %v4616_v22 = vmul.f32 0.5, %v14086_v21 }
 0x597   : > { %v16573_v8 = vadd.f32 %v4622_v60, %v4620_v4  ;;  %v4617_v23 = vmul.f32 0.5, %v14088_v42  ;;  %v20012_v42 = vld [vmem:[#allocation20_spill] sm:$0xff] }
 0x598   : > { %v4621_v17 = vmul.f32 %v4609_v7, %v20010_v15  ;;  %v4618_v49 = vadd.f32 0.5, %v4616_v22 }
 0x599   : > { %14089 = vtanh.f32 %v16573_v8  ;;  %v4619_v61 = vadd.f32 0.5, %v4617_v23 }
 0x59a   : > { %v16577_v39 = vadd.f32 %v4623_v13, %v4621_v17 }
 0x59c   : > { %14091 = vtanh.f32 %v16577_v39 }
 0x5a0   : > { %v4534_v37 = vpop.f32.mrb[44].mxu0  ;;  %v4577_v24 = vpop.f32.mrb[44].mxu1 }
 0x5a1   : > { %v12818_v41 = vadd.f32 %v4534_v37, %v15491_v50  ;;  %v4536_v33 = vpop.f32.mrb[45].mxu0  ;;  %v4579_v35 = vpop.f32.mrb[45].mxu1  ;;  %v12850_v59 = vadd.f32 %v4577_v24, %v15503_v31  ;;  %v20013_v37 = vld [vmem:[#allocation21_spill] sm:$0xff] }
 0x5a2   : > { %v12819_v25 = vadd.f32 %v4536_v33, %v15497_v16  ;;  %v4538_v40 = vpop.f32.mrb[46].mxu0  ;;  %v4581_v47 = vpop.f32.mrb[46].mxu1  ;;  %v12851_v0 = vadd.f32 %v4579_v35, %v15513_v30 }
 0x5a3   : > { %v4630_v36 = vmul.f32 0.5, %v12818_v41  ;;  %v12820_v53 = vadd.f32 %v4538_v40, %v15491_v50  ;;  %v4540_v54 = vpop.f32.mrb[47].mxu0  ;;  %v4583_v1 = vpop.f32.mrb[47].mxu1  ;;  %v12852_v56 = vadd.f32 %v4581_v47, %v15503_v31 }
 0x5a4   : > { %v4638_v55 = vmul.f32 0.5, %v12819_v25  ;;  %v12821_v63 = vadd.f32 %v4540_v54, %v15497_v16  ;;  %v14090_v26 = vpop.eup %14089  ;;  %v12853_v5 = vadd.f32 %v4583_v1, %v15513_v30  ;;  %v4648_v15 = vmul.f32 0.5, %v12851_v0  ;;  %v20016_v54 = vld [vmem:[#allocation24_spill] sm:$0xff] }
 0x5a5   : > { %14093 = vtanh.f32 %v4630_v36  ;;  %v4631_v48 = vmul.f32 0.5, %v12820_v53  ;;  %v4628_v45 = vmul.f32 %v14090_v26, %v4618_v49  ;;  %v20023_v26 = vld [vmem:[#allocation31_spill] sm:$0xff]  ;;  %v20024_v49 = vld [vmem:[#allocation32_spill] sm:$0xff] }
 0x5a6   : > { %14095 = vtanh.f32 %v4638_v55  ;;  %v4639_v2 = vmul.f32 0.5, %v12821_v63  ;;  %v14092_v51 = vpop.eup %14091  ;;  %v4649_v21 = vmul.f32 0.5, %v12853_v5  ;;  %v20022_v63 = vld [vmem:[#allocation30_spill] sm:$0xff] }
 0x5a7   : > { %v4629_v60 = vmul.f32 %v14092_v51, %v4619_v61  ;;  %14097 = vtanh.f32 %v4631_v48  ;;  %v20025_v61 = vld [vmem:[#allocation34_spill] sm:$0xff]  ;;  %v20026_v51 = vld [vmem:[#allocation35_spill] sm:$0xff] }
 0x5a8   : > { %14099 = vtanh.f32 %v12850_v59 }
 0x5a9   : > { %v16586_v4 = vpack.c.bf16 %v4629_v60, %v4628_v45  ;;  %14101 = vtanh.f32 %v4639_v2  ;;  %v20027_v45 = vld [vmem:[#allocation36_spill] sm:$0xff] }
 0x5aa   : > { %14103 = vtanh.f32 %v12852_v56 }
 0x5ab   : > { %20011 = vst [vmem:[#allocation15_spill] sm:$0xff] %v16586_v4  ;;  %4906 = vmatmul.mubr.bf16.vlgmr.msra.gmra.mrb[20].mxu0 %v16586_v4  ;;  %4949 = vmatmul.mubr.bf16.vlgmr.msra.gmra.mrb[20].mxu1 %v16586_v4  ;;  %14105 = vtanh.f32 %v4648_v15  ;;  %v16670_v15 = vld [vmem:[%s19683_s2 + $0x2c] ss:$16 sps:$4 sm:$0xff]  }
 0x5ac   : > { %5169 = vmatpush1.bf16.msra.mxu0 %v16331_v9  ;;  %5212 = vmatpush1.bf16.msra.mxu1 %v16336_v10  ;;  %14107 = vtanh.f32 %v4649_v21  ;;  %v16680_v21 = vld [vmem:[%s19683_s2 + $0x28] ss:$16 sps:$4 sm:$0xff]  }
 0x5ad   : > { %5170 = vmatprep.subr.bf16.mxu0 %v16343_v12  ;;  %5213 = vmatprep.subr.bf16.mxu1 %v16348_v32  ;;  %v20014_v12 = vld [vmem:[#allocation22_spill] sm:$0xff] }
 0x5ae   : > { %5200 = vmatprep.mubr.bf16.mxu0 %v19931_v14  ;;  %5243 = vmatprep.mubr.bf16.mxu1 %v19931_v14 }
 0x5af   : > { %v14094_v3 = vpop.eup %14093 }
 0x5b0   : > { %v14096_v7 = vpop.eup %14095  ;;  %v4634_v13 = vmul.f32 0.5, %v14094_v3  ;;  %5171 = vmatpush1.bf16.msra.mxu0 %v16359_v43  ;;  %5214 = vmatpush1.bf16.msra.mxu1 %v20012_v42  ;;  %v16689_v42 = vld [vmem:[%s19683_s2 + $0x44] ss:$16 sps:$4 sm:$0xff]  }
 0x5b1   : > { %v4642_v17 = vmul.f32 0.5, %v14096_v7  ;;  %v14098_v9 = vpop.eup %14097  ;;  %5172 = vmatprep.subr.bf16.mxu0 %v20013_v37  ;;  %5215 = vmatprep.subr.bf16.mxu1 %v20014_v12  ;;  %v16704_v37 = vld [vmem:[%s19683_s2 + $0x48] ss:$16 sps:$4 sm:$0xff]   ;;  %v16713_v12 = vld [vmem:[%s19683_s2 + $0x64] ss:$16 sps:$4 sm:$0xff]  }
 0x5b2   : > { %v4636_v10 = vadd.f32 0.5, %v4634_v13  ;;  %v14100_v32 = vpop.eup %14099  ;;  %v4635_v41 = vmul.f32 0.5, %v14098_v9  ;;  %v16665_v13 = vld [vmem:[%s19683_s2 + $0x24] ss:$16 sps:$4 sm:$0xff]   ;;  %v16694_v9 = vld [vmem:[%s19683_s2 + $0x4c] ss:$16 sps:$4 sm:$0xff]  }
 0x5b3   : > { %v4644_v24 = vadd.f32 0.5, %v4642_v17  ;;  %v14102_v33 = vpop.eup %14101  ;;  %v16675_v17 = vld [vmem:[%s19683_s2 + $0x20] ss:$16 sps:$4 sm:$0xff]  }
 0x5b4   : > { %v4658_v35 = vmul.f32 %v14100_v32, %v4636_v10  ;;  %v4637_v23 = vadd.f32 0.5, %v4635_v41  ;;  %v4643_v25 = vmul.f32 0.5, %v14102_v33  ;;  %5173 = vmatpush1.bf16.msra.mxu0 %v16385_v28  ;;  %5216 = vmatpush1.bf16.msra.mxu1 %v16390_v62  ;;  %v14104_v43 = vpop.eup %14103  ;;  %v20017_v28 = vld [vmem:[#allocation25_spill] sm:$0xff]  ;;  %v16718_v32 = vld [vmem:[%s19683_s2 + $0x6c] ss:$16 sps:$4 sm:$0xff]  }
 0x5b5   : > { %v4656_v22 = vmul.f32 %v4644_v24, %v16429_v58  ;;  %5174 = vmatprep.subr.bf16.mxu0 %v16397_v18  ;;  %5217 = vmatprep.subr.bf16.mxu1 %v16402_v38  ;;  %v20015_v58 = vld [vmem:[#allocation23_spill] sm:$0xff]  ;;  %v20018_v18 = vld [vmem:[#allocation26_spill] sm:$0xff]  ;;  %v14106_v1 = vpop.eup %14105 }
 0x5b6   : > { %v4645_v47 = vadd.f32 0.5, %v4643_v25  ;;  %v4659_v36 = vmul.f32 %v14104_v43, %v4637_v23  ;;  %v20019_v38 = vld [vmem:[#allocation27_spill] sm:$0xff]  ;;  %v14108_v55 = vpop.eup %14107  ;;  %v4652_v59 = vmul.f32 0.5, %v14106_v1  ;;  %v16728_v41 = vld [vmem:[%s19683_s2 + $0x68] ss:$16 sps:$4 sm:$0xff]  }
 0x5b7   : > { %v16607_v40 = vadd.f32 %v4658_v35, %v4656_v22  ;;  %v4653_v48 = vmul.f32 0.5, %v14108_v55  ;;  %v16699_v10 = vld [vmem:[%s19683_s2 + $0x40] ss:$16 sps:$4 sm:$0xff]   ;;  %v16737_v33 = vld [vmem:[%s19683_s2 + $0x84] ss:$16 sps:$4 sm:$0xff]  }
 0x5b8   : > { %v4657_v53 = vmul.f32 %v4645_v47, %v16457_v27  ;;  %5175 = vmatpush1.bf16.msra.mxu0 %v16410_v44  ;;  %5218 = vmatpush1.bf16.msra.mxu1 %v20015_v58  ;;  %v20020_v27 = vld [vmem:[#allocation28_spill] sm:$0xff]  ;;  %v20021_v44 = vld [vmem:[#allocation29_spill] sm:$0xff]  ;;  %v4654_v60 = vadd.f32 0.5, %v4652_v59 }
 0x5b9   : > { %5176 = vmatprep.subr.bf16.mxu0 %v20016_v54  ;;  %5219 = vmatprep.subr.bf16.mxu1 %v20017_v28  ;;  %14109 = vtanh.f32 %v16607_v40  ;;  %v4655_v56 = vadd.f32 0.5, %v4653_v48  ;;  %v16723_v24 = vld [vmem:[%s19683_s2 + $0x60] ss:$16 sps:$4 sm:$0xff]   ;;  %v16742_v35 = vld [vmem:[%s19683_s2 + $0x8c] ss:$16 sps:$4 sm:$0xff]  }
 0x5ba   : > { %v16615_v62 = vadd.f32 %v4659_v36, %v4657_v53  ;;  %v16747_v22 = vld [vmem:[%s19683_s2 + $0x80] ss:$16 sps:$4 sm:$0xff]   ;;  %v16752_v23 = vld [vmem:[%s19683_s2 + $0x88] ss:$16 sps:$4 sm:$0xff]   ;;  %v16761_v25 = vld [vmem:[%s19683_s2 + $0xa4] ss:$16 sps:$4 sm:$0xff]  }
 0x5bb   : > { %v16766_v43 = vld [vmem:[%s19683_s2 + $0xac] ss:$16 sps:$4 sm:$0xff]   ;;  %v16771_v47 = vld [vmem:[%s19683_s2 + $0xa0] ss:$16 sps:$4 sm:$0xff]   ;;  %v16776_v36 = vld [vmem:[%s19683_s2 + $0xa8] ss:$16 sps:$4 sm:$0xff]  }
 0x5bc   : > { %14111 = vtanh.f32 %v16615_v62  ;;  %5177 = vmatpush1.bf16.msra.mxu0 %v20018_v18  ;;  %5220 = vmatpush1.bf16.msra.mxu1 %v20019_v38  ;;  %v16785_v53 = vld [vmem:[%s19683_s2 + $0xc4] ss:$16 sps:$4 sm:$0xff]   ;;  %v16790_v58 = vld [vmem:[%s19683_s2 + $0xcc] ss:$16 sps:$4 sm:$0xff]   ;;  %v16795_v54 = vld [vmem:[%s19683_s2 + $0xc0] ss:$16 sps:$4 sm:$0xff]  }
 0x5bd   : > { %5178 = vmatprep.subr.bf16.mxu0 %v20020_v27  ;;  %5221 = vmatprep.subr.bf16.mxu1 %v20021_v44  ;;  %v16800_v28 = vld [vmem:[%s19683_s2 + $0xc8] ss:$16 sps:$4 sm:$0xff]   ;;  %v16809_v18 = vld [vmem:[%s19683_s2 + $0xe4] ss:$16 sps:$4 sm:$0xff]   ;;  %v16814_v38 = vld [vmem:[%s19683_s2 + $0xec] ss:$16 sps:$4 sm:$0xff]  }
 0x5be   : > { %v16819_v1 = vld [vmem:[%s19683_s2 + $0xe0] ss:$16 sps:$4 sm:$0xff]   ;;  %v16824_v27 = vld [vmem:[%s19683_s2 + $0xe8] ss:$16 sps:$4 sm:$0xff]   ;;  %v16833_v44 = vld [vmem:[%s19683_s2 + $0x104] ss:$16 sps:$4 sm:$0xff]  }
 0x5bf   : > { %v16838_v55 = vld [vmem:[%s19683_s2 + $0x10c] ss:$16 sps:$4 sm:$0xff]  }
 0x5c0   : > { %5179 = vmatpush1.bf16.msra.mxu0 %v20022_v63  ;;  %5222 = vmatpush1.bf16.msra.mxu1 %v20023_v26  ;;  %20029 = vst [vmem:[#allocation18_spill] sm:$0xff] %v16838_v55 }
 0x5c1   : > { %5180 = vmatprep.subr.bf16.mxu0 %v20024_v49  ;;  %5223 = vmatprep.subr.bf16.mxu1 %v20025_v61 }
 0x5c3   : > { %v14110_v2 = vpop.eup %14109 }
 0x5c4   : > { %5181 = vmatpush1.bf16.msra.mxu0 %v20026_v51  ;;  %5224 = vmatpush1.bf16.msra.mxu1 %v20027_v45  ;;  %v4664_v5 = vmul.f32 %v14110_v2, %v4654_v60 }
 0x5c5   : > { %5182 = vmatprep.subr.bf16.mxu0 %v16501_v11  ;;  %5225 = vmatprep.subr.bf16.mxu1 %v16506_v57  ;;  %v16641_v57 = vld [vmem:[%s19683_s2 + $0x4] ss:$16 sps:$4 sm:$0xff]   ;;  %v16646_v11 = vld [vmem:[%s19683_s2 + $0xc] ss:$16 sps:$4 sm:$0xff]  }
 0x5c6   : > { %v14112_v0 = vpop.eup %14111 }
 0x5c7   : > { %v4665_v3 = vmul.f32 %v14112_v0, %v4655_v56 }
 0x5c8   : > { %5183 = vmatpush1.bf16.msra.mxu0 %v16513_v6  ;;  %5226 = vmatpush1.bf16.msra.mxu1 %v16518_v52  ;;  %v16651_v6 = vld [vmem:[%s19683_s2] ss:$16 sps:$4 sm:$0xff]   ;;  %v16656_v52 = vld [vmem:[%s19683_s2 + $0x8] ss:$16 sps:$4 sm:$0xff]  }
 0x5c9   : > { %v16632_v7 = vpack.c.bf16 %v4665_v3, %v4664_v5  ;;  %5541 = vmatprep.subr.bf16.mxu0 %v16641_v57  ;;  %5584 = vmatprep.subr.bf16.mxu1 %v16646_v11 }
 0x5cb   : > { %20028 = vst [vmem:[#allocation17_spill] sm:$0xff] %v16632_v7  ;;  %5201 = vmatmul.mubr.bf16.vlgmr.msra.gmra.mrb[40].mxu0 %v16632_v7  ;;  %5244 = vmatmul.mubr.bf16.vlgmr.msra.gmra.mrb[40].mxu1 %v16632_v7 }
 0x5cc   : > { %5573 = vmatprep.mubr.bf16.mxu0 %v19931_v14  ;;  %5616 = vmatprep.mubr.bf16.mxu1 %v19931_v14 }
 0x5cd   : > { %5542 = vmatpush1.bf16.msra.mxu0 %v16651_v6  ;;  %5585 = vmatpush1.bf16.msra.mxu1 %v16656_v52 }
 0x5ce   : > { %5543 = vmatprep.subr.bf16.mxu0 %v16665_v13  ;;  %5586 = vmatprep.subr.bf16.mxu1 %v16670_v15 }
 0x5d1   : > { %5544 = vmatpush1.bf16.msra.mxu0 %v16675_v17  ;;  %5587 = vmatpush1.bf16.msra.mxu1 %v16680_v21 }
 0x5d2   : > { %5545 = vmatprep.subr.bf16.mxu0 %v16689_v42  ;;  %5588 = vmatprep.subr.bf16.mxu1 %v16694_v9 }
 0x5d5   : > { %5546 = vmatpush1.bf16.msra.mxu0 %v16699_v10  ;;  %5589 = vmatpush1.bf16.msra.mxu1 %v16704_v37 }
 0x5d6   : > { %5547 = vmatprep.subr.bf16.mxu0 %v16713_v12  ;;  %5590 = vmatprep.subr.bf16.mxu1 %v16718_v32 }
 0x5d9   : > { %5548 = vmatpush1.bf16.msra.mxu0 %v16723_v24  ;;  %5591 = vmatpush1.bf16.msra.mxu1 %v16728_v41 }
 0x5da   : > { %5549 = vmatprep.subr.bf16.mxu0 %v16737_v33  ;;  %5592 = vmatprep.subr.bf16.mxu1 %v16742_v35 }
 0x5dd   : > { %5550 = vmatpush1.bf16.msra.mxu0 %v16747_v22  ;;  %5593 = vmatpush1.bf16.msra.mxu1 %v16752_v23 }
 0x5de   : > { %5551 = vmatprep.subr.bf16.mxu0 %v16761_v25  ;;  %5594 = vmatprep.subr.bf16.mxu1 %v16766_v43 }
 0x5e1   : > { %5552 = vmatpush1.bf16.msra.mxu0 %v16771_v47  ;;  %5595 = vmatpush1.bf16.msra.mxu1 %v16776_v36 }
 0x5e2   : > { %5553 = vmatprep.subr.bf16.mxu0 %v16785_v53  ;;  %5596 = vmatprep.subr.bf16.mxu1 %v16790_v58 }
 0x5e5   : > { %5554 = vmatpush1.bf16.msra.mxu0 %v16795_v54  ;;  %5597 = vmatpush1.bf16.msra.mxu1 %v16800_v28 }
 0x5e6   : > { %5555 = vmatprep.subr.bf16.mxu0 %v16809_v18  ;;  %5598 = vmatprep.subr.bf16.mxu1 %v16814_v38 }
 0x5e9   : > { %5556 = vmatpush1.bf16.msra.mxu0 %v16819_v1  ;;  %5599 = vmatpush1.bf16.msra.mxu1 %v16824_v27 }
 0x5ea   : > { %5836 = vmatprep.subr.bf16.mxu0 %v16833_v44  ;;  %5879 = vmatprep.subr.bf16.mxu1 %v16838_v55 }
 0x67e   : > { %v4907_v63 = vpop.f32.mrb[20].mxu0  ;;  %v4950_v26 = vpop.f32.mrb[20].mxu1 }
 0x67f   : > { %v12762_v59 = vadd.f32 %v4907_v63, %v20006_v46  ;;  %v4909_v48 = vpop.f32.mrb[21].mxu0  ;;  %v4952_v49 = vpop.f32.mrb[21].mxu1  ;;  %v12794_v4 = vadd.f32 %v4950_v26, %v15465_v29 }
 0x680   : > { %v12763_v61 = vadd.f32 %v4909_v48, %v20007_v34  ;;  %v4911_v2 = vpop.f32.mrb[22].mxu0  ;;  %v4954_v51 = vpop.f32.mrb[22].mxu1 }
 0x681   : > { %v5262_v45 = vmul.f32 0.5, %v12762_v59  ;;  %v12764_v60 = vadd.f32 %v4911_v2, %v20006_v46  ;;  %v4913_v56 = vpop.f32.mrb[23].mxu0  ;;  %v4956_v0 = vpop.f32.mrb[23].mxu1  ;;  %v12796_v7 = vadd.f32 %v4954_v51, %v15465_v29  ;;  %v12795_v59 = vadd.f32 %v4952_v49, %v20008_v19 }
 0x682   : > { %v5270_v5 = vmul.f32 0.5, %v12763_v61  ;;  %v12765_v3 = vadd.f32 %v4913_v56, %v20007_v34  ;;  %v12797_v48 = vadd.f32 %v4956_v0, %v20008_v19 }
 0x683   : > { %14113 = vtanh.f32 %v5262_v45  ;;  %v5263_v20 = vmul.f32 0.5, %v12764_v60  ;;  %v5280_v56 = vmul.f32 0.5, %v12795_v59 }
 0x684   : > { %14115 = vtanh.f32 %v5270_v5  ;;  %v5271_v63 = vmul.f32 0.5, %v12765_v3  ;;  %v5281_v34 = vmul.f32 0.5, %v12797_v48 }
 0x685   : > { %14117 = vtanh.f32 %v5263_v20 }
 0x686   : > { %14119 = vtanh.f32 %v12794_v4 }
 0x687   : > { %14121 = vtanh.f32 %v5271_v63 }
 0x688   : > { %14123 = vtanh.f32 %v12796_v7 }
 0x689   : > { %14125 = vtanh.f32 %v5280_v56 }
 0x68a   : > { %14127 = vtanh.f32 %v5281_v34 }
 0x68d   : > { %v14114_v2 = vpop.eup %14113 }
 0x68e   : > { %v14116_v61 = vpop.eup %14115  ;;  %v5266_v46 = vmul.f32 0.5, %v14114_v2 }
 0x68f   : > { %v5274_v45 = vmul.f32 0.5, %v14116_v61  ;;  %v14118_v26 = vpop.eup %14117 }
 0x690   : > { %v5268_v60 = vadd.f32 0.5, %v5266_v46  ;;  %v14120_v5 = vpop.eup %14119  ;;  %v5267_v20 = vmul.f32 0.5, %v14118_v26 }
 0x691   : > { %v5276_v3 = vadd.f32 0.5, %v5274_v45  ;;  %v14122_v55 = vpop.eup %14121 }
 0x692   : > { %v5290_v51 = vmul.f32 %v14120_v5, %v5268_v60  ;;  %v5269_v49 = vadd.f32 0.5, %v5267_v20  ;;  %v5275_v7 = vmul.f32 0.5, %v14122_v55  ;;  %v14124_v0 = vpop.eup %14123 }
 0x693   : > { %v5288_v4 = vmul.f32 %v5276_v3, %v16573_v8  ;;  %v14126_v61 = vpop.eup %14125 }
 0x694   : > { %v5277_v2 = vadd.f32 0.5, %v5275_v7  ;;  %v5291_v59 = vmul.f32 %v14124_v0, %v5269_v49  ;;  %v14128_v56 = vpop.eup %14127  ;;  %v5284_v60 = vmul.f32 0.5, %v14126_v61 }
 0x695   : > { %v16851_v63 = vadd.f32 %v5290_v51, %v5288_v4  ;;  %v5285_v5 = vmul.f32 0.5, %v14128_v56 }
 0x696   : > { %v5289_v48 = vmul.f32 %v5277_v2, %v16577_v39 }
 0x697   : > { %20030 = vst [vmem:[#allocation20_spill] sm:$0xff] %v16851_v63  ;;  %14129 = vtanh.f32 %v16851_v63  ;;  %v5287_v61 = vadd.f32 0.5, %v5285_v5  ;;  %v16884_v5 = vld [vmem:[%s19683_s2 + $0x12c] ss:$16 sps:$4 sm:$0xff]  }
 0x698   : > { %v16855_v46 = vadd.f32 %v5291_v59, %v5289_v48 }
 0x69a   : > { %20031 = vst [vmem:[#allocation21_spill] sm:$0xff] %v16855_v46  ;;  %14131 = vtanh.f32 %v16855_v46  ;;  %v5286_v46 = vadd.f32 0.5, %v5284_v60 }
 0x69e   : > { %v5202_v45 = vpop.f32.mrb[40].mxu0  ;;  %v5245_v8 = vpop.f32.mrb[40].mxu1 }
 0x69f   : > { %v12814_v55 = vadd.f32 %v5202_v45, %v15491_v50  ;;  %v5204_v34 = vpop.f32.mrb[41].mxu0  ;;  %v5247_v26 = vpop.f32.mrb[41].mxu1  ;;  %v12846_v48 = vadd.f32 %v5245_v8, %v15503_v31  ;;  %v16872_v8 = vld [vmem:[%s19683_s2 + $0x108] ss:$16 sps:$4 sm:$0xff]  }
 0x6a0   : > { %v12815_v3 = vadd.f32 %v5204_v34, %v15497_v16  ;;  %v5206_v20 = vpop.f32.mrb[42].mxu0  ;;  %v5249_v39 = vpop.f32.mrb[42].mxu1 }
 0x6a1   : > { %v5298_v51 = vmul.f32 0.5, %v12814_v55  ;;  %v12816_v4 = vadd.f32 %v5206_v20, %v15491_v50  ;;  %v5208_v49 = vpop.f32.mrb[43].mxu0  ;;  %v5251_v7 = vpop.f32.mrb[43].mxu1  ;;  %v12848_v55 = vadd.f32 %v5249_v39, %v15503_v31  ;;  %v12847_v20 = vadd.f32 %v5247_v26, %v15513_v30  ;;  %v16900_v26 = vld [vmem:[%s19683_s2 + $0x128] ss:$16 sps:$4 sm:$0xff]  }
 0x6a2   : > { %v5306_v0 = vmul.f32 0.5, %v12815_v3  ;;  %v12817_v2 = vadd.f32 %v5208_v49, %v15497_v16  ;;  %v14130_v59 = vpop.eup %14129  ;;  %v16867_v3 = vld [vmem:[%s19683_s2 + $0x100] ss:$16 sps:$4 sm:$0xff]   ;;  %20033 = vst [vmem:[#allocation23_spill] sm:$0xff] %v16900_v26  ;;  %v16907_v39 = vld [vmem:[%s19683_s2 + $0x144] ss:$16 sps:$4 sm:$0xff]  }
 0x6a3   : > { %14133 = vtanh.f32 %v5298_v51  ;;  %v5299_v45 = vmul.f32 0.5, %v12816_v4  ;;  %v5296_v63 = vmul.f32 %v14130_v59, %v5286_v46  ;;  %v16879_v46 = vld [vmem:[%s19683_s2 + $0x124] ss:$16 sps:$4 sm:$0xff]   ;;  %20034 = vst [vmem:[#allocation24_spill] sm:$0xff] %v16907_v39  ;;  %v16912_v51 = vld [vmem:[%s19683_s2 + $0x14c] ss:$16 sps:$4 sm:$0xff]  }
 0x6a4   : > { %14135 = vtanh.f32 %v5306_v0  ;;  %v5307_v56 = vmul.f32 0.5, %v12817_v2  ;;  %v14132_v34 = vpop.eup %14131  ;;  %20035 = vst [vmem:[#allocation25_spill] sm:$0xff] %v16912_v51  ;;  %v5316_v0 = vmul.f32 0.5, %v12847_v20 }
 0x6a5   : > { %v5297_v19 = vmul.f32 %v14132_v34, %v5287_v61  ;;  %14137 = vtanh.f32 %v5299_v45  ;;  %v16926_v45 = vld [vmem:[%s19683_s2 + $0x148] ss:$16 sps:$4 sm:$0xff]   ;;  %v16933_v34 = vld [vmem:[%s19683_s2 + $0x164] ss:$16 sps:$4 sm:$0xff]  }
 0x6a6   : > { %14139 = vtanh.f32 %v12846_v48  ;;  %v16921_v48 = vld [vmem:[%s19683_s2 + $0x140] ss:$16 sps:$4 sm:$0xff]  }
 0x6a7   : > { %v16874_v60 = vpack.c.bf16 %v5297_v19, %v5296_v63  ;;  %14141 = vtanh.f32 %v5307_v56  ;;  %v12849_v19 = vadd.f32 %v5251_v7, %v15513_v30  ;;  %v16895_v63 = vld [vmem:[%s19683_s2 + $0x120] ss:$16 sps:$4 sm:$0xff]  }
 0x6a8   : > { %14143 = vtanh.f32 %v12848_v55  ;;  %v16938_v55 = vld [vmem:[%s19683_s2 + $0x16c] ss:$16 sps:$4 sm:$0xff]  }
 0x6a9   : > { %20032 = vst [vmem:[#allocation22_spill] sm:$0xff] %v16874_v60  ;;  %5574 = vmatmul.mubr.bf16.vlgmr.msra.gmra.mrb[24].mxu0 %v16874_v60  ;;  %5617 = vmatmul.mubr.bf16.vlgmr.msra.gmra.mrb[24].mxu1 %v16874_v60  ;;  %v5317_v59 = vmul.f32 0.5, %v12849_v19  ;;  %14145 = vtanh.f32 %v5316_v0 }
 0x6aa   : > { %5837 = vmatpush1.bf16.msra.mxu0 %v16867_v3  ;;  %5880 = vmatpush1.bf16.msra.mxu1 %v16872_v8 }
 0x6ab   : > { %5838 = vmatprep.subr.bf16.mxu0 %v16879_v46  ;;  %5881 = vmatprep.subr.bf16.mxu1 %v16884_v5  ;;  %14147 = vtanh.f32 %v5317_v59  ;;  %v16963_v59 = vld [vmem:[%s19683_s2 + $0x18c] ss:$16 sps:$4 sm:$0xff]  }
 0x6ac   : > { %5868 = vmatprep.mubr.bf16.mxu0 %v19931_v14  ;;  %5911 = vmatprep.mubr.bf16.mxu1 %v19931_v14  ;;  %20038 = vst [vmem:[#allocation28_spill] sm:$0xff] %v16963_v59 }
 0x6ad   : > { %v14134_v4 = vpop.eup %14133 }
 0x6ae   : > { %v14136_v49 = vpop.eup %14135  ;;  %v5302_v7 = vmul.f32 0.5, %v14134_v4  ;;  %5839 = vmatpush1.bf16.msra.mxu0 %v16895_v63  ;;  %5882 = vmatpush1.bf16.msra.mxu1 %v16900_v26  ;;  %v16946_v26 = vld [vmem:[%s19683_s2 + $0x160] ss:$16 sps:$4 sm:$0xff]  }
 0x6af   : > { %v5310_v2 = vmul.f32 0.5, %v14136_v49  ;;  %v14138_v61 = vpop.eup %14137  ;;  %5840 = vmatprep.subr.bf16.mxu0 %v16907_v39  ;;  %5883 = vmatprep.subr.bf16.mxu1 %v16912_v51 }
 0x6b0   : > { %v5304_v56 = vadd.f32 0.5, %v5302_v7  ;;  %v14140_v20 = vpop.eup %14139  ;;  %v5303_v4 = vmul.f32 0.5, %v14138_v61 }
 0x6b1   : > { %v5312_v19 = vadd.f32 0.5, %v5310_v2  ;;  %v14142_v49 = vpop.eup %14141  ;;  %v16951_v2 = vld [vmem:[%s19683_s2 + $0x168] ss:$16 sps:$4 sm:$0xff]  }
 0x6b2   : > { %v5326_v60 = vmul.f32 %v14140_v20, %v5304_v56  ;;  %v5305_v39 = vadd.f32 0.5, %v5303_v4  ;;  %v5311_v51 = vmul.f32 0.5, %v14142_v49  ;;  %5841 = vmatpush1.bf16.msra.mxu0 %v16921_v48  ;;  %5884 = vmatpush1.bf16.msra.mxu1 %v16926_v45  ;;  %20036 = vst [vmem:[#allocation26_spill] sm:$0xff] %v16951_v2  ;;  %v14144_v0 = vpop.eup %14143  ;;  %v16973_v4 = vld [vmem:[%s19683_s2 + $0x180] ss:$16 sps:$4 sm:$0xff]  }
 0x6b3   : > { %v5324_v7 = vmul.f32 %v5312_v19, %v16607_v40  ;;  %5842 = vmatprep.subr.bf16.mxu0 %v16933_v34  ;;  %5885 = vmatprep.subr.bf16.mxu1 %v16938_v55  ;;  %v16958_v40 = vld [vmem:[%s19683_s2 + $0x184] ss:$16 sps:$4 sm:$0xff]   ;;  %20039 = vst [vmem:[#allocation29_spill] sm:$0xff] %v16973_v4  ;;  %v16978_v49 = vld [vmem:[%s19683_s2 + $0x188] ss:$16 sps:$4 sm:$0xff]  }
 0x6b4   : > { %20037 = vst [vmem:[#allocation27_spill] sm:$0xff] %v16958_v40  ;;  %v5313_v56 = vadd.f32 0.5, %v5311_v51  ;;  %v5327_v20 = vmul.f32 %v14144_v0, %v5305_v39  ;;  %20040 = vst [vmem:[#allocation30_spill] sm:$0xff] %v16978_v49  ;;  %v17001_v51 = vld [vmem:[%s19683_s2 + $0x1a0] ss:$16 sps:$4 sm:$0xff]   ;;  %v14146_v0 = vpop.eup %14145 }
 0x6b5   : > { %v16965_v61 = vadd.f32 %v5326_v60, %v5324_v7  ;;  %v16990_v60 = vld [vmem:[%s19683_s2 + $0x1ac] ss:$16 sps:$4 sm:$0xff]   ;;  %20043 = vst [vmem:[#allocation34_spill] sm:$0xff] %v17001_v51  ;;  %v17006_v7 = vld [vmem:[%s19683_s2 + $0x1a8] ss:$16 sps:$4 sm:$0xff]  }
 0x6b6   : > { %v5325_v19 = vmul.f32 %v5313_v56, %v16615_v62  ;;  %5843 = vmatpush1.bf16.msra.mxu0 %v16946_v26  ;;  %5886 = vmatpush1.bf16.msra.mxu1 %v16951_v2  ;;  %v16985_v62 = vld [vmem:[%s19683_s2 + $0x1a4] ss:$16 sps:$4 sm:$0xff]   ;;  %20042 = vst [vmem:[#allocation32_spill] sm:$0xff] %v16990_v60  ;;  %20044 = vst [vmem:[#allocation35_spill] sm:$0xff] %v17006_v7 }
 0x6b7   : > { %5844 = vmatprep.subr.bf16.mxu0 %v16958_v40  ;;  %5887 = vmatprep.subr.bf16.mxu1 %v16963_v59  ;;  %20041 = vst [vmem:[#allocation31_spill] sm:$0xff] %v16985_v62  ;;  %14149 = vtanh.f32 %v16965_v61  ;;  %v17013_v56 = vld [vmem:[%s19683_s2 + $0x1c4] ss:$16 sps:$4 sm:$0xff]  }
 0x6b8   : > { %v16993_v39 = vadd.f32 %v5327_v20, %v5325_v19  ;;  %20045 = vst [vmem:[#allocation36_spill] sm:$0xff] %v17013_v56  ;;  %v17018_v20 = vld [vmem:[%s19683_s2 + $0x1cc] ss:$16 sps:$4 sm:$0xff]   ;;  %v14148_v19 = vpop.eup %14147 }
 0x6b9   : > { %20046 = vst [vmem:[#allocation38_spill] sm:$0xff] %v17018_v20 }
 0x6ba   : > { %14151 = vtanh.f32 %v16993_v39  ;;  %5845 = vmatpush1.bf16.msra.mxu0 %v16973_v4  ;;  %5888 = vmatpush1.bf16.msra.mxu1 %v16978_v49  ;;  %v5320_v49 = vmul.f32 0.5, %v14146_v0  ;;  %v5321_v4 = vmul.f32 0.5, %v14148_v19  ;;  %v17049_v0 = vld [vmem:[%s19683_s2 + $0x1e0] ss:$16 sps:$4 sm:$0xff]   ;;  %v17054_v19 = vld [vmem:[%s19683_s2 + $0x1e8] ss:$16 sps:$4 sm:$0xff]  }
 0x6bb   : > { %5846 = vmatprep.subr.bf16.mxu0 %v16985_v62  ;;  %5889 = vmatprep.subr.bf16.mxu1 %v16990_v60  ;;  %v17025_v62 = vld [vmem:[%s19683_s2 + $0x1c0] ss:$16 sps:$4 sm:$0xff]   ;;  %v17030_v60 = vld [vmem:[%s19683_s2 + $0x1c8] ss:$16 sps:$4 sm:$0xff]  }
 0x6bc   : > { %20047 = vst [vmem:[#allocation39_spill] sm:$0xff] %v17025_v62  ;;  %20048 = vst [vmem:[#allocation40_spill] sm:$0xff] %v17030_v60 }
 0x6be   : > { %5847 = vmatpush1.bf16.msra.mxu0 %v17001_v51  ;;  %5890 = vmatpush1.bf16.msra.mxu1 %v17006_v7  ;;  %v17037_v7 = vld [vmem:[%s19683_s2 + $0x1e4] ss:$16 sps:$4 sm:$0xff]   ;;  %v17042_v51 = vld [vmem:[%s19683_s2 + $0x1ec] ss:$16 sps:$4 sm:$0xff]  }
 0x6bf   : > { %5848 = vmatprep.subr.bf16.mxu0 %v17013_v56  ;;  %5891 = vmatprep.subr.bf16.mxu1 %v17018_v20  ;;  %v5322_v20 = vadd.f32 0.5, %v5320_v49  ;;  %v5323_v56 = vadd.f32 0.5, %v5321_v4  ;;  %v20053_v49 = vld [vmem:[#allocation20_spill] sm:$0xff] }
 0x6c1   : > { %v14150_v59 = vpop.eup %14149 }
 0x6c2   : > { %5849 = vmatpush1.bf16.msra.mxu0 %v17025_v62  ;;  %5892 = vmatpush1.bf16.msra.mxu1 %v17030_v60  ;;  %v5332_v62 = vmul.f32 %v14150_v59, %v5322_v20 }
 0x6c3   : > { %5850 = vmatprep.subr.bf16.mxu0 %v17037_v7  ;;  %5893 = vmatprep.subr.bf16.mxu1 %v17042_v51 }
 0x6c4   : > { %v14152_v40 = vpop.eup %14151 }
 0x6c5   : > { %v5333_v2 = vmul.f32 %v14152_v40, %v5323_v56 }
 0x6c6   : > { %5851 = vmatpush1.bf16.msra.mxu0 %v17049_v0  ;;  %5894 = vmatpush1.bf16.msra.mxu1 %v17054_v19 }
 0x6c7   : > { %v17060_v60 = vpack.c.bf16 %v5333_v2, %v5332_v62  ;;  %6209 = vmatprep.subr.bf16.mxu0 %v16641_v57  ;;  %6252 = vmatprep.subr.bf16.mxu1 %v16646_v11  ;;  %v20049_v57 = vld [vmem:[#allocation18_spill] sm:$0xff] }
 0x6c9   : > { %5869 = vmatmul.mubr.bf16.vlgmr.msra.gmra.mrb[36].mxu0 %v17060_v60  ;;  %5912 = vmatmul.mubr.bf16.vlgmr.msra.gmra.mrb[36].mxu1 %v17060_v60 }
 0x6ca   : > { %6210 = vmatpush1.bf16.msra.mxu0 %v16651_v6  ;;  %6253 = vmatpush1.bf16.msra.mxu1 %v16656_v52  ;;  %v20050_v52 = vld [vmem:[#allocation9_spill] sm:$0xff] }
 0x6cb   : > { %6211 = vmatprep.subr.bf16.mxu0 %v16665_v13  ;;  %6254 = vmatprep.subr.bf16.mxu1 %v16670_v15 }
 0x6cc   : > { %6241 = vmatprep.mubr.bf16.mxu0 %v19931_v14  ;;  %6284 = vmatprep.mubr.bf16.mxu1 %v19931_v14 }
 0x6ce   : > { %6212 = vmatpush1.bf16.msra.mxu0 %v16675_v17  ;;  %6255 = vmatpush1.bf16.msra.mxu1 %v16680_v21  ;;  %v20051_v21 = vld [vmem:[#allocation10_spill] sm:$0xff] }
 0x6cf   : > { %6213 = vmatprep.subr.bf16.mxu0 %v16689_v42  ;;  %6256 = vmatprep.subr.bf16.mxu1 %v16694_v9 }
 0x6d2   : > { %6214 = vmatpush1.bf16.msra.mxu0 %v16699_v10  ;;  %6257 = vmatpush1.bf16.msra.mxu1 %v16704_v37 }
 0x6d3   : > { %6215 = vmatprep.subr.bf16.mxu0 %v16713_v12  ;;  %6258 = vmatprep.subr.bf16.mxu1 %v16718_v32 }
 0x6d6   : > { %6216 = vmatpush1.bf16.msra.mxu0 %v16723_v24  ;;  %6259 = vmatpush1.bf16.msra.mxu1 %v16728_v41 }
 0x6d7   : > { %6217 = vmatprep.subr.bf16.mxu0 %v16737_v33  ;;  %6260 = vmatprep.subr.bf16.mxu1 %v16742_v35 }
 0x6da   : > { %6218 = vmatpush1.bf16.msra.mxu0 %v16747_v22  ;;  %6261 = vmatpush1.bf16.msra.mxu1 %v16752_v23 }
 0x6db   : > { %6219 = vmatprep.subr.bf16.mxu0 %v16761_v25  ;;  %6262 = vmatprep.subr.bf16.mxu1 %v16766_v43  ;;  %v20052_v43 = vld [vmem:[#allocation11_spill] sm:$0xff] }
 0x6de   : > { %6220 = vmatpush1.bf16.msra.mxu0 %v16771_v47  ;;  %6263 = vmatpush1.bf16.msra.mxu1 %v16776_v36 }
 0x6df   : > { %6221 = vmatprep.subr.bf16.mxu0 %v16785_v53  ;;  %6264 = vmatprep.subr.bf16.mxu1 %v16790_v58 }
 0x6e2   : > { %6222 = vmatpush1.bf16.msra.mxu0 %v16795_v54  ;;  %6265 = vmatpush1.bf16.msra.mxu1 %v16800_v28 }
 0x6e3   : > { %6223 = vmatprep.subr.bf16.mxu0 %v16809_v18  ;;  %6266 = vmatprep.subr.bf16.mxu1 %v16814_v38 }
 0x6e6   : > { %6224 = vmatpush1.bf16.msra.mxu0 %v16819_v1  ;;  %6267 = vmatpush1.bf16.msra.mxu1 %v16824_v27 }
 0x6e7   : > { %6503 = vmatprep.subr.bf16.mxu0 %v16833_v44  ;;  %6546 = vmatprep.subr.bf16.mxu1 %v20049_v57 }
 0x77c   : > { %v5575_v11 = vpop.f32.mrb[24].mxu0  ;;  %v5618_v6 = vpop.f32.mrb[24].mxu1 }
 0x77d   : > { %v12766_v13 = vadd.f32 %v5575_v11, %v20050_v52  ;;  %v5577_v15 = vpop.f32.mrb[25].mxu0  ;;  %v5620_v17 = vpop.f32.mrb[25].mxu1  ;;  %v12798_v35 = vadd.f32 %v5618_v6, %v15465_v29 }
 0x77e   : > { %v12767_v42 = vadd.f32 %v5577_v15, %v20051_v21  ;;  %v5579_v9 = vpop.f32.mrb[26].mxu0  ;;  %v5622_v10 = vpop.f32.mrb[26].mxu1  ;;  %v12799_v47 = vadd.f32 %v5620_v17, %v20052_v43  ;;  %v20054_v15 = vld [vmem:[#allocation21_spill] sm:$0xff] }
 0x77f   : > { %v5930_v37 = vmul.f32 0.5, %v12766_v13  ;;  %v12768_v12 = vadd.f32 %v5579_v9, %v20050_v52  ;;  %v5581_v32 = vpop.f32.mrb[27].mxu0  ;;  %v5624_v24 = vpop.f32.mrb[27].mxu1  ;;  %v12800_v25 = vadd.f32 %v5622_v10, %v15465_v29 }
 0x780   : > { %v5938_v41 = vmul.f32 0.5, %v12767_v42  ;;  %v12769_v33 = vadd.f32 %v5581_v32, %v20051_v21  ;;  %v12801_v36 = vadd.f32 %v5624_v24, %v20052_v43  ;;  %v5948_v28 = vmul.f32 0.5, %v12799_v47 }
 0x781   : > { %14153 = vtanh.f32 %v5930_v37  ;;  %v5931_v22 = vmul.f32 0.5, %v12768_v12 }
 0x782   : > { %14155 = vtanh.f32 %v5938_v41  ;;  %v5939_v23 = vmul.f32 0.5, %v12769_v33  ;;  %v5949_v38 = vmul.f32 0.5, %v12801_v36 }
 0x783   : > { %14157 = vtanh.f32 %v5931_v22 }
 0x784   : > { %14159 = vtanh.f32 %v12798_v35 }
 0x785   : > { %14161 = vtanh.f32 %v5939_v23 }
 0x786   : > { %14163 = vtanh.f32 %v12800_v25 }
 0x787   : > { %14165 = vtanh.f32 %v5948_v28 }
 0x788   : > { %14167 = vtanh.f32 %v5949_v38 }
 0x78b   : > { %v14154_v53 = vpop.eup %14153 }
 0x78c   : > { %v14156_v58 = vpop.eup %14155  ;;  %v5934_v54 = vmul.f32 0.5, %v14154_v53 }
 0x78d   : > { %v5942_v18 = vmul.f32 0.5, %v14156_v58  ;;  %v14158_v1 = vpop.eup %14157 }
 0x78e   : > { %v5936_v27 = vadd.f32 0.5, %v5934_v54  ;;  %v14160_v44 = vpop.eup %14159  ;;  %v5935_v40 = vmul.f32 0.5, %v14158_v1 }
 0x78f   : > { %v5944_v2 = vadd.f32 0.5, %v5942_v18  ;;  %v14162_v59 = vpop.eup %14161 }
 0x790   : > { %v5958_v4 = vmul.f32 %v14160_v44, %v5936_v27  ;;  %v5937_v56 = vadd.f32 0.5, %v5935_v40  ;;  %v5943_v20 = vmul.f32 0.5, %v14162_v59  ;;  %v14164_v57 = vpop.eup %14163 }
 0x791   : > { %v5956_v62 = vmul.f32 %v5944_v2, %v20053_v49  ;;  %v14166_v9 = vpop.eup %14165 }
 0x792   : > { %v5945_v6 = vadd.f32 0.5, %v5943_v20  ;;  %v5959_v13 = vmul.f32 %v14164_v57, %v5937_v56  ;;  %v14168_v10 = vpop.eup %14167  ;;  %v5952_v33 = vmul.f32 0.5, %v14166_v9 }
 0x793   : > { %v17109_v11 = vadd.f32 %v5958_v4, %v5956_v62  ;;  %v5953_v35 = vmul.f32 0.5, %v14168_v10  ;;  %v20055_v10 = vld [vmem:[#allocation23_spill] sm:$0xff] }
 0x794   : > { %v5957_v17 = vmul.f32 %v5945_v6, %v20054_v15  ;;  %v5954_v27 = vadd.f32 0.5, %v5952_v33 }
 0x795   : > { %14169 = vtanh.f32 %v17109_v11  ;;  %v5955_v44 = vadd.f32 0.5, %v5953_v35 }
 0x796   : > { %v17113_v42 = vadd.f32 %v5959_v13, %v5957_v17 }
 0x798   : > { %14171 = vtanh.f32 %v17113_v42 }
 0x79c   : > { %v5870_v37 = vpop.f32.mrb[36].mxu0  ;;  %v5913_v12 = vpop.f32.mrb[36].mxu1 }
 0x79d   : > { %v12810_v32 = vadd.f32 %v5870_v37, %v15491_v50  ;;  %v5872_v24 = vpop.f32.mrb[37].mxu0  ;;  %v5915_v41 = vpop.f32.mrb[37].mxu1  ;;  %v12842_v38 = vadd.f32 %v5913_v12, %v15503_v31  ;;  %v20056_v37 = vld [vmem:[#allocation24_spill] sm:$0xff] }
 0x79e   : > { %v12811_v22 = vadd.f32 %v5872_v24, %v15497_v16  ;;  %v5874_v23 = vpop.f32.mrb[38].mxu0  ;;  %v5917_v25 = vpop.f32.mrb[38].mxu1  ;;  %v12843_v56 = vadd.f32 %v5915_v41, %v15513_v30 }
 0x79f   : > { %v5966_v47 = vmul.f32 0.5, %v12810_v32  ;;  %v12812_v36 = vadd.f32 %v5874_v23, %v15491_v50  ;;  %v5876_v53 = vpop.f32.mrb[39].mxu0  ;;  %v5919_v58 = vpop.f32.mrb[39].mxu1  ;;  %v12844_v49 = vadd.f32 %v5917_v25, %v15503_v31 }
 0x7a0   : > { %v5974_v54 = vmul.f32 0.5, %v12811_v22  ;;  %v12813_v28 = vadd.f32 %v5876_v53, %v15497_v16  ;;  %v14170_v18 = vpop.eup %14169  ;;  %v12845_v20 = vadd.f32 %v5919_v58, %v15513_v30  ;;  %v5984_v15 = vmul.f32 0.5, %v12843_v56  ;;  %v20059_v53 = vld [vmem:[#allocation27_spill] sm:$0xff] }
 0x7a1   : > { %14173 = vtanh.f32 %v5966_v47  ;;  %v5967_v1 = vmul.f32 0.5, %v12812_v36  ;;  %v5964_v59 = vmul.f32 %v14170_v18, %v5954_v27  ;;  %v20066_v18 = vld [vmem:[#allocation35_spill] sm:$0xff]  ;;  %v20067_v27 = vld [vmem:[#allocation36_spill] sm:$0xff] }
 0x7a2   : > { %14175 = vtanh.f32 %v5974_v54  ;;  %v5975_v2 = vmul.f32 0.5, %v12813_v28  ;;  %v14172_v40 = vpop.eup %14171  ;;  %v5985_v9 = vmul.f32 0.5, %v12845_v20  ;;  %v20065_v28 = vld [vmem:[#allocation34_spill] sm:$0xff] }
 0x7a3   : > { %v5965_v4 = vmul.f32 %v14172_v40, %v5955_v44  ;;  %14177 = vtanh.f32 %v5967_v1  ;;  %v20068_v44 = vld [vmem:[#allocation38_spill] sm:$0xff]  ;;  %v20069_v40 = vld [vmem:[#allocation39_spill] sm:$0xff] }
 0x7a4   : > { %14179 = vtanh.f32 %v12842_v38 }
 0x7a5   : > { %v17122_v62 = vpack.c.bf16 %v5965_v4, %v5964_v59  ;;  %14181 = vtanh.f32 %v5975_v2  ;;  %v20070_v59 = vld [vmem:[#allocation40_spill] sm:$0xff] }
 0x7a6   : > { %14183 = vtanh.f32 %v12844_v49 }
 0x7a7   : > { %6242 = vmatmul.mubr.bf16.vlgmr.msra.gmra.mrb[28].mxu0 %v17122_v62  ;;  %6285 = vmatmul.mubr.bf16.vlgmr.msra.gmra.mrb[28].mxu1 %v17122_v62  ;;  %14185 = vtanh.f32 %v5984_v15 }
 0x7a8   : > { %6504 = vmatpush1.bf16.msra.mxu0 %v16867_v3  ;;  %6547 = vmatpush1.bf16.msra.mxu1 %v16872_v8  ;;  %14187 = vtanh.f32 %v5985_v9 }
 0x7a9   : > { %6505 = vmatprep.subr.bf16.mxu0 %v16879_v46  ;;  %6548 = vmatprep.subr.bf16.mxu1 %v16884_v5  ;;  %v20057_v46 = vld [vmem:[#allocation25_spill] sm:$0xff] }
 0x7aa   : > { %6535 = vmatprep.mubr.bf16.mxu0 %v19931_v14  ;;  %6578 = vmatprep.mubr.bf16.mxu1 %v19931_v14 }
 0x7ab   : > { %v14174_v57 = vpop.eup %14173 }
 0x7ac   : > { %v14176_v6 = vpop.eup %14175  ;;  %v5970_v13 = vmul.f32 0.5, %v14174_v57  ;;  %6506 = vmatpush1.bf16.msra.mxu0 %v16895_v63  ;;  %6549 = vmatpush1.bf16.msra.mxu1 %v20055_v10  ;;  %v6762_v10 = vld [vmem:[%s19685_s4 + $0x240] sm:$0xff] }
 0x7ad   : > { %v5978_v17 = vmul.f32 0.5, %v14176_v6  ;;  %v14178_v3 = vpop.eup %14177  ;;  %6507 = vmatprep.subr.bf16.mxu0 %v20056_v37  ;;  %6550 = vmatprep.subr.bf16.mxu1 %v20057_v46  ;;  %v6767_v46 = vld [vmem:[%s19685_s4 + $0x268] sm:$0xff] }
 0x7ae   : > { %v5972_v8 = vadd.f32 0.5, %v5970_v13  ;;  %v14180_v5 = vpop.eup %14179  ;;  %v5971_v32 = vmul.f32 0.5, %v14178_v3  ;;  %v6759_v13 = vld [vmem:[%s19685_s4 + $0x228] sm:$0xff]  ;;  %v6766_v3 = vld [vmem:[%s19685_s4 + $0x260] sm:$0xff] }
 0x7af   : > { %v5980_v12 = vadd.f32 0.5, %v5978_v17  ;;  %v14182_v24 = vpop.eup %14181  ;;  %v12449_v37 = vcombine.high %v6762_v10, %v6766_v3 }
 0x7b0   : > { %v5994_v41 = vmul.f32 %v14180_v5, %v5972_v8  ;;  %v5973_v35 = vadd.f32 0.5, %v5971_v32  ;;  %v5979_v22 = vmul.f32 0.5, %v14182_v24  ;;  %6508 = vmatpush1.bf16.msra.mxu0 %v16921_v48  ;;  %6551 = vmatpush1.bf16.msra.mxu1 %v16926_v45  ;;  %v14184_v63 = vpop.eup %14183  ;;  %v20060_v48 = vld [vmem:[#allocation28_spill] sm:$0xff]  ;;  %v12448_v5 = vcombine.low %v6762_v10, %v6766_v3  ;;  %v6770_v24 = vld [vmem:[%s19685_s4 + $0x280] sm:$0xff] }
 0x7b1   : > { %v5992_v33 = vmul.f32 %v5980_v12, %v16965_v61  ;;  %6509 = vmatprep.subr.bf16.mxu0 %v16933_v34  ;;  %6552 = vmatprep.subr.bf16.mxu1 %v16938_v55  ;;  %v20058_v61 = vld [vmem:[#allocation26_spill] sm:$0xff]  ;;  %v20061_v34 = vld [vmem:[#allocation29_spill] sm:$0xff]  ;;  %v14186_v58 = vpop.eup %14185  ;;  %v6763_v8 = vld [vmem:[%s19685_s4 + $0x248] sm:$0xff] }
 0x7b2   : > { %v5981_v25 = vadd.f32 0.5, %v5979_v22  ;;  %v5995_v47 = vmul.f32 %v14184_v63, %v5973_v35  ;;  %v20062_v55 = vld [vmem:[#allocation30_spill] sm:$0xff]  ;;  %v14188_v54 = vpop.eup %14187  ;;  %v5988_v38 = vmul.f32 0.5, %v14186_v58  ;;  %v12450_v12 = vcombine.low %v6763_v8, %v6767_v46  ;;  %v6775_v22 = vld [vmem:[%s19685_s4 + $0x2a8] sm:$0xff]  ;;  %v6810_v10 = vld [vmem:[%s19685_s4 + $0x3c0] sm:$0xff] }
 0x7b3   : > { %v17143_v23 = vadd.f32 %v5994_v41, %v5992_v33  ;;  %v5989_v1 = vmul.f32 0.5, %v14188_v54  ;;  %v12451_v32 = vcombine.high %v6763_v8, %v6767_v46  ;;  %v6774_v41 = vld [vmem:[%s19685_s4 + $0x2a0] sm:$0xff]  ;;  %v6771_v33 = vld [vmem:[%s19685_s4 + $0x288] sm:$0xff] }
 0x7b4   : > { %v5993_v36 = vmul.f32 %v5981_v25, %v16993_v39  ;;  %6510 = vmatpush1.bf16.msra.mxu0 %v16946_v26  ;;  %6553 = vmatpush1.bf16.msra.mxu1 %v20058_v61  ;;  %v20063_v39 = vld [vmem:[#allocation31_spill] sm:$0xff]  ;;  %v20064_v26 = vld [vmem:[#allocation32_spill] sm:$0xff]  ;;  %v5990_v4 = vadd.f32 0.5, %v5988_v38  ;;  %v12457_v35 = vcombine.high %v6770_v24, %v6774_v41  ;;  %v12456_v63 = vcombine.low %v6770_v24, %v6774_v41  ;;  %v17273_v24 = vld [vmem:[%s19685_s4 + $0x210] sm:$0xff] }
 0x7b5   : > { %6511 = vmatprep.subr.bf16.mxu0 %v20059_v53  ;;  %6554 = vmatprep.subr.bf16.mxu1 %v20060_v48  ;;  %14189 = vtanh.f32 %v17143_v23  ;;  %v5991_v49 = vadd.f32 0.5, %v5989_v1  ;;  %v12458_v25 = vcombine.low %v6771_v33, %v6775_v22  ;;  %v6782_v61 = vld [vmem:[%s19685_s4 + $0x2e0] sm:$0xff]  ;;  %v6779_v53 = vld [vmem:[%s19685_s4 + $0x2c8] sm:$0xff]  ;;  %v17278_v41 = vld [vmem:[%s19685_s4 + $0x230] sm:$0xff] }
 0x7b6   : > { %v17151_v45 = vadd.f32 %v5995_v47, %v5993_v36  ;;  %v12459_v47 = vcombine.high %v6771_v33, %v6775_v22  ;;  %v6778_v36 = vld [vmem:[%s19685_s4 + $0x2c0] sm:$0xff]  ;;  %v6791_v38 = vld [vmem:[%s19685_s4 + $0x328] sm:$0xff]  ;;  %v12444_v33 = vcombine.low %v17273_v24, %v17278_v41  ;;  %v17287_v22 = vld [vmem:[%s19685_s4 + $0x218] sm:$0xff] }
 0x7b7   : > { %v12465_v48 = vcombine.high %v6778_v36, %v6782_v61  ;;  %v6790_v54 = vld [vmem:[%s19685_s4 + $0x320] sm:$0xff]  ;;  %v6811_v8 = vld [vmem:[%s19685_s4 + $0x3c8] sm:$0xff] }
 0x7b8   : > { %14191 = vtanh.f32 %v17151_v45  ;;  %6512 = vmatpush1.bf16.msra.mxu0 %v20061_v34  ;;  %6555 = vmatpush1.bf16.msra.mxu1 %v20062_v55  ;;  %v6783_v34 = vld [vmem:[%s19685_s4 + $0x2e8] sm:$0xff]  ;;  %v12464_v55 = vcombine.low %v6778_v36, %v6782_v61  ;;  %v6814_v3 = vld [vmem:[%s19685_s4 + $0x3e0] sm:$0xff] }
 0x7b9   : > { %6513 = vmatprep.subr.bf16.mxu0 %v20063_v39  ;;  %6556 = vmatprep.subr.bf16.mxu1 %v20064_v26  ;;  %v12466_v58 = vcombine.low %v6779_v53, %v6783_v34  ;;  %v12467_v39 = vcombine.high %v6779_v53, %v6783_v34  ;;  %v6786_v26 = vld [vmem:[%s19685_s4 + $0x300] sm:$0xff]  ;;  %v12497_v46 = vcombine.high %v6810_v10, %v6814_v3 }
 0x7ba   : > { %v12472_v1 = vcombine.low %v6786_v26, %v6790_v54 }
 0x7bc   : > { %6514 = vmatpush1.bf16.msra.mxu0 %v20065_v28  ;;  %6557 = vmatpush1.bf16.msra.mxu1 %v20066_v18  ;;  %v6787_v28 = vld [vmem:[%s19685_s4 + $0x308] sm:$0xff]  ;;  %v12473_v18 = vcombine.high %v6786_v26, %v6790_v54 }
 0x7bd   : > { %6515 = vmatprep.subr.bf16.mxu0 %v20067_v27  ;;  %6558 = vmatprep.subr.bf16.mxu1 %v20068_v44  ;;  %v12474_v27 = vcombine.low %v6787_v28, %v6791_v38  ;;  %v12475_v44 = vcombine.high %v6787_v28, %v6791_v38 }
 0x7bf   : > { %v14190_v2 = vpop.eup %14189 }
 0x7c0   : > { %6516 = vmatpush1.bf16.msra.mxu0 %v20069_v40  ;;  %6559 = vmatpush1.bf16.msra.mxu1 %v20070_v59  ;;  %v6000_v20 = vmul.f32 %v14190_v2, %v5990_v4  ;;  %v6794_v2 = vld [vmem:[%s19685_s4 + $0x340] sm:$0xff]  ;;  %v6795_v59 = vld [vmem:[%s19685_s4 + $0x348] sm:$0xff] }
 0x7c1   : > { %6517 = vmatprep.subr.bf16.mxu0 %v17037_v7  ;;  %6560 = vmatprep.subr.bf16.mxu1 %v17042_v51  ;;  %v6754_v51 = vld [vmem:[%s19685_s4 + $0x200] sm:$0xff] }
 0x7c2   : > { %v14192_v56 = vpop.eup %14191  ;;  %v6758_v7 = vld [vmem:[%s19685_s4 + $0x220] sm:$0xff] }
 0x7c3   : > { %v6001_v57 = vmul.f32 %v14192_v56, %v5991_v49  ;;  %v12440_v15 = vcombine.low %v6754_v51, %v6758_v7  ;;  %v6798_v40 = vld [vmem:[%s19685_s4 + $0x360] sm:$0xff]  ;;  %v6799_v49 = vld [vmem:[%s19685_s4 + $0x368] sm:$0xff] }
 0x7c4   : > { %6518 = vmatpush1.bf16.msra.mxu0 %v17049_v0  ;;  %6561 = vmatpush1.bf16.msra.mxu1 %v17054_v19  ;;  %v6755_v0 = vld [vmem:[%s19685_s4 + $0x208] sm:$0xff]  ;;  %v12441_v19 = vcombine.high %v6754_v51, %v6758_v7  ;;  %v12481_v4 = vcombine.high %v6794_v2, %v6798_v40  ;;  %v12480_v56 = vcombine.low %v6794_v2, %v6798_v40  ;;  %v6802_v51 = vld [vmem:[%s19685_s4 + $0x380] sm:$0xff] }
 0x7c5   : > { %v17168_v6 = vpack.c.bf16 %v6001_v57, %v6000_v20  ;;  %v12442_v17 = vcombine.low %v6755_v0, %v6759_v13  ;;  %v12443_v9 = vcombine.high %v6755_v0, %v6759_v13  ;;  %v12482_v20 = vcombine.low %v6795_v59, %v6799_v49  ;;  %v6806_v7 = vld [vmem:[%s19685_s4 + $0x3a0] sm:$0xff]  ;;  %v6803_v0 = vld [vmem:[%s19685_s4 + $0x388] sm:$0xff] }
 0x7c6   : > { %7138 = vmatprep.subr.bf16.mxu0 %v12441_v19  ;;  %v12483_v57 = vcombine.high %v6795_v59, %v6799_v49  ;;  %v12489_v19 = vcombine.high %v6802_v51, %v6806_v7  ;;  %v6807_v13 = vld [vmem:[%s19685_s4 + $0x3a8] sm:$0xff] }
 0x7c7   : > { %6536 = vmatmul.mubr.bf16.vlgmr.msra.gmra.mrb[32].mxu0 %v17168_v6  ;;  %6579 = vmatmul.mubr.bf16.vlgmr.msra.gmra.mrb[32].mxu1 %v17168_v6 }
 0x7c8   : > { %7170 = vmatprep.mubr.bf16.mxu0 %v19931_v14  ;;  %7283 = vmatprep.mubr.bf16.mxu1 %v19931_v14 }
 0x7c9   : > { %7251 = vmatprep.subr.bf16.mxu1 %v12443_v9  ;;  %7139 = vmatpush1.bf16.msra.mxu0 %v12440_v15  ;;  %v12488_v15 = vcombine.low %v6802_v51, %v6806_v7  ;;  %v12491_v9 = vcombine.high %v6803_v0, %v6807_v13 }
 0x7ca   : > { %7252 = vmatpush1.bf16.msra.mxu1 %v12442_v17  ;;  %7140 = vmatprep.subr.bf16.mxu0 %v12449_v37  ;;  %v12490_v17 = vcombine.low %v6803_v0, %v6807_v13  ;;  %v12496_v37 = vcombine.low %v6810_v10, %v6814_v3 }
 0x7cb   : > { %7253 = vmatprep.subr.bf16.mxu1 %v12451_v32 }
 0x7cd   : > { %7141 = vmatpush1.bf16.msra.mxu0 %v12448_v5  ;;  %v6815_v5 = vld [vmem:[%s19685_s4 + $0x3e8] sm:$0xff] }
 0x7ce   : > { %7254 = vmatpush1.bf16.msra.mxu1 %v12450_v12  ;;  %7142 = vmatprep.subr.bf16.mxu0 %v12457_v35  ;;  %v12498_v12 = vcombine.low %v6811_v8, %v6815_v5  ;;  %v12499_v32 = vcombine.high %v6811_v8, %v6815_v5  ;;  %v12445_v35 = vcombine.high %v17273_v24, %v17278_v41  ;;  %v6777_v24 = vld [vmem:[%s19685_s4 + $0x2b8] sm:$0xff]  ;;  %v6780_v41 = vld [vmem:[%s19685_s4 + $0x2d0] sm:$0xff] }
 0x7cf   : > { %7255 = vmatprep.subr.bf16.mxu1 %v12459_v47 }
 0x7d1   : > { %7143 = vmatpush1.bf16.msra.mxu0 %v12456_v63  ;;  %v17292_v63 = vld [vmem:[%s19685_s4 + $0x238] sm:$0xff] }
 0x7d2   : > { %7256 = vmatpush1.bf16.msra.mxu1 %v12458_v25  ;;  %7144 = vmatprep.subr.bf16.mxu0 %v12465_v48  ;;  %v12446_v25 = vcombine.low %v17287_v22, %v17292_v63  ;;  %v12447_v47 = vcombine.high %v17287_v22, %v17292_v63  ;;  %v6781_v22 = vld [vmem:[%s19685_s4 + $0x2d8] sm:$0xff] }
 0x7d3   : > { %7257 = vmatprep.subr.bf16.mxu1 %v12467_v39  ;;  %v6785_v63 = vld [vmem:[%s19685_s4 + $0x2f8] sm:$0xff] }
 0x7d5   : > { %7145 = vmatpush1.bf16.msra.mxu0 %v12464_v55 }
 0x7d6   : > { %7258 = vmatpush1.bf16.msra.mxu1 %v12466_v58  ;;  %7146 = vmatprep.subr.bf16.mxu0 %v12473_v18 }
 0x7d7   : > { %7259 = vmatprep.subr.bf16.mxu1 %v12475_v44 }
 0x7d9   : > { %7147 = vmatpush1.bf16.msra.mxu0 %v12472_v1 }
 0x7da   : > { %7260 = vmatpush1.bf16.msra.mxu1 %v12474_v27  ;;  %7148 = vmatprep.subr.bf16.mxu0 %v12481_v4 }
 0x7db   : > { %7261 = vmatprep.subr.bf16.mxu1 %v12483_v57 }
 0x7dd   : > { %7149 = vmatpush1.bf16.msra.mxu0 %v12480_v56 }
 0x7de   : > { %7262 = vmatpush1.bf16.msra.mxu1 %v12482_v20  ;;  %7150 = vmatprep.subr.bf16.mxu0 %v12489_v19 }
 0x7df   : > { %7263 = vmatprep.subr.bf16.mxu1 %v12491_v9 }
 0x7e1   : > { %7151 = vmatpush1.bf16.msra.mxu0 %v12488_v15 }
 0x7e2   : > { %7264 = vmatpush1.bf16.msra.mxu1 %v12490_v17  ;;  %7152 = vmatprep.subr.bf16.mxu0 %v12497_v46 }
 0x7e3   : > { %7265 = vmatprep.subr.bf16.mxu1 %v12499_v32 }
 0x7e5   : > { %7153 = vmatpush1.bf16.msra.mxu0 %v12496_v37 }
 0x7e6   : > { %7266 = vmatpush1.bf16.msra.mxu1 %v12498_v12  ;;  %7364 = vmatprep.subr.bf16.mxu0 %v12445_v35 }
 0x7e7   : > { %7477 = vmatprep.subr.bf16.mxu1 %v12447_v47 }
 0x87a   : > { %v6243_v36 = vpop.f32.mrb[28].mxu0  ;;  %v6286_v61 = vpop.f32.mrb[28].mxu1 }
 0x87b   : > { %v12770_v53 = vadd.f32 %v6243_v36, %v20050_v52  ;;  %v6245_v48 = vpop.f32.mrb[29].mxu0  ;;  %v6288_v34 = vpop.f32.mrb[29].mxu1  ;;  %v12802_v27 = vadd.f32 %v6286_v61, %v15465_v29 }
 0x87c   : > { %v12771_v55 = vadd.f32 %v6245_v48, %v20051_v21  ;;  %v6247_v58 = vpop.f32.mrb[30].mxu0  ;;  %v6290_v39 = vpop.f32.mrb[30].mxu1  ;;  %v12803_v59 = vadd.f32 %v6288_v34, %v20052_v43 }
 0x87d   : > { %v6597_v26 = vmul.f32 0.5, %v12770_v53  ;;  %v12772_v54 = vadd.f32 %v6247_v58, %v20050_v52  ;;  %v6249_v28 = vpop.f32.mrb[31].mxu0  ;;  %v6292_v18 = vpop.f32.mrb[31].mxu1  ;;  %v12804_v40 = vadd.f32 %v6290_v39, %v15465_v29 }
 0x87e   : > { %v6605_v38 = vmul.f32 0.5, %v12771_v55  ;;  %v12773_v1 = vadd.f32 %v6249_v28, %v20051_v21  ;;  %v6615_v52 = vmul.f32 0.5, %v12803_v59  ;;  %v12805_v4 = vadd.f32 %v6292_v18, %v20052_v43 }
 0x87f   : > { %14193 = vtanh.f32 %v6597_v26  ;;  %v6598_v44 = vmul.f32 0.5, %v12772_v54 }
 0x880   : > { %14195 = vtanh.f32 %v6605_v38  ;;  %v6606_v2 = vmul.f32 0.5, %v12773_v1  ;;  %v6616_v57 = vmul.f32 0.5, %v12805_v4 }
 0x881   : > { %14197 = vtanh.f32 %v6598_v44 }
 0x882   : > { %14199 = vtanh.f32 %v12802_v27 }
 0x883   : > { %14201 = vtanh.f32 %v6606_v2 }
 0x884   : > { %14203 = vtanh.f32 %v12804_v40 }
 0x885   : > { %14205 = vtanh.f32 %v6615_v52 }
 0x886   : > { %14207 = vtanh.f32 %v6616_v57 }
 0x889   : > { %v14194_v49 = vpop.eup %14193 }
 0x88a   : > { %v14196_v56 = vpop.eup %14195  ;;  %v6601_v21 = vmul.f32 0.5, %v14194_v49 }
 0x88b   : > { %v6609_v20 = vmul.f32 0.5, %v14196_v56  ;;  %v14198_v51 = vpop.eup %14197 }
 0x88c   : > { %v6603_v7 = vadd.f32 0.5, %v6601_v21  ;;  %v14200_v0 = vpop.eup %14199  ;;  %v6602_v13 = vmul.f32 0.5, %v14198_v51 }
 0x88d   : > { %v6611_v19 = vadd.f32 0.5, %v6609_v20  ;;  %v14202_v29 = vpop.eup %14201 }
 0x88e   : > { %v6625_v15 = vmul.f32 %v14200_v0, %v6603_v7  ;;  %v6604_v9 = vadd.f32 0.5, %v6602_v13  ;;  %v6610_v10 = vmul.f32 0.5, %v14202_v29  ;;  %v14204_v3 = vpop.eup %14203 }
 0x88f   : > { %v6623_v17 = vmul.f32 %v6611_v19, %v17109_v11  ;;  %v14206_v5 = vpop.eup %14205 }
 0x890   : > { %v6612_v8 = vadd.f32 0.5, %v6610_v10  ;;  %v6626_v37 = vmul.f32 %v14204_v3, %v6604_v9  ;;  %v6619_v32 = vmul.f32 0.5, %v14206_v5  ;;  %v14208_v35 = vpop.eup %14207 }
 0x891   : > { %v6627_v43 = vadd.f32 %v6625_v15, %v6623_v17  ;;  %v6620_v34 = vmul.f32 0.5, %v14208_v35 }
 0x892   : > { %v6624_v46 = vmul.f32 %v6612_v8, %v17113_v42  ;;  %v6621_v48 = vadd.f32 0.5, %v6619_v32 }
 0x893   : > { %14209 = vtanh.f32 %v6627_v43  ;;  %v6622_v40 = vadd.f32 0.5, %v6620_v34  ;;  %v6764_v34 = vld [vmem:[%s19685_s4 + $0x250] sm:$0xff] }
 0x894   : > { %v6628_v12 = vadd.f32 %v6626_v37, %v6624_v46 }
 0x896   : > { %14211 = vtanh.f32 %v6628_v12 }
 0x89a   : > { %v6537_v47 = vpop.f32.mrb[32].mxu0  ;;  %v6580_v36 = vpop.f32.mrb[32].mxu1 }
 0x89b   : > { %v12806_v61 = vadd.f32 %v6537_v47, %v15491_v50  ;;  %v6539_v11 = vpop.f32.mrb[33].mxu0  ;;  %v6582_v53 = vpop.f32.mrb[33].mxu1  ;;  %v12838_v44 = vadd.f32 %v6580_v36, %v15503_v31 }
 0x89c   : > { %v12807_v55 = vadd.f32 %v6539_v11, %v15497_v16  ;;  %v6541_v58 = vpop.f32.mrb[34].mxu0  ;;  %v6584_v39 = vpop.f32.mrb[34].mxu1 }
 0x89d   : > { %v14210_v26 = vpop.eup %14209  ;;  %v6633_v54 = vmul.f32 0.5, %v12806_v61  ;;  %v12808_v42 = vadd.f32 %v6541_v58, %v15491_v50  ;;  %v6543_v28 = vpop.f32.mrb[35].mxu0  ;;  %v12840_v49 = vadd.f32 %v6584_v39, %v15503_v31  ;;  %v12839_v50 = vadd.f32 %v6582_v53, %v15513_v30  ;;  %v6765_v58 = vld [vmem:[%s19685_s4 + $0x258] sm:$0xff] }
 0x89e   : > { %v6586_v18 = vpop.f32.mrb[35].mxu1  ;;  %v6631_v38 = vmul.f32 %v14210_v26, %v6621_v48  ;;  %v6641_v1 = vmul.f32 0.5, %v12807_v55  ;;  %v12809_v27 = vadd.f32 %v6543_v28, %v15497_v16  ;;  %v6768_v55 = vld [vmem:[%s19685_s4 + $0x270] sm:$0xff]  ;;  %v6769_v39 = vld [vmem:[%s19685_s4 + $0x278] sm:$0xff] }
 0x89f   : > { %14213 = vtanh.f32 %v6633_v54  ;;  %v6634_v2 = vmul.f32 0.5, %v12808_v42  ;;  %v6651_v16 = vmul.f32 0.5, %v12839_v50  ;;  %v12841_v21 = vadd.f32 %v6586_v18, %v15513_v30  ;;  %v6772_v42 = vld [vmem:[%s19685_s4 + $0x290] sm:$0xff] }
 0x8a0   : > { %14215 = vtanh.f32 %v6641_v1  ;;  %v6642_v59 = vmul.f32 0.5, %v12809_v27  ;;  %v14212_v52 = vpop.eup %14211  ;;  %v12453_v54 = vcombine.high %v6764_v34, %v6768_v55  ;;  %v6776_v28 = vld [vmem:[%s19685_s4 + $0x2b0] sm:$0xff]  ;;  %v12455_v18 = vcombine.high %v6765_v58, %v6769_v39 }
 0x8a1   : > { %v6632_v4 = vmul.f32 %v14212_v52, %v6622_v40  ;;  %14217 = vtanh.f32 %v6634_v2  ;;  %v6652_v0 = vmul.f32 0.5, %v12841_v21  ;;  %v12461_v1 = vcombine.high %v6772_v42, %v6776_v28 }
 0x8a2   : > { %14219 = vtanh.f32 %v12838_v44  ;;  %v12454_v27 = vcombine.low %v6765_v58, %v6769_v39  ;;  %v6773_v44 = vld [vmem:[%s19685_s4 + $0x298] sm:$0xff]  ;;  %v12471_v52 = vcombine.high %v6781_v22, %v6785_v63  ;;  %v6691_v58 = vld [vmem:[%s19685_s4 + $0x8] sm:$0xff] }
 0x8a3   : > { %14221 = vtanh.f32 %v6642_v59  ;;  %v17315_v56 = vpack.c.bf16 %v6632_v4, %v6631_v38  ;;  %v12452_v38 = vcombine.low %v6764_v34, %v6768_v55  ;;  %v12463_v2 = vcombine.high %v6773_v44, %v6777_v24  ;;  %v6788_v4 = vld [vmem:[%s19685_s4 + $0x310] sm:$0xff]  ;;  %v6695_v39 = vld [vmem:[%s19685_s4 + $0x28] sm:$0xff] }
 0x8a4   : > { %14223 = vtanh.f32 %v12840_v49  ;;  %v12462_v40 = vcombine.low %v6773_v44, %v6777_v24  ;;  %v6792_v49 = vld [vmem:[%s19685_s4 + $0x330] sm:$0xff]  ;;  %v6699_v24 = vld [vmem:[%s19685_s4 + $0x48] sm:$0xff] }
 0x8a5   : > { %14225 = vtanh.f32 %v6651_v16  ;;  %v12470_v16 = vcombine.low %v6781_v22, %v6785_v63  ;;  %v12477_v21 = vcombine.high %v6788_v4, %v6792_v49  ;;  %v12506_v22 = vcombine.low %v6691_v58, %v6695_v39  ;;  %v6706_v63 = vld [vmem:[%s19685_s4 + $0x80] sm:$0xff] }
 0x8a6   : > { %14227 = vtanh.f32 %v6652_v0  ;;  %v6797_v0 = vld [vmem:[%s19685_s4 + $0x358] sm:$0xff] }
 0x8a9   : > { %v14214_v20 = vpop.eup %14213 }
 0x8aa   : > { %v14216_v57 = vpop.eup %14215  ;;  %v6637_v51 = vmul.f32 0.5, %v14214_v20  ;;  %v6789_v20 = vld [vmem:[%s19685_s4 + $0x318] sm:$0xff] }
 0x8ab   : > { %v6645_v7 = vmul.f32 0.5, %v14216_v57  ;;  %v14218_v19 = vpop.eup %14217  ;;  %v6793_v57 = vld [vmem:[%s19685_s4 + $0x338] sm:$0xff] }
 0x8ac   : > { %v6639_v13 = vadd.f32 0.5, %v6637_v51  ;;  %v14220_v29 = vpop.eup %14219  ;;  %v6638_v15 = vmul.f32 0.5, %v14218_v19  ;;  %v6796_v51 = vld [vmem:[%s19685_s4 + $0x350] sm:$0xff]  ;;  %v6801_v19 = vld [vmem:[%s19685_s4 + $0x378] sm:$0xff] }
 0x8ad   : > { %v6647_v31 = vadd.f32 0.5, %v6645_v7  ;;  %v14222_v17 = vpop.eup %14221  ;;  %v6800_v7 = vld [vmem:[%s19685_s4 + $0x370] sm:$0xff] }
 0x8ae   : > { %v6661_v9 = vmul.f32 %v14220_v29, %v6639_v13  ;;  %v6640_v3 = vadd.f32 0.5, %v6638_v15  ;;  %v6646_v43 = vmul.f32 0.5, %v14222_v17  ;;  %v14224_v8 = vpop.eup %14223  ;;  %v12476_v13 = vcombine.low %v6788_v4, %v6792_v49  ;;  %v6707_v4 = vld [vmem:[%s19685_s4 + $0x88] sm:$0xff] }
 0x8af   : > { %v6659_v10 = vmul.f32 %v6647_v31, %v17143_v23  ;;  %v14226_v12 = vpop.eup %14225  ;;  %v12479_v29 = vcombine.high %v6789_v20, %v6793_v57  ;;  %v12478_v31 = vcombine.low %v6789_v20, %v6793_v57  ;;  %v12485_v15 = vcombine.high %v6796_v51, %v6800_v7  ;;  %v6711_v49 = vld [vmem:[%s19685_s4 + $0xa8] sm:$0xff] }
 0x8b0   : > { %v6648_v37 = vadd.f32 0.5, %v6646_v43  ;;  %v6662_v46 = vmul.f32 %v14224_v8, %v6640_v3  ;;  %v6655_v35 = vmul.f32 0.5, %v14226_v12  ;;  %v14228_v47 = vpop.eup %14227  ;;  %v12487_v17 = vcombine.high %v6797_v0, %v6801_v19  ;;  %v6813_v12 = vld [vmem:[%s19685_s4 + $0x3d8] sm:$0xff] }
 0x8b1   : > { %v6663_v30 = vadd.f32 %v6661_v9, %v6659_v10  ;;  %v6656_v61 = vmul.f32 0.5, %v14228_v47  ;;  %v6804_v9 = vld [vmem:[%s19685_s4 + $0x390] sm:$0xff]  ;;  %v12484_v3 = vcombine.low %v6796_v51, %v6800_v7  ;;  %v12486_v43 = vcombine.low %v6797_v0, %v6801_v19  ;;  %v6722_v19 = vld [vmem:[%s19685_s4 + $0x100] sm:$0xff] }
 0x8b2   : > { %v6660_v5 = vmul.f32 %v6648_v37, %v17151_v45  ;;  %v6657_v36 = vadd.f32 0.5, %v6655_v35  ;;  %v6808_v10 = vld [vmem:[%s19685_s4 + $0x3b0] sm:$0xff]  ;;  %v6809_v37 = vld [vmem:[%s19685_s4 + $0x3b8] sm:$0xff]  ;;  %v12523_v57 = vcombine.high %v6707_v4, %v6711_v49  ;;  %v12522_v51 = vcombine.low %v6707_v4, %v6711_v49 }
 0x8b3   : > { %14229 = vtanh.f32 %v6663_v30  ;;  %v6658_v23 = vadd.f32 0.5, %v6656_v61  ;;  %v12493_v8 = vcombine.high %v6804_v9, %v6808_v10  ;;  %v6805_v30 = vld [vmem:[%s19685_s4 + $0x398] sm:$0xff]  ;;  %v12492_v35 = vcombine.low %v6804_v9, %v6808_v10  ;;  %v6730_v9 = vld [vmem:[%s19685_s4 + $0x140] sm:$0xff] }
 0x8b4   : > { %v6664_v32 = vadd.f32 %v6662_v46, %v6660_v5  ;;  %v6812_v46 = vld [vmem:[%s19685_s4 + $0x3d0] sm:$0xff]  ;;  %v12495_v47 = vcombine.high %v6805_v30, %v6809_v37  ;;  %v6734_v10 = vld [vmem:[%s19685_s4 + $0x160] sm:$0xff] }
 0x8b5   : > { %v6816_v5 = vld [vmem:[%s19685_s4 + $0x3f0] sm:$0xff] }
 0x8b6   : > { %14231 = vtanh.f32 %v6664_v32  ;;  %v6817_v32 = vld [vmem:[%s19685_s4 + $0x3f8] sm:$0xff]  ;;  %v12501_v61 = vcombine.high %v6812_v46, %v6816_v5  ;;  %v12500_v34 = vcombine.low %v6812_v46, %v6816_v5  ;;  %v12545_v46 = vcombine.high %v6730_v9, %v6734_v10 }
 0x8b7   : > { %v12502_v55 = vcombine.low %v6813_v12, %v6817_v32 }
 0x8bd   : > { %v14230_v11 = vpop.eup %14229 }
 0x8be   : > { %v6667_v53 = vmul.f32 %v14230_v11, %v6657_v36  ;;  %v12494_v36 = vcombine.low %v6805_v30, %v6809_v37  ;;  %v20071_v11 = vld [vmem:[#allocation17_spill] sm:$0xff] }
 0x8c0   : > { %v14232_v48 = vpop.eup %14231 }
 0x8c1   : > { %v6668_v45 = vmul.f32 %v14232_v48, %v6658_v23  ;;  %v6690_v23 = vld [vmem:[%s19685_s4] sm:$0xff] }
 0x8c2   : > { %v6694_v48 = vld [vmem:[%s19685_s4 + $0x20] sm:$0xff] }
 0x8c3   : > { %v17332_v26 = vpack.c.bf16 %v6668_v45, %v6667_v53  ;;  %v12503_v53 = vcombine.high %v6813_v12, %v6817_v32  ;;  %v12505_v45 = vcombine.high %v6690_v23, %v6694_v48  ;;  %v12504_v44 = vcombine.low %v6690_v23, %v6694_v48  ;;  %v6738_v12 = vld [vmem:[%s19685_s4 + $0x180] sm:$0xff]  ;;  %v6747_v48 = vld [vmem:[%s19685_s4 + $0x1c8] sm:$0xff] }
 0x8c4   : > { %v6742_v32 = vld [vmem:[%s19685_s4 + $0x1a0] sm:$0xff] }
 0x8c5   : > { %7171 = vmatmul.mubr.bf16.vlgmr.msra.gmra.mrb[64].mxu0 %v17332_v26  ;;  %7284 = vmatmul.mubr.bf16.vlgmr.msra.gmra.mrb[64].mxu1 %v17332_v26  ;;  %v6750_v23 = vld [vmem:[%s19685_s4 + $0x1e0] sm:$0xff] }
 0x8c6   : > { %7365 = vmatpush1.bf16.msra.mxu0 %v12444_v33  ;;  %7180 = vmatprep.mubr.bf16.mxu0 %v19931_v14  ;;  %v6784_v33 = vld [vmem:[%s19685_s4 + $0x2f0] sm:$0xff] }
 0x8c7   : > { %7293 = vmatprep.mubr.bf16.mxu1 %v19931_v14  ;;  %7366 = vmatprep.subr.bf16.mxu0 %v12453_v54  ;;  %v12469_v59 = vcombine.high %v6780_v41, %v6784_v33  ;;  %v12468_v50 = vcombine.low %v6780_v41, %v6784_v33  ;;  %v12507_v54 = vcombine.high %v6691_v58, %v6695_v39  ;;  %v6703_v41 = vld [vmem:[%s19685_s4 + $0x68] sm:$0xff] }
 0x8c8   : > { %7478 = vmatpush1.bf16.msra.mxu1 %v12446_v25  ;;  %v12460_v25 = vcombine.low %v6772_v42, %v6776_v28  ;;  %v20072_v42 = vld [vmem:[#allocation37_spill] sm:$0xff]  ;;  %v20073_v28 = vld [vmem:[#allocation14_spill] sm:$0xff] }
 0x8c9   : > { %7479 = vmatprep.subr.bf16.mxu1 %v12455_v18  ;;  %v20074_v18 = vld [vmem:[#allocation33_spill] sm:$0xff] }
 0x8ca   : > { %7367 = vmatpush1.bf16.msra.mxu0 %v12452_v38  ;;  %v20075_v38 = vld [vmem:[#allocation7_spill] sm:$0xff] }
 0x8cb   : > { %7368 = vmatprep.subr.bf16.mxu0 %v12461_v1  ;;  %v6698_v1 = vld [vmem:[%s19685_s4 + $0x40] sm:$0xff] }
 0x8cc   : > { %7480 = vmatpush1.bf16.msra.mxu1 %v12454_v27  ;;  %v6702_v27 = vld [vmem:[%s19685_s4 + $0x60] sm:$0xff] }
 0x8cd   : > { %7181 = vmatmul.mubr.bf16.gmra.mrb[68].mxu0 %v17168_v6  ;;  %7294 = vmatmul.mubr.bf16.gmra.mrb[68].mxu1 %v17168_v6  ;;  %v12513_v33 = vcombine.high %v6698_v1, %v6702_v27 }
 0x8ce   : > { %7190 = vmatprep.mubr.bf16.mxu0 %v19931_v14  ;;  %7303 = vmatprep.mubr.bf16.mxu1 %v19931_v14 }
 0x8cf   : > { %7369 = vmatpush1.bf16.msra.mxu0 %v12460_v25  ;;  %7481 = vmatprep.subr.bf16.mxu1 %v12463_v2  ;;  %v6710_v25 = vld [vmem:[%s19685_s4 + $0xa0] sm:$0xff]  ;;  %v12515_v2 = vcombine.high %v6699_v24, %v6703_v41 }
 0x8d0   : > { %7370 = vmatprep.subr.bf16.mxu0 %v12469_v59  ;;  %7482 = vmatpush1.bf16.msra.mxu1 %v12462_v40  ;;  %v12512_v40 = vcombine.low %v6698_v1, %v6702_v27  ;;  %v12521_v59 = vcombine.high %v6706_v63, %v6710_v25  ;;  %v12520_v20 = vcombine.low %v6706_v63, %v6710_v25  ;;  %v6692_v1 = vld [vmem:[%s19685_s4 + $0x10] sm:$0xff]  ;;  %v6701_v63 = vld [vmem:[%s19685_s4 + $0x58] sm:$0xff] }
 0x8d1   : > { %7483 = vmatprep.subr.bf16.mxu1 %v12471_v52  ;;  %v12514_v52 = vcombine.low %v6699_v24, %v6703_v41  ;;  %v6696_v27 = vld [vmem:[%s19685_s4 + $0x30] sm:$0xff]  ;;  %v6693_v41 = vld [vmem:[%s19685_s4 + $0x18] sm:$0xff] }
 0x8d3   : > { %7371 = vmatpush1.bf16.msra.mxu0 %v12468_v50  ;;  %v6718_v50 = vld [vmem:[%s19685_s4 + $0xe0] sm:$0xff] }
 0x8d4   : > { %7372 = vmatprep.subr.bf16.mxu0 %v12477_v21  ;;  %7484 = vmatpush1.bf16.msra.mxu1 %v12470_v16  ;;  %v6715_v16 = vld [vmem:[%s19685_s4 + $0xc8] sm:$0xff] }
 0x8d5   : > { %7191 = vmatmul.mubr.bf16.gmra.mrb[72].mxu0 %v17060_v60  ;;  %7304 = vmatmul.mubr.bf16.gmra.mrb[72].mxu1 %v17060_v60  ;;  %v6719_v21 = vld [vmem:[%s19685_s4 + $0xe8] sm:$0xff] }
 0x8d6   : > { %7200 = vmatprep.mubr.bf16.mxu0 %v19931_v14  ;;  %7313 = vmatprep.mubr.bf16.mxu1 %v19931_v14  ;;  %v12531_v0 = vcombine.high %v6715_v16, %v6719_v21 }
 0x8d7   : > { %7373 = vmatpush1.bf16.msra.mxu0 %v12476_v13  ;;  %7485 = vmatprep.subr.bf16.mxu1 %v12479_v29  ;;  %v6726_v13 = vld [vmem:[%s19685_s4 + $0x120] sm:$0xff] }
 0x8d8   : > { %7374 = vmatprep.subr.bf16.mxu0 %v12485_v15  ;;  %7486 = vmatpush1.bf16.msra.mxu1 %v12478_v31  ;;  %v12530_v31 = vcombine.low %v6715_v16, %v6719_v21  ;;  %v6723_v15 = vld [vmem:[%s19685_s4 + $0x108] sm:$0xff]  ;;  %v6709_v16 = vld [vmem:[%s19685_s4 + $0x98] sm:$0xff] }
 0x8d9   : > { %7487 = vmatprep.subr.bf16.mxu1 %v12487_v17  ;;  %v6727_v17 = vld [vmem:[%s19685_s4 + $0x128] sm:$0xff]  ;;  %v6713_v21 = vld [vmem:[%s19685_s4 + $0xb8] sm:$0xff] }
 0x8da   : > { %v12539_v30 = vcombine.high %v6723_v15, %v6727_v17  ;;  %v12538_v37 = vcombine.low %v6723_v15, %v6727_v17  ;;  %v6724_v15 = vld [vmem:[%s19685_s4 + $0x110] sm:$0xff] }
 0x8db   : > { %7375 = vmatpush1.bf16.msra.mxu0 %v12484_v3  ;;  %v6731_v3 = vld [vmem:[%s19685_s4 + $0x148] sm:$0xff]  ;;  %v6728_v17 = vld [vmem:[%s19685_s4 + $0x130] sm:$0xff] }
 0x8dc   : > { %7376 = vmatprep.subr.bf16.mxu0 %v12493_v8  ;;  %7488 = vmatpush1.bf16.msra.mxu1 %v12486_v43  ;;  %v6735_v43 = vld [vmem:[%s19685_s4 + $0x168] sm:$0xff]  ;;  %v12536_v8 = vcombine.low %v6722_v19, %v6726_v13 }
 0x8dd   : > { %7201 = vmatmul.mubr.bf16.gmra.mrb[76].mxu0 %v20071_v11  ;;  %7314 = vmatmul.mubr.bf16.gmra.mrb[76].mxu1 %v20071_v11  ;;  %v12547_v5 = vcombine.high %v6731_v3, %v6735_v43 }
 0x8de   : > { %7210 = vmatprep.mubr.bf16.mxu0 %v19931_v14  ;;  %7323 = vmatprep.mubr.bf16.mxu1 %v19931_v14 }
 0x8df   : > { %7377 = vmatpush1.bf16.msra.mxu0 %v12492_v35  ;;  %7489 = vmatprep.subr.bf16.mxu1 %v12495_v47  ;;  %v12544_v35 = vcombine.low %v6730_v9, %v6734_v10  ;;  %v12546_v47 = vcombine.low %v6731_v3, %v6735_v43  ;;  %v12541_v3 = vcombine.high %v6724_v15, %v6728_v17  ;;  %v6725_v43 = vld [vmem:[%s19685_s4 + $0x118] sm:$0xff] }
 0x8e0   : > { %7378 = vmatprep.subr.bf16.mxu0 %v12501_v61  ;;  %7490 = vmatpush1.bf16.msra.mxu1 %v12494_v36  ;;  %v6739_v36 = vld [vmem:[%s19685_s4 + $0x188] sm:$0xff] }
 0x8e1   : > { %7491 = vmatprep.subr.bf16.mxu1 %v12503_v53  ;;  %v6743_v61 = vld [vmem:[%s19685_s4 + $0x1a8] sm:$0xff]  ;;  %v6746_v53 = vld [vmem:[%s19685_s4 + $0x1c0] sm:$0xff] }
 0x8e2   : > { %v12554_v58 = vcombine.low %v6739_v36, %v6743_v61  ;;  %v12561_v39 = vcombine.high %v6746_v53, %v6750_v23 }
 0x8e3   : > { %7379 = vmatpush1.bf16.msra.mxu0 %v12500_v34  ;;  %v6751_v34 = vld [vmem:[%s19685_s4 + $0x1e8] sm:$0xff] }
 0x8e4   : > { %7492 = vmatpush1.bf16.msra.mxu1 %v12502_v55  ;;  %7910 = vmatprep.subr.bf16.mxu0 %v12505_v45  ;;  %v12552_v55 = vcombine.low %v6738_v12, %v6742_v32  ;;  %v12555_v45 = vcombine.high %v6739_v36, %v6743_v61  ;;  %v12562_v24 = vcombine.low %v6747_v48, %v6751_v34  ;;  %v6740_v61 = vld [vmem:[%s19685_s4 + $0x190] sm:$0xff] }
 0x8e5   : > { %7211 = vmatmul.mubr.bf16.gmra.mrb[80].mxu0 %v20072_v42  ;;  %7324 = vmatmul.mubr.bf16.gmra.mrb[80].mxu1 %v20072_v42 }
 0x8e6   : > { %7220 = vmatprep.mubr.bf16.mxu0 %v19931_v14  ;;  %7333 = vmatprep.mubr.bf16.mxu1 %v19931_v14 }
 0x8e7   : > { %8023 = vmatprep.subr.bf16.mxu1 %v12507_v54  ;;  %v12563_v54 = vcombine.high %v6747_v48, %v6751_v34 }
 0x8ed   : > { %7221 = vmatmul.mubr.bf16.gmra.mrb[84].mxu0 %v20073_v28  ;;  %7334 = vmatmul.mubr.bf16.gmra.mrb[84].mxu1 %v20073_v28 }
 0x8ee   : > { %7230 = vmatprep.mubr.bf16.mxu0 %v19931_v14  ;;  %7343 = vmatprep.mubr.bf16.mxu1 %v19931_v14 }
 0x8f5   : > { %7231 = vmatmul.mubr.bf16.gmra.mrb[88].mxu0 %v20074_v18  ;;  %7344 = vmatmul.mubr.bf16.gmra.mrb[88].mxu1 %v20074_v18 }
 0x8f6   : > { %7240 = vmatprep.mubr.bf16.mxu0 %v19931_v14  ;;  %7353 = vmatprep.mubr.bf16.mxu1 %v19931_v14 }
 0x8fd   : > { %7241 = vmatmul.mubr.bf16.gmra.mrb[92].mxu0 %v20075_v38  ;;  %7354 = vmatmul.mubr.bf16.gmra.mrb[92].mxu1 %v20075_v38 }
 0x8fe   : > { %7396 = vmatprep.mubr.bf16.mxu0 %v19931_v14  ;;  %7509 = vmatprep.mubr.bf16.mxu1 %v19931_v14 }
 0x905   : > { %7397 = vmatmul.mubr.bf16.vlgmr.msra.gmra.mrb[96].mxu0 %v17332_v26  ;;  %7510 = vmatmul.mubr.bf16.vlgmr.msra.gmra.mrb[96].mxu1 %v17332_v26  ;;  %v6714_v26 = vld [vmem:[%s19685_s4 + $0xc0] sm:$0xff] }
 0x906   : > { %7911 = vmatpush1.bf16.msra.mxu0 %v12504_v44  ;;  %7406 = vmatprep.mubr.bf16.mxu0 %v19931_v14  ;;  %v12529_v7 = vcombine.high %v6714_v26, %v6718_v50  ;;  %v12528_v29 = vcombine.low %v6714_v26, %v6718_v50  ;;  %v12560_v44 = vcombine.low %v6746_v53, %v6750_v23  ;;  %v6744_v53 = vld [vmem:[%s19685_s4 + $0x1b0] sm:$0xff] }
 0x907   : > { %7519 = vmatprep.mubr.bf16.mxu1 %v19931_v14  ;;  %7912 = vmatprep.subr.bf16.mxu0 %v12513_v33  ;;  %v6697_v33 = vld [vmem:[%s19685_s4 + $0x38] sm:$0xff]  ;;  %v12557_v34 = vcombine.high %v6740_v61, %v6744_v53 }
 0x908   : > { %8024 = vmatpush1.bf16.msra.mxu1 %v12506_v22  ;;  %v12511_v22 = vcombine.high %v6693_v41, %v6697_v33 }
 0x909   : > { %8025 = vmatprep.subr.bf16.mxu1 %v12515_v2  ;;  %v12510_v2 = vcombine.low %v6693_v41, %v6697_v33  ;;  %v20079_v41 = vld [vmem:[#allocation19_spill] sm:$0xff] }
 0x90a   : > { %7913 = vmatpush1.bf16.msra.mxu0 %v12512_v40  ;;  %v6708_v40 = vld [vmem:[%s19685_s4 + $0x90] sm:$0xff] }
 0x90b   : > { %7914 = vmatprep.subr.bf16.mxu0 %v12521_v59  ;;  %v6712_v59 = vld [vmem:[%s19685_s4 + $0xb0] sm:$0xff] }
 0x90c   : > { %8026 = vmatpush1.bf16.msra.mxu1 %v12514_v52  ;;  %v20076_v52 = vld [vmem:[#allocation12_spill] sm:$0xff]  ;;  %v12525_v26 = vcombine.high %v6708_v40, %v6712_v59 }
 0x90d   : > { %7407 = vmatmul.mubr.bf16.gmra.mrb[100].mxu0 %v17168_v6  ;;  %7520 = vmatmul.mubr.bf16.gmra.mrb[100].mxu1 %v17168_v6  ;;  %v12537_v6 = vcombine.high %v6722_v19, %v6726_v13  ;;  %v12527_v19 = vcombine.high %v6709_v16, %v6713_v21  ;;  %v12526_v13 = vcombine.low %v6709_v16, %v6713_v21  ;;  %v17771_v16 = vld [vmem:[%s19686_s5 + $0x64] ss:$16 sps:$4 sm:$0xff]   ;;  %v17776_v21 = vld [vmem:[%s19686_s5 + $0x48] ss:$16 sps:$4 sm:$0xff]  }
 0x90e   : > { %7416 = vmatprep.mubr.bf16.mxu0 %v19931_v14  ;;  %7529 = vmatprep.mubr.bf16.mxu1 %v19931_v14  ;;  %20086 = vst [vmem:[#allocation20_spill] sm:$0xff] %v17771_v16  ;;  %20087 = vst [vmem:[#allocation21_spill] sm:$0xff] %v17776_v21 }
 0x90f   : > { %7915 = vmatpush1.bf16.msra.mxu0 %v12520_v20  ;;  %8027 = vmatprep.subr.bf16.mxu1 %v12523_v57  ;;  %v6716_v20 = vld [vmem:[%s19685_s4 + $0xd0] sm:$0xff] }
 0x910   : > { %7916 = vmatprep.subr.bf16.mxu0 %v12529_v7  ;;  %8028 = vmatpush1.bf16.msra.mxu1 %v12522_v51  ;;  %v6720_v57 = vld [vmem:[%s19685_s4 + $0xf0] sm:$0xff]  ;;  %v6717_v51 = vld [vmem:[%s19685_s4 + $0xd8] sm:$0xff] }
 0x911   : > { %8029 = vmatprep.subr.bf16.mxu1 %v12531_v0  ;;  %v6721_v7 = vld [vmem:[%s19685_s4 + $0xf8] sm:$0xff]  ;;  %v12524_v0 = vcombine.low %v6708_v40, %v6712_v59  ;;  %v12532_v9 = vcombine.low %v6716_v20, %v6720_v57 }
 0x912   : > { %v12534_v10 = vcombine.low %v6717_v51, %v6721_v7  ;;  %v17725_v40 = vld [vmem:[%s19686_s5 + $0x8] ss:$16 sps:$4 sm:$0xff]   ;;  %v17732_v59 = vld [vmem:[%s19686_s5 + $0x2c] ss:$16 sps:$4 sm:$0xff]  }
 0x913   : > { %7917 = vmatpush1.bf16.msra.mxu0 %v12528_v29  ;;  %v12533_v29 = vcombine.high %v6716_v20, %v6720_v57  ;;  %v17783_v20 = vld [vmem:[%s19686_s5 + $0x6c] ss:$16 sps:$4 sm:$0xff]   ;;  %v17792_v57 = vld [vmem:[%s19686_s5 + $0x60] ss:$16 sps:$4 sm:$0xff]  }
 0x914   : > { %7918 = vmatprep.subr.bf16.mxu0 %v12537_v6  ;;  %8030 = vmatpush1.bf16.msra.mxu1 %v12530_v31  ;;  %v20077_v31 = vld [vmem:[#allocation16_spill] sm:$0xff]  ;;  %v12535_v6 = vcombine.high %v6717_v51, %v6721_v7  ;;  %20088 = vst [vmem:[#allocation23_spill] sm:$0xff] %v17783_v20  ;;  %20089 = vst [vmem:[#allocation24_spill] sm:$0xff] %v17792_v57  ;;  %v17799_v51 = vld [vmem:[%s19686_s5 + $0x84] ss:$16 sps:$4 sm:$0xff]  }
 0x915   : > { %7417 = vmatmul.mubr.bf16.gmra.mrb[104].mxu0 %v17060_v60  ;;  %7530 = vmatmul.mubr.bf16.gmra.mrb[104].mxu1 %v17060_v60  ;;  %v12553_v60 = vcombine.high %v6738_v12, %v6742_v32  ;;  %v12540_v12 = vcombine.low %v6724_v15, %v6728_v17  ;;  %20090 = vst [vmem:[#allocation25_spill] sm:$0xff] %v17799_v51  ;;  %v17804_v7 = vld [vmem:[%s19686_s5 + $0x68] ss:$16 sps:$4 sm:$0xff]   ;;  %v17851_v15 = vld [vmem:[%s19686_s5 + $0xc4] ss:$16 sps:$4 sm:$0xff]  }
 0x916   : > { %7426 = vmatprep.mubr.bf16.mxu0 %v19931_v14  ;;  %7539 = vmatprep.mubr.bf16.mxu1 %v19931_v14  ;;  %20091 = vst [vmem:[#allocation26_spill] sm:$0xff] %v17804_v7  ;;  %20098 = vst [vmem:[#allocation34_spill] sm:$0xff] %v17851_v15  ;;  %v17856_v17 = vld [vmem:[%s19686_s5 + $0xa8] ss:$16 sps:$4 sm:$0xff]  }
 0x917   : > { %7919 = vmatpush1.bf16.msra.mxu0 %v12536_v8  ;;  %8031 = vmatprep.subr.bf16.mxu1 %v12539_v30  ;;  %v6729_v8 = vld [vmem:[%s19685_s4 + $0x138] sm:$0xff]  ;;  %v6732_v30 = vld [vmem:[%s19685_s4 + $0x150] sm:$0xff]  ;;  %20099 = vst [vmem:[#allocation35_spill] sm:$0xff] %v17856_v17 }
 0x918   : > { %7920 = vmatprep.subr.bf16.mxu0 %v12545_v46  ;;  %8032 = vmatpush1.bf16.msra.mxu1 %v12538_v37  ;;  %v6736_v37 = vld [vmem:[%s19685_s4 + $0x170] sm:$0xff]  ;;  %v6733_v46 = vld [vmem:[%s19685_s4 + $0x158] sm:$0xff]  ;;  %v12543_v32 = vcombine.high %v6725_v43, %v6729_v8 }
 0x919   : > { %8033 = vmatprep.subr.bf16.mxu1 %v12547_v5  ;;  %v6737_v5 = vld [vmem:[%s19685_s4 + $0x178] sm:$0xff]  ;;  %v12548_v23 = vcombine.low %v6732_v30, %v6736_v37 }
 0x91a   : > { %v12551_v36 = vcombine.high %v6733_v46, %v6737_v5  ;;  %v12550_v48 = vcombine.low %v6733_v46, %v6737_v5  ;;  %v17908_v46 = vld [vmem:[%s19686_s5 + $0x104] ss:$16 sps:$4 sm:$0xff]   ;;  %v17915_v5 = vld [vmem:[%s19686_s5 + $0x10c] ss:$16 sps:$4 sm:$0xff]  }
 0x91b   : > { %7921 = vmatpush1.bf16.msra.mxu0 %v12544_v35  ;;  %v12542_v35 = vcombine.low %v6725_v43, %v6729_v8  ;;  %v17880_v43 = vld [vmem:[%s19686_s5 + $0xc8] ss:$16 sps:$4 sm:$0xff]   ;;  %v17887_v8 = vld [vmem:[%s19686_s5 + $0xec] ss:$16 sps:$4 sm:$0xff]   ;;  %20107 = vst [vmem:[#allocation33_spill] sm:$0xff] %v17908_v46  ;;  %20108 = vst [vmem:[#allocation7_spill] sm:$0xff] %v17915_v5 }
 0x91c   : > { %7922 = vmatprep.subr.bf16.mxu0 %v12553_v60  ;;  %8034 = vmatpush1.bf16.msra.mxu1 %v12546_v47  ;;  %v12549_v47 = vcombine.high %v6732_v30, %v6736_v37  ;;  %v20078_v60 = vld [vmem:[#allocation13_spill] sm:$0xff]  ;;  %20103 = vst [vmem:[#allocation40_spill] sm:$0xff] %v17880_v43  ;;  %20104 = vst [vmem:[#allocation17_spill] sm:$0xff] %v17887_v8  ;;  %v17903_v37 = vld [vmem:[%s19686_s5 + $0xe8] ss:$16 sps:$4 sm:$0xff]  }
 0x91d   : > { %7427 = vmatmul.mubr.bf16.gmra.mrb[108].mxu0 %v20071_v11  ;;  %7540 = vmatmul.mubr.bf16.gmra.mrb[108].mxu1 %v20071_v11  ;;  %v12509_v11 = vcombine.high %v6692_v1, %v6696_v27  ;;  %v17896_v30 = vld [vmem:[%s19686_s5 + $0xe0] ss:$16 sps:$4 sm:$0xff]   ;;  %20106 = vst [vmem:[#allocation14_spill] sm:$0xff] %v17903_v37 }
 0x91e   : > { %7436 = vmatprep.mubr.bf16.mxu0 %v19931_v14  ;;  %7549 = vmatprep.mubr.bf16.mxu1 %v19931_v14  ;;  %20105 = vst [vmem:[#allocation37_spill] sm:$0xff] %v17896_v30 }
 0x91f   : > { %7923 = vmatpush1.bf16.msra.mxu0 %v12552_v55  ;;  %8035 = vmatprep.subr.bf16.mxu1 %v12555_v45  ;;  %v6741_v55 = vld [vmem:[%s19685_s4 + $0x198] sm:$0xff] }
 0x920   : > { %7924 = vmatprep.subr.bf16.mxu0 %v12561_v39  ;;  %8036 = vmatpush1.bf16.msra.mxu1 %v12554_v58  ;;  %v6745_v45 = vld [vmem:[%s19685_s4 + $0x1b8] sm:$0xff]  ;;  %v6748_v58 = vld [vmem:[%s19685_s4 + $0x1d0] sm:$0xff] }
 0x921   : > { %8037 = vmatprep.subr.bf16.mxu1 %v12563_v54  ;;  %v6752_v39 = vld [vmem:[%s19685_s4 + $0x1f0] sm:$0xff]  ;;  %v6749_v54 = vld [vmem:[%s19685_s4 + $0x1d8] sm:$0xff] }
 0x923   : > { %7925 = vmatpush1.bf16.msra.mxu0 %v12560_v44  ;;  %v12559_v44 = vcombine.high %v6741_v55, %v6745_v45 }
 0x924   : > { %8038 = vmatpush1.bf16.msra.mxu1 %v12562_v24  ;;  %8136 = vmatprep.subr.bf16.mxu0 %v12509_v11  ;;  %v12558_v24 = vcombine.low %v6741_v55, %v6745_v45  ;;  %v12565_v11 = vcombine.high %v6748_v58, %v6752_v39  ;;  %v18018_v55 = vld [vmem:[%s19686_s5 + $0x168] ss:$16 sps:$4 sm:$0xff]   ;;  %v18025_v45 = vld [vmem:[%s19686_s5 + $0x184] ss:$16 sps:$4 sm:$0xff]  }
 0x925   : > { %7437 = vmatmul.mubr.bf16.gmra.mrb[112].mxu0 %v20072_v42  ;;  %7550 = vmatmul.mubr.bf16.gmra.mrb[112].mxu1 %v20072_v42  ;;  %v6700_v42 = vld [vmem:[%s19685_s4 + $0x50] sm:$0xff] }
 0x926   : > { %7446 = vmatprep.mubr.bf16.mxu0 %v19931_v14  ;;  %7559 = vmatprep.mubr.bf16.mxu1 %v19931_v14 }
 0x927   : > { %8249 = vmatprep.subr.bf16.mxu1 %v12511_v22  ;;  %v12564_v22 = vcombine.low %v6748_v58, %v6752_v39  ;;  %v18030_v58 = vld [vmem:[%s19686_s5 + $0x18c] ss:$16 sps:$4 sm:$0xff]   ;;  %v18037_v39 = vld [vmem:[%s19686_s5 + $0x180] ss:$16 sps:$4 sm:$0xff]  }
 0x92d   : > { %7447 = vmatmul.mubr.bf16.gmra.mrb[116].mxu0 %v20073_v28  ;;  %7560 = vmatmul.mubr.bf16.gmra.mrb[116].mxu1 %v20073_v28  ;;  %v6704_v28 = vld [vmem:[%s19685_s4 + $0x70] sm:$0xff] }
 0x92e   : > { %7456 = vmatprep.mubr.bf16.mxu0 %v19931_v14  ;;  %7569 = vmatprep.mubr.bf16.mxu1 %v19931_v14  ;;  %v12517_v25 = vcombine.high %v6700_v42, %v6704_v28  ;;  %v12516_v49 = vcombine.low %v6700_v42, %v6704_v28  ;;  %v17687_v28 = vld [vmem:[%s19686_s5 + $0x4] ss:$16 sps:$4 sm:$0xff]  }
 0x935   : > { %7457 = vmatmul.mubr.bf16.gmra.mrb[120].mxu0 %v20074_v18  ;;  %7570 = vmatmul.mubr.bf16.gmra.mrb[120].mxu1 %v20074_v18  ;;  %v12508_v18 = vcombine.low %v6692_v1, %v6696_v27  ;;  %v6753_v1 = vld [vmem:[%s19685_s4 + $0x1f8] sm:$0xff]  ;;  %v12556_v27 = vcombine.low %v6740_v61, %v6744_v53  ;;  %v17989_v61 = vld [vmem:[%s19686_s5 + $0x140] ss:$16 sps:$4 sm:$0xff]  }
 0x936   : > { %7466 = vmatprep.mubr.bf16.mxu0 %v19931_v14  ;;  %7579 = vmatprep.mubr.bf16.mxu1 %v19931_v14  ;;  %v12567_v33 = vcombine.high %v6749_v54, %v6753_v1  ;;  %v12566_v42 = vcombine.low %v6749_v54, %v6753_v1  ;;  %v17994_v53 = vld [vmem:[%s19686_s5 + $0x148] ss:$16 sps:$4 sm:$0xff]   ;;  %v18049_v1 = vld [vmem:[%s19686_s5 + $0x1a4] ss:$16 sps:$4 sm:$0xff]  }
 0x937   : > { %v18042_v54 = vld [vmem:[%s19686_s5 + $0x188] ss:$16 sps:$4 sm:$0xff]  }
 0x93d   : > { %7467 = vmatmul.mubr.bf16.gmra.mrb[124].mxu0 %v20075_v38  ;;  %7580 = vmatmul.mubr.bf16.gmra.mrb[124].mxu1 %v20075_v38  ;;  %v6705_v38 = vld [vmem:[%s19685_s4 + $0x78] sm:$0xff] }
 0x93e   : > { %7942 = vmatprep.mubr.bf16.mxu0 %v19931_v14  ;;  %8055 = vmatprep.mubr.bf16.mxu1 %v19931_v14  ;;  %v12519_v4 = vcombine.high %v6701_v63, %v6705_v38  ;;  %v12518_v50 = vcombine.low %v6701_v63, %v6705_v38  ;;  %v20080_v63 = vld [vmem:[#allocation15_spill] sm:$0xff]  ;;  %v20081_v38 = vld [vmem:[#allocation22_spill] sm:$0xff] }
 0x945   : > { %7943 = vmatmul.mubr.bf16.vlgmr.msra.gmra.mrb[64].mxu0 %v20076_v52  ;;  %8056 = vmatmul.mubr.bf16.vlgmr.msra.gmra.mrb[64].mxu1 %v20076_v52 }
 0x946   : > { %8137 = vmatpush1.bf16.msra.mxu0 %v12508_v18  ;;  %7952 = vmatprep.mubr.bf16.mxu0 %v19931_v14  ;;  %v17692_v18 = vld [vmem:[%s19686_s5 + $0xc] ss:$16 sps:$4 sm:$0xff]  }
 0x947   : > { %8065 = vmatprep.mubr.bf16.mxu1 %v19931_v14  ;;  %8138 = vmatprep.subr.bf16.mxu0 %v12517_v25  ;;  %v17715_v25 = vld [vmem:[%s19686_s5] ss:$16 sps:$4 sm:$0xff]  }
 0x948   : > { %8250 = vmatpush1.bf16.msra.mxu1 %v12510_v2  ;;  %v17720_v2 = vld [vmem:[%s19686_s5 + $0x24] ss:$16 sps:$4 sm:$0xff]  }
 0x949   : > { %8251 = vmatprep.subr.bf16.mxu1 %v12519_v4  ;;  %v17739_v4 = vld [vmem:[%s19686_s5 + $0x20] ss:$16 sps:$4 sm:$0xff]  }
 0x94a   : > { %8139 = vmatpush1.bf16.msra.mxu0 %v12516_v49  ;;  %v17752_v49 = vld [vmem:[%s19686_s5 + $0x28] ss:$16 sps:$4 sm:$0xff]  }
 0x94b   : > { %8140 = vmatprep.subr.bf16.mxu0 %v12525_v26  ;;  %20083 = vst [vmem:[#allocation9_spill] sm:$0xff] %v17752_v49  ;;  %v17760_v26 = vld [vmem:[%s19686_s5 + $0x40] ss:$16 sps:$4 sm:$0xff]  }
 0x94c   : > { %8252 = vmatpush1.bf16.msra.mxu1 %v12518_v50  ;;  %20084 = vst [vmem:[#allocation10_spill] sm:$0xff] %v17760_v26  ;;  %v17765_v50 = vld [vmem:[%s19686_s5 + $0x4c] ss:$16 sps:$4 sm:$0xff]  }
 0x94d   : > { %7953 = vmatmul.mubr.bf16.gmra.mrb[68].mxu0 %v20077_v31  ;;  %8066 = vmatmul.mubr.bf16.gmra.mrb[68].mxu1 %v20077_v31  ;;  %20085 = vst [vmem:[#allocation11_spill] sm:$0xff] %v17765_v50 }
 0x94e   : > { %7962 = vmatprep.mubr.bf16.mxu0 %v19931_v14  ;;  %8075 = vmatprep.mubr.bf16.mxu1 %v19931_v14 }
 0x94f   : > { %8141 = vmatpush1.bf16.msra.mxu0 %v12524_v0  ;;  %8253 = vmatprep.subr.bf16.mxu1 %v12527_v19  ;;  %v17811_v0 = vld [vmem:[%s19686_s5 + $0x80] ss:$16 sps:$4 sm:$0xff]   ;;  %v17816_v19 = vld [vmem:[%s19686_s5 + $0x8c] ss:$16 sps:$4 sm:$0xff]  }
 0x950   : > { %8142 = vmatprep.subr.bf16.mxu0 %v12533_v29  ;;  %8254 = vmatpush1.bf16.msra.mxu1 %v12526_v13  ;;  %20092 = vst [vmem:[#allocation27_spill] sm:$0xff] %v17811_v0  ;;  %20093 = vst [vmem:[#allocation28_spill] sm:$0xff] %v17816_v19  ;;  %v17823_v13 = vld [vmem:[%s19686_s5 + $0xa4] ss:$16 sps:$4 sm:$0xff]   ;;  %v17828_v29 = vld [vmem:[%s19686_s5 + $0x88] ss:$16 sps:$4 sm:$0xff]  }
 0x951   : > { %8255 = vmatprep.subr.bf16.mxu1 %v12535_v6  ;;  %20094 = vst [vmem:[#allocation29_spill] sm:$0xff] %v17823_v13  ;;  %20095 = vst [vmem:[#allocation30_spill] sm:$0xff] %v17828_v29  ;;  %v17844_v6 = vld [vmem:[%s19686_s5 + $0xa0] ss:$16 sps:$4 sm:$0xff]  }
 0x952   : > { %20097 = vst [vmem:[#allocation32_spill] sm:$0xff] %v17844_v6 }
 0x953   : > { %8143 = vmatpush1.bf16.msra.mxu0 %v12532_v9  ;;  %v17863_v9 = vld [vmem:[%s19686_s5 + $0xc0] ss:$16 sps:$4 sm:$0xff]  }
 0x954   : > { %8144 = vmatprep.subr.bf16.mxu0 %v12541_v3  ;;  %8256 = vmatpush1.bf16.msra.mxu1 %v12534_v10  ;;  %20100 = vst [vmem:[#allocation36_spill] sm:$0xff] %v17863_v9  ;;  %v17868_v10 = vld [vmem:[%s19686_s5 + $0xcc] ss:$16 sps:$4 sm:$0xff]   ;;  %v17875_v3 = vld [vmem:[%s19686_s5 + $0xe4] ss:$16 sps:$4 sm:$0xff]  }
 0x955   : > { %7963 = vmatmul.mubr.bf16.gmra.mrb[72].mxu0 %v20078_v60  ;;  %8076 = vmatmul.mubr.bf16.gmra.mrb[72].mxu1 %v20078_v60  ;;  %20101 = vst [vmem:[#allocation38_spill] sm:$0xff] %v17868_v10  ;;  %20102 = vst [vmem:[#allocation39_spill] sm:$0xff] %v17875_v3 }
 0x956   : > { %7972 = vmatprep.mubr.bf16.mxu0 %v19931_v14  ;;  %8085 = vmatprep.mubr.bf16.mxu1 %v19931_v14 }
 0x957   : > { %8145 = vmatpush1.bf16.msra.mxu0 %v12540_v12  ;;  %8257 = vmatprep.subr.bf16.mxu1 %v12543_v32  ;;  %v17939_v12 = vld [vmem:[%s19686_s5 + $0x100] ss:$16 sps:$4 sm:$0xff]   ;;  %v17949_v32 = vld [vmem:[%s19686_s5 + $0x124] ss:$16 sps:$4 sm:$0xff]  }
 0x958   : > { %8146 = vmatprep.subr.bf16.mxu0 %v12549_v47  ;;  %8258 = vmatpush1.bf16.msra.mxu1 %v12542_v35  ;;  %v17963_v35 = vld [vmem:[%s19686_s5 + $0x120] ss:$16 sps:$4 sm:$0xff]   ;;  %v17968_v47 = vld [vmem:[%s19686_s5 + $0x128] ss:$16 sps:$4 sm:$0xff]  }
 0x959   : > { %8259 = vmatprep.subr.bf16.mxu1 %v12551_v36  ;;  %v17980_v36 = vld [vmem:[%s19686_s5 + $0x14c] ss:$16 sps:$4 sm:$0xff]  }
 0x95b   : > { %8147 = vmatpush1.bf16.msra.mxu0 %v12548_v23  ;;  %v18001_v23 = vld [vmem:[%s19686_s5 + $0x164] ss:$16 sps:$4 sm:$0xff]  }
 0x95c   : > { %8148 = vmatprep.subr.bf16.mxu0 %v12557_v34  ;;  %8260 = vmatpush1.bf16.msra.mxu1 %v12550_v48  ;;  %v18006_v48 = vld [vmem:[%s19686_s5 + $0x16c] ss:$16 sps:$4 sm:$0xff]   ;;  %v18013_v34 = vld [vmem:[%s19686_s5 + $0x160] ss:$16 sps:$4 sm:$0xff]  }
 0x95d   : > { %7973 = vmatmul.mubr.bf16.gmra.mrb[76].mxu0 %v20079_v41  ;;  %8086 = vmatmul.mubr.bf16.gmra.mrb[76].mxu1 %v20079_v41 }
 0x95e   : > { %7982 = vmatprep.mubr.bf16.mxu0 %v19931_v14  ;;  %8095 = vmatprep.mubr.bf16.mxu1 %v19931_v14 }
 0x95f   : > { %8149 = vmatpush1.bf16.msra.mxu0 %v12556_v27  ;;  %8261 = vmatprep.subr.bf16.mxu1 %v12559_v44  ;;  %v18054_v27 = vld [vmem:[%s19686_s5 + $0x1ac] ss:$16 sps:$4 sm:$0xff]   ;;  %v18061_v44 = vld [vmem:[%s19686_s5 + $0x1a0] ss:$16 sps:$4 sm:$0xff]  }
 0x960   : > { %8150 = vmatprep.subr.bf16.mxu0 %v12565_v11  ;;  %8262 = vmatpush1.bf16.msra.mxu1 %v12558_v24  ;;  %v18066_v24 = vld [vmem:[%s19686_s5 + $0x1a8] ss:$16 sps:$4 sm:$0xff]   ;;  %v18073_v11 = vld [vmem:[%s19686_s5 + $0x1c4] ss:$16 sps:$4 sm:$0xff]  }
 0x961   : > { %8263 = vmatprep.subr.bf16.mxu1 %v12567_v33  ;;  %v18085_v33 = vld [vmem:[%s19686_s5 + $0x1c0] ss:$16 sps:$4 sm:$0xff]  }
 0x963   : > { %8151 = vmatpush1.bf16.msra.mxu0 %v12564_v22  ;;  %v18090_v22 = vld [vmem:[%s19686_s5 + $0x1c8] ss:$16 sps:$4 sm:$0xff]  }
 0x964   : > { %8264 = vmatpush1.bf16.msra.mxu1 %v12566_v42  ;;  %8860 = vmatprep.subr.bf16.mxu0 %v17687_v28  ;;  %v18097_v42 = vld [vmem:[%s19686_s5 + $0x1e4] ss:$16 sps:$4 sm:$0xff]  }
 0x965   : > { %7983 = vmatmul.mubr.bf16.gmra.mrb[80].mxu0 %v20080_v63  ;;  %8096 = vmatmul.mubr.bf16.gmra.mrb[80].mxu1 %v20080_v63 }
 0x966   : > { %7992 = vmatprep.mubr.bf16.mxu0 %v19931_v14  ;;  %8105 = vmatprep.mubr.bf16.mxu1 %v19931_v14 }
 0x967   : > { %8903 = vmatprep.subr.bf16.mxu1 %v17692_v18 }
 0x96d   : > { %7993 = vmatmul.mubr.bf16.gmra.mrb[84].mxu0 %v20081_v38  ;;  %8106 = vmatmul.mubr.bf16.gmra.mrb[84].mxu1 %v20081_v38 }
 0x96e   : > { %8002 = vmatprep.mubr.bf16.mxu0 %v19931_v14  ;;  %8115 = vmatprep.mubr.bf16.mxu1 %v19931_v14 }
 0x975   : > { %8003 = vmatmul.mubr.bf16.gmra.mrb[88].mxu0 %v17122_v62  ;;  %8116 = vmatmul.mubr.bf16.gmra.mrb[88].mxu1 %v17122_v62 }
 0x976   : > { %8012 = vmatprep.mubr.bf16.mxu0 %v19931_v14  ;;  %8125 = vmatprep.mubr.bf16.mxu1 %v19931_v14 }
 0x97d   : > { %8013 = vmatmul.mubr.bf16.gmra.mrb[92].mxu0 %v17315_v56  ;;  %8126 = vmatmul.mubr.bf16.gmra.mrb[92].mxu1 %v17315_v56 }
 0x97e   : > { %8168 = vmatprep.mubr.bf16.mxu0 %v19931_v14  ;;  %8281 = vmatprep.mubr.bf16.mxu1 %v19931_v14 }
 0x985   : > { %8169 = vmatmul.mubr.bf16.vlgmr.msra.gmra.mrb[96].mxu0 %v20076_v52  ;;  %8282 = vmatmul.mubr.bf16.vlgmr.msra.gmra.mrb[96].mxu1 %v20076_v52  ;;  %v17746_v52 = vld [vmem:[%s19686_s5 + $0x44] ss:$16 sps:$4 sm:$0xff]  }
 0x986   : > { %8861 = vmatpush1.bf16.msra.mxu0 %v17715_v25  ;;  %8178 = vmatprep.mubr.bf16.mxu0 %v19931_v14  ;;  %20082 = vst [vmem:[#allocation18_spill] sm:$0xff] %v17746_v52 }
 0x987   : > { %8291 = vmatprep.mubr.bf16.mxu1 %v19931_v14  ;;  %8862 = vmatprep.subr.bf16.mxu0 %v17720_v2 }
 0x988   : > { %8904 = vmatpush1.bf16.msra.mxu1 %v17725_v40 }
 0x989   : > { %8905 = vmatprep.subr.bf16.mxu1 %v17732_v59 }
 0x98a   : > { %8863 = vmatpush1.bf16.msra.mxu0 %v17739_v4 }
 0x98b   : > { %8864 = vmatprep.subr.bf16.mxu0 %v17746_v52 }
 0x98c   : > { %8906 = vmatpush1.bf16.msra.mxu1 %v17752_v49 }
 0x98d   : > { %8179 = vmatmul.mubr.bf16.gmra.mrb[100].mxu0 %v20077_v31  ;;  %8292 = vmatmul.mubr.bf16.gmra.mrb[100].mxu1 %v20077_v31  ;;  %v17835_v31 = vld [vmem:[%s19686_s5 + $0xac] ss:$16 sps:$4 sm:$0xff]  }
 0x98e   : > { %8188 = vmatprep.mubr.bf16.mxu0 %v19931_v14  ;;  %8301 = vmatprep.mubr.bf16.mxu1 %v19931_v14  ;;  %20096 = vst [vmem:[#allocation31_spill] sm:$0xff] %v17835_v31 }
 0x98f   : > { %8865 = vmatpush1.bf16.msra.mxu0 %v17760_v26  ;;  %8907 = vmatprep.subr.bf16.mxu1 %v17765_v50 }
 0x990   : > { %8866 = vmatprep.subr.bf16.mxu0 %v17771_v16  ;;  %8908 = vmatpush1.bf16.msra.mxu1 %v17776_v21 }
 0x991   : > { %8909 = vmatprep.subr.bf16.mxu1 %v17783_v20 }
 0x993   : > { %8867 = vmatpush1.bf16.msra.mxu0 %v17792_v57 }
 0x994   : > { %8868 = vmatprep.subr.bf16.mxu0 %v17799_v51  ;;  %8910 = vmatpush1.bf16.msra.mxu1 %v17804_v7 }
 0x995   : > { %8189 = vmatmul.mubr.bf16.gmra.mrb[104].mxu0 %v20078_v60  ;;  %8302 = vmatmul.mubr.bf16.gmra.mrb[104].mxu1 %v20078_v60  ;;  %v17975_v60 = vld [vmem:[%s19686_s5 + $0x144] ss:$16 sps:$4 sm:$0xff]  }
 0x996   : > { %8198 = vmatprep.mubr.bf16.mxu0 %v19931_v14  ;;  %8311 = vmatprep.mubr.bf16.mxu1 %v19931_v14 }
 0x997   : > { %8869 = vmatpush1.bf16.msra.mxu0 %v17811_v0  ;;  %8911 = vmatprep.subr.bf16.mxu1 %v17816_v19 }
 0x998   : > { %8870 = vmatprep.subr.bf16.mxu0 %v17823_v13  ;;  %8912 = vmatpush1.bf16.msra.mxu1 %v17828_v29 }
 0x999   : > { %8913 = vmatprep.subr.bf16.mxu1 %v17835_v31 }
 0x99b   : > { %8871 = vmatpush1.bf16.msra.mxu0 %v17844_v6 }
 0x99c   : > { %8872 = vmatprep.subr.bf16.mxu0 %v17851_v15  ;;  %8914 = vmatpush1.bf16.msra.mxu1 %v17856_v17 }
 0x99d   : > { %8199 = vmatmul.mubr.bf16.gmra.mrb[108].mxu0 %v20079_v41  ;;  %8312 = vmatmul.mubr.bf16.gmra.mrb[108].mxu1 %v20079_v41  ;;  %v18078_v41 = vld [vmem:[%s19686_s5 + $0x1cc] ss:$16 sps:$4 sm:$0xff]  }
 0x99e   : > { %8208 = vmatprep.mubr.bf16.mxu0 %v19931_v14  ;;  %8321 = vmatprep.mubr.bf16.mxu1 %v19931_v14  ;;  %20109 = vst [vmem:[#allocation12_spill] sm:$0xff] %v18078_v41 }
 0x99f   : > { %8873 = vmatpush1.bf16.msra.mxu0 %v17863_v9  ;;  %8915 = vmatprep.subr.bf16.mxu1 %v17868_v10 }
 0x9a0   : > { %8874 = vmatprep.subr.bf16.mxu0 %v17875_v3  ;;  %8916 = vmatpush1.bf16.msra.mxu1 %v17880_v43 }
 0x9a1   : > { %8917 = vmatprep.subr.bf16.mxu1 %v17887_v8 }
 0x9a3   : > { %8875 = vmatpush1.bf16.msra.mxu0 %v17896_v30 }
 0x9a4   : > { %8918 = vmatpush1.bf16.msra.mxu1 %v17903_v37  ;;  %9155 = vmatprep.subr.bf16.mxu0 %v17908_v46 }
 0x9a5   : > { %8209 = vmatmul.mubr.bf16.gmra.mrb[112].mxu0 %v20080_v63  ;;  %8322 = vmatmul.mubr.bf16.gmra.mrb[112].mxu1 %v20080_v63  ;;  %v18102_v63 = vld [vmem:[%s19686_s5 + $0x1ec] ss:$16 sps:$4 sm:$0xff]  }
 0x9a6   : > { %8218 = vmatprep.mubr.bf16.mxu0 %v19931_v14  ;;  %8331 = vmatprep.mubr.bf16.mxu1 %v19931_v14 }
 0x9a7   : > { %9198 = vmatprep.subr.bf16.mxu1 %v17915_v5 }
 0x9ad   : > { %8219 = vmatmul.mubr.bf16.gmra.mrb[116].mxu0 %v20081_v38  ;;  %8332 = vmatmul.mubr.bf16.gmra.mrb[116].mxu1 %v20081_v38  ;;  %v18109_v38 = vld [vmem:[%s19686_s5 + $0x1e0] ss:$16 sps:$4 sm:$0xff]  }
 0x9ae   : > { %8228 = vmatprep.mubr.bf16.mxu0 %v19931_v14  ;;  %8341 = vmatprep.mubr.bf16.mxu1 %v19931_v14 }
 0x9b5   : > { %8229 = vmatmul.mubr.bf16.gmra.mrb[120].mxu0 %v17122_v62  ;;  %8342 = vmatmul.mubr.bf16.gmra.mrb[120].mxu1 %v17122_v62  ;;  %v17944_v62 = vld [vmem:[%s19686_s5 + $0x108] ss:$16 sps:$4 sm:$0xff]  }
 0x9b6   : > { %8238 = vmatprep.mubr.bf16.mxu0 %v19931_v14  ;;  %8351 = vmatprep.mubr.bf16.mxu1 %v19931_v14 }
 0x9bd   : > { %8239 = vmatmul.mubr.bf16.gmra.mrb[124].mxu0 %v17315_v56  ;;  %8352 = vmatmul.mubr.bf16.gmra.mrb[124].mxu1 %v17315_v56  ;;  %v17954_v56 = vld [vmem:[%s19686_s5 + $0x12c] ss:$16 sps:$4 sm:$0xff]  }
 0x9be   : > { %8892 = vmatprep.mubr.bf16.mxu0 %v19931_v14  ;;  %8935 = vmatprep.mubr.bf16.mxu1 %v19931_v14 }
 0x9c5   : > { %8893 = vmatmul.mubr.bf16.vlgmr.msra.gmra.mrb[64].mxu0 %v19931_v14  ;;  %8936 = vmatmul.mubr.bf16.vlgmr.msra.gmra.mrb[64].mxu1 %v19931_v14 }
 0x9c6   : > { %9156 = vmatpush1.bf16.msra.mxu0 %v17939_v12  ;;  %9199 = vmatpush1.bf16.msra.mxu1 %v17944_v62 }
 0x9c7   : > { %9157 = vmatprep.subr.bf16.mxu0 %v17949_v32  ;;  %9200 = vmatprep.subr.bf16.mxu1 %v17954_v56 }
 0x9c8   : > { %9187 = vmatprep.mubr.bf16.mxu0 %v19931_v14  ;;  %9230 = vmatprep.mubr.bf16.mxu1 %v19931_v14 }
 0x9ca   : > { %9158 = vmatpush1.bf16.msra.mxu0 %v17963_v35  ;;  %9201 = vmatpush1.bf16.msra.mxu1 %v17968_v47 }
 0x9cb   : > { %9159 = vmatprep.subr.bf16.mxu0 %v17975_v60  ;;  %9202 = vmatprep.subr.bf16.mxu1 %v17980_v36 }
 0x9ce   : > { %9160 = vmatpush1.bf16.msra.mxu0 %v17989_v61  ;;  %9203 = vmatpush1.bf16.msra.mxu1 %v17994_v53 }
 0x9cf   : > { %9161 = vmatprep.subr.bf16.mxu0 %v18001_v23  ;;  %9204 = vmatprep.subr.bf16.mxu1 %v18006_v48 }
 0x9d2   : > { %9162 = vmatpush1.bf16.msra.mxu0 %v18013_v34  ;;  %9205 = vmatpush1.bf16.msra.mxu1 %v18018_v55 }
 0x9d3   : > { %9163 = vmatprep.subr.bf16.mxu0 %v18025_v45  ;;  %9206 = vmatprep.subr.bf16.mxu1 %v18030_v58 }
 0x9d6   : > { %9164 = vmatpush1.bf16.msra.mxu0 %v18037_v39  ;;  %9207 = vmatpush1.bf16.msra.mxu1 %v18042_v54 }
 0x9d7   : > { %9165 = vmatprep.subr.bf16.mxu0 %v18049_v1  ;;  %9208 = vmatprep.subr.bf16.mxu1 %v18054_v27 }
 0x9da   : > { %9166 = vmatpush1.bf16.msra.mxu0 %v18061_v44  ;;  %9209 = vmatpush1.bf16.msra.mxu1 %v18066_v24 }
 0x9db   : > { %9167 = vmatprep.subr.bf16.mxu0 %v18073_v11  ;;  %9210 = vmatprep.subr.bf16.mxu1 %v18078_v41  ;;  %v18114_v41 = vld [vmem:[%s19686_s5 + $0x1e8] ss:$16 sps:$4 sm:$0xff]  }
 0x9de   : > { %9168 = vmatpush1.bf16.msra.mxu0 %v18085_v33  ;;  %9211 = vmatpush1.bf16.msra.mxu1 %v18090_v22 }
 0x9df   : > { %9169 = vmatprep.subr.bf16.mxu0 %v18097_v42  ;;  %9212 = vmatprep.subr.bf16.mxu1 %v18102_v63 }
 0x9e2   : > { %9170 = vmatpush1.bf16.msra.mxu0 %v18109_v38  ;;  %9213 = vmatpush1.bf16.msra.mxu1 %v18114_v41 }
 0x9e3   : > { %9334 = vmatprep.subr.bf16.mxu0 %v17687_v28  ;;  %9377 = vmatprep.subr.bf16.mxu1 %v17692_v18 }
 0x9e5   : > { %9188 = vmatmul.mubr.bf16.vlgmr.msra.gmra.mrb[124].mxu0 %v19931_v14  ;;  %9231 = vmatmul.mubr.bf16.vlgmr.msra.gmra.mrb[124].mxu1 %v19931_v14 }
 0x9e6   : > { %9335 = vmatpush1.bf16.msra.mxu0 %v17715_v25  ;;  %9378 = vmatpush1.bf16.msra.mxu1 %v17725_v40 }
 0x9e7   : > { %9336 = vmatprep.subr.bf16.mxu0 %v17720_v2  ;;  %9379 = vmatprep.subr.bf16.mxu1 %v17732_v59 }
 0x9e8   : > { %9366 = vmatprep.mubr.bf16.mxu0 %v19931_v14  ;;  %9409 = vmatprep.mubr.bf16.mxu1 %v19931_v14 }
 0x9ea   : > { %9337 = vmatpush1.bf16.msra.mxu0 %v17739_v4  ;;  %9380 = vmatpush1.bf16.msra.mxu1 %v17752_v49 }
 0x9eb   : > { %9338 = vmatprep.subr.bf16.mxu0 %v17746_v52  ;;  %9381 = vmatprep.subr.bf16.mxu1 %v17765_v50 }
 0x9ee   : > { %9339 = vmatpush1.bf16.msra.mxu0 %v17760_v26  ;;  %9382 = vmatpush1.bf16.msra.mxu1 %v17776_v21 }
 0x9ef   : > { %9340 = vmatprep.subr.bf16.mxu0 %v17771_v16  ;;  %9383 = vmatprep.subr.bf16.mxu1 %v17783_v20 }
 0x9f2   : > { %9341 = vmatpush1.bf16.msra.mxu0 %v17792_v57  ;;  %9384 = vmatpush1.bf16.msra.mxu1 %v17804_v7 }
 0x9f3   : > { %9342 = vmatprep.subr.bf16.mxu0 %v17799_v51  ;;  %9385 = vmatprep.subr.bf16.mxu1 %v17816_v19 }
 0x9f6   : > { %9343 = vmatpush1.bf16.msra.mxu0 %v17811_v0  ;;  %9386 = vmatpush1.bf16.msra.mxu1 %v17828_v29 }
 0x9f7   : > { %9344 = vmatprep.subr.bf16.mxu0 %v17823_v13  ;;  %9387 = vmatprep.subr.bf16.mxu1 %v17835_v31 }
 0x9fa   : > { %9345 = vmatpush1.bf16.msra.mxu0 %v17844_v6  ;;  %9388 = vmatpush1.bf16.msra.mxu1 %v17856_v17 }
 0x9fb   : > { %9346 = vmatprep.subr.bf16.mxu0 %v17851_v15  ;;  %9389 = vmatprep.subr.bf16.mxu1 %v17868_v10  ;;  %v18161_v10 = vld [vmem:[%s19687_s6] sm:$0xff] }
 0x9fe   : > { %9347 = vmatpush1.bf16.msra.mxu0 %v17863_v9  ;;  %9390 = vmatpush1.bf16.msra.mxu1 %v17880_v43  ;;  %v20110_v9 = vld [vmem:[#allocation8_spill] sm:$0xff] }
 0x9ff   : > { %9348 = vmatprep.subr.bf16.mxu0 %v17875_v3  ;;  %9391 = vmatprep.subr.bf16.mxu1 %v17887_v8  ;;  %v20111_v15 = vsub.s32 0, %v20110_v9  ;;  %v20113_v8 = vsub.s32 1, %v20110_v9  ;;  %v20117_v16 = vsub.s32 3, %v20110_v9  ;;  %v20125_v49 = vsub.s32 7, %v20110_v9 }
 0xa01   : > { %v18166_v43 = vrot.slane %v18161_v10, %v20111_v15 }
 0xa02   : > { %9349 = vmatpush1.bf16.msra.mxu0 %v17896_v30  ;;  %9392 = vmatpush1.bf16.msra.mxu1 %v17903_v37  ;;  %v18171_v30 = vrot.slane %v18161_v10, %v20113_v8 }
 0xa03   : > { %9437 = vmatprep.subr.bf16.mxu0 %v17908_v46  ;;  %9480 = vmatprep.subr.bf16.mxu1 %v17915_v5  ;;  %20112 = vst [vmem:[#allocation16_spill] sm:$0xff] %v18166_v43  ;;  %v20115_v5 = vsub.s32 2, %v20110_v9 }
 0xa04   : > { %20114 = vst [vmem:[#allocation13_spill] sm:$0xff] %v18171_v30 }
 0xa05   : > { %v18177_v17 = vrot.slane %v18161_v10, %v20115_v5 }
 0xa07   : > { %20116 = vst [vmem:[#allocation19_spill] sm:$0xff] %v18177_v17 }
 0xa98   : > { %v8894_v37 = vpop.f32.mrb[64].mxu0  ;;  %v8937_v3 = vpop.f32.mrb[64].mxu1 }
 0xa99   : > { %v12870_v46 = vadd.f32 %v8894_v37, %v18166_v43  ;;  %v8896_v6 = vpop.f32.mrb[65].mxu0  ;;  %v8939_v31 = vpop.f32.mrb[65].mxu1  ;;  %v12902_v37 = vadd.f32 %v8937_v3, %v18177_v17 }
 0xa9a   : > { %v12871_v13 = vadd.f32 %v8896_v6, %v18171_v30  ;;  %v8898_v15 = vpop.f32.mrb[66].mxu0  ;;  %v8941_v29 = vpop.f32.mrb[66].mxu1  ;;  %v18186_v6 = vrot.slane %v18161_v10, %v20117_v16 }
 0xa9b   : > { %v9249_v0 = vmul.f32 0.5, %v12870_v46  ;;  %v12872_v19 = vadd.f32 %v8898_v15, %v18166_v43  ;;  %v8900_v8 = vpop.f32.mrb[67].mxu0  ;;  %v8943_v51 = vpop.f32.mrb[67].mxu1  ;;  %v12904_v46 = vadd.f32 %v8941_v29, %v18177_v17 }
 0xa9c   : > { %v9257_v7 = vmul.f32 0.5, %v12871_v13  ;;  %v12873_v57 = vadd.f32 %v8900_v8, %v18171_v30  ;;  %20118 = vst [vmem:[#allocation15_spill] sm:$0xff] %v18186_v6  ;;  %v12903_v13 = vadd.f32 %v8939_v31, %v18186_v6 }
 0xa9d   : > { %14233 = vtanh.f32 %v9249_v0  ;;  %v9250_v20 = vmul.f32 0.5, %v12872_v19  ;;  %v12905_v0 = vadd.f32 %v8943_v51, %v18186_v6 }
 0xa9e   : > { %14235 = vtanh.f32 %v9257_v7  ;;  %v9258_v5 = vmul.f32 0.5, %v12873_v57  ;;  %v9267_v7 = vmul.f32 0.5, %v12903_v13 }
 0xa9f   : > { %14237 = vtanh.f32 %v9250_v20  ;;  %v9268_v8 = vmul.f32 0.5, %v12905_v0 }
 0xaa0   : > { %14239 = vtanh.f32 %v12902_v37 }
 0xaa1   : > { %14241 = vtanh.f32 %v9258_v5 }
 0xaa2   : > { %14243 = vtanh.f32 %v12904_v46 }
 0xaa3   : > { %14245 = vtanh.f32 %v9267_v7 }
 0xaa4   : > { %14247 = vtanh.f32 %v9268_v8  ;;  %v20124_v8 = vsub.s32 6, %v20110_v9 }
 0xaa7   : > { %v14234_v15 = vpop.eup %14233 }
 0xaa8   : > { %v14236_v3 = vpop.eup %14235  ;;  %v9253_v19 = vmul.f32 0.5, %v14234_v15 }
 0xaa9   : > { %v9261_v57 = vmul.f32 0.5, %v14236_v3  ;;  %v14238_v30 = vpop.eup %14237 }
 0xaaa   : > { %v9255_v43 = vadd.f32 0.5, %v9253_v19  ;;  %v14240_v16 = vpop.eup %14239  ;;  %v9254_v20 = vmul.f32 0.5, %v14238_v30  ;;  %v20121_v30 = vsub.s32 4, %v20110_v9 }
 0xaab   : > { %v9263_v21 = vadd.f32 0.5, %v9261_v57  ;;  %v14242_v26 = vpop.eup %14241 }
 0xaac   : > { %v9277_v29 = vmul.f32 %v14240_v16, %v9255_v43  ;;  %v9256_v5 = vadd.f32 0.5, %v9254_v20  ;;  %v9262_v31 = vmul.f32 0.5, %v14242_v26  ;;  %v14244_v46 = vpop.eup %14243  ;;  %v18200_v43 = vrot.slane %v18161_v10, %v20121_v30 }
 0xaad   : > { %v9275_v37 = vmul.f32 0.0, %v9263_v21  ;;  %v14246_v21 = vpop.eup %14245  ;;  %v20123_v26 = vsub.s32 5, %v20110_v9  ;;  %v18211_v16 = vrot.slane %v18161_v10, %v20124_v8 }
 0xaae   : > { %v9264_v6 = vadd.f32 0.5, %v9262_v31  ;;  %v9278_v15 = vmul.f32 %v14244_v46, %v9256_v5  ;;  %20122 = vst [vmem:[#allocation41_spill] sm:$0xff] %v18200_v43  ;;  %v14248_v19 = vpop.eup %14247 }
 0xaaf   : > { %v18191_v51 = vadd.f32 %v9277_v29, %v9275_v37  ;;  %v18205_v3 = vrot.slane %v18161_v10, %v20123_v26  ;;  %v9271_v37 = vmul.f32 0.5, %v14246_v21  ;;  %v9272_v5 = vmul.f32 0.5, %v14248_v19 }
 0xab0   : > { %v9276_v13 = vmul.f32 0.0, %v9264_v6 }
 0xab1   : > { %20119 = vst [vmem:[#allocation22_spill] sm:$0xff] %v18191_v51  ;;  %14249 = vtanh.f32 %v18191_v51  ;;  %v9273_v52 = vadd.f32 0.5, %v9271_v37  ;;  %v9274_v21 = vadd.f32 0.5, %v9272_v5 }
 0xab2   : > { %v18194_v0 = vadd.f32 %v9278_v15, %v9276_v13 }
 0xab4   : > { %20120 = vst [vmem:[#allocation8_spill] sm:$0xff] %v18194_v0  ;;  %14251 = vtanh.f32 %v18194_v0 }
 0xab8   : > { %v9189_v7 = vpop.f32.mrb[124].mxu0  ;;  %v9232_v6 = vpop.f32.mrb[124].mxu1 }
 0xab9   : > { %v12962_v57 = vadd.f32 %v9189_v7, %v18200_v43  ;;  %v9191_v20 = vpop.f32.mrb[125].mxu0  ;;  %v9234_v29 = vpop.f32.mrb[125].mxu1  ;;  %v12994_v8 = vadd.f32 %v9232_v6, %v18211_v16 }
 0xaba   : > { %v12963_v31 = vadd.f32 %v9191_v20, %v18205_v3  ;;  %v9193_v46 = vpop.f32.mrb[126].mxu0  ;;  %v9236_v15 = vpop.f32.mrb[126].mxu1 }
 0xabb   : > { %v9285_v13 = vmul.f32 0.5, %v12962_v57  ;;  %v12964_v30 = vadd.f32 %v9193_v46, %v18200_v43  ;;  %v9195_v26 = vpop.f32.mrb[127].mxu0  ;;  %v9238_v0 = vpop.f32.mrb[127].mxu1  ;;  %v18220_v57 = vrot.slane %v18161_v10, %v20125_v49 }
 0xabc   : > { %v9293_v51 = vmul.f32 0.5, %v12963_v31  ;;  %v12965_v7 = vadd.f32 %v9195_v26, %v18205_v3  ;;  %v14250_v17 = vpop.eup %14249 }
 0xabd   : > { %14253 = vtanh.f32 %v9285_v13  ;;  %v9286_v50 = vmul.f32 0.5, %v12964_v30  ;;  %v18222_v46 = vmul.f32 %v14250_v17, %v9273_v52  ;;  %v12996_v13 = vadd.f32 %v9236_v15, %v18211_v16 }
 0xabe   : > { %14255 = vtanh.f32 %v9293_v51  ;;  %v9294_v19 = vmul.f32 0.5, %v12965_v7  ;;  %v14252_v20 = vpop.eup %14251  ;;  %v12995_v51 = vadd.f32 %v9234_v29, %v18220_v57  ;;  %v12997_v49 = vadd.f32 %v9238_v0, %v18220_v57 }
 0xabf   : > { %20126 = vst [vmem:[#allocation42_spill] sm:$0xff] %v18222_v46  ;;  %v18224_v31 = vmul.f32 %v14252_v20, %v9274_v21  ;;  %14257 = vtanh.f32 %v9286_v50 }
 0xac0   : > { %14259 = vtanh.f32 %v12994_v8  ;;  %v9303_v9 = vmul.f32 0.5, %v12995_v51  ;;  %v9304_v29 = vmul.f32 0.5, %v12997_v49 }
 0xac1   : > { %20127 = vst [vmem:[#allocation43_spill] sm:$0xff] %v18224_v31  ;;  %14261 = vtanh.f32 %v9294_v19  ;;  %v9333_v6 = vpack.c.bf16 %v18224_v31, %v18222_v46 }
 0xac2   : > { %14263 = vtanh.f32 %v12996_v13 }
 0xac3   : > { %9367 = vmatmul.mubr.bf16.vlgmr.msra.gmra.mrb[68].mxu0 %v9333_v6  ;;  %9410 = vmatmul.mubr.bf16.vlgmr.msra.gmra.mrb[68].mxu1 %v9333_v6  ;;  %14265 = vtanh.f32 %v9303_v9 }
 0xac4   : > { %9438 = vmatpush1.bf16.msra.mxu0 %v17939_v12  ;;  %9481 = vmatpush1.bf16.msra.mxu1 %v17944_v62  ;;  %14267 = vtanh.f32 %v9304_v29  ;;  %v20128_v29 = vld [vmem:[#allocation12_spill] sm:$0xff] }
 0xac5   : > { %9439 = vmatprep.subr.bf16.mxu0 %v17949_v32  ;;  %9482 = vmatprep.subr.bf16.mxu1 %v17954_v56 }
 0xac6   : > { %9469 = vmatprep.mubr.bf16.mxu0 %v19931_v14  ;;  %9512 = vmatprep.mubr.bf16.mxu1 %v19931_v14 }
 0xac7   : > { %v14254_v52 = vpop.eup %14253 }
 0xac8   : > { %v14256_v50 = vpop.eup %14255  ;;  %v9289_v17 = vmul.f32 0.5, %v14254_v52  ;;  %9440 = vmatpush1.bf16.msra.mxu0 %v17963_v35  ;;  %9483 = vmatpush1.bf16.msra.mxu1 %v17968_v47 }
 0xac9   : > { %v9297_v10 = vmul.f32 0.5, %v14256_v50  ;;  %v14258_v0 = vpop.eup %14257  ;;  %9441 = vmatprep.subr.bf16.mxu0 %v17975_v60  ;;  %9484 = vmatprep.subr.bf16.mxu1 %v17980_v36 }
 0xaca   : > { %v9291_v37 = vadd.f32 0.5, %v9289_v17  ;;  %v14260_v5 = vpop.eup %14259  ;;  %v9290_v30 = vmul.f32 0.5, %v14258_v0 }
 0xacb   : > { %v9299_v15 = vadd.f32 0.5, %v9297_v10  ;;  %v14262_v26 = vpop.eup %14261 }
 0xacc   : > { %v9313_v7 = vmul.f32 %v14260_v5, %v9291_v37  ;;  %v9292_v21 = vadd.f32 0.5, %v9290_v30  ;;  %v9298_v19 = vmul.f32 0.5, %v14262_v26  ;;  %9442 = vmatpush1.bf16.msra.mxu0 %v17989_v61  ;;  %9485 = vmatpush1.bf16.msra.mxu1 %v17994_v53  ;;  %v14264_v20 = vpop.eup %14263 }
 0xacd   : > { %v9311_v8 = vmul.f32 0.0, %v9299_v15  ;;  %9443 = vmatprep.subr.bf16.mxu0 %v18001_v23  ;;  %9486 = vmatprep.subr.bf16.mxu1 %v18006_v48  ;;  %v14266_v50 = vpop.eup %14265 }
 0xace   : > { %v9300_v6 = vadd.f32 0.5, %v9298_v19  ;;  %v9314_v51 = vmul.f32 %v14264_v20, %v9292_v21  ;;  %v14268_v17 = vpop.eup %14267  ;;  %v9307_v9 = vmul.f32 0.5, %v14266_v50  ;;  %v20134_v21 = vld [vmem:[#allocation10_spill] sm:$0xff]  ;;  %v20140_v20 = vld [vmem:[#allocation25_spill] sm:$0xff]  ;;  %v20145_v50 = vld [vmem:[#allocation31_spill] sm:$0xff] }
 0xacf   : > { %v18245_v13 = vadd.f32 %v9313_v7, %v9311_v8  ;;  %v9308_v10 = vmul.f32 0.5, %v14268_v17  ;;  %v20131_v8 = vld [vmem:[#allocation9_spill] sm:$0xff]  ;;  %v20139_v19 = vld [vmem:[#allocation26_spill] sm:$0xff]  ;;  %v20146_v17 = vld [vmem:[#allocation32_spill] sm:$0xff] }
 0xad0   : > { %v9312_v49 = vmul.f32 0.0, %v9300_v6  ;;  %9444 = vmatpush1.bf16.msra.mxu0 %v18013_v34  ;;  %9487 = vmatpush1.bf16.msra.mxu1 %v18018_v55  ;;  %v9309_v37 = vadd.f32 0.5, %v9307_v9  ;;  %v20142_v6 = vld [vmem:[#allocation27_spill] sm:$0xff] }
 0xad1   : > { %9445 = vmatprep.subr.bf16.mxu0 %v18025_v45  ;;  %9488 = vmatprep.subr.bf16.mxu1 %v18030_v58  ;;  %14269 = vtanh.f32 %v18245_v13  ;;  %v9310_v5 = vadd.f32 0.5, %v9308_v10  ;;  %v20147_v9 = vld [vmem:[#allocation35_spill] sm:$0xff]  ;;  %v20148_v10 = vld [vmem:[#allocation34_spill] sm:$0xff] }
 0xad2   : > { %v18252_v52 = vadd.f32 %v9314_v51, %v9312_v49  ;;  %v20143_v51 = vld [vmem:[#allocation30_spill] sm:$0xff]  ;;  %v20144_v49 = vld [vmem:[#allocation29_spill] sm:$0xff] }
 0xad4   : > { %14271 = vtanh.f32 %v18252_v52  ;;  %9446 = vmatpush1.bf16.msra.mxu0 %v18037_v39  ;;  %9489 = vmatpush1.bf16.msra.mxu1 %v18042_v54 }
 0xad5   : > { %9447 = vmatprep.subr.bf16.mxu0 %v18049_v1  ;;  %9490 = vmatprep.subr.bf16.mxu1 %v18054_v27 }
 0xad8   : > { %9448 = vmatpush1.bf16.msra.mxu0 %v18061_v44  ;;  %9491 = vmatpush1.bf16.msra.mxu1 %v18066_v24 }
 0xad9   : > { %9449 = vmatprep.subr.bf16.mxu0 %v18073_v11  ;;  %9492 = vmatprep.subr.bf16.mxu1 %v20128_v29 }
 0xadb   : > { %v14270_v0 = vpop.eup %14269 }
 0xadc   : > { %9450 = vmatpush1.bf16.msra.mxu0 %v18085_v33  ;;  %9493 = vmatpush1.bf16.msra.mxu1 %v18090_v22  ;;  %v18267_v30 = vmul.f32 %v14270_v0, %v9309_v37  ;;  %v20149_v0 = vld [vmem:[#allocation38_spill] sm:$0xff]  ;;  %v20150_v37 = vld [vmem:[#allocation36_spill] sm:$0xff] }
 0xadd   : > { %9451 = vmatprep.subr.bf16.mxu0 %v18097_v42  ;;  %9494 = vmatprep.subr.bf16.mxu1 %v18102_v63 }
 0xade   : > { %v14272_v15 = vpop.eup %14271  ;;  %20129 = vst [vmem:[#allocation12_spill] sm:$0xff] %v18267_v30 }
 0xadf   : > { %v18269_v26 = vmul.f32 %v14272_v15, %v9310_v5  ;;  %v20151_v5 = vld [vmem:[#allocation40_spill] sm:$0xff]  ;;  %v20152_v15 = vld [vmem:[#allocation39_spill] sm:$0xff] }
 0xae0   : > { %9452 = vmatpush1.bf16.msra.mxu0 %v18109_v38  ;;  %9495 = vmatpush1.bf16.msra.mxu1 %v18114_v41 }
 0xae1   : > { %20130 = vst [vmem:[#allocation44_spill] sm:$0xff] %v18269_v26  ;;  %v9436_v7 = vpack.c.bf16 %v18269_v26, %v18267_v30  ;;  %9616 = vmatprep.subr.bf16.mxu0 %v17687_v28  ;;  %9659 = vmatprep.subr.bf16.mxu1 %v17692_v18  ;;  %v20132_v28 = vld [vmem:[#allocation18_spill] sm:$0xff]  ;;  %v20133_v18 = vld [vmem:[#allocation11_spill] sm:$0xff] }
 0xae3   : > { %9470 = vmatmul.mubr.bf16.vlgmr.msra.gmra.mrb[120].mxu0 %v9436_v7  ;;  %9513 = vmatmul.mubr.bf16.vlgmr.msra.gmra.mrb[120].mxu1 %v9436_v7  ;;  %v20153_v7 = vld [vmem:[#allocation17_spill] sm:$0xff] }
 0xae4   : > { %9617 = vmatpush1.bf16.msra.mxu0 %v17715_v25  ;;  %9660 = vmatpush1.bf16.msra.mxu1 %v17725_v40  ;;  %v20135_v25 = vld [vmem:[#allocation21_spill] sm:$0xff]  ;;  %v20136_v40 = vld [vmem:[#allocation20_spill] sm:$0xff] }
 0xae5   : > { %9618 = vmatprep.subr.bf16.mxu0 %v17720_v2  ;;  %9661 = vmatprep.subr.bf16.mxu1 %v17732_v59  ;;  %v20137_v2 = vld [vmem:[#allocation23_spill] sm:$0xff]  ;;  %v20138_v59 = vld [vmem:[#allocation24_spill] sm:$0xff] }
 0xae6   : > { %9648 = vmatprep.mubr.bf16.mxu0 %v19931_v14  ;;  %9691 = vmatprep.mubr.bf16.mxu1 %v19931_v14 }
 0xae8   : > { %9619 = vmatpush1.bf16.msra.mxu0 %v17739_v4  ;;  %9662 = vmatpush1.bf16.msra.mxu1 %v20131_v8  ;;  %v20141_v4 = vld [vmem:[#allocation28_spill] sm:$0xff]  ;;  %v20154_v8 = vld [vmem:[#allocation37_spill] sm:$0xff] }
 0xae9   : > { %9620 = vmatprep.subr.bf16.mxu0 %v20132_v28  ;;  %9663 = vmatprep.subr.bf16.mxu1 %v20133_v18  ;;  %v20155_v28 = vld [vmem:[#allocation14_spill] sm:$0xff]  ;;  %v20156_v18 = vld [vmem:[#allocation33_spill] sm:$0xff] }
 0xaec   : > { %9621 = vmatpush1.bf16.msra.mxu0 %v20134_v21  ;;  %9664 = vmatpush1.bf16.msra.mxu1 %v20135_v25  ;;  %v20157_v21 = vld [vmem:[#allocation7_spill] sm:$0xff] }
 0xaed   : > { %9622 = vmatprep.subr.bf16.mxu0 %v20136_v40  ;;  %9665 = vmatprep.subr.bf16.mxu1 %v20137_v2  ;;  %v20158_v2 = vld [vmem:[#allocation16_spill] sm:$0xff] }
 0xaf0   : > { %9623 = vmatpush1.bf16.msra.mxu0 %v20138_v59  ;;  %9666 = vmatpush1.bf16.msra.mxu1 %v20139_v19 }
 0xaf1   : > { %9624 = vmatprep.subr.bf16.mxu0 %v20140_v20  ;;  %9667 = vmatprep.subr.bf16.mxu1 %v20141_v4  ;;  %v20159_v4 = vld [vmem:[#allocation13_spill] sm:$0xff] }
 0xaf4   : > { %9625 = vmatpush1.bf16.msra.mxu0 %v20142_v6  ;;  %9668 = vmatpush1.bf16.msra.mxu1 %v20143_v51 }
 0xaf5   : > { %9626 = vmatprep.subr.bf16.mxu0 %v20144_v49  ;;  %9669 = vmatprep.subr.bf16.mxu1 %v20145_v50 }
 0xaf8   : > { %9627 = vmatpush1.bf16.msra.mxu0 %v20146_v17  ;;  %9670 = vmatpush1.bf16.msra.mxu1 %v20147_v9 }
 0xaf9   : > { %9628 = vmatprep.subr.bf16.mxu0 %v20148_v10  ;;  %9671 = vmatprep.subr.bf16.mxu1 %v20149_v0 }
 0xafc   : > { %9629 = vmatpush1.bf16.msra.mxu0 %v20150_v37  ;;  %9672 = vmatpush1.bf16.msra.mxu1 %v20151_v5  ;;  %v20160_v5 = vld [vmem:[#allocation19_spill] sm:$0xff] }
 0xafd   : > { %9630 = vmatprep.subr.bf16.mxu0 %v20152_v15  ;;  %9673 = vmatprep.subr.bf16.mxu1 %v20153_v7 }
 0xb00   : > { %9631 = vmatpush1.bf16.msra.mxu0 %v20154_v8  ;;  %9674 = vmatpush1.bf16.msra.mxu1 %v20155_v28 }
 0xb01   : > { %9719 = vmatprep.subr.bf16.mxu0 %v20156_v18  ;;  %9762 = vmatprep.subr.bf16.mxu1 %v20157_v21  ;;  %v20161_v18 = vld [vmem:[#allocation15_spill] sm:$0xff] }
 0xb96   : > { %v9368_v25 = vpop.f32.mrb[68].mxu0  ;;  %v9411_v40 = vpop.f32.mrb[68].mxu1 }
 0xb97   : > { %v12874_v59 = vadd.f32 %v9368_v25, %v20158_v2  ;;  %v9370_v19 = vpop.f32.mrb[69].mxu0  ;;  %v9413_v20 = vpop.f32.mrb[69].mxu1  ;;  %v12906_v15 = vadd.f32 %v9411_v40, %v20160_v5 }
 0xb98   : > { %v12875_v6 = vadd.f32 %v9370_v19, %v20159_v4  ;;  %v9372_v51 = vpop.f32.mrb[70].mxu0  ;;  %v9415_v49 = vpop.f32.mrb[70].mxu1  ;;  %v12907_v21 = vadd.f32 %v9413_v20, %v20161_v18 }
 0xb99   : > { %v9531_v50 = vmul.f32 0.5, %v12874_v59  ;;  %v12876_v17 = vadd.f32 %v9372_v51, %v20158_v2  ;;  %v9374_v9 = vpop.f32.mrb[71].mxu0  ;;  %v9417_v10 = vpop.f32.mrb[71].mxu1  ;;  %v12908_v28 = vadd.f32 %v9415_v49, %v20160_v5 }
 0xb9a   : > { %v9539_v0 = vmul.f32 0.5, %v12875_v6  ;;  %v12877_v37 = vadd.f32 %v9374_v9, %v20159_v4  ;;  %v12909_v25 = vadd.f32 %v9417_v10, %v20161_v18  ;;  %v9549_v51 = vmul.f32 0.5, %v12907_v21 }
 0xb9b   : > { %14273 = vtanh.f32 %v9531_v50  ;;  %v9532_v7 = vmul.f32 0.5, %v12876_v17 }
 0xb9c   : > { %14275 = vtanh.f32 %v9539_v0  ;;  %v9540_v8 = vmul.f32 0.5, %v12877_v37  ;;  %v9550_v9 = vmul.f32 0.5, %v12909_v25 }
 0xb9d   : > { %14277 = vtanh.f32 %v9532_v7 }
 0xb9e   : > { %14279 = vtanh.f32 %v12906_v15  ;;  %v20162_v15 = vld [vmem:[#allocation22_spill] sm:$0xff] }
 0xb9f   : > { %14281 = vtanh.f32 %v9540_v8 }
 0xba0   : > { %14283 = vtanh.f32 %v12908_v28 }
 0xba1   : > { %14285 = vtanh.f32 %v9549_v51 }
 0xba2   : > { %14287 = vtanh.f32 %v9550_v9 }
 0xba5   : > { %v14274_v59 = vpop.eup %14273 }
 0xba6   : > { %v14276_v19 = vpop.eup %14275  ;;  %v9535_v6 = vmul.f32 0.5, %v14274_v59 }
 0xba7   : > { %v9543_v50 = vmul.f32 0.5, %v14276_v19  ;;  %v14278_v40 = vpop.eup %14277  ;;  %v20163_v19 = vld [vmem:[#allocation8_spill] sm:$0xff] }
 0xba8   : > { %v9537_v17 = vadd.f32 0.5, %v9535_v6  ;;  %v14280_v0 = vpop.eup %14279  ;;  %v9536_v7 = vmul.f32 0.5, %v14278_v40 }
 0xba9   : > { %v9545_v37 = vadd.f32 0.5, %v9543_v50  ;;  %v14282_v26 = vpop.eup %14281 }
 0xbaa   : > { %v9559_v49 = vmul.f32 %v14280_v0, %v9537_v17  ;;  %v9538_v20 = vadd.f32 0.5, %v9536_v7  ;;  %v9544_v28 = vmul.f32 0.5, %v14282_v26  ;;  %v14284_v10 = vpop.eup %14283 }
 0xbab   : > { %v9557_v8 = vmul.f32 %v9545_v37, %v20162_v15  ;;  %v14286_v50 = vpop.eup %14285 }
 0xbac   : > { %v9546_v59 = vadd.f32 0.5, %v9544_v28  ;;  %v9560_v21 = vmul.f32 %v14284_v10, %v9538_v20  ;;  %v14288_v51 = vpop.eup %14287  ;;  %v9553_v37 = vmul.f32 0.5, %v14286_v50 }
 0xbad   : > { %v18320_v30 = vadd.f32 %v9559_v49, %v9557_v8  ;;  %v9554_v7 = vmul.f32 0.5, %v14288_v51 }
 0xbae   : > { %v9558_v25 = vmul.f32 %v9546_v59, %v20163_v19  ;;  %v9555_v46 = vadd.f32 0.5, %v9553_v37 }
 0xbaf   : > { %14289 = vtanh.f32 %v18320_v30  ;;  %v9556_v50 = vadd.f32 0.5, %v9554_v7 }
 0xbb0   : > { %v18324_v6 = vadd.f32 %v9560_v21, %v9558_v25 }
 0xbb2   : > { %20164 = vst [vmem:[#allocation9_spill] sm:$0xff] %v18324_v6  ;;  %14291 = vtanh.f32 %v18324_v6 }
 0xbb6   : > { %v9471_v40 = vpop.f32.mrb[120].mxu0  ;;  %v9514_v17 = vpop.f32.mrb[120].mxu1 }
 0xbb7   : > { %v12958_v26 = vadd.f32 %v9471_v40, %v18200_v43  ;;  %v9473_v9 = vpop.f32.mrb[121].mxu0  ;;  %v9516_v0 = vpop.f32.mrb[121].mxu1  ;;  %v12990_v40 = vadd.f32 %v9514_v17, %v18211_v16 }
 0xbb8   : > { %v12959_v49 = vadd.f32 %v9473_v9, %v18205_v3  ;;  %v9475_v15 = vpop.f32.mrb[122].mxu0  ;;  %v9518_v8 = vpop.f32.mrb[122].mxu1  ;;  %v12991_v17 = vadd.f32 %v9516_v0, %v18220_v57 }
 0xbb9   : > { %v9567_v20 = vmul.f32 0.5, %v12958_v26  ;;  %v12960_v28 = vadd.f32 %v9475_v15, %v18200_v43  ;;  %v9477_v10 = vpop.f32.mrb[123].mxu0  ;;  %v9520_v59 = vpop.f32.mrb[123].mxu1  ;;  %v12992_v15 = vadd.f32 %v9518_v8, %v18211_v16 }
 0xbba   : > { %v9575_v21 = vmul.f32 0.5, %v12959_v49  ;;  %v12961_v19 = vadd.f32 %v9477_v10, %v18205_v3  ;;  %v14290_v25 = vpop.eup %14289  ;;  %v12993_v37 = vadd.f32 %v9520_v59, %v18220_v57  ;;  %v9585_v7 = vmul.f32 0.5, %v12991_v17  ;;  %v18494_v17 = vld [vmem:[%s19686_s5 + $0x8c] ss:$16 sps:$4 sm:$0xff]  }
 0xbbb   : > { %14293 = vtanh.f32 %v9567_v20  ;;  %v9568_v31 = vmul.f32 0.5, %v12960_v28  ;;  %v18332_v6 = vmul.f32 %v14290_v25, %v9555_v46  ;;  %20168 = vst [vmem:[#allocation21_spill] sm:$0xff] %v18494_v17 }
 0xbbc   : > { %14295 = vtanh.f32 %v9575_v21  ;;  %v9576_v51 = vmul.f32 0.5, %v12961_v19  ;;  %v14292_v9 = vpop.eup %14291  ;;  %v9586_v20 = vmul.f32 0.5, %v12993_v37  ;;  %v18500_v37 = vld [vmem:[%s19686_s5 + $0x80] ss:$16 sps:$4 sm:$0xff]  }
 0xbbd   : > { %v18334_v26 = vmul.f32 %v14292_v9, %v9556_v50  ;;  %14297 = vtanh.f32 %v9568_v31  ;;  %v18464_v50 = vld [vmem:[%s19686_s5 + $0x64] ss:$16 sps:$4 sm:$0xff]   ;;  %v18476_v9 = vld [vmem:[%s19686_s5 + $0x60] ss:$16 sps:$4 sm:$0xff]   ;;  %20169 = vst [vmem:[#allocation20_spill] sm:$0xff] %v18500_v37 }
 0xbbe   : > { %14299 = vtanh.f32 %v12990_v40  ;;  %20165 = vst [vmem:[#allocation18_spill] sm:$0xff] %v18476_v9 }
 0xbbf   : > { %14301 = vtanh.f32 %v9576_v51  ;;  %v9615_v49 = vpack.c.bf16 %v18334_v26, %v18332_v6  ;;  %v18470_v51 = vld [vmem:[%s19686_s5 + $0x6c] ss:$16 sps:$4 sm:$0xff]  }
 0xbc0   : > { %14303 = vtanh.f32 %v12992_v15  ;;  %v18482_v15 = vld [vmem:[%s19686_s5 + $0x68] ss:$16 sps:$4 sm:$0xff]  }
 0xbc1   : > { %9649 = vmatmul.mubr.bf16.vlgmr.msra.gmra.mrb[72].mxu0 %v9615_v49  ;;  %9692 = vmatmul.mubr.bf16.vlgmr.msra.gmra.mrb[72].mxu1 %v9615_v49  ;;  %14305 = vtanh.f32 %v9585_v7  ;;  %20166 = vst [vmem:[#allocation11_spill] sm:$0xff] %v18482_v15  ;;  %v18488_v49 = vld [vmem:[%s19686_s5 + $0x84] ss:$16 sps:$4 sm:$0xff]   ;;  %v18524_v7 = vld [vmem:[%s19686_s5 + $0xa0] ss:$16 sps:$4 sm:$0xff]  }
 0xbc2   : > { %9720 = vmatpush1.bf16.msra.mxu0 %v17939_v12  ;;  %9763 = vmatpush1.bf16.msra.mxu1 %v17944_v62  ;;  %14307 = vtanh.f32 %v9586_v20  ;;  %20167 = vst [vmem:[#allocation10_spill] sm:$0xff] %v18488_v49  ;;  %20173 = vst [vmem:[#allocation25_spill] sm:$0xff] %v18524_v7  ;;  %v18536_v20 = vld [vmem:[%s19686_s5 + $0xc4] ss:$16 sps:$4 sm:$0xff]  }
 0xbc3   : > { %9721 = vmatprep.subr.bf16.mxu0 %v17949_v32  ;;  %9764 = vmatprep.subr.bf16.mxu1 %v17954_v56  ;;  %20175 = vst [vmem:[#allocation27_spill] sm:$0xff] %v18536_v20 }
 0xbc4   : > { %9751 = vmatprep.mubr.bf16.mxu0 %v19931_v14  ;;  %9794 = vmatprep.mubr.bf16.mxu1 %v19931_v14 }
 0xbc5   : > { %v14294_v46 = vpop.eup %14293 }
 0xbc6   : > { %v14296_v31 = vpop.eup %14295  ;;  %v9571_v0 = vmul.f32 0.5, %v14294_v46  ;;  %9722 = vmatpush1.bf16.msra.mxu0 %v17963_v35  ;;  %9765 = vmatpush1.bf16.msra.mxu1 %v17968_v47  ;;  %v18506_v46 = vld [vmem:[%s19686_s5 + $0x88] ss:$16 sps:$4 sm:$0xff]  }
 0xbc7   : > { %v9579_v8 = vmul.f32 0.5, %v14296_v31  ;;  %v14298_v12 = vpop.eup %14297  ;;  %9723 = vmatprep.subr.bf16.mxu0 %v17975_v60  ;;  %9766 = vmatprep.subr.bf16.mxu1 %v17980_v36  ;;  %20170 = vst [vmem:[#allocation23_spill] sm:$0xff] %v18506_v46  ;;  %v18512_v31 = vld [vmem:[%s19686_s5 + $0xa4] ss:$16 sps:$4 sm:$0xff]  }
 0xbc8   : > { %v9573_v62 = vadd.f32 0.5, %v9571_v0  ;;  %v14300_v32 = vpop.eup %14299  ;;  %v9572_v28 = vmul.f32 0.5, %v14298_v12  ;;  %20171 = vst [vmem:[#allocation24_spill] sm:$0xff] %v18512_v31  ;;  %v18518_v0 = vld [vmem:[%s19686_s5 + $0xac] ss:$16 sps:$4 sm:$0xff]  }
 0xbc9   : > { %v9581_v56 = vadd.f32 0.5, %v9579_v8  ;;  %v14302_v10 = vpop.eup %14301  ;;  %20172 = vst [vmem:[#allocation26_spill] sm:$0xff] %v18518_v0  ;;  %v18530_v8 = vld [vmem:[%s19686_s5 + $0xa8] ss:$16 sps:$4 sm:$0xff]   ;;  %v18542_v12 = vld [vmem:[%s19686_s5 + $0xcc] ss:$16 sps:$4 sm:$0xff]  }
 0xbca   : > { %v9595_v59 = vmul.f32 %v14300_v32, %v9573_v62  ;;  %v9574_v19 = vadd.f32 0.5, %v9572_v28  ;;  %v9580_v25 = vmul.f32 0.5, %v14302_v10  ;;  %9724 = vmatpush1.bf16.msra.mxu0 %v17989_v61  ;;  %9767 = vmatpush1.bf16.msra.mxu1 %v17994_v53  ;;  %v14304_v35 = vpop.eup %14303  ;;  %20174 = vst [vmem:[#allocation28_spill] sm:$0xff] %v18530_v8  ;;  %20176 = vst [vmem:[#allocation30_spill] sm:$0xff] %v18542_v12  ;;  %v18548_v62 = vld [vmem:[%s19686_s5 + $0xc0] ss:$16 sps:$4 sm:$0xff]  }
 0xbcb   : > { %v9593_v21 = vmul.f32 %v9581_v56, %v18245_v13  ;;  %9725 = vmatprep.subr.bf16.mxu0 %v18001_v23  ;;  %9768 = vmatprep.subr.bf16.mxu1 %v18006_v48  ;;  %v14306_v53 = vpop.eup %14305  ;;  %v18446_v13 = vld [vmem:[%s19686_s5 + $0x4c] ss:$16 sps:$4 sm:$0xff]   ;;  %20177 = vst [vmem:[#allocation29_spill] sm:$0xff] %v18548_v62  ;;  %v18554_v32 = vld [vmem:[%s19686_s5 + $0xc8] ss:$16 sps:$4 sm:$0xff]  }
 0xbcc   : > { %v9582_v60 = vadd.f32 0.5, %v9580_v25  ;;  %v9596_v36 = vmul.f32 %v14304_v35, %v9574_v19  ;;  %v14308_v23 = vpop.eup %14307  ;;  %v9589_v48 = vmul.f32 0.5, %v14306_v53  ;;  %20178 = vst [vmem:[#allocation31_spill] sm:$0xff] %v18554_v32  ;;  %v18560_v56 = vld [vmem:[%s19686_s5 + $0xe4] ss:$16 sps:$4 sm:$0xff]  }
 0xbcd   : > { %v18356_v47 = vadd.f32 %v9595_v59, %v9593_v21  ;;  %20179 = vst [vmem:[#allocation32_spill] sm:$0xff] %v18560_v56  ;;  %v18566_v28 = vld [vmem:[%s19686_s5 + $0xec] ss:$16 sps:$4 sm:$0xff]   ;;  %v18572_v10 = vld [vmem:[%s19686_s5 + $0xe0] ss:$16 sps:$4 sm:$0xff]  }
 0xbce   : > { %v9594_v40 = vmul.f32 %v9582_v60, %v18252_v52  ;;  %9726 = vmatpush1.bf16.msra.mxu0 %v18013_v34  ;;  %9769 = vmatpush1.bf16.msra.mxu1 %v18018_v55  ;;  %v9590_v34 = vmul.f32 0.5, %v14308_v23  ;;  %v18452_v52 = vld [vmem:[%s19686_s5 + $0x40] ss:$16 sps:$4 sm:$0xff]   ;;  %20180 = vst [vmem:[#allocation35_spill] sm:$0xff] %v18566_v28  ;;  %20181 = vst [vmem:[#allocation34_spill] sm:$0xff] %v18572_v10 }
 0xbcf   : > { %9727 = vmatprep.subr.bf16.mxu0 %v18025_v45  ;;  %9770 = vmatprep.subr.bf16.mxu1 %v18030_v58  ;;  %14309 = vtanh.f32 %v18356_v47  ;;  %v9591_v45 = vadd.f32 0.5, %v9589_v48  ;;  %v18578_v59 = vld [vmem:[%s19686_s5 + $0xe8] ss:$16 sps:$4 sm:$0xff]   ;;  %v18584_v21 = vld [vmem:[%s19686_s5 + $0x104] ss:$16 sps:$4 sm:$0xff]  }
 0xbd0   : > { %v18364_v61 = vadd.f32 %v9596_v36, %v9594_v40  ;;  %v9592_v58 = vadd.f32 0.5, %v9590_v34  ;;  %20182 = vst [vmem:[#allocation38_spill] sm:$0xff] %v18578_v59  ;;  %20183 = vst [vmem:[#allocation36_spill] sm:$0xff] %v18584_v21  ;;  %v18590_v19 = vld [vmem:[%s19686_s5 + $0x10c] ss:$16 sps:$4 sm:$0xff]  }
 0xbd1   : > { %20184 = vst [vmem:[#allocation40_spill] sm:$0xff] %v18590_v19 }
 0xbd2   : > { %14311 = vtanh.f32 %v18364_v61  ;;  %9728 = vmatpush1.bf16.msra.mxu0 %v18037_v39  ;;  %9771 = vmatpush1.bf16.msra.mxu1 %v18042_v54 }
 0xbd3   : > { %9729 = vmatprep.subr.bf16.mxu0 %v18049_v1  ;;  %9772 = vmatprep.subr.bf16.mxu1 %v18054_v27 }
 0xbd6   : > { %9730 = vmatpush1.bf16.msra.mxu0 %v18061_v44  ;;  %9773 = vmatpush1.bf16.msra.mxu1 %v18066_v24  ;;  %v18390_v44 = vld [vmem:[%s19686_s5 + $0x4] ss:$16 sps:$4 sm:$0xff]   ;;  %v18396_v24 = vld [vmem:[%s19686_s5 + $0xc] ss:$16 sps:$4 sm:$0xff]  }
 0xbd7   : > { %9731 = vmatprep.subr.bf16.mxu0 %v18073_v11  ;;  %9774 = vmatprep.subr.bf16.mxu1 %v20128_v29  ;;  %v18402_v11 = vld [vmem:[%s19686_s5] ss:$16 sps:$4 sm:$0xff]   ;;  %v18458_v29 = vld [vmem:[%s19686_s5 + $0x48] ss:$16 sps:$4 sm:$0xff]  }
 0xbd9   : > { %v14310_v55 = vpop.eup %14309 }
 0xbda   : > { %9732 = vmatpush1.bf16.msra.mxu0 %v18085_v33  ;;  %9775 = vmatpush1.bf16.msra.mxu1 %v18090_v22  ;;  %v18379_v54 = vmul.f32 %v14310_v55, %v9591_v45  ;;  %v18414_v33 = vld [vmem:[%s19686_s5 + $0x24] ss:$16 sps:$4 sm:$0xff]   ;;  %v18420_v22 = vld [vmem:[%s19686_s5 + $0x2c] ss:$16 sps:$4 sm:$0xff]  }
 0xbdb   : > { %9733 = vmatprep.subr.bf16.mxu0 %v18097_v42  ;;  %9776 = vmatprep.subr.bf16.mxu1 %v18102_v63  ;;  %v18428_v42 = vld [vmem:[%s19686_s5 + $0x20] ss:$16 sps:$4 sm:$0xff]   ;;  %v18434_v63 = vld [vmem:[%s19686_s5 + $0x28] ss:$16 sps:$4 sm:$0xff]  }
 0xbdc   : > { %v14312_v39 = vpop.eup %14311 }
 0xbdd   : > { %v18381_v1 = vmul.f32 %v14312_v39, %v9592_v58 }
 0xbde   : > { %9734 = vmatpush1.bf16.msra.mxu0 %v18109_v38  ;;  %9777 = vmatpush1.bf16.msra.mxu1 %v18114_v41  ;;  %v18408_v41 = vld [vmem:[%s19686_s5 + $0x8] ss:$16 sps:$4 sm:$0xff]   ;;  %v18440_v38 = vld [vmem:[%s19686_s5 + $0x44] ss:$16 sps:$4 sm:$0xff]  }
 0xbdf   : > { %v9718_v27 = vpack.c.bf16 %v18381_v1, %v18379_v54  ;;  %9898 = vmatprep.subr.bf16.mxu0 %v18390_v44  ;;  %9941 = vmatprep.subr.bf16.mxu1 %v18396_v24 }
 0xbe1   : > { %9752 = vmatmul.mubr.bf16.vlgmr.msra.gmra.mrb[116].mxu0 %v9718_v27  ;;  %9795 = vmatmul.mubr.bf16.vlgmr.msra.gmra.mrb[116].mxu1 %v9718_v27 }
 0xbe2   : > { %9899 = vmatpush1.bf16.msra.mxu0 %v18402_v11  ;;  %9942 = vmatpush1.bf16.msra.mxu1 %v18408_v41 }
 0xbe3   : > { %9900 = vmatprep.subr.bf16.mxu0 %v18414_v33  ;;  %9943 = vmatprep.subr.bf16.mxu1 %v18420_v22 }
 0xbe4   : > { %9930 = vmatprep.mubr.bf16.mxu0 %v19931_v14  ;;  %9973 = vmatprep.mubr.bf16.mxu1 %v19931_v14 }
 0xbe6   : > { %9901 = vmatpush1.bf16.msra.mxu0 %v18428_v42  ;;  %9944 = vmatpush1.bf16.msra.mxu1 %v18434_v63 }
 0xbe7   : > { %9902 = vmatprep.subr.bf16.mxu0 %v18440_v38  ;;  %9945 = vmatprep.subr.bf16.mxu1 %v18446_v13 }
 0xbea   : > { %9903 = vmatpush1.bf16.msra.mxu0 %v18452_v52  ;;  %9946 = vmatpush1.bf16.msra.mxu1 %v18458_v29 }
 0xbeb   : > { %9904 = vmatprep.subr.bf16.mxu0 %v18464_v50  ;;  %9947 = vmatprep.subr.bf16.mxu1 %v18470_v51 }
 0xbee   : > { %9905 = vmatpush1.bf16.msra.mxu0 %v18476_v9  ;;  %9948 = vmatpush1.bf16.msra.mxu1 %v18482_v15 }
 0xbef   : > { %9906 = vmatprep.subr.bf16.mxu0 %v18488_v49  ;;  %9949 = vmatprep.subr.bf16.mxu1 %v18494_v17 }
 0xbf2   : > { %9907 = vmatpush1.bf16.msra.mxu0 %v18500_v37  ;;  %9950 = vmatpush1.bf16.msra.mxu1 %v18506_v46 }
 0xbf3   : > { %9908 = vmatprep.subr.bf16.mxu0 %v18512_v31  ;;  %9951 = vmatprep.subr.bf16.mxu1 %v18518_v0 }
 0xbf6   : > { %9909 = vmatpush1.bf16.msra.mxu0 %v18524_v7  ;;  %9952 = vmatpush1.bf16.msra.mxu1 %v18530_v8 }
 0xbf7   : > { %9910 = vmatprep.subr.bf16.mxu0 %v18536_v20  ;;  %9953 = vmatprep.subr.bf16.mxu1 %v18542_v12 }
 0xbfa   : > { %9911 = vmatpush1.bf16.msra.mxu0 %v18548_v62  ;;  %9954 = vmatpush1.bf16.msra.mxu1 %v18554_v32 }
 0xbfb   : > { %9912 = vmatprep.subr.bf16.mxu0 %v18560_v56  ;;  %9955 = vmatprep.subr.bf16.mxu1 %v18566_v28 }
 0xbfe   : > { %9913 = vmatpush1.bf16.msra.mxu0 %v18572_v10  ;;  %9956 = vmatpush1.bf16.msra.mxu1 %v18578_v59 }
 0xbff   : > { %10001 = vmatprep.subr.bf16.mxu0 %v18584_v21  ;;  %10044 = vmatprep.subr.bf16.mxu1 %v18590_v19 }
 0xc94   : > { %v9650_v25 = vpop.f32.mrb[72].mxu0  ;;  %v9693_v35 = vpop.f32.mrb[72].mxu1 }
 0xc95   : > { %v12878_v60 = vadd.f32 %v9650_v25, %v20158_v2  ;;  %v9652_v36 = vpop.f32.mrb[73].mxu0  ;;  %v9695_v40 = vpop.f32.mrb[73].mxu1  ;;  %v12910_v19 = vadd.f32 %v9693_v35, %v20160_v5 }
 0xc96   : > { %v12879_v53 = vadd.f32 %v9652_v36, %v20159_v4  ;;  %v9654_v23 = vpop.f32.mrb[74].mxu0  ;;  %v9697_v48 = vpop.f32.mrb[74].mxu1  ;;  %v12911_v36 = vadd.f32 %v9695_v40, %v20161_v18 }
 0xc97   : > { %v9813_v34 = vmul.f32 0.5, %v12878_v60  ;;  %v12880_v55 = vadd.f32 %v9654_v23, %v20158_v2  ;;  %v9656_v45 = vpop.f32.mrb[75].mxu0  ;;  %v9699_v58 = vpop.f32.mrb[75].mxu1  ;;  %v12912_v59 = vadd.f32 %v9697_v48, %v20160_v5 }
 0xc98   : > { %v9821_v39 = vmul.f32 0.5, %v12879_v53  ;;  %v12881_v27 = vadd.f32 %v9656_v45, %v20159_v4  ;;  %v9831_v60 = vmul.f32 0.5, %v12911_v36  ;;  %v12913_v23 = vadd.f32 %v9699_v58, %v20161_v18 }
 0xc99   : > { %14313 = vtanh.f32 %v9813_v34  ;;  %v9814_v21 = vmul.f32 0.5, %v12880_v55 }
 0xc9a   : > { %14315 = vtanh.f32 %v9821_v39  ;;  %v9822_v25 = vmul.f32 0.5, %v12881_v27  ;;  %v9832_v35 = vmul.f32 0.5, %v12913_v23 }
 0xc9b   : > { %14317 = vtanh.f32 %v9814_v21 }
 0xc9c   : > { %14319 = vtanh.f32 %v12910_v19 }
 0xc9d   : > { %14321 = vtanh.f32 %v9822_v25 }
 0xc9e   : > { %14323 = vtanh.f32 %v12912_v59 }
 0xc9f   : > { %14325 = vtanh.f32 %v9831_v60 }
 0xca0   : > { %14327 = vtanh.f32 %v9832_v35 }
 0xca3   : > { %v14314_v53 = vpop.eup %14313 }
 0xca4   : > { %v14316_v2 = vpop.eup %14315  ;;  %v9817_v45 = vmul.f32 0.5, %v14314_v53 }
 0xca5   : > { %v9825_v34 = vmul.f32 0.5, %v14316_v2  ;;  %v14318_v55 = vpop.eup %14317  ;;  %v20186_v2 = vld [vmem:[#allocation9_spill] sm:$0xff] }
 0xca6   : > { %v9819_v39 = vadd.f32 0.5, %v9817_v45  ;;  %v14320_v27 = vpop.eup %14319  ;;  %v9818_v4 = vmul.f32 0.5, %v14318_v55 }
 0xca7   : > { %v9827_v21 = vadd.f32 0.5, %v9825_v34  ;;  %v14322_v48 = vpop.eup %14321 }
 0xca8   : > { %v9841_v19 = vmul.f32 %v14320_v27, %v9819_v39  ;;  %v9820_v25 = vadd.f32 0.5, %v9818_v4  ;;  %v9826_v59 = vmul.f32 0.5, %v14322_v48  ;;  %v14324_v36 = vpop.eup %14323 }
 0xca9   : > { %v9839_v40 = vmul.f32 %v9827_v21, %v18320_v30  ;;  %v14326_v23 = vpop.eup %14325 }
 0xcaa   : > { %v9828_v18 = vadd.f32 0.5, %v9826_v59  ;;  %v9842_v53 = vmul.f32 %v14324_v36, %v9820_v25  ;;  %v9835_v34 = vmul.f32 0.5, %v14326_v23  ;;  %v14328_v55 = vpop.eup %14327 }
 0xcab   : > { %v18602_v58 = vadd.f32 %v9841_v19, %v9839_v40  ;;  %v9836_v48 = vmul.f32 0.5, %v14328_v55 }
 0xcac   : > { %v9840_v60 = vmul.f32 %v9828_v18, %v20186_v2  ;;  %v9837_v21 = vadd.f32 0.5, %v9835_v34 }
 0xcad   : > { %20185 = vst [vmem:[#allocation39_spill] sm:$0xff] %v18602_v58  ;;  %14329 = vtanh.f32 %v18602_v58  ;;  %v9838_v5 = vadd.f32 0.5, %v9836_v48 }
 0xcae   : > { %v18606_v45 = vadd.f32 %v9842_v53, %v9840_v60  ;;  %v20188_v60 = vld [vmem:[#allocation42_spill] sm:$0xff] }
 0xcaf   : > { %v9603_v23 = vadd.f32 %v18332_v6, %v20188_v60  ;;  %v18666_v60 = vld [vmem:[%s19686_s5 + $0x144] ss:$16 sps:$4 sm:$0xff]  }
 0xcb0   : > { %20187 = vst [vmem:[#allocation17_spill] sm:$0xff] %v18606_v45  ;;  %14331 = vtanh.f32 %v18606_v45 }
 0xcb4   : > { %v9753_v30 = vpop.f32.mrb[116].mxu0  ;;  %v9796_v4 = vpop.f32.mrb[116].mxu1 }
 0xcb5   : > { %v12954_v35 = vadd.f32 %v9753_v30, %v18200_v43  ;;  %v9755_v39 = vpop.f32.mrb[117].mxu0  ;;  %v9798_v27 = vpop.f32.mrb[117].mxu1  ;;  %v12986_v34 = vadd.f32 %v9796_v4, %v18211_v16 }
 0xcb6   : > { %v12955_v19 = vadd.f32 %v9755_v39, %v18205_v3  ;;  %v9757_v40 = vpop.f32.mrb[118].mxu0  ;;  %v9800_v25 = vpop.f32.mrb[118].mxu1 }
 0xcb7   : > { %v14330_v18 = vpop.eup %14329  ;;  %v9849_v59 = vmul.f32 0.5, %v12954_v35  ;;  %v12956_v36 = vadd.f32 %v9757_v40, %v18200_v43  ;;  %v9759_v53 = vpop.f32.mrb[119].mxu0  ;;  %v20189_v40 = vld [vmem:[#allocation43_spill] sm:$0xff]  ;;  %v12988_v6 = vadd.f32 %v9800_v25, %v18211_v16 }
 0xcb8   : > { %v9802_v2 = vpop.f32.mrb[119].mxu1  ;;  %v9847_v45 = vmul.f32 %v14330_v18, %v9837_v21  ;;  %v9857_v58 = vmul.f32 0.5, %v12955_v19  ;;  %v12957_v30 = vadd.f32 %v9759_v53, %v18205_v3  ;;  %v9604_v43 = vadd.f32 %v18334_v26, %v20189_v40  ;;  %v18640_v26 = vld [vmem:[%s19686_s5 + $0x124] ss:$16 sps:$4 sm:$0xff]  }
 0xcb9   : > { %14333 = vtanh.f32 %v9849_v59  ;;  %v9850_v55 = vmul.f32 0.5, %v12956_v36  ;;  %v12987_v21 = vadd.f32 %v9798_v27, %v18220_v57  ;;  %v12989_v48 = vadd.f32 %v9802_v2, %v18220_v57  ;;  %v18654_v59 = vld [vmem:[%s19686_s5 + $0x120] ss:$16 sps:$4 sm:$0xff]   ;;  %v18660_v36 = vld [vmem:[%s19686_s5 + $0x128] ss:$16 sps:$4 sm:$0xff]  }
 0xcba   : > { %v18616_v39 = vadd.f32 %v9847_v45, %v9603_v23  ;;  %14335 = vtanh.f32 %v9857_v58  ;;  %v9858_v35 = vmul.f32 0.5, %v12957_v30  ;;  %v14332_v10 = vpop.eup %14331  ;;  %v18672_v23 = vld [vmem:[%s19686_s5 + $0x14c] ss:$16 sps:$4 sm:$0xff]  }
 0xcbb   : > { %v9848_v28 = vmul.f32 %v14332_v10, %v9838_v5  ;;  %14337 = vtanh.f32 %v9850_v55  ;;  %v9867_v58 = vmul.f32 0.5, %v12987_v21  ;;  %v18628_v5 = vld [vmem:[%s19686_s5 + $0x100] ss:$16 sps:$4 sm:$0xff]   ;;  %v9868_v18 = vmul.f32 0.5, %v12989_v48  ;;  %v18685_v48 = vld [vmem:[%s19686_s5 + $0x148] ss:$16 sps:$4 sm:$0xff]  }
 0xcbc   : > { %14339 = vtanh.f32 %v12986_v34 }
 0xcbd   : > { %v18622_v19 = vadd.f32 %v9848_v28, %v9604_v43  ;;  %14341 = vtanh.f32 %v9858_v35  ;;  %v9897_v4 = vpack.c.bf16 %v9848_v28, %v9847_v45  ;;  %v18634_v43 = vld [vmem:[%s19686_s5 + $0x108] ss:$16 sps:$4 sm:$0xff]   ;;  %v18646_v28 = vld [vmem:[%s19686_s5 + $0x12c] ss:$16 sps:$4 sm:$0xff]  }
 0xcbe   : > { %14343 = vtanh.f32 %v12988_v6 }
 0xcbf   : > { %9931 = vmatmul.mubr.bf16.vlgmr.msra.gmra.mrb[76].mxu0 %v9897_v4  ;;  %9974 = vmatmul.mubr.bf16.vlgmr.msra.gmra.mrb[76].mxu1 %v9897_v4  ;;  %14345 = vtanh.f32 %v9867_v58  ;;  %v18679_v58 = vld [vmem:[%s19686_s5 + $0x140] ss:$16 sps:$4 sm:$0xff]  }
 0xcc0   : > { %10002 = vmatpush1.bf16.msra.mxu0 %v18628_v5  ;;  %10045 = vmatpush1.bf16.msra.mxu1 %v18634_v43  ;;  %14347 = vtanh.f32 %v9868_v18 }
 0xcc1   : > { %10003 = vmatprep.subr.bf16.mxu0 %v18640_v26  ;;  %10046 = vmatprep.subr.bf16.mxu1 %v18646_v28 }
 0xcc2   : > { %10033 = vmatprep.mubr.bf16.mxu0 %v19931_v14  ;;  %10076 = vmatprep.mubr.bf16.mxu1 %v19931_v14 }
 0xcc3   : > { %v14334_v10 = vpop.eup %14333 }
 0xcc4   : > { %v14336_v45 = vpop.eup %14335  ;;  %v9853_v27 = vmul.f32 0.5, %v14334_v10  ;;  %10004 = vmatpush1.bf16.msra.mxu0 %v18654_v59  ;;  %10047 = vmatpush1.bf16.msra.mxu1 %v18660_v36 }
 0xcc5   : > { %v9861_v25 = vmul.f32 0.5, %v14336_v45  ;;  %v14338_v53 = vpop.eup %14337  ;;  %10005 = vmatprep.subr.bf16.mxu0 %v18666_v60  ;;  %10048 = vmatprep.subr.bf16.mxu1 %v18672_v23  ;;  %v18697_v45 = vld [vmem:[%s19686_s5 + $0x16c] ss:$16 sps:$4 sm:$0xff]  }
 0xcc6   : > { %v9855_v2 = vadd.f32 0.5, %v9853_v27  ;;  %v14340_v30 = vpop.eup %14339  ;;  %v9854_v55 = vmul.f32 0.5, %v14338_v53 }
 0xcc7   : > { %v9863_v34 = vadd.f32 0.5, %v9861_v25  ;;  %v14342_v35 = vpop.eup %14341 }
 0xcc8   : > { %v9877_v40 = vmul.f32 %v14340_v30, %v9855_v2  ;;  %v9856_v21 = vadd.f32 0.5, %v9854_v55  ;;  %v9862_v4 = vmul.f32 0.5, %v14342_v35  ;;  %10006 = vmatpush1.bf16.msra.mxu0 %v18679_v58  ;;  %10049 = vmatpush1.bf16.msra.mxu1 %v18685_v48  ;;  %v14344_v10 = vpop.eup %14343  ;;  %v18707_v2 = vld [vmem:[%s19686_s5 + $0x160] ss:$16 sps:$4 sm:$0xff]   ;;  %v18713_v30 = vld [vmem:[%s19686_s5 + $0x168] ss:$16 sps:$4 sm:$0xff]  }
 0xcc9   : > { %v9875_v6 = vmul.f32 %v9863_v34, %v18356_v47  ;;  %v18691_v47 = vld [vmem:[%s19686_s5 + $0x164] ss:$16 sps:$4 sm:$0xff]   ;;  %10050 = vmatprep.subr.bf16.mxu1 %v18697_v45  ;;  %v14346_v55 = vpop.eup %14345 }
 0xcca   : > { %10007 = vmatprep.subr.bf16.mxu0 %v18691_v47  ;;  %v9864_v25 = vadd.f32 0.5, %v9862_v4  ;;  %v9878_v18 = vmul.f32 %v14344_v10, %v9856_v21  ;;  %v18719_v34 = vld [vmem:[%s19686_s5 + $0x184] ss:$16 sps:$4 sm:$0xff]   ;;  %v9871_v21 = vmul.f32 0.5, %v14346_v55  ;;  %v18752_v10 = vld [vmem:[%s19686_s5 + $0x1ac] ss:$16 sps:$4 sm:$0xff]  }
 0xccb   : > { %v18700_v27 = vadd.f32 %v9877_v40, %v9875_v6  ;;  %v18734_v40 = vld [vmem:[%s19686_s5 + $0x180] ss:$16 sps:$4 sm:$0xff]   ;;  %v18740_v6 = vld [vmem:[%s19686_s5 + $0x188] ss:$16 sps:$4 sm:$0xff]   ;;  %v18746_v4 = vld [vmem:[%s19686_s5 + $0x1a4] ss:$16 sps:$4 sm:$0xff]  }
 0xccc   : > { %v9876_v53 = vmul.f32 %v9864_v25, %v18364_v61  ;;  %10008 = vmatpush1.bf16.msra.mxu0 %v18707_v2  ;;  %10051 = vmatpush1.bf16.msra.mxu1 %v18713_v30  ;;  %v18725_v61 = vld [vmem:[%s19686_s5 + $0x18c] ss:$16 sps:$4 sm:$0xff]   ;;  %20191 = vst [vmem:[#allocation14_spill] sm:$0xff] %v18734_v40  ;;  %20192 = vst [vmem:[#allocation33_spill] sm:$0xff] %v18740_v6  ;;  %v14348_v25 = vpop.eup %14347  ;;  %v9873_v55 = vadd.f32 0.5, %v9871_v21 }
 0xccd   : > { %14349 = vtanh.f32 %v18700_v27  ;;  %10009 = vmatprep.subr.bf16.mxu0 %v18719_v34  ;;  %20190 = vst [vmem:[#allocation37_spill] sm:$0xff] %v18725_v61  ;;  %10052 = vmatprep.subr.bf16.mxu1 %v18725_v61  ;;  %20193 = vst [vmem:[#allocation7_spill] sm:$0xff] %v18746_v4 }
 0xcce   : > { %v18728_v35 = vadd.f32 %v9878_v18, %v9876_v53  ;;  %20194 = vst [vmem:[#allocation22_spill] sm:$0xff] %v18752_v10  ;;  %v18758_v18 = vld [vmem:[%s19686_s5 + $0x1a0] ss:$16 sps:$4 sm:$0xff]   ;;  %v18764_v53 = vld [vmem:[%s19686_s5 + $0x1a8] ss:$16 sps:$4 sm:$0xff]  }
 0xccf   : > { %20195 = vst [vmem:[#allocation8_spill] sm:$0xff] %v18758_v18  ;;  %20196 = vst [vmem:[#allocation9_spill] sm:$0xff] %v18764_v53 }
 0xcd0   : > { %14351 = vtanh.f32 %v18728_v35  ;;  %10010 = vmatpush1.bf16.msra.mxu0 %v18734_v40  ;;  %10053 = vmatpush1.bf16.msra.mxu1 %v18740_v6  ;;  %v20199_v40 = vld [vmem:[#allocation12_spill] sm:$0xff] }
 0xcd1   : > { %10011 = vmatprep.subr.bf16.mxu0 %v18746_v4  ;;  %10054 = vmatprep.subr.bf16.mxu1 %v18752_v10  ;;  %v9872_v4 = vmul.f32 0.5, %v14348_v25  ;;  %v18770_v10 = vld [vmem:[%s19686_s5 + $0x1c4] ss:$16 sps:$4 sm:$0xff]   ;;  %v18784_v25 = vld [vmem:[%s19686_s5 + $0x1c0] ss:$16 sps:$4 sm:$0xff]  }
 0xcd2   : > { %20197 = vst [vmem:[#allocation42_spill] sm:$0xff] %v18770_v10 }
 0xcd3   : > { %v9874_v61 = vadd.f32 0.5, %v9872_v4  ;;  %v18812_v4 = vld [vmem:[%s19686_s5 + $0x1e0] ss:$16 sps:$4 sm:$0xff]  }
 0xcd4   : > { %10012 = vmatpush1.bf16.msra.mxu0 %v18758_v18  ;;  %10055 = vmatpush1.bf16.msra.mxu1 %v18764_v53  ;;  %v18776_v18 = vld [vmem:[%s19686_s5 + $0x1cc] ss:$16 sps:$4 sm:$0xff]   ;;  %v9605_v53 = vadd.f32 %v18379_v54, %v20199_v40  ;;  %v18798_v54 = vld [vmem:[%s19686_s5 + $0x1e4] ss:$16 sps:$4 sm:$0xff]  }
 0xcd5   : > { %10013 = vmatprep.subr.bf16.mxu0 %v18770_v10  ;;  %20198 = vst [vmem:[#allocation43_spill] sm:$0xff] %v18776_v18  ;;  %10056 = vmatprep.subr.bf16.mxu1 %v18776_v18  ;;  %v18790_v10 = vld [vmem:[%s19686_s5 + $0x1c8] ss:$16 sps:$4 sm:$0xff]   ;;  %20202 = vst [vmem:[#allocation46_spill] sm:$0xff] %v18798_v54  ;;  %v18804_v40 = vld [vmem:[%s19686_s5 + $0x1ec] ss:$16 sps:$4 sm:$0xff]  }
 0xcd6   : > { %20200 = vst [vmem:[#allocation12_spill] sm:$0xff] %v18790_v10  ;;  %20203 = vst [vmem:[#allocation47_spill] sm:$0xff] %v18804_v40 }
 0xcd7   : > { %v14350_v6 = vpop.eup %14349 }
 0xcd8   : > { %v9883_v21 = vmul.f32 %v14350_v6, %v9873_v55  ;;  %10014 = vmatpush1.bf16.msra.mxu0 %v18784_v25  ;;  %10057 = vmatpush1.bf16.msra.mxu1 %v18790_v10  ;;  %v20204_v55 = vld [vmem:[#allocation44_spill] sm:$0xff] }
 0xcd9   : > { %10015 = vmatprep.subr.bf16.mxu0 %v18798_v54  ;;  %10058 = vmatprep.subr.bf16.mxu1 %v18804_v40  ;;  %v18818_v54 = vld [vmem:[%s19686_s5 + $0x1e8] ss:$16 sps:$4 sm:$0xff]  }
 0xcda   : > { %v18793_v18 = vadd.f32 %v9883_v21, %v9605_v53  ;;  %v14352_v6 = vpop.eup %14351  ;;  %v9606_v53 = vadd.f32 %v18381_v1, %v20204_v55  ;;  %v20205_v1 = vld [vmem:[#allocation35_spill] sm:$0xff] }
 0xcdc   : > { %20201 = vst [vmem:[#allocation45_spill] sm:$0xff] %v18793_v18  ;;  %v9884_v18 = vmul.f32 %v14352_v6, %v9874_v61  ;;  %10016 = vmatpush1.bf16.msra.mxu0 %v18812_v4  ;;  %10059 = vmatpush1.bf16.msra.mxu1 %v18818_v54  ;;  %v20206_v61 = vld [vmem:[#allocation34_spill] sm:$0xff] }
 0xcdd   : > { %10180 = vmatprep.subr.bf16.mxu0 %v18390_v44  ;;  %10223 = vmatprep.subr.bf16.mxu1 %v18396_v24 }
 0xcde   : > { %v18821_v40 = vadd.f32 %v9884_v18, %v9606_v53  ;;  %v10000_v10 = vpack.c.bf16 %v9884_v18, %v9883_v21  ;;  %v20208_v18 = vld [vmem:[#allocation36_spill] sm:$0xff] }
 0xcdf   : > { %v20209_v21 = vld [vmem:[#allocation40_spill] sm:$0xff] }
 0xce0   : > { %10034 = vmatmul.mubr.bf16.vlgmr.msra.gmra.mrb[112].mxu0 %v10000_v10  ;;  %10077 = vmatmul.mubr.bf16.vlgmr.msra.gmra.mrb[112].mxu1 %v10000_v10  ;;  %v20207_v10 = vld [vmem:[#allocation38_spill] sm:$0xff]  ;;  %v20210_v53 = vld [vmem:[#allocation16_spill] sm:$0xff] }
 0xce1   : > { %10181 = vmatpush1.bf16.msra.mxu0 %v18402_v11  ;;  %10224 = vmatpush1.bf16.msra.mxu1 %v18408_v41 }
 0xce2   : > { %10182 = vmatprep.subr.bf16.mxu0 %v18414_v33  ;;  %10225 = vmatprep.subr.bf16.mxu1 %v18420_v22 }
 0xce3   : > { %10212 = vmatprep.mubr.bf16.mxu0 %v19931_v14  ;;  %10255 = vmatprep.mubr.bf16.mxu1 %v19931_v14 }
 0xce5   : > { %10183 = vmatpush1.bf16.msra.mxu0 %v18428_v42  ;;  %10226 = vmatpush1.bf16.msra.mxu1 %v18434_v63 }
 0xce6   : > { %10184 = vmatprep.subr.bf16.mxu0 %v18440_v38  ;;  %10227 = vmatprep.subr.bf16.mxu1 %v18446_v13 }
 0xce9   : > { %10185 = vmatpush1.bf16.msra.mxu0 %v18452_v52  ;;  %10228 = vmatpush1.bf16.msra.mxu1 %v18458_v29 }
 0xcea   : > { %10186 = vmatprep.subr.bf16.mxu0 %v18464_v50  ;;  %10229 = vmatprep.subr.bf16.mxu1 %v18470_v51 }
 0xced   : > { %10187 = vmatpush1.bf16.msra.mxu0 %v18476_v9  ;;  %10230 = vmatpush1.bf16.msra.mxu1 %v18482_v15 }
 0xcee   : > { %10188 = vmatprep.subr.bf16.mxu0 %v18488_v49  ;;  %10231 = vmatprep.subr.bf16.mxu1 %v18494_v17 }
 0xcf1   : > { %10189 = vmatpush1.bf16.msra.mxu0 %v18500_v37  ;;  %10232 = vmatpush1.bf16.msra.mxu1 %v18506_v46 }
 0xcf2   : > { %10190 = vmatprep.subr.bf16.mxu0 %v18512_v31  ;;  %10233 = vmatprep.subr.bf16.mxu1 %v18518_v0 }
 0xcf5   : > { %10191 = vmatpush1.bf16.msra.mxu0 %v18524_v7  ;;  %10234 = vmatpush1.bf16.msra.mxu1 %v18530_v8  ;;  %v20211_v8 = vld [vmem:[#allocation13_spill] sm:$0xff] }
 0xcf6   : > { %10192 = vmatprep.subr.bf16.mxu0 %v18536_v20  ;;  %10235 = vmatprep.subr.bf16.mxu1 %v18542_v12 }
 0xcf9   : > { %10193 = vmatpush1.bf16.msra.mxu0 %v18548_v62  ;;  %10236 = vmatpush1.bf16.msra.mxu1 %v18554_v32 }
 0xcfa   : > { %10194 = vmatprep.subr.bf16.mxu0 %v18560_v56  ;;  %10237 = vmatprep.subr.bf16.mxu1 %v20205_v1 }
 0xcfd   : > { %10195 = vmatpush1.bf16.msra.mxu0 %v20206_v61  ;;  %10238 = vmatpush1.bf16.msra.mxu1 %v20207_v10 }
 0xcfe   : > { %10283 = vmatprep.subr.bf16.mxu0 %v20208_v18  ;;  %10326 = vmatprep.subr.bf16.mxu1 %v20209_v21  ;;  %v20212_v21 = vld [vmem:[#allocation19_spill] sm:$0xff] }
 0xd92   : > { %v9932_v6 = vpop.f32.mrb[76].mxu0  ;;  %v9975_v55 = vpop.f32.mrb[76].mxu1 }
 0xd93   : > { %v12882_v12 = vadd.f32 %v9932_v6, %v20210_v53  ;;  %v9934_v20 = vpop.f32.mrb[77].mxu0  ;;  %v9977_v62 = vpop.f32.mrb[77].mxu1  ;;  %v12914_v46 = vadd.f32 %v9975_v55, %v20212_v21 }
 0xd94   : > { %v12883_v32 = vadd.f32 %v9934_v20, %v20211_v8  ;;  %v9936_v7 = vpop.f32.mrb[78].mxu0  ;;  %v9979_v56 = vpop.f32.mrb[78].mxu1  ;;  %v20213_v20 = vld [vmem:[#allocation15_spill] sm:$0xff] }
 0xd95   : > { %v10095_v0 = vmul.f32 0.5, %v12882_v12  ;;  %v12884_v1 = vadd.f32 %v9936_v7, %v20210_v53  ;;  %v9938_v61 = vpop.f32.mrb[79].mxu0  ;;  %v9981_v31 = vpop.f32.mrb[79].mxu1  ;;  %v12916_v17 = vadd.f32 %v9979_v56, %v20212_v21  ;;  %v12915_v49 = vadd.f32 %v9977_v62, %v20213_v20  ;;  %v20214_v21 = vld [vmem:[#allocation39_spill] sm:$0xff] }
 0xd96   : > { %v10103_v10 = vmul.f32 0.5, %v12883_v32  ;;  %v12885_v18 = vadd.f32 %v9938_v61, %v20211_v8  ;;  %v12917_v12 = vadd.f32 %v9981_v31, %v20213_v20 }
 0xd97   : > { %14353 = vtanh.f32 %v10095_v0  ;;  %v10096_v37 = vmul.f32 0.5, %v12884_v1  ;;  %v10113_v7 = vmul.f32 0.5, %v12915_v49 }
 0xd98   : > { %14355 = vtanh.f32 %v10103_v10  ;;  %v10104_v6 = vmul.f32 0.5, %v12885_v18  ;;  %v10114_v55 = vmul.f32 0.5, %v12917_v12 }
 0xd99   : > { %14357 = vtanh.f32 %v10096_v37 }
 0xd9a   : > { %14359 = vtanh.f32 %v12914_v46 }
 0xd9b   : > { %14361 = vtanh.f32 %v10104_v6 }
 0xd9c   : > { %14363 = vtanh.f32 %v12916_v17 }
 0xd9d   : > { %14365 = vtanh.f32 %v10113_v7 }
 0xd9e   : > { %14367 = vtanh.f32 %v10114_v55 }
 0xda1   : > { %v14354_v32 = vpop.eup %14353 }
 0xda2   : > { %v14356_v53 = vpop.eup %14355  ;;  %v10099_v61 = vmul.f32 0.5, %v14354_v32 }
 0xda3   : > { %v10107_v0 = vmul.f32 0.5, %v14356_v53  ;;  %v14358_v1 = vpop.eup %14357  ;;  %v20216_v53 = vld [vmem:[#allocation17_spill] sm:$0xff] }
 0xda4   : > { %v10101_v10 = vadd.f32 0.5, %v10099_v61  ;;  %v14360_v18 = vpop.eup %14359  ;;  %v10100_v8 = vmul.f32 0.5, %v14358_v1 }
 0xda5   : > { %v10109_v37 = vadd.f32 0.5, %v10107_v0  ;;  %v14362_v56 = vpop.eup %14361 }
 0xda6   : > { %v10123_v46 = vmul.f32 %v14360_v18, %v10101_v10  ;;  %v10102_v6 = vadd.f32 0.5, %v10100_v8  ;;  %v10108_v17 = vmul.f32 0.5, %v14362_v56  ;;  %v14364_v49 = vpop.eup %14363  ;;  %v20218_v10 = vld [vmem:[#allocation41_spill] sm:$0xff] }
 0xda7   : > { %v10121_v62 = vmul.f32 %v10109_v37, %v20214_v21  ;;  %v14366_v12 = vpop.eup %14365 }
 0xda8   : > { %v10110_v20 = vadd.f32 0.5, %v10108_v17  ;;  %v10124_v32 = vmul.f32 %v14364_v49, %v10102_v6  ;;  %v10117_v0 = vmul.f32 0.5, %v14366_v12  ;;  %v14368_v1 = vpop.eup %14367 }
 0xda9   : > { %v18868_v31 = vadd.f32 %v10123_v46, %v10121_v62  ;;  %v10118_v46 = vmul.f32 0.5, %v14368_v1 }
 0xdaa   : > { %v10122_v7 = vmul.f32 %v10110_v20, %v20216_v53  ;;  %v10119_v56 = vadd.f32 0.5, %v10117_v0 }
 0xdab   : > { %20215 = vst [vmem:[#allocation44_spill] sm:$0xff] %v18868_v31  ;;  %14369 = vtanh.f32 %v18868_v31  ;;  %v10120_v1 = vadd.f32 0.5, %v10118_v46 }
 0xdac   : > { %v18872_v61 = vadd.f32 %v10124_v32, %v10122_v7 }
 0xdae   : > { %20217 = vst [vmem:[#allocation39_spill] sm:$0xff] %v18872_v61  ;;  %14371 = vtanh.f32 %v18872_v61 }
 0xdb3   : > { %v10035_v21 = vpop.f32.mrb[112].mxu0  ;;  %v10078_v8 = vpop.f32.mrb[112].mxu1 }
 0xdb4   : > { %v12950_v55 = vadd.f32 %v10035_v21, %v20218_v10  ;;  %v10037_v18 = vpop.f32.mrb[113].mxu0  ;;  %v10080_v37 = vpop.f32.mrb[113].mxu1  ;;  %v12982_v21 = vadd.f32 %v10078_v8, %v18211_v16 }
 0xdb5   : > { %v12951_v62 = vadd.f32 %v10037_v18, %v18205_v3  ;;  %v10039_v6 = vpop.f32.mrb[114].mxu0  ;;  %v10082_v17 = vpop.f32.mrb[114].mxu1 }
 0xdb6   : > { %v14370_v20 = vpop.eup %14369  ;;  %v10131_v49 = vmul.f32 0.5, %v12950_v55  ;;  %v12952_v32 = vadd.f32 %v10039_v6, %v20218_v10  ;;  %v10041_v53 = vpop.f32.mrb[115].mxu0  ;;  %v12984_v6 = vadd.f32 %v10082_v17, %v18211_v16 }
 0xdb7   : > { %v10084_v7 = vpop.f32.mrb[115].mxu1  ;;  %v10129_v12 = vmul.f32 %v14370_v20, %v10119_v56  ;;  %v10139_v61 = vmul.f32 0.5, %v12951_v62  ;;  %v12953_v31 = vadd.f32 %v10041_v53, %v18205_v3  ;;  %v12983_v56 = vadd.f32 %v10080_v37, %v18220_v57 }
 0xdb8   : > { %14373 = vtanh.f32 %v10131_v49  ;;  %v10132_v15 = vmul.f32 0.5, %v12952_v32  ;;  %v14372_v9 = vpop.eup %14371 }
 0xdb9   : > { %v18881_v0 = vadd.f32 %v10129_v12, %v18616_v39  ;;  %14375 = vtanh.f32 %v10139_v61  ;;  %v10140_v18 = vmul.f32 0.5, %v12953_v31  ;;  %v10130_v55 = vmul.f32 %v14372_v9, %v10120_v1 }
 0xdba   : > { %14377 = vtanh.f32 %v10132_v15  ;;  %v10149_v39 = vmul.f32 0.5, %v12983_v56  ;;  %v12985_v61 = vadd.f32 %v10084_v7, %v18220_v57 }
 0xdbb   : > { %14379 = vtanh.f32 %v12982_v21  ;;  %v18886_v62 = vadd.f32 %v10130_v55, %v18622_v19  ;;  %v10179_v8 = vpack.c.bf16 %v10130_v55, %v10129_v12 }
 0xdbc   : > { %14381 = vtanh.f32 %v10140_v18  ;;  %v10150_v37 = vmul.f32 0.5, %v12985_v61 }
 0xdbd   : > { %14383 = vtanh.f32 %v12984_v6  ;;  %10213 = vmatmul.mubr.bf16.vlgmr.msra.gmra.mrb[80].mxu0 %v10179_v8  ;;  %10256 = vmatmul.mubr.bf16.vlgmr.msra.gmra.mrb[80].mxu1 %v10179_v8  ;;  %v20219_v8 = vld [vmem:[#allocation37_spill] sm:$0xff] }
 0xdbe   : > { %10284 = vmatpush1.bf16.msra.mxu0 %v18628_v5  ;;  %10327 = vmatpush1.bf16.msra.mxu1 %v18634_v43  ;;  %14385 = vtanh.f32 %v10149_v39 }
 0xdbf   : > { %10285 = vmatprep.subr.bf16.mxu0 %v18640_v26  ;;  %10328 = vmatprep.subr.bf16.mxu1 %v18646_v28  ;;  %14387 = vtanh.f32 %v10150_v37 }
 0xdc0   : > { %10315 = vmatprep.mubr.bf16.mxu0 %v19931_v14  ;;  %10358 = vmatprep.mubr.bf16.mxu1 %v19931_v14 }
 0xdc2   : > { %v14374_v9 = vpop.eup %14373  ;;  %10286 = vmatpush1.bf16.msra.mxu0 %v18654_v59  ;;  %10329 = vmatpush1.bf16.msra.mxu1 %v18660_v36 }
 0xdc3   : > { %v14376_v15 = vpop.eup %14375  ;;  %v10135_v19 = vmul.f32 0.5, %v14374_v9  ;;  %10287 = vmatprep.subr.bf16.mxu0 %v18666_v60  ;;  %10330 = vmatprep.subr.bf16.mxu1 %v18672_v23  ;;  %v20220_v9 = vld [vmem:[#allocation14_spill] sm:$0xff] }
 0xdc4   : > { %v10143_v31 = vmul.f32 0.5, %v14376_v15  ;;  %v14378_v46 = vpop.eup %14377  ;;  %v20221_v15 = vld [vmem:[#allocation33_spill] sm:$0xff] }
 0xdc5   : > { %v10137_v17 = vadd.f32 0.5, %v10135_v19  ;;  %v14380_v20 = vpop.eup %14379  ;;  %v10136_v32 = vmul.f32 0.5, %v14378_v46  ;;  %v20224_v46 = vld [vmem:[#allocation8_spill] sm:$0xff] }
 0xdc6   : > { %v10145_v49 = vadd.f32 0.5, %v10143_v31  ;;  %v14382_v53 = vpop.eup %14381  ;;  %10288 = vmatpush1.bf16.msra.mxu0 %v18679_v58  ;;  %10331 = vmatpush1.bf16.msra.mxu1 %v18685_v48  ;;  %v20222_v31 = vld [vmem:[#allocation7_spill] sm:$0xff] }
 0xdc7   : > { %v10159_v7 = vmul.f32 %v14380_v20, %v10137_v17  ;;  %v10138_v21 = vadd.f32 0.5, %v10136_v32  ;;  %v10144_v1 = vmul.f32 0.5, %v14382_v53  ;;  %v14384_v18 = vpop.eup %14383  ;;  %10289 = vmatprep.subr.bf16.mxu0 %v18691_v47  ;;  %10332 = vmatprep.subr.bf16.mxu1 %v18697_v45  ;;  %v20225_v17 = vld [vmem:[#allocation9_spill] sm:$0xff]  ;;  %v20226_v32 = vld [vmem:[#allocation42_spill] sm:$0xff]  ;;  %v20227_v53 = vld [vmem:[#allocation43_spill] sm:$0xff] }
 0xdc8   : > { %v10157_v12 = vmul.f32 %v10145_v49, %v18700_v27  ;;  %v14386_v39 = vpop.eup %14385 }
 0xdc9   : > { %v10146_v6 = vadd.f32 0.5, %v10144_v1  ;;  %v10160_v56 = vmul.f32 %v14384_v18, %v10138_v21  ;;  %v10153_v19 = vmul.f32 0.5, %v14386_v39  ;;  %v14388_v37 = vpop.eup %14387  ;;  %v20228_v21 = vld [vmem:[#allocation12_spill] sm:$0xff]  ;;  %v20229_v1 = vld [vmem:[#allocation45_spill] sm:$0xff] }
 0xdca   : > { %v18904_v55 = vadd.f32 %v10159_v7, %v10157_v12  ;;  %10290 = vmatpush1.bf16.msra.mxu0 %v18707_v2  ;;  %10333 = vmatpush1.bf16.msra.mxu1 %v18713_v30  ;;  %v10154_v49 = vmul.f32 0.5, %v14388_v37 }
 0xdcb   : > { %v10158_v27 = vmul.f32 %v10146_v6, %v18728_v35  ;;  %10291 = vmatprep.subr.bf16.mxu0 %v18719_v34  ;;  %10334 = vmatprep.subr.bf16.mxu1 %v20219_v8  ;;  %v20223_v35 = vld [vmem:[#allocation22_spill] sm:$0xff]  ;;  %v10155_v20 = vadd.f32 0.5, %v10153_v19 }
 0xdcc   : > { %14389 = vtanh.f32 %v18904_v55  ;;  %v10156_v6 = vadd.f32 0.5, %v10154_v49  ;;  %v20247_v49 = vld [vmem:[#allocation35_spill] sm:$0xff] }
 0xdcd   : > { %v18912_v61 = vadd.f32 %v10160_v56, %v10158_v27  ;;  %v20230_v56 = vld [vmem:[#allocation46_spill] sm:$0xff]  ;;  %v20231_v27 = vld [vmem:[#allocation47_spill] sm:$0xff] }
 0xdce   : > { %10292 = vmatpush1.bf16.msra.mxu0 %v20220_v9  ;;  %10335 = vmatpush1.bf16.msra.mxu1 %v20221_v15 }
 0xdcf   : > { %14391 = vtanh.f32 %v18912_v61  ;;  %10293 = vmatprep.subr.bf16.mxu0 %v20222_v31  ;;  %10336 = vmatprep.subr.bf16.mxu1 %v20223_v35 }
 0xdd2   : > { %10294 = vmatpush1.bf16.msra.mxu0 %v20224_v46  ;;  %10337 = vmatpush1.bf16.msra.mxu1 %v20225_v17 }
 0xdd3   : > { %10295 = vmatprep.subr.bf16.mxu0 %v20226_v32  ;;  %10338 = vmatprep.subr.bf16.mxu1 %v20227_v53 }
 0xdd6   : > { %v14390_v7 = vpop.eup %14389  ;;  %10296 = vmatpush1.bf16.msra.mxu0 %v18784_v25  ;;  %10339 = vmatpush1.bf16.msra.mxu1 %v20228_v21 }
 0xdd7   : > { %v10165_v12 = vmul.f32 %v14390_v7, %v10155_v20  ;;  %10297 = vmatprep.subr.bf16.mxu0 %v20230_v56  ;;  %10340 = vmatprep.subr.bf16.mxu1 %v20231_v27  ;;  %v20248_v7 = vld [vmem:[#allocation34_spill] sm:$0xff] }
 0xdd9   : > { %v18926_v18 = vadd.f32 %v10165_v12, %v20229_v1  ;;  %v14392_v39 = vpop.eup %14391  ;;  %v20250_v1 = vld [vmem:[#allocation36_spill] sm:$0xff] }
 0xdda   : > { %v10166_v19 = vmul.f32 %v14392_v39, %v10156_v6  ;;  %10298 = vmatpush1.bf16.msra.mxu0 %v18812_v4  ;;  %10341 = vmatpush1.bf16.msra.mxu1 %v18818_v54  ;;  %v20251_v6 = vld [vmem:[#allocation40_spill] sm:$0xff] }
 0xddb   : > { %10462 = vmatprep.subr.bf16.mxu0 %v18390_v44  ;;  %10505 = vmatprep.subr.bf16.mxu1 %v18396_v24  ;;  %v20232_v44 = vld [vmem:[#allocation18_spill] sm:$0xff]  ;;  %v20233_v24 = vld [vmem:[#allocation11_spill] sm:$0xff] }
 0xddc   : > { %v18933_v37 = vadd.f32 %v10166_v19, %v18821_v40  ;;  %v10282_v20 = vpack.c.bf16 %v10166_v19, %v10165_v12  ;;  %v20246_v40 = vld [vmem:[#allocation32_spill] sm:$0xff]  ;;  %v20249_v12 = vld [vmem:[#allocation38_spill] sm:$0xff] }
 0xdde   : > { %10316 = vmatmul.mubr.bf16.vlgmr.msra.gmra.mrb[108].mxu0 %v10282_v20  ;;  %10359 = vmatmul.mubr.bf16.vlgmr.msra.gmra.mrb[108].mxu1 %v10282_v20  ;;  %v20252_v20 = vld [vmem:[#allocation16_spill] sm:$0xff] }
 0xddf   : > { %10463 = vmatpush1.bf16.msra.mxu0 %v18402_v11  ;;  %10506 = vmatpush1.bf16.msra.mxu1 %v18408_v41  ;;  %v20234_v11 = vld [vmem:[#allocation10_spill] sm:$0xff]  ;;  %v20235_v41 = vld [vmem:[#allocation21_spill] sm:$0xff] }
 0xde0   : > { %10464 = vmatprep.subr.bf16.mxu0 %v18414_v33  ;;  %10507 = vmatprep.subr.bf16.mxu1 %v18420_v22  ;;  %v20236_v33 = vld [vmem:[#allocation20_spill] sm:$0xff]  ;;  %v20237_v22 = vld [vmem:[#allocation23_spill] sm:$0xff] }
 0xde1   : > { %10494 = vmatprep.mubr.bf16.mxu0 %v19931_v14  ;;  %10537 = vmatprep.mubr.bf16.mxu1 %v19931_v14 }
 0xde3   : > { %10465 = vmatpush1.bf16.msra.mxu0 %v18428_v42  ;;  %10508 = vmatpush1.bf16.msra.mxu1 %v18434_v63  ;;  %v20238_v42 = vld [vmem:[#allocation24_spill] sm:$0xff]  ;;  %v20239_v63 = vld [vmem:[#allocation26_spill] sm:$0xff] }
 0xde4   : > { %10466 = vmatprep.subr.bf16.mxu0 %v18440_v38  ;;  %10509 = vmatprep.subr.bf16.mxu1 %v18446_v13  ;;  %v20240_v38 = vld [vmem:[#allocation25_spill] sm:$0xff]  ;;  %v20241_v13 = vld [vmem:[#allocation28_spill] sm:$0xff] }
 0xde7   : > { %10467 = vmatpush1.bf16.msra.mxu0 %v18452_v52  ;;  %10510 = vmatpush1.bf16.msra.mxu1 %v18458_v29  ;;  %v20242_v52 = vld [vmem:[#allocation27_spill] sm:$0xff]  ;;  %v20243_v29 = vld [vmem:[#allocation30_spill] sm:$0xff] }
 0xde8   : > { %10468 = vmatprep.subr.bf16.mxu0 %v18464_v50  ;;  %10511 = vmatprep.subr.bf16.mxu1 %v18470_v51  ;;  %v20244_v50 = vld [vmem:[#allocation29_spill] sm:$0xff]  ;;  %v20245_v51 = vld [vmem:[#allocation31_spill] sm:$0xff] }
 0xdeb   : > { %10469 = vmatpush1.bf16.msra.mxu0 %v20232_v44  ;;  %10512 = vmatpush1.bf16.msra.mxu1 %v20233_v24 }
 0xdec   : > { %10470 = vmatprep.subr.bf16.mxu0 %v20234_v11  ;;  %10513 = vmatprep.subr.bf16.mxu1 %v20235_v41  ;;  %v20253_v41 = vld [vmem:[#allocation13_spill] sm:$0xff] }
 0xdef   : > { %10471 = vmatpush1.bf16.msra.mxu0 %v20236_v33  ;;  %10514 = vmatpush1.bf16.msra.mxu1 %v20237_v22 }
 0xdf0   : > { %10472 = vmatprep.subr.bf16.mxu0 %v20238_v42  ;;  %10515 = vmatprep.subr.bf16.mxu1 %v20239_v63 }
 0xdf3   : > { %10473 = vmatpush1.bf16.msra.mxu0 %v20240_v38  ;;  %10516 = vmatpush1.bf16.msra.mxu1 %v20241_v13 }
 0xdf4   : > { %10474 = vmatprep.subr.bf16.mxu0 %v20242_v52  ;;  %10517 = vmatprep.subr.bf16.mxu1 %v20243_v29 }
 0xdf7   : > { %10475 = vmatpush1.bf16.msra.mxu0 %v20244_v50  ;;  %10518 = vmatpush1.bf16.msra.mxu1 %v20245_v51  ;;  %v20254_v51 = vld [vmem:[#allocation19_spill] sm:$0xff] }
 0xdf8   : > { %10476 = vmatprep.subr.bf16.mxu0 %v20246_v40  ;;  %10519 = vmatprep.subr.bf16.mxu1 %v20247_v49 }
 0xdfb   : > { %10477 = vmatpush1.bf16.msra.mxu0 %v20248_v7  ;;  %10520 = vmatpush1.bf16.msra.mxu1 %v20249_v12 }
 0xdfc   : > { %10565 = vmatprep.subr.bf16.mxu0 %v20250_v1  ;;  %10608 = vmatprep.subr.bf16.mxu1 %v20251_v6  ;;  %v20255_v1 = vld [vmem:[#allocation15_spill] sm:$0xff] }
 0xe90   : > { %v10214_v39 = vpop.f32.mrb[80].mxu0  ;;  %v10257_v19 = vpop.f32.mrb[80].mxu1 }
 0xe91   : > { %v12886_v44 = vadd.f32 %v10214_v39, %v20252_v20  ;;  %v10216_v24 = vpop.f32.mrb[81].mxu0  ;;  %v10259_v11 = vpop.f32.mrb[81].mxu1  ;;  %v12918_v40 = vadd.f32 %v10257_v19, %v20254_v51 }
 0xe92   : > { %v12887_v33 = vadd.f32 %v10216_v24, %v20253_v41  ;;  %v10218_v22 = vpop.f32.mrb[82].mxu0  ;;  %v10261_v42 = vpop.f32.mrb[82].mxu1  ;;  %v12919_v6 = vadd.f32 %v10259_v11, %v20255_v1 }
 0xe93   : > { %v10377_v63 = vmul.f32 0.5, %v12886_v44  ;;  %v12888_v38 = vadd.f32 %v10218_v22, %v20252_v20  ;;  %v10220_v13 = vpop.f32.mrb[83].mxu0  ;;  %v10263_v52 = vpop.f32.mrb[83].mxu1  ;;  %v12920_v12 = vadd.f32 %v10261_v42, %v20254_v51  ;;  %v20256_v51 = vld [vmem:[#allocation44_spill] sm:$0xff] }
 0xe94   : > { %v10385_v29 = vmul.f32 0.5, %v12887_v33  ;;  %v12889_v50 = vadd.f32 %v10220_v13, %v20253_v41  ;;  %v10395_v39 = vmul.f32 0.5, %v12919_v6  ;;  %v12921_v44 = vadd.f32 %v10263_v52, %v20255_v1 }
 0xe95   : > { %14393 = vtanh.f32 %v10377_v63  ;;  %v10378_v49 = vmul.f32 0.5, %v12888_v38 }
 0xe96   : > { %14395 = vtanh.f32 %v10385_v29  ;;  %v10386_v7 = vmul.f32 0.5, %v12889_v50  ;;  %v10396_v19 = vmul.f32 0.5, %v12921_v44 }
 0xe97   : > { %14397 = vtanh.f32 %v10378_v49 }
 0xe98   : > { %14399 = vtanh.f32 %v12918_v40 }
 0xe99   : > { %14401 = vtanh.f32 %v10386_v7 }
 0xe9a   : > { %14403 = vtanh.f32 %v12920_v12 }
 0xe9b   : > { %14405 = vtanh.f32 %v10395_v39  ;;  %v20258_v39 = vld [vmem:[#allocation39_spill] sm:$0xff] }
 0xe9c   : > { %14407 = vtanh.f32 %v10396_v19 }
 0xe9f   : > { %v14394_v24 = vpop.eup %14393 }
 0xea0   : > { %v14396_v33 = vpop.eup %14395  ;;  %v10381_v22 = vmul.f32 0.5, %v14394_v24 }
 0xea1   : > { %v10389_v63 = vmul.f32 0.5, %v14396_v33  ;;  %v14398_v38 = vpop.eup %14397 }
 0xea2   : > { %v10383_v13 = vadd.f32 0.5, %v10381_v22  ;;  %v14400_v29 = vpop.eup %14399  ;;  %v10382_v49 = vmul.f32 0.5, %v14398_v38 }
 0xea3   : > { %v10391_v50 = vadd.f32 0.5, %v10389_v63  ;;  %v14402_v42 = vpop.eup %14401 }
 0xea4   : > { %v10405_v40 = vmul.f32 %v14400_v29, %v10383_v13  ;;  %v10384_v7 = vadd.f32 0.5, %v10382_v49  ;;  %v10390_v12 = vmul.f32 0.5, %v14402_v42  ;;  %v14404_v6 = vpop.eup %14403 }
 0xea5   : > { %v10403_v11 = vmul.f32 %v10391_v50, %v20256_v51  ;;  %v14406_v33 = vpop.eup %14405 }
 0xea6   : > { %v10392_v1 = vadd.f32 0.5, %v10390_v12  ;;  %v10406_v24 = vmul.f32 %v14404_v6, %v10384_v7  ;;  %v10399_v63 = vmul.f32 0.5, %v14406_v33  ;;  %v14408_v38 = vpop.eup %14407 }
 0xea7   : > { %v18980_v52 = vadd.f32 %v10405_v40, %v10403_v11  ;;  %v10400_v42 = vmul.f32 0.5, %v14408_v38 }
 0xea8   : > { %v10404_v44 = vmul.f32 %v10392_v1, %v20258_v39  ;;  %v10401_v49 = vadd.f32 0.5, %v10399_v63 }
 0xea9   : > { %20257 = vst [vmem:[#allocation17_spill] sm:$0xff] %v18980_v52  ;;  %14409 = vtanh.f32 %v18980_v52  ;;  %v10402_v38 = vadd.f32 0.5, %v10400_v42 }
 0xeaa   : > { %v18984_v22 = vadd.f32 %v10406_v24, %v10404_v44 }
 0xeac   : > { %20259 = vst [vmem:[#allocation41_spill] sm:$0xff] %v18984_v22  ;;  %14411 = vtanh.f32 %v18984_v22 }
 0xeb1   : > { %v10317_v51 = vpop.f32.mrb[108].mxu0  ;;  %v10360_v13 = vpop.f32.mrb[108].mxu1 }
 0xeb2   : > { %v12946_v19 = vadd.f32 %v10317_v51, %v20218_v10  ;;  %v10319_v29 = vpop.f32.mrb[109].mxu0  ;;  %v10362_v50 = vpop.f32.mrb[109].mxu1  ;;  %v12978_v51 = vadd.f32 %v10360_v13, %v18211_v16 }
 0xeb3   : > { %v12947_v40 = vadd.f32 %v10319_v29, %v18205_v3  ;;  %v10321_v11 = vpop.f32.mrb[110].mxu0  ;;  %v10364_v7 = vpop.f32.mrb[110].mxu1 }
 0xeb4   : > { %v14410_v1 = vpop.eup %14409  ;;  %v10413_v12 = vmul.f32 0.5, %v12946_v19  ;;  %v12948_v6 = vadd.f32 %v10321_v11, %v20218_v10  ;;  %v10323_v24 = vpop.f32.mrb[111].mxu0  ;;  %v12980_v11 = vadd.f32 %v10364_v7, %v18211_v16 }
 0xeb5   : > { %v10366_v39 = vpop.f32.mrb[111].mxu1  ;;  %v10411_v44 = vmul.f32 %v14410_v1, %v10401_v49  ;;  %v10421_v33 = vmul.f32 0.5, %v12947_v40  ;;  %v12949_v22 = vadd.f32 %v10323_v24, %v18205_v3  ;;  %v12979_v49 = vadd.f32 %v10362_v50, %v18220_v57 }
 0xeb6   : > { %14413 = vtanh.f32 %v10413_v12  ;;  %v10414_v52 = vmul.f32 0.5, %v12948_v6  ;;  %v14412_v41 = vpop.eup %14411  ;;  %v12981_v42 = vadd.f32 %v10366_v39, %v18220_v57 }
 0xeb7   : > { %v18993_v63 = vadd.f32 %v10411_v44, %v18881_v0  ;;  %14415 = vtanh.f32 %v10421_v33  ;;  %v10422_v29 = vmul.f32 0.5, %v12949_v22  ;;  %v10412_v19 = vmul.f32 %v14412_v41, %v10402_v38  ;;  %v19124_v33 = vld [vmem:[%s19686_s5 + $0x64] ss:$16 sps:$4 sm:$0xff]   ;;  %v19136_v38 = vld [vmem:[%s19686_s5 + $0x60] ss:$16 sps:$4 sm:$0xff]  }
 0xeb8   : > { %14417 = vtanh.f32 %v10414_v52  ;;  %v10431_v0 = vmul.f32 0.5, %v12979_v49  ;;  %v10432_v50 = vmul.f32 0.5, %v12981_v42  ;;  %v19160_v49 = vld [vmem:[%s19686_s5 + $0x80] ss:$16 sps:$4 sm:$0xff]   ;;  %v19178_v42 = vld [vmem:[%s19686_s5 + $0xac] ss:$16 sps:$4 sm:$0xff]  }
 0xeb9   : > { %14419 = vtanh.f32 %v12978_v51  ;;  %v18998_v40 = vadd.f32 %v10412_v19, %v18886_v62  ;;  %v10461_v13 = vpack.c.bf16 %v10412_v19, %v10411_v44  ;;  %v19118_v44 = vld [vmem:[%s19686_s5 + $0x48] ss:$16 sps:$4 sm:$0xff]   ;;  %v19130_v51 = vld [vmem:[%s19686_s5 + $0x6c] ss:$16 sps:$4 sm:$0xff]   ;;  %v19148_v19 = vld [vmem:[%s19686_s5 + $0x84] ss:$16 sps:$4 sm:$0xff]  }
 0xeba   : > { %14421 = vtanh.f32 %v10422_v29  ;;  %v19142_v29 = vld [vmem:[%s19686_s5 + $0x68] ss:$16 sps:$4 sm:$0xff]  }
 0xebb   : > { %14423 = vtanh.f32 %v12980_v11  ;;  %10495 = vmatmul.mubr.bf16.vlgmr.msra.gmra.mrb[84].mxu0 %v10461_v13  ;;  %10538 = vmatmul.mubr.bf16.vlgmr.msra.gmra.mrb[84].mxu1 %v10461_v13  ;;  %v19154_v11 = vld [vmem:[%s19686_s5 + $0x8c] ss:$16 sps:$4 sm:$0xff]   ;;  %v19166_v13 = vld [vmem:[%s19686_s5 + $0x88] ss:$16 sps:$4 sm:$0xff]  }
 0xebc   : > { %10566 = vmatpush1.bf16.msra.mxu0 %v18628_v5  ;;  %10609 = vmatpush1.bf16.msra.mxu1 %v18634_v43  ;;  %14425 = vtanh.f32 %v10431_v0  ;;  %v19172_v0 = vld [vmem:[%s19686_s5 + $0xa4] ss:$16 sps:$4 sm:$0xff]  }
 0xebd   : > { %10567 = vmatprep.subr.bf16.mxu0 %v18640_v26  ;;  %10610 = vmatprep.subr.bf16.mxu1 %v18646_v28  ;;  %14427 = vtanh.f32 %v10432_v50  ;;  %v19208_v50 = vld [vmem:[%s19686_s5 + $0xc0] ss:$16 sps:$4 sm:$0xff]  }
 0xebe   : > { %10597 = vmatprep.mubr.bf16.mxu0 %v19931_v14  ;;  %10640 = vmatprep.mubr.bf16.mxu1 %v19931_v14 }
 0xec0   : > { %v14414_v41 = vpop.eup %14413  ;;  %10568 = vmatpush1.bf16.msra.mxu0 %v18654_v59  ;;  %10611 = vmatpush1.bf16.msra.mxu1 %v18660_v36 }
 0xec1   : > { %v14416_v62 = vpop.eup %14415  ;;  %v10417_v52 = vmul.f32 0.5, %v14414_v41  ;;  %10569 = vmatprep.subr.bf16.mxu0 %v18666_v60  ;;  %10612 = vmatprep.subr.bf16.mxu1 %v18672_v23  ;;  %v19184_v41 = vld [vmem:[%s19686_s5 + $0xa0] ss:$16 sps:$4 sm:$0xff]  }
 0xec2   : > { %v10425_v22 = vmul.f32 0.5, %v14416_v62  ;;  %v14418_v5 = vpop.eup %14417  ;;  %v19190_v62 = vld [vmem:[%s19686_s5 + $0xa8] ss:$16 sps:$4 sm:$0xff]  }
 0xec3   : > { %v10419_v43 = vadd.f32 0.5, %v10417_v52  ;;  %v14420_v26 = vpop.eup %14419  ;;  %v10418_v7 = vmul.f32 0.5, %v14418_v5  ;;  %v19196_v52 = vld [vmem:[%s19686_s5 + $0xc4] ss:$16 sps:$4 sm:$0xff]   ;;  %v19214_v5 = vld [vmem:[%s19686_s5 + $0xc8] ss:$16 sps:$4 sm:$0xff]  }
 0xec4   : > { %v10427_v28 = vadd.f32 0.5, %v10425_v22  ;;  %v14422_v1 = vpop.eup %14421  ;;  %10570 = vmatpush1.bf16.msra.mxu0 %v18679_v58  ;;  %10613 = vmatpush1.bf16.msra.mxu1 %v18685_v48  ;;  %v19202_v22 = vld [vmem:[%s19686_s5 + $0xcc] ss:$16 sps:$4 sm:$0xff]  }
 0xec5   : > { %v10441_v12 = vmul.f32 %v14420_v26, %v10419_v43  ;;  %v10420_v24 = vadd.f32 0.5, %v10418_v7  ;;  %v10426_v39 = vmul.f32 0.5, %v14422_v1  ;;  %v14424_v59 = vpop.eup %14423  ;;  %10571 = vmatprep.subr.bf16.mxu0 %v18691_v47  ;;  %10614 = vmatprep.subr.bf16.mxu1 %v18697_v45  ;;  %v19220_v43 = vld [vmem:[%s19686_s5 + $0xe4] ss:$16 sps:$4 sm:$0xff]   ;;  %v19226_v26 = vld [vmem:[%s19686_s5 + $0xec] ss:$16 sps:$4 sm:$0xff]  }
 0xec6   : > { %v10439_v6 = vmul.f32 %v10427_v28, %v18904_v55  ;;  %v14426_v58 = vpop.eup %14425  ;;  %v19232_v28 = vld [vmem:[%s19686_s5 + $0xe0] ss:$16 sps:$4 sm:$0xff]   ;;  %v19238_v7 = vld [vmem:[%s19686_s5 + $0xe8] ss:$16 sps:$4 sm:$0xff]   ;;  %v19244_v1 = vld [vmem:[%s19686_s5 + $0x104] ss:$16 sps:$4 sm:$0xff]  }
 0xec7   : > { %v10428_v60 = vadd.f32 0.5, %v10426_v39  ;;  %v10442_v23 = vmul.f32 %v14424_v59, %v10420_v24  ;;  %v10435_v47 = vmul.f32 0.5, %v14426_v58  ;;  %v14428_v45 = vpop.eup %14427  ;;  %20260 = vst [vmem:[#allocation37_spill] sm:$0xff] %v19238_v7  ;;  %20261 = vst [vmem:[#allocation14_spill] sm:$0xff] %v19244_v1 }
 0xec8   : > { %v19016_v36 = vadd.f32 %v10441_v12, %v10439_v6  ;;  %10572 = vmatpush1.bf16.msra.mxu0 %v18707_v2  ;;  %10615 = vmatpush1.bf16.msra.mxu1 %v18713_v30  ;;  %v10436_v30 = vmul.f32 0.5, %v14428_v45  ;;  %v19250_v12 = vld [vmem:[%s19686_s5 + $0x10c] ss:$16 sps:$4 sm:$0xff]  }
 0xec9   : > { %v10440_v55 = vmul.f32 %v10428_v60, %v18912_v61  ;;  %10573 = vmatprep.subr.bf16.mxu0 %v18719_v34  ;;  %10616 = vmatprep.subr.bf16.mxu1 %v20219_v8  ;;  %v10437_v2 = vadd.f32 0.5, %v10435_v47  ;;  %20262 = vst [vmem:[#allocation33_spill] sm:$0xff] %v19250_v12 }
 0xeca   : > { %14429 = vtanh.f32 %v19016_v36 }
 0xecb   : > { %v19024_v48 = vadd.f32 %v10442_v23, %v10440_v55  ;;  %v20263_v23 = vld [vmem:[#allocation13_spill] sm:$0xff] }
 0xecc   : > { %10574 = vmatpush1.bf16.msra.mxu0 %v20220_v9  ;;  %10617 = vmatpush1.bf16.msra.mxu1 %v20221_v15  ;;  %v10438_v9 = vadd.f32 0.5, %v10436_v30 }
 0xecd   : > { %14431 = vtanh.f32 %v19024_v48  ;;  %10575 = vmatprep.subr.bf16.mxu0 %v20222_v31  ;;  %10618 = vmatprep.subr.bf16.mxu1 %v20223_v35 }
 0xed0   : > { %10576 = vmatpush1.bf16.msra.mxu0 %v20224_v46  ;;  %10619 = vmatpush1.bf16.msra.mxu1 %v20225_v17  ;;  %v19050_v46 = vld [vmem:[%s19686_s5 + $0x4] ss:$16 sps:$4 sm:$0xff]   ;;  %v19056_v17 = vld [vmem:[%s19686_s5 + $0xc] ss:$16 sps:$4 sm:$0xff]  }
 0xed1   : > { %10577 = vmatprep.subr.bf16.mxu0 %v20226_v32  ;;  %10620 = vmatprep.subr.bf16.mxu1 %v20227_v53  ;;  %v19074_v32 = vld [vmem:[%s19686_s5 + $0x24] ss:$16 sps:$4 sm:$0xff]   ;;  %v19080_v53 = vld [vmem:[%s19686_s5 + $0x2c] ss:$16 sps:$4 sm:$0xff]  }
 0xed4   : > { %v14430_v34 = vpop.eup %14429  ;;  %10578 = vmatpush1.bf16.msra.mxu0 %v18784_v25  ;;  %10621 = vmatpush1.bf16.msra.mxu1 %v20228_v21  ;;  %v19088_v21 = vld [vmem:[%s19686_s5 + $0x20] ss:$16 sps:$4 sm:$0xff]  }
 0xed5   : > { %v10447_v8 = vmul.f32 %v14430_v34, %v10437_v2  ;;  %10579 = vmatprep.subr.bf16.mxu0 %v20230_v56  ;;  %10622 = vmatprep.subr.bf16.mxu1 %v20231_v27  ;;  %v19100_v56 = vld [vmem:[%s19686_s5 + $0x44] ss:$16 sps:$4 sm:$0xff]   ;;  %v19106_v27 = vld [vmem:[%s19686_s5 + $0x4c] ss:$16 sps:$4 sm:$0xff]  }
 0xed7   : > { %v19038_v61 = vadd.f32 %v10447_v8, %v18926_v18  ;;  %v14432_v15 = vpop.eup %14431  ;;  %v19094_v18 = vld [vmem:[%s19686_s5 + $0x28] ss:$16 sps:$4 sm:$0xff]  }
 0xed8   : > { %v10448_v31 = vmul.f32 %v14432_v15, %v10438_v9  ;;  %10580 = vmatpush1.bf16.msra.mxu0 %v18812_v4  ;;  %10623 = vmatpush1.bf16.msra.mxu1 %v18818_v54  ;;  %v19062_v54 = vld [vmem:[%s19686_s5] ss:$16 sps:$4 sm:$0xff]   ;;  %v19068_v4 = vld [vmem:[%s19686_s5 + $0x8] ss:$16 sps:$4 sm:$0xff]  }
 0xed9   : > { %10744 = vmatprep.subr.bf16.mxu0 %v19050_v46  ;;  %10787 = vmatprep.subr.bf16.mxu1 %v19056_v17  ;;  %v20264_v15 = vld [vmem:[#allocation19_spill] sm:$0xff] }
 0xeda   : > { %v19045_v35 = vadd.f32 %v10448_v31, %v18933_v37  ;;  %v10564_v25 = vpack.c.bf16 %v10448_v31, %v10447_v8  ;;  %v19112_v37 = vld [vmem:[%s19686_s5 + $0x40] ss:$16 sps:$4 sm:$0xff]  }
 0xedc   : > { %10598 = vmatmul.mubr.bf16.vlgmr.msra.gmra.mrb[104].mxu0 %v10564_v25  ;;  %10641 = vmatmul.mubr.bf16.vlgmr.msra.gmra.mrb[104].mxu1 %v10564_v25 }
 0xedd   : > { %10745 = vmatpush1.bf16.msra.mxu0 %v19062_v54  ;;  %10788 = vmatpush1.bf16.msra.mxu1 %v19068_v4 }
 0xede   : > { %10746 = vmatprep.subr.bf16.mxu0 %v19074_v32  ;;  %10789 = vmatprep.subr.bf16.mxu1 %v19080_v53 }
 0xedf   : > { %10776 = vmatprep.mubr.bf16.mxu0 %v19931_v14  ;;  %10819 = vmatprep.mubr.bf16.mxu1 %v19931_v14 }
 0xee1   : > { %10747 = vmatpush1.bf16.msra.mxu0 %v19088_v21  ;;  %10790 = vmatpush1.bf16.msra.mxu1 %v19094_v18 }
 0xee2   : > { %10748 = vmatprep.subr.bf16.mxu0 %v19100_v56  ;;  %10791 = vmatprep.subr.bf16.mxu1 %v19106_v27 }
 0xee5   : > { %10749 = vmatpush1.bf16.msra.mxu0 %v19112_v37  ;;  %10792 = vmatpush1.bf16.msra.mxu1 %v19118_v44 }
 0xee6   : > { %10750 = vmatprep.subr.bf16.mxu0 %v19124_v33  ;;  %10793 = vmatprep.subr.bf16.mxu1 %v19130_v51 }
 0xee9   : > { %10751 = vmatpush1.bf16.msra.mxu0 %v19136_v38  ;;  %10794 = vmatpush1.bf16.msra.mxu1 %v19142_v29 }
 0xeea   : > { %10752 = vmatprep.subr.bf16.mxu0 %v19148_v19  ;;  %10795 = vmatprep.subr.bf16.mxu1 %v19154_v11 }
 0xeed   : > { %10753 = vmatpush1.bf16.msra.mxu0 %v19160_v49  ;;  %10796 = vmatpush1.bf16.msra.mxu1 %v19166_v13 }
 0xeee   : > { %10754 = vmatprep.subr.bf16.mxu0 %v19172_v0  ;;  %10797 = vmatprep.subr.bf16.mxu1 %v19178_v42 }
 0xef1   : > { %10755 = vmatpush1.bf16.msra.mxu0 %v19184_v41  ;;  %10798 = vmatpush1.bf16.msra.mxu1 %v19190_v62 }
 0xef2   : > { %10756 = vmatprep.subr.bf16.mxu0 %v19196_v52  ;;  %10799 = vmatprep.subr.bf16.mxu1 %v19202_v22 }
 0xef5   : > { %10757 = vmatpush1.bf16.msra.mxu0 %v19208_v50  ;;  %10800 = vmatpush1.bf16.msra.mxu1 %v19214_v5 }
 0xef6   : > { %10758 = vmatprep.subr.bf16.mxu0 %v19220_v43  ;;  %10801 = vmatprep.subr.bf16.mxu1 %v19226_v26 }
 0xef9   : > { %10759 = vmatpush1.bf16.msra.mxu0 %v19232_v28  ;;  %10802 = vmatpush1.bf16.msra.mxu1 %v19238_v7 }
 0xefa   : > { %10847 = vmatprep.subr.bf16.mxu0 %v19244_v1  ;;  %10890 = vmatprep.subr.bf16.mxu1 %v19250_v12 }
 0xf8e   : > { %v10496_v6 = vpop.f32.mrb[84].mxu0  ;;  %v10539_v24 = vpop.f32.mrb[84].mxu1 }
 0xf8f   : > { %v12890_v39 = vadd.f32 %v10496_v6, %v20252_v20  ;;  %v10498_v59 = vpop.f32.mrb[85].mxu0  ;;  %v10541_v60 = vpop.f32.mrb[85].mxu1  ;;  %v12922_v31 = vadd.f32 %v10539_v24, %v20264_v15 }
 0xf90   : > { %v12891_v55 = vadd.f32 %v10498_v59, %v20263_v23  ;;  %v10500_v58 = vpop.f32.mrb[86].mxu0  ;;  %v10543_v47 = vpop.f32.mrb[86].mxu1  ;;  %v20265_v59 = vld [vmem:[#allocation15_spill] sm:$0xff] }
 0xf91   : > { %v10659_v45 = vmul.f32 0.5, %v12890_v39  ;;  %v12892_v2 = vadd.f32 %v10500_v58, %v20252_v20  ;;  %v10502_v30 = vpop.f32.mrb[87].mxu0  ;;  %v10545_v34 = vpop.f32.mrb[87].mxu1  ;;  %v12924_v12 = vadd.f32 %v10543_v47, %v20264_v15  ;;  %v12923_v1 = vadd.f32 %v10541_v60, %v20265_v59  ;;  %v20266_v15 = vld [vmem:[#allocation17_spill] sm:$0xff] }
 0xf92   : > { %v10667_v8 = vmul.f32 0.5, %v12891_v55  ;;  %v12893_v9 = vadd.f32 %v10502_v30, %v20263_v23  ;;  %v12925_v58 = vadd.f32 %v10545_v34, %v20265_v59 }
 0xf93   : > { %14433 = vtanh.f32 %v10659_v45  ;;  %v10660_v25 = vmul.f32 0.5, %v12892_v2  ;;  %v10677_v39 = vmul.f32 0.5, %v12923_v1 }
 0xf94   : > { %14435 = vtanh.f32 %v10667_v8  ;;  %v10668_v6 = vmul.f32 0.5, %v12893_v9  ;;  %v10678_v24 = vmul.f32 0.5, %v12925_v58 }
 0xf95   : > { %14437 = vtanh.f32 %v10660_v25 }
 0xf96   : > { %14439 = vtanh.f32 %v12922_v31 }
 0xf97   : > { %14441 = vtanh.f32 %v10668_v6 }
 0xf98   : > { %14443 = vtanh.f32 %v12924_v12 }
 0xf99   : > { %14445 = vtanh.f32 %v10677_v39 }
 0xf9a   : > { %14447 = vtanh.f32 %v10678_v24 }
 0xf9d   : > { %v14434_v55 = vpop.eup %14433 }
 0xf9e   : > { %v14436_v20 = vpop.eup %14435  ;;  %v10663_v30 = vmul.f32 0.5, %v14434_v55 }
 0xf9f   : > { %v10671_v45 = vmul.f32 0.5, %v14436_v20  ;;  %v14438_v2 = vpop.eup %14437  ;;  %v20268_v20 = vld [vmem:[#allocation41_spill] sm:$0xff] }
 0xfa0   : > { %v10665_v8 = vadd.f32 0.5, %v10663_v30  ;;  %v14440_v9 = vpop.eup %14439  ;;  %v10664_v23 = vmul.f32 0.5, %v14438_v2 }
 0xfa1   : > { %v10673_v25 = vadd.f32 0.5, %v10671_v45  ;;  %v14442_v47 = vpop.eup %14441 }
 0xfa2   : > { %v10687_v31 = vmul.f32 %v14440_v9, %v10665_v8  ;;  %v10666_v6 = vadd.f32 0.5, %v10664_v23  ;;  %v10672_v12 = vmul.f32 0.5, %v14442_v47  ;;  %v14444_v1 = vpop.eup %14443 }
 0xfa3   : > { %v10685_v60 = vmul.f32 %v10673_v25, %v20266_v15  ;;  %v14446_v58 = vpop.eup %14445 }
 0xfa4   : > { %v10674_v59 = vadd.f32 0.5, %v10672_v12  ;;  %v10688_v55 = vmul.f32 %v14444_v1, %v10666_v6  ;;  %v10681_v45 = vmul.f32 0.5, %v14446_v58  ;;  %v14448_v2 = vpop.eup %14447 }
 0xfa5   : > { %v19262_v34 = vadd.f32 %v10687_v31, %v10685_v60  ;;  %v10682_v47 = vmul.f32 0.5, %v14448_v2 }
 0xfa6   : > { %v10686_v39 = vmul.f32 %v10674_v59, %v20268_v20  ;;  %v10683_v25 = vadd.f32 0.5, %v10681_v45 }
 0xfa7   : > { %20267 = vst [vmem:[#allocation7_spill] sm:$0xff] %v19262_v34  ;;  %14449 = vtanh.f32 %v19262_v34  ;;  %v10684_v2 = vadd.f32 0.5, %v10682_v47 }
 0xfa8   : > { %v19266_v30 = vadd.f32 %v10688_v55, %v10686_v39 }
 0xfaa   : > { %20269 = vst [vmem:[#allocation22_spill] sm:$0xff] %v19266_v30  ;;  %14451 = vtanh.f32 %v19266_v30 }
 0xfaf   : > { %v10599_v15 = vpop.f32.mrb[104].mxu0  ;;  %v10642_v23 = vpop.f32.mrb[104].mxu1 }
 0xfb0   : > { %v12942_v24 = vadd.f32 %v10599_v15, %v20218_v10  ;;  %v10601_v8 = vpop.f32.mrb[105].mxu0  ;;  %v10644_v9 = vpop.f32.mrb[105].mxu1  ;;  %v12974_v15 = vadd.f32 %v10642_v23, %v18211_v16 }
 0xfb1   : > { %v12943_v31 = vadd.f32 %v10601_v8, %v18205_v3  ;;  %v10603_v60 = vpop.f32.mrb[106].mxu0  ;;  %v10646_v6 = vpop.f32.mrb[106].mxu1 }
 0xfb2   : > { %v14450_v59 = vpop.eup %14449  ;;  %v10695_v12 = vmul.f32 0.5, %v12942_v24  ;;  %v12944_v1 = vadd.f32 %v10603_v60, %v20218_v10  ;;  %v10605_v55 = vpop.f32.mrb[107].mxu0  ;;  %v12976_v60 = vadd.f32 %v10646_v6, %v18211_v16 }
 0xfb3   : > { %v10648_v20 = vpop.f32.mrb[107].mxu1  ;;  %v10693_v39 = vmul.f32 %v14450_v59, %v10683_v25  ;;  %v10703_v58 = vmul.f32 0.5, %v12943_v31  ;;  %v12945_v30 = vadd.f32 %v10605_v55, %v18205_v3  ;;  %v12975_v25 = vadd.f32 %v10644_v9, %v18220_v57  ;;  %v19312_v55 = vld [vmem:[%s19686_s5 + $0x120] ss:$16 sps:$4 sm:$0xff]  }
 0xfb4   : > { %14453 = vtanh.f32 %v10695_v12  ;;  %v10696_v34 = vmul.f32 0.5, %v12944_v1  ;;  %v14452_v7 = vpop.eup %14451  ;;  %v12977_v47 = vadd.f32 %v10648_v20, %v18220_v57  ;;  %v19318_v20 = vld [vmem:[%s19686_s5 + $0x128] ss:$16 sps:$4 sm:$0xff]  }
 0xfb5   : > { %v19275_v45 = vadd.f32 %v10693_v39, %v18993_v63  ;;  %14455 = vtanh.f32 %v10703_v58  ;;  %v10704_v8 = vmul.f32 0.5, %v12945_v30  ;;  %v10694_v24 = vmul.f32 %v14452_v7, %v10684_v2  ;;  %v19286_v7 = vld [vmem:[%s19686_s5 + $0x100] ss:$16 sps:$4 sm:$0xff]   ;;  %v19304_v30 = vld [vmem:[%s19686_s5 + $0x12c] ss:$16 sps:$4 sm:$0xff]  }
 0xfb6   : > { %14457 = vtanh.f32 %v10696_v34  ;;  %v10713_v63 = vmul.f32 0.5, %v12975_v25  ;;  %v19298_v34 = vld [vmem:[%s19686_s5 + $0x124] ss:$16 sps:$4 sm:$0xff]   ;;  %v10714_v1 = vmul.f32 0.5, %v12977_v47  ;;  %v19330_v2 = vld [vmem:[%s19686_s5 + $0x14c] ss:$16 sps:$4 sm:$0xff]  }
 0xfb7   : > { %14459 = vtanh.f32 %v12974_v15  ;;  %v19280_v31 = vadd.f32 %v10694_v24, %v18998_v40  ;;  %v10743_v23 = vpack.c.bf16 %v10694_v24, %v10693_v39  ;;  %v19292_v40 = vld [vmem:[%s19686_s5 + $0x108] ss:$16 sps:$4 sm:$0xff]   ;;  %v19324_v15 = vld [vmem:[%s19686_s5 + $0x144] ss:$16 sps:$4 sm:$0xff]  }
 0xfb8   : > { %14461 = vtanh.f32 %v10704_v8 }
 0xfb9   : > { %14463 = vtanh.f32 %v12976_v60  ;;  %10777 = vmatmul.mubr.bf16.vlgmr.msra.gmra.mrb[88].mxu0 %v10743_v23  ;;  %10820 = vmatmul.mubr.bf16.vlgmr.msra.gmra.mrb[88].mxu1 %v10743_v23 }
 0xfba   : > { %10848 = vmatpush1.bf16.msra.mxu0 %v19286_v7  ;;  %10891 = vmatpush1.bf16.msra.mxu1 %v19292_v40  ;;  %14465 = vtanh.f32 %v10713_v63 }
 0xfbb   : > { %10849 = vmatprep.subr.bf16.mxu0 %v19298_v34  ;;  %10892 = vmatprep.subr.bf16.mxu1 %v19304_v30  ;;  %14467 = vtanh.f32 %v10714_v1  ;;  %v19355_v1 = vld [vmem:[%s19686_s5 + $0x16c] ss:$16 sps:$4 sm:$0xff]  }
 0xfbc   : > { %10879 = vmatprep.mubr.bf16.mxu0 %v19931_v14  ;;  %10922 = vmatprep.mubr.bf16.mxu1 %v19931_v14 }
 0xfbe   : > { %v14454_v9 = vpop.eup %14453  ;;  %10850 = vmatpush1.bf16.msra.mxu0 %v19312_v55  ;;  %10893 = vmatpush1.bf16.msra.mxu1 %v19318_v20 }
 0xfbf   : > { %v14456_v6 = vpop.eup %14455  ;;  %v10699_v59 = vmul.f32 0.5, %v14454_v9  ;;  %10851 = vmatprep.subr.bf16.mxu0 %v19324_v15  ;;  %10894 = vmatprep.subr.bf16.mxu1 %v19330_v2 }
 0xfc0   : > { %v10707_v12 = vmul.f32 0.5, %v14456_v6  ;;  %v14458_v39 = vpop.eup %14457  ;;  %v19337_v6 = vld [vmem:[%s19686_s5 + $0x140] ss:$16 sps:$4 sm:$0xff]  }
 0xfc1   : > { %v10701_v58 = vadd.f32 0.5, %v10699_v59  ;;  %v14460_v8 = vpop.eup %14459  ;;  %v10700_v60 = vmul.f32 0.5, %v14458_v39  ;;  %v19343_v59 = vld [vmem:[%s19686_s5 + $0x148] ss:$16 sps:$4 sm:$0xff]  }
 0xfc2   : > { %v10709_v24 = vadd.f32 0.5, %v10707_v12  ;;  %v14462_v25 = vpop.eup %14461  ;;  %10852 = vmatpush1.bf16.msra.mxu0 %v19337_v6  ;;  %10895 = vmatpush1.bf16.msra.mxu1 %v19343_v59 }
 0xfc3   : > { %v10723_v23 = vmul.f32 %v14460_v8, %v10701_v58  ;;  %v10702_v47 = vadd.f32 0.5, %v10700_v60  ;;  %v10708_v9 = vmul.f32 0.5, %v14462_v25  ;;  %v14464_v12 = vpop.eup %14463  ;;  %10896 = vmatprep.subr.bf16.mxu1 %v19355_v1  ;;  %v19365_v60 = vld [vmem:[%s19686_s5 + $0x160] ss:$16 sps:$4 sm:$0xff]   ;;  %v19371_v25 = vld [vmem:[%s19686_s5 + $0x168] ss:$16 sps:$4 sm:$0xff]  }
 0xfc4   : > { %v10721_v63 = vmul.f32 %v10709_v24, %v19016_v36  ;;  %v19349_v36 = vld [vmem:[%s19686_s5 + $0x164] ss:$16 sps:$4 sm:$0xff]   ;;  %20270 = vst [vmem:[#allocation8_spill] sm:$0xff] %v19371_v25 }
 0xfc5   : > { %10853 = vmatprep.subr.bf16.mxu0 %v19349_v36  ;;  %v10710_v58 = vadd.f32 0.5, %v10708_v9  ;;  %v10724_v8 = vmul.f32 %v14464_v12, %v10702_v47  ;;  %v19392_v9 = vld [vmem:[%s19686_s5 + $0x180] ss:$16 sps:$4 sm:$0xff]   ;;  %v19398_v12 = vld [vmem:[%s19686_s5 + $0x188] ss:$16 sps:$4 sm:$0xff]  }
 0xfc6   : > { %v19358_v39 = vadd.f32 %v10723_v23, %v10721_v63  ;;  %10854 = vmatpush1.bf16.msra.mxu0 %v19365_v60  ;;  %10897 = vmatpush1.bf16.msra.mxu1 %v19371_v25  ;;  %v19377_v23 = vld [vmem:[%s19686_s5 + $0x184] ss:$16 sps:$4 sm:$0xff]   ;;  %v14466_v63 = vpop.eup %14465  ;;  %20273 = vst [vmem:[#allocation43_spill] sm:$0xff] %v19392_v9  ;;  %20274 = vst [vmem:[#allocation12_spill] sm:$0xff] %v19398_v12 }
 0xfc7   : > { %v10722_v24 = vmul.f32 %v10710_v58, %v19024_v48  ;;  %20271 = vst [vmem:[#allocation9_spill] sm:$0xff] %v19377_v23  ;;  %10855 = vmatprep.subr.bf16.mxu0 %v19377_v23  ;;  %v19383_v48 = vld [vmem:[%s19686_s5 + $0x18c] ss:$16 sps:$4 sm:$0xff]   ;;  %v10717_v58 = vmul.f32 0.5, %v14466_v63  ;;  %v19422_v63 = vld [vmem:[%s19686_s5 + $0x1a8] ss:$16 sps:$4 sm:$0xff]  }
 0xfc8   : > { %14469 = vtanh.f32 %v19358_v39  ;;  %20272 = vst [vmem:[#allocation42_spill] sm:$0xff] %v19383_v48  ;;  %10898 = vmatprep.subr.bf16.mxu1 %v19383_v48 }
 0xfc9   : > { %v19386_v47 = vadd.f32 %v10724_v8, %v10722_v24  ;;  %v19404_v8 = vld [vmem:[%s19686_s5 + $0x1a4] ss:$16 sps:$4 sm:$0xff]   ;;  %v19410_v24 = vld [vmem:[%s19686_s5 + $0x1ac] ss:$16 sps:$4 sm:$0xff]  }
 0xfca   : > { %10856 = vmatpush1.bf16.msra.mxu0 %v19392_v9  ;;  %10899 = vmatpush1.bf16.msra.mxu1 %v19398_v12  ;;  %20275 = vst [vmem:[#allocation45_spill] sm:$0xff] %v19404_v8  ;;  %20276 = vst [vmem:[#allocation46_spill] sm:$0xff] %v19410_v24  ;;  %v14468_v9 = vpop.eup %14467  ;;  %v19416_v12 = vld [vmem:[%s19686_s5 + $0x1a0] ss:$16 sps:$4 sm:$0xff]  }
 0xfcb   : > { %14471 = vtanh.f32 %v19386_v47  ;;  %10857 = vmatprep.subr.bf16.mxu0 %v19404_v8  ;;  %10900 = vmatprep.subr.bf16.mxu1 %v19410_v24  ;;  %20277 = vst [vmem:[#allocation47_spill] sm:$0xff] %v19416_v12  ;;  %v10719_v8 = vadd.f32 0.5, %v10717_v58  ;;  %v10718_v48 = vmul.f32 0.5, %v14468_v9  ;;  %v19428_v24 = vld [vmem:[%s19686_s5 + $0x1c4] ss:$16 sps:$4 sm:$0xff]  }
 0xfcc   : > { %20278 = vst [vmem:[#allocation18_spill] sm:$0xff] %v19428_v24  ;;  %v19440_v9 = vld [vmem:[%s19686_s5 + $0x1c0] ss:$16 sps:$4 sm:$0xff]   ;;  %v19446_v58 = vld [vmem:[%s19686_s5 + $0x1c8] ss:$16 sps:$4 sm:$0xff]  }
 0xfcd   : > { %20280 = vst [vmem:[#allocation10_spill] sm:$0xff] %v19440_v9  ;;  %20281 = vst [vmem:[#allocation21_spill] sm:$0xff] %v19446_v58 }
 0xfce   : > { %10858 = vmatpush1.bf16.msra.mxu0 %v19416_v12  ;;  %10901 = vmatpush1.bf16.msra.mxu1 %v19422_v63  ;;  %v19434_v12 = vld [vmem:[%s19686_s5 + $0x1cc] ss:$16 sps:$4 sm:$0xff]  }
 0xfcf   : > { %10859 = vmatprep.subr.bf16.mxu0 %v19428_v24  ;;  %20279 = vst [vmem:[#allocation11_spill] sm:$0xff] %v19434_v12  ;;  %10902 = vmatprep.subr.bf16.mxu1 %v19434_v12  ;;  %v10720_v12 = vadd.f32 0.5, %v10718_v48  ;;  %v19473_v48 = vld [vmem:[%s19686_s5 + $0x1e8] ss:$16 sps:$4 sm:$0xff]  }
 0xfd2   : > { %v14470_v23 = vpop.eup %14469  ;;  %10860 = vmatpush1.bf16.msra.mxu0 %v19440_v9  ;;  %10903 = vmatpush1.bf16.msra.mxu1 %v19446_v58 }
 0xfd3   : > { %v10729_v25 = vmul.f32 %v14470_v23, %v10719_v8  ;;  %v19455_v23 = vld [vmem:[%s19686_s5 + $0x1e4] ss:$16 sps:$4 sm:$0xff]   ;;  %v19461_v8 = vld [vmem:[%s19686_s5 + $0x1ec] ss:$16 sps:$4 sm:$0xff]  }
 0xfd4   : > { %20282 = vst [vmem:[#allocation20_spill] sm:$0xff] %v19455_v23  ;;  %10861 = vmatprep.subr.bf16.mxu0 %v19455_v23  ;;  %20283 = vst [vmem:[#allocation23_spill] sm:$0xff] %v19461_v8  ;;  %10904 = vmatprep.subr.bf16.mxu1 %v19461_v8 }
 0xfd5   : > { %v19450_v24 = vadd.f32 %v10729_v25, %v19038_v61  ;;  %v14472_v9 = vpop.eup %14471  ;;  %v19467_v61 = vld [vmem:[%s19686_s5 + $0x1e0] ss:$16 sps:$4 sm:$0xff]  }
 0xfd6   : > { %v10730_v58 = vmul.f32 %v14472_v9, %v10720_v12  ;;  %10862 = vmatpush1.bf16.msra.mxu0 %v19467_v61  ;;  %10905 = vmatpush1.bf16.msra.mxu1 %v19473_v48 }
 0xfd7   : > { %11026 = vmatprep.subr.bf16.mxu0 %v19050_v46  ;;  %11069 = vmatprep.subr.bf16.mxu1 %v19056_v17  ;;  %v20285_v46 = vld [vmem:[#allocation14_spill] sm:$0xff]  ;;  %v20286_v17 = vld [vmem:[#allocation33_spill] sm:$0xff] }
 0xfd8   : > { %v19477_v23 = vadd.f32 %v10730_v58, %v19045_v35  ;;  %v10846_v8 = vpack.c.bf16 %v10730_v58, %v10729_v25  ;;  %v20284_v35 = vld [vmem:[#allocation37_spill] sm:$0xff] }
 0xfda   : > { %10880 = vmatmul.mubr.bf16.vlgmr.msra.gmra.mrb[100].mxu0 %v10846_v8  ;;  %10923 = vmatmul.mubr.bf16.vlgmr.msra.gmra.mrb[100].mxu1 %v10846_v8 }
 0xfdb   : > { %11027 = vmatpush1.bf16.msra.mxu0 %v19062_v54  ;;  %11070 = vmatpush1.bf16.msra.mxu1 %v19068_v4 }
 0xfdc   : > { %11028 = vmatprep.subr.bf16.mxu0 %v19074_v32  ;;  %11071 = vmatprep.subr.bf16.mxu1 %v19080_v53  ;;  %v20287_v32 = vld [vmem:[#allocation16_spill] sm:$0xff] }
 0xfdd   : > { %11058 = vmatprep.mubr.bf16.mxu0 %v19931_v14  ;;  %11101 = vmatprep.mubr.bf16.mxu1 %v19931_v14 }
 0xfdf   : > { %11029 = vmatpush1.bf16.msra.mxu0 %v19088_v21  ;;  %11072 = vmatpush1.bf16.msra.mxu1 %v19094_v18 }
 0xfe0   : > { %11030 = vmatprep.subr.bf16.mxu0 %v19100_v56  ;;  %11073 = vmatprep.subr.bf16.mxu1 %v19106_v27  ;;  %v20288_v56 = vld [vmem:[#allocation13_spill] sm:$0xff] }
 0xfe3   : > { %11031 = vmatpush1.bf16.msra.mxu0 %v19112_v37  ;;  %11074 = vmatpush1.bf16.msra.mxu1 %v19118_v44 }
 0xfe4   : > { %11032 = vmatprep.subr.bf16.mxu0 %v19124_v33  ;;  %11075 = vmatprep.subr.bf16.mxu1 %v19130_v51 }
 0xfe7   : > { %11033 = vmatpush1.bf16.msra.mxu0 %v19136_v38  ;;  %11076 = vmatpush1.bf16.msra.mxu1 %v19142_v29 }
 0xfe8   : > { %11034 = vmatprep.subr.bf16.mxu0 %v19148_v19  ;;  %11077 = vmatprep.subr.bf16.mxu1 %v19154_v11 }
 0xfeb   : > { %11035 = vmatpush1.bf16.msra.mxu0 %v19160_v49  ;;  %11078 = vmatpush1.bf16.msra.mxu1 %v19166_v13  ;;  %v20289_v49 = vld [vmem:[#allocation19_spill] sm:$0xff] }
 0xfec   : > { %11036 = vmatprep.subr.bf16.mxu0 %v19172_v0  ;;  %11079 = vmatprep.subr.bf16.mxu1 %v19178_v42 }
 0xfef   : > { %11037 = vmatpush1.bf16.msra.mxu0 %v19184_v41  ;;  %11080 = vmatpush1.bf16.msra.mxu1 %v19190_v62  ;;  %v20290_v62 = vld [vmem:[#allocation15_spill] sm:$0xff] }
 0xff0   : > { %11038 = vmatprep.subr.bf16.mxu0 %v19196_v52  ;;  %11081 = vmatprep.subr.bf16.mxu1 %v19202_v22 }
 0xff3   : > { %11039 = vmatpush1.bf16.msra.mxu0 %v19208_v50  ;;  %11082 = vmatpush1.bf16.msra.mxu1 %v19214_v5 }
 0xff4   : > { %11040 = vmatprep.subr.bf16.mxu0 %v19220_v43  ;;  %11083 = vmatprep.subr.bf16.mxu1 %v19226_v26 }
 0xff7   : > { %11041 = vmatpush1.bf16.msra.mxu0 %v19232_v28  ;;  %11084 = vmatpush1.bf16.msra.mxu1 %v20284_v35 }
 0xff8   : > { %11129 = vmatprep.subr.bf16.mxu0 %v20285_v46  ;;  %11172 = vmatprep.subr.bf16.mxu1 %v20286_v17 }
0x108c   : > { %v10778_v54 = vpop.f32.mrb[88].mxu0  ;;  %v10821_v4 = vpop.f32.mrb[88].mxu1 }
0x108d   : > { %v12894_v53 = vadd.f32 %v10778_v54, %v20287_v32  ;;  %v10780_v21 = vpop.f32.mrb[89].mxu0  ;;  %v10823_v18 = vpop.f32.mrb[89].mxu1  ;;  %v12926_v13 = vadd.f32 %v10821_v4, %v20289_v49  ;;  %v20291_v54 = vld [vmem:[#allocation7_spill] sm:$0xff] }
0x108e   : > { %v12895_v27 = vadd.f32 %v10780_v21, %v20288_v56  ;;  %v10782_v37 = vpop.f32.mrb[90].mxu0  ;;  %v10825_v44 = vpop.f32.mrb[90].mxu1  ;;  %v12927_v52 = vadd.f32 %v10823_v18, %v20290_v62 }
0x108f   : > { %v10941_v33 = vmul.f32 0.5, %v12894_v53  ;;  %v12896_v51 = vadd.f32 %v10782_v37, %v20287_v32  ;;  %v10784_v38 = vpop.f32.mrb[91].mxu0  ;;  %v10827_v29 = vpop.f32.mrb[91].mxu1  ;;  %v12928_v41 = vadd.f32 %v10825_v44, %v20289_v49 }
0x1090   : > { %v10949_v19 = vmul.f32 0.5, %v12895_v27  ;;  %v12897_v11 = vadd.f32 %v10784_v38, %v20288_v56  ;;  %v10959_v22 = vmul.f32 0.5, %v12927_v52  ;;  %v12929_v50 = vadd.f32 %v10827_v29, %v20290_v62 }
0x1091   : > { %14473 = vtanh.f32 %v10941_v33  ;;  %v10942_v0 = vmul.f32 0.5, %v12896_v51  ;;  %v20292_v33 = vld [vmem:[#allocation22_spill] sm:$0xff] }
0x1092   : > { %14475 = vtanh.f32 %v10949_v19  ;;  %v10950_v42 = vmul.f32 0.5, %v12897_v11  ;;  %v10960_v25 = vmul.f32 0.5, %v12929_v50 }
0x1093   : > { %14477 = vtanh.f32 %v10942_v0 }
0x1094   : > { %14479 = vtanh.f32 %v12926_v13 }
0x1095   : > { %14481 = vtanh.f32 %v10950_v42 }
0x1096   : > { %14483 = vtanh.f32 %v12928_v41 }
0x1097   : > { %14485 = vtanh.f32 %v10959_v22 }
0x1098   : > { %14487 = vtanh.f32 %v10960_v25 }
0x109b   : > { %v14474_v5 = vpop.eup %14473 }
0x109c   : > { %v14476_v43 = vpop.eup %14475  ;;  %v10945_v26 = vmul.f32 0.5, %v14474_v5 }
0x109d   : > { %v10953_v28 = vmul.f32 0.5, %v14476_v43  ;;  %v14478_v12 = vpop.eup %14477 }
0x109e   : > { %v10947_v9 = vadd.f32 0.5, %v10945_v26  ;;  %v14480_v58 = vpop.eup %14479  ;;  %v10946_v35 = vmul.f32 0.5, %v14478_v12 }
0x109f   : > { %v10955_v8 = vadd.f32 0.5, %v10953_v28  ;;  %v14482_v46 = vpop.eup %14481 }
0x10a0   : > { %v10969_v17 = vmul.f32 %v14480_v58, %v10947_v9  ;;  %v10948_v53 = vadd.f32 0.5, %v10946_v35  ;;  %v10954_v21 = vmul.f32 0.5, %v14482_v46  ;;  %v14484_v18 = vpop.eup %14483 }
0x10a1   : > { %v10967_v4 = vmul.f32 %v10955_v8, %v20291_v54  ;;  %v14486_v38 = vpop.eup %14485 }
0x10a2   : > { %v10956_v37 = vadd.f32 0.5, %v10954_v21  ;;  %v10970_v44 = vmul.f32 %v14484_v18, %v10948_v53  ;;  %v10963_v19 = vmul.f32 0.5, %v14486_v38  ;;  %v14488_v11 = vpop.eup %14487 }
0x10a3   : > { %v19524_v27 = vadd.f32 %v10969_v17, %v10967_v4  ;;  %v10964_v50 = vmul.f32 0.5, %v14488_v11 }
0x10a4   : > { %v10968_v51 = vmul.f32 %v10956_v37, %v20292_v33  ;;  %v10965_v22 = vadd.f32 0.5, %v10963_v19 }
0x10a5   : > { %14489 = vtanh.f32 %v19524_v27  ;;  %v10966_v53 = vadd.f32 0.5, %v10964_v50 }
0x10a6   : > { %v19528_v29 = vadd.f32 %v10970_v44, %v10968_v51 }
0x10a8   : > { %14491 = vtanh.f32 %v19528_v29 }
0x10ad   : > { %v10881_v13 = vpop.f32.mrb[100].mxu0  ;;  %v10924_v0 = vpop.f32.mrb[100].mxu1 }
0x10ae   : > { %v12938_v42 = vadd.f32 %v10881_v13, %v20218_v10  ;;  %v10883_v41 = vpop.f32.mrb[101].mxu0  ;;  %v10926_v52 = vpop.f32.mrb[101].mxu1  ;;  %v12970_v17 = vadd.f32 %v10924_v0, %v18211_v16 }
0x10af   : > { %v12939_v5 = vadd.f32 %v10883_v41, %v18205_v3  ;;  %v10885_v43 = vpop.f32.mrb[102].mxu0  ;;  %v10928_v26 = vpop.f32.mrb[102].mxu1  ;;  %v12971_v33 = vadd.f32 %v10926_v52, %v18220_v57 }
0x10b0   : > { %v14490_v28 = vpop.eup %14489  ;;  %v10977_v25 = vmul.f32 0.5, %v12938_v42  ;;  %v12940_v12 = vadd.f32 %v10885_v43, %v20218_v10  ;;  %v10887_v9 = vpop.f32.mrb[103].mxu0  ;;  %v12972_v44 = vadd.f32 %v10928_v26, %v18211_v16  ;;  %v20293_v43 = vld [vmem:[#allocation8_spill] sm:$0xff] }
0x10b1   : > { %v10930_v58 = vpop.f32.mrb[103].mxu1  ;;  %v10975_v8 = vmul.f32 %v14490_v28, %v10965_v22  ;;  %v10985_v35 = vmul.f32 0.5, %v12939_v5  ;;  %v12941_v46 = vadd.f32 %v10887_v9, %v18205_v3  ;;  %v20297_v28 = vld [vmem:[#allocation12_spill] sm:$0xff]  ;;  %v20300_v9 = vld [vmem:[#allocation47_spill] sm:$0xff] }
0x10b2   : > { %14493 = vtanh.f32 %v10977_v25  ;;  %v10978_v54 = vmul.f32 0.5, %v12940_v12  ;;  %v14492_v18 = vpop.eup %14491  ;;  %v12973_v19 = vadd.f32 %v10930_v58, %v18220_v57  ;;  %v20298_v12 = vld [vmem:[#allocation45_spill] sm:$0xff] }
0x10b3   : > { %v19537_v4 = vadd.f32 %v10975_v8, %v19275_v45  ;;  %14495 = vtanh.f32 %v10985_v35  ;;  %v10986_v21 = vmul.f32 0.5, %v12941_v46  ;;  %v10976_v37 = vmul.f32 %v14492_v18, %v10966_v53  ;;  %v20301_v35 = vld [vmem:[#allocation18_spill] sm:$0xff]  ;;  %v20302_v46 = vld [vmem:[#allocation11_spill] sm:$0xff] }
0x10b4   : > { %14497 = vtanh.f32 %v10978_v54  ;;  %v10995_v45 = vmul.f32 0.5, %v12971_v33  ;;  %v10996_v42 = vmul.f32 0.5, %v12973_v19  ;;  %v20303_v53 = vld [vmem:[#allocation10_spill] sm:$0xff]  ;;  %v20306_v33 = vld [vmem:[#allocation23_spill] sm:$0xff] }
0x10b5   : > { %14499 = vtanh.f32 %v12970_v17  ;;  %v19542_v51 = vadd.f32 %v10976_v37, %v19280_v31  ;;  %v11025_v38 = vpack.c.bf16 %v10976_v37, %v10975_v8 }
0x10b6   : > { %14501 = vtanh.f32 %v10986_v21  ;;  %v20304_v21 = vld [vmem:[#allocation21_spill] sm:$0xff] }
0x10b7   : > { %14503 = vtanh.f32 %v12972_v44  ;;  %11059 = vmatmul.mubr.bf16.vlgmr.msra.gmra.mrb[92].mxu0 %v11025_v38  ;;  %11102 = vmatmul.mubr.bf16.vlgmr.msra.gmra.mrb[92].mxu1 %v11025_v38  ;;  %v20305_v44 = vld [vmem:[#allocation20_spill] sm:$0xff] }
0x10b8   : > { %11130 = vmatpush1.bf16.msra.mxu0 %v19286_v7  ;;  %11173 = vmatpush1.bf16.msra.mxu1 %v19292_v40  ;;  %14505 = vtanh.f32 %v10995_v45 }
0x10b9   : > { %11131 = vmatprep.subr.bf16.mxu0 %v19298_v34  ;;  %11174 = vmatprep.subr.bf16.mxu1 %v19304_v30  ;;  %14507 = vtanh.f32 %v10996_v42  ;;  %v13904_v42 = vld [vmem:[%s19688_s7 + $0x38] sm:$0xff]  }
0x10ba   : > { %11161 = vmatprep.mubr.bf16.mxu0 %v19931_v14  ;;  %11204 = vmatprep.mubr.bf16.mxu1 %v19931_v14 }
0x10bc   : > { %v14494_v11 = vpop.eup %14493  ;;  %11132 = vmatpush1.bf16.msra.mxu0 %v19312_v55  ;;  %11175 = vmatpush1.bf16.msra.mxu1 %v19318_v20 }
0x10bd   : > { %v14496_v31 = vpop.eup %14495  ;;  %v10981_v13 = vmul.f32 0.5, %v14494_v11  ;;  %11133 = vmatprep.subr.bf16.mxu0 %v19324_v15  ;;  %11176 = vmatprep.subr.bf16.mxu1 %v19330_v2  ;;  %v14708_v11 = vmov 0.0  }
0x10be   : > { %v10989_v0 = vmul.f32 0.5, %v14496_v31  ;;  %v14498_v7 = vpop.eup %14497  ;;  %v13901_v31 = vld [vmem:[%s19688_s7 + $0x20] sm:$0xff]  }
0x10bf   : > { %v10983_v40 = vadd.f32 0.5, %v10981_v13  ;;  %v14500_v34 = vpop.eup %14499  ;;  %v10982_v41 = vmul.f32 0.5, %v14498_v7  ;;  %v13902_v13 = vld [vmem:[%s19688_s7 + $0x28] sm:$0xff]   ;;  %v13905_v7 = vld [vmem:[%s19688_s7 + $0x40] sm:$0xff]  }
0x10c0   : > { %v10991_v30 = vadd.f32 0.5, %v10989_v0  ;;  %v14502_v52 = vpop.eup %14501  ;;  %11134 = vmatpush1.bf16.msra.mxu0 %v19337_v6  ;;  %11177 = vmatpush1.bf16.msra.mxu1 %v19343_v59  ;;  %v20294_v6 = vld [vmem:[#allocation9_spill] sm:$0xff]  ;;  %v20295_v59 = vld [vmem:[#allocation42_spill] sm:$0xff] }
0x10c1   : > { %v11005_v14 = vmul.f32 %v14500_v34, %v10983_v40  ;;  %v10984_v50 = vadd.f32 0.5, %v10982_v41  ;;  %v10990_v5 = vmul.f32 0.5, %v14502_v52  ;;  %v14504_v55 = vpop.eup %14503  ;;  %11135 = vmatprep.subr.bf16.mxu0 %v19349_v36  ;;  %11178 = vmatprep.subr.bf16.mxu1 %v19355_v1  ;;  %v20296_v1 = vld [vmem:[#allocation43_spill] sm:$0xff]  ;;  %v13903_v0 = vld [vmem:[%s19688_s7 + $0x30] sm:$0xff]   ;;  %v13906_v40 = vld [vmem:[%s19688_s7 + $0x48] sm:$0xff]  }
0x10c2   : > { %v11003_v22 = vmul.f32 %v10991_v30, %v19358_v39  ;;  %v14506_v26 = vpop.eup %14505  ;;  %v13907_v34 = vld [vmem:[%s19688_s7 + $0x50] sm:$0xff]   ;;  %v13908_v30 = vld [vmem:[%s19688_s7 + $0x58] sm:$0xff]   ;;  %v13909_v41 = vld [vmem:[%s19688_s7 + $0x60] sm:$0xff]  }
0x10c3   : > { %v10992_v15 = vadd.f32 0.5, %v10990_v5  ;;  %v11006_v2 = vmul.f32 %v14504_v55, %v10984_v50  ;;  %v10999_v25 = vmul.f32 0.5, %v14506_v26  ;;  %v13910_v52 = vld [vmem:[%s19688_s7 + $0x68] sm:$0xff]  }
0x10c4   : > { %v19560_v20 = vadd.f32 %v11005_v14, %v11003_v22  ;;  %11136 = vmatpush1.bf16.msra.mxu0 %v19365_v60  ;;  %11179 = vmatpush1.bf16.msra.mxu1 %v20293_v43  ;;  %v14508_v60 = vpop.eup %14507  ;;  %v13911_v14 = vld [vmem:[%s19688_s7 + $0x70] sm:$0xff]   ;;  %v13912_v22 = vld [vmem:[%s19688_s7 + $0x78] sm:$0xff]  }
0x10c5   : > { %v11004_v39 = vmul.f32 %v10992_v15, %v19386_v47  ;;  %11137 = vmatprep.subr.bf16.mxu0 %v20294_v6  ;;  %11180 = vmatprep.subr.bf16.mxu1 %v20295_v59  ;;  %v20299_v47 = vld [vmem:[#allocation46_spill] sm:$0xff]  ;;  %v11001_v58 = vadd.f32 0.5, %v10999_v25  ;;  %v11000_v8 = vmul.f32 0.5, %v14508_v60 }
0x10c6   : > { %14509 = vtanh.f32 %v19560_v20 }
0x10c7   : > { %v19568_v36 = vadd.f32 %v11006_v2, %v11004_v39  ;;  %v11002_v37 = vadd.f32 0.5, %v11000_v8 }
0x10c8   : > { %11138 = vmatpush1.bf16.msra.mxu0 %v20296_v1  ;;  %11181 = vmatpush1.bf16.msra.mxu1 %v20297_v28 }
0x10c9   : > { %14511 = vtanh.f32 %v19568_v36  ;;  %11139 = vmatprep.subr.bf16.mxu0 %v20298_v12  ;;  %11182 = vmatprep.subr.bf16.mxu1 %v20299_v47 }
0x10cc   : > { %11140 = vmatpush1.bf16.msra.mxu0 %v20300_v9  ;;  %11183 = vmatpush1.bf16.msra.mxu1 %v19422_v63 }
0x10cd   : > { %11141 = vmatprep.subr.bf16.mxu0 %v20301_v35  ;;  %11184 = vmatprep.subr.bf16.mxu1 %v20302_v46 }
0x10d0   : > { %v14510_v17 = vpop.eup %14509  ;;  %11142 = vmatpush1.bf16.msra.mxu0 %v20303_v53  ;;  %11185 = vmatpush1.bf16.msra.mxu1 %v20304_v21 }
0x10d1   : > { %v11011_v54 = vmul.f32 %v14510_v17, %v11001_v58  ;;  %11143 = vmatprep.subr.bf16.mxu0 %v20305_v44  ;;  %11186 = vmatprep.subr.bf16.mxu1 %v20306_v33 }
0x10d3   : > { %v19582_v18 = vadd.f32 %v11011_v54, %v19450_v24  ;;  %v14512_v63 = vpop.eup %14511  ;;  %v13897_v24 = vld [vmem:[%s19688_s7] sm:$0xff]  }
0x10d4   : > { %v11012_v38 = vmul.f32 %v14512_v63, %v11002_v37  ;;  %11144 = vmatpush1.bf16.msra.mxu0 %v19467_v61  ;;  %11187 = vmatpush1.bf16.msra.mxu1 %v19473_v48  ;;  %v13898_v61 = vld [vmem:[%s19688_s7 + $0x8] sm:$0xff]   ;;  %v13900_v48 = vld [vmem:[%s19688_s7 + $0x18] sm:$0xff]  }
0x10d5   : > { %12722 = vmatprep.subr.bf16.mxu1 %v14708_v11  ;;  %12702 = vmatprep.subr.bf16.mxu0 %v14708_v11 }
0x10d6   : > { %v19589_v45 = vadd.f32 %v11012_v38, %v19477_v23  ;;  %v11128_v19 = vpack.c.bf16 %v11012_v38, %v11011_v54  ;;  %v13899_v23 = vld [vmem:[%s19688_s7 + $0x10] sm:$0xff]  }
0x10d8   : > { %11162 = vmatmul.mubr.bf16.vlgmr.msra.gmra.mrb[96].mxu0 %v11128_v19  ;;  %11205 = vmatmul.mubr.bf16.vlgmr.msra.gmra.mrb[96].mxu1 %v11128_v19 }
0x10d9   : > { %12723 = vmatpush3.bf16.msra.mxu1 %v13897_v24  ;;  %12738 = vmatprep.mubr.msk.bf16.mxu1 %vm14709_vm1, %v14708_v11 }
0x10da   : > { %12724 = vmatprep.subr.bf16.mxu1 %v14708_v11  ;;  %12718 = vmatprep.mubr.msk.bf16.mxu0 %vm14709_vm1, %v14708_v11 }
0x10db   : > { %12703 = vmatpush3.bf16.msra.mxu0 %v13905_v7 }
0x10dc   : > { %12704 = vmatprep.subr.bf16.mxu0 %v14708_v11 }
0x10dd   : > { %12725 = vmatpush3.bf16.msra.mxu1 %v13898_v61 }
0x10de   : > { %12726 = vmatprep.subr.bf16.mxu1 %v14708_v11 }
0x10df   : > { %12705 = vmatpush3.bf16.msra.mxu0 %v13906_v40 }
0x10e0   : > { %12706 = vmatprep.subr.bf16.mxu0 %v14708_v11 }
0x10e1   : > { %12727 = vmatpush3.bf16.msra.mxu1 %v13899_v23 }
0x10e2   : > { %12728 = vmatprep.subr.bf16.mxu1 %v14708_v11 }
0x10e3   : > { %12707 = vmatpush3.bf16.msra.mxu0 %v13907_v34 }
0x10e4   : > { %12708 = vmatprep.subr.bf16.mxu0 %v14708_v11 }
0x10e5   : > { %12729 = vmatpush3.bf16.msra.mxu1 %v13900_v48 }
0x10e6   : > { %12730 = vmatprep.subr.bf16.mxu1 %v14708_v11 }
0x10e7   : > { %12709 = vmatpush3.bf16.msra.mxu0 %v13908_v30 }
0x10e8   : > { %12710 = vmatprep.subr.bf16.mxu0 %v14708_v11 }
0x10e9   : > { %12731 = vmatpush3.bf16.msra.mxu1 %v13901_v31 }
0x10ea   : > { %12732 = vmatprep.subr.bf16.mxu1 %v14708_v11 }
0x10eb   : > { %12711 = vmatpush3.bf16.msra.mxu0 %v13909_v41 }
0x10ec   : > { %12712 = vmatprep.subr.bf16.mxu0 %v14708_v11 }
0x10ed   : > { %12733 = vmatpush3.bf16.msra.mxu1 %v13902_v13 }
0x10ee   : > { %12734 = vmatprep.subr.bf16.mxu1 %v14708_v11 }
0x10ef   : > { %12713 = vmatpush3.bf16.msra.mxu0 %v13910_v52 }
0x10f0   : > { %12714 = vmatprep.subr.bf16.mxu0 %v14708_v11 }
0x10f1   : > { %12735 = vmatpush3.bf16.msra.mxu1 %v13903_v0 }
0x10f2   : > { %12736 = vmatprep.subr.bf16.mxu1 %v14708_v11 }
0x10f3   : > { %12715 = vmatpush3.bf16.msra.mxu0 %v13911_v14 }
0x10f4   : > { %12716 = vmatprep.subr.bf16.mxu0 %v14708_v11 }
0x10f5   : > { %12737 = vmatpush3.bf16.msra.mxu1 %v13904_v42 }
0x10f7   : > { %12717 = vmatpush3.bf16.msra.mxu0 %v13912_v22 }
0x118a   : > { %v11060_v50 = vpop.f32.mrb[92].mxu0  ;;  %v11103_v5 = vpop.f32.mrb[92].mxu1 }
0x118b   : > { %v12898_v55 = vadd.f32 %v11060_v50, %v20287_v32  ;;  %v11062_v15 = vpop.f32.mrb[93].mxu0  ;;  %v11105_v2 = vpop.f32.mrb[93].mxu1  ;;  %v12930_v47 = vadd.f32 %v11103_v5, %v20289_v49 }
0x118c   : > { %v12899_v39 = vadd.f32 %v11062_v15, %v20288_v56  ;;  %v11064_v43 = vpop.f32.mrb[94].mxu0  ;;  %v11107_v6 = vpop.f32.mrb[94].mxu1  ;;  %v12931_v8 = vadd.f32 %v11105_v2, %v20290_v62 }
0x118d   : > { %v11223_v59 = vmul.f32 0.5, %v12898_v55  ;;  %v12900_v26 = vadd.f32 %v11064_v43, %v20287_v32  ;;  %v11066_v1 = vpop.f32.mrb[95].mxu0  ;;  %v11109_v28 = vpop.f32.mrb[95].mxu1  ;;  %v12932_v58 = vadd.f32 %v11107_v6, %v20289_v49 }
0x118e   : > { %v11231_v25 = vmul.f32 0.5, %v12899_v39  ;;  %v12901_v12 = vadd.f32 %v11066_v1, %v20288_v56  ;;  %v11241_v32 = vmul.f32 0.5, %v12931_v8  ;;  %v12933_v35 = vadd.f32 %v11109_v28, %v20290_v62 }
0x118f   : > { %14513 = vtanh.f32 %v11223_v59  ;;  %v11224_v60 = vmul.f32 0.5, %v12900_v26 }
0x1190   : > { %14515 = vtanh.f32 %v11231_v25  ;;  %v11232_v9 = vmul.f32 0.5, %v12901_v12  ;;  %v11242_v53 = vmul.f32 0.5, %v12933_v35 }
0x1191   : > { %14517 = vtanh.f32 %v11224_v60 }
0x1192   : > { %14519 = vtanh.f32 %v12930_v47 }
0x1193   : > { %14521 = vtanh.f32 %v11232_v9 }
0x1194   : > { %14523 = vtanh.f32 %v12932_v58 }
0x1195   : > { %14525 = vtanh.f32 %v11241_v32 }
0x1196   : > { %14527 = vtanh.f32 %v11242_v53 }
0x1199   : > { %v14514_v46 = vpop.eup %14513 }
0x119a   : > { %v14516_v17 = vpop.eup %14515  ;;  %v11227_v56 = vmul.f32 0.5, %v14514_v46 }
0x119b   : > { %v11235_v54 = vmul.f32 0.5, %v14516_v17  ;;  %v14518_v21 = vpop.eup %14517 }
0x119c   : > { %v11229_v37 = vadd.f32 0.5, %v11227_v56  ;;  %v14520_v44 = vpop.eup %14519  ;;  %v11228_v63 = vmul.f32 0.5, %v14518_v21 }
0x119d   : > { %v11237_v33 = vadd.f32 0.5, %v11235_v54  ;;  %v14522_v49 = vpop.eup %14521 }
0x119e   : > { %v11251_v38 = vmul.f32 %v14520_v44, %v11229_v37  ;;  %v11230_v24 = vadd.f32 0.5, %v11228_v63  ;;  %v11236_v11 = vmul.f32 0.5, %v14522_v49  ;;  %v14524_v61 = vpop.eup %14523 }
0x119f   : > { %v11249_v19 = vmul.f32 %v11237_v33, %v19524_v27  ;;  %v14526_v13 = vpop.eup %14525 }
0x11a0   : > { %v11238_v23 = vadd.f32 0.5, %v11236_v11  ;;  %v11252_v48 = vmul.f32 %v14524_v61, %v11230_v24  ;;  %v11245_v42 = vmul.f32 0.5, %v14526_v13  ;;  %v14528_v7 = vpop.eup %14527 }
0x11a1   : > { %v11253_v62 = vadd.f32 %v11251_v38, %v11249_v19  ;;  %v11246_v14 = vmul.f32 0.5, %v14528_v7 }
0x11a2   : > { %v11250_v31 = vmul.f32 %v11238_v23, %v19528_v29  ;;  %v11247_v52 = vadd.f32 0.5, %v11245_v42 }
0x11a3   : > { %14529 = vtanh.f32 %v11253_v62  ;;  %v11248_v25 = vadd.f32 0.5, %v11246_v14 }
0x11a4   : > { %v11254_v0 = vadd.f32 %v11252_v48, %v11250_v31 }
0x11a6   : > { %14531 = vtanh.f32 %v11254_v0 }
0x11ab   : > { %v11163_v40 = vpop.f32.mrb[96].mxu0  ;;  %v11206_v34 = vpop.f32.mrb[96].mxu1 }
0x11ac   : > { %v12934_v30 = vadd.f32 %v11163_v40, %v20218_v10  ;;  %v11165_v27 = vpop.f32.mrb[97].mxu0  ;;  %v11208_v41 = vpop.f32.mrb[97].mxu1  ;;  %v12966_v26 = vadd.f32 %v11206_v34, %v18211_v16 }
0x11ad   : > { %v12935_v22 = vadd.f32 %v11165_v27, %v18205_v3  ;;  %v11167_v50 = vpop.f32.mrb[98].mxu0  ;;  %v11210_v5 = vpop.f32.mrb[98].mxu1  ;;  %v12967_v9 = vadd.f32 %v11208_v41, %v18220_v57 }
0x11ae   : > { %v14530_v55 = vpop.eup %14529  ;;  %v11259_v15 = vmul.f32 0.5, %v12934_v30  ;;  %v12936_v29 = vadd.f32 %v11167_v50, %v20218_v10  ;;  %v11169_v2 = vpop.f32.mrb[99].mxu0  ;;  %v12968_v10 = vadd.f32 %v11210_v5, %v18211_v16 }
0x11af   : > { %v11212_v39 = vpop.f32.mrb[99].mxu1  ;;  %v11257_v43 = vmul.f32 %v14530_v55, %v11247_v52  ;;  %v11267_v6 = vmul.f32 0.5, %v12935_v22  ;;  %v12937_v59 = vadd.f32 %v11169_v2, %v18205_v3  ;;  %v11277_v32 = vmul.f32 0.5, %v12967_v9 }
0x11b0   : > { %14533 = vtanh.f32 %v11259_v15  ;;  %v11260_v1 = vmul.f32 0.5, %v12936_v29  ;;  %v14532_v47 = vpop.eup %14531 }
0x11b1   : > { %v11295_v28 = vadd.f32 %v11257_v43, %v19537_v4  ;;  %14535 = vtanh.f32 %v11267_v6  ;;  %v11268_v12 = vmul.f32 0.5, %v12937_v59  ;;  %v11258_v60 = vmul.f32 %v14532_v47, %v11248_v25 }
0x11b2   : > { %14537 = vtanh.f32 %v11260_v1  ;;  %v12969_v4 = vadd.f32 %v11212_v39, %v18220_v57 }
0x11b3   : > { %14539 = vtanh.f32 %v12966_v26  ;;  %v11296_v58 = vadd.f32 %v11258_v60, %v19542_v51  ;;  %v11299_v3 = vmul.f32 0.125, %v11295_v28 }
0x11b4   : > { %14541 = vtanh.f32 %v11268_v12  ;;  %v11278_v16 = vmul.f32 0.5, %v12969_v4 }
0x11b5   : > { %v11300_v8 = vmul.f32 0.125, %v11296_v58  ;;  %14543 = vtanh.f32 %v12968_v10 }
0x11b6   : > { %14545 = vtanh.f32 %v11277_v32 }
0x11b7   : > { %v11301_v35 = vpack.c.bf16 %v11300_v8, %v11299_v3  ;;  %14547 = vtanh.f32 %v11278_v16 }
0x11b9   : > { %12739 = vmatmul.mubr.bf16.vlgmr.msra.gmra.mrb[128].mxu1 %v11301_v35 }
0x11ba   : > { %v14534_v46 = vpop.eup %14533 }
0x11bb   : > { %v14536_v17 = vpop.eup %14535  ;;  %v11263_v56 = vmul.f32 0.5, %v14534_v46 }
0x11bc   : > { %v11271_v54 = vmul.f32 0.5, %v14536_v17  ;;  %v14538_v53 = vpop.eup %14537 }
0x11bd   : > { %v11265_v21 = vadd.f32 0.5, %v11263_v56  ;;  %v14540_v37 = vpop.eup %14539  ;;  %v11264_v51 = vmul.f32 0.5, %v14538_v53 }
0x11be   : > { %v11273_v44 = vadd.f32 0.5, %v11271_v54  ;;  %v14542_v33 = vpop.eup %14541 }
0x11bf   : > { %v11287_v63 = vmul.f32 %v14540_v37, %v11265_v21  ;;  %v11266_v38 = vadd.f32 0.5, %v11264_v51  ;;  %v11272_v19 = vmul.f32 0.5, %v14542_v33  ;;  %v14544_v57 = vpop.eup %14543 }
0x11c0   : > { %v11285_v49 = vmul.f32 %v11273_v44, %v19560_v20  ;;  %v14546_v23 = vpop.eup %14545 }
0x11c1   : > { %v11274_v11 = vadd.f32 0.5, %v11272_v19  ;;  %v11288_v61 = vmul.f32 %v14544_v57, %v11266_v38  ;;  %v11281_v31 = vmul.f32 0.5, %v14546_v23  ;;  %v14548_v13 = vpop.eup %14547 }
0x11c2   : > { %v11289_v24 = vadd.f32 %v11287_v63, %v11285_v49  ;;  %v11282_v42 = vmul.f32 0.5, %v14548_v13 }
0x11c3   : > { %v11286_v62 = vmul.f32 %v11274_v11, %v19568_v36  ;;  %v11283_v0 = vadd.f32 0.5, %v11281_v31 }
0x11c4   : > { %14549 = vtanh.f32 %v11289_v24  ;;  %v11284_v34 = vadd.f32 0.5, %v11282_v42 }
0x11c5   : > { %v11290_v48 = vadd.f32 %v11288_v61, %v11286_v62 }
0x11c7   : > { %14551 = vtanh.f32 %v11290_v48 }
0x11ce   : > { %v14550_v7 = vpop.eup %14549 }
0x11cf   : > { %v11293_v20 = vmul.f32 %v14550_v7, %v11283_v0 }
0x11d1   : > { %v11297_v40 = vadd.f32 %v11293_v20, %v19582_v18  ;;  %v14552_v30 = vpop.eup %14551  ;;  %v12680_v18 = vld [vmem:[%s19689_s8] ss:$0 sm:$0xff] }
0x11d2   : > { %v11294_v27 = vmul.f32 %v14552_v30, %v11284_v34 }
0x11d3   : > { %v11318_v52 = vmul.f32 0.125, %v11297_v40 }
0x11d4   : > { %v11298_v41 = vadd.f32 %v11294_v27, %v19589_v45 }
0x11d6   : > { %v11319_v14 = vmul.f32 0.125, %v11298_v41 }
0x11d8   : > { %v11320_v36 = vpack.c.bf16 %v11319_v14, %v11318_v52 }
0x11da   : > { %12719 = vmatmul.mubr.bf16.vlgmr.msra.gmra.mrb[128].mxu0 %v11320_v36 }
0x128c   : > { %v11508_v22 = vpop.f32.mrb[128].mxu1 }
0x128d   : > { %v12740_v50 = vpop.f32.mrb[129].mxu1 }
0x128e   : > { %v11511_v5 = vpop.f32.mrb[130].mxu1 }
0x128f   : > { %v12741_v55 = vpop.f32.mrb[131].mxu1 }
0x12ad   : > { %v11419_v15 = vpop.f32.mrb[128].mxu0 }
0x12ae   : > { %v11509_v29 = vadd.f32 %v11508_v22, %v11419_v15  ;;  %v12720_v45 = vpop.f32.mrb[129].mxu0 }
0x12af   : > { %v11422_v2 = vpop.f32.mrb[130].mxu0 }
0x12b0   : > { %v11522_v39 = vadd.f32 %v12680_v18, %v11509_v29  ;;  %v11512_v43 = vadd.f32 %v11511_v5, %v11422_v2  ;;  %v12721_v6 = vpop.f32.mrb[131].mxu0 }
0x12b2   : > { %11525 = vst.msk [vmem:[%s435_s30] sm:$0xff] %vm11524_vm2, %v11522_v39  ;;  %v11523_v59 = vadd.f32 %v12680_v18, %v11512_v43 }
0x12b4   : > { %11526 = vst.msk [vmem:[%s435_s30 + $0x8] sm:$0xff] %vm11524_vm2, %v11523_v59 }
0x12b5 PF: > { %p16_p9 = scmp.ge.s32.totalorder %s14777_s13, 4   ;;  %s20307_s30 = smov %s14701_s10 }
0x12b6   : > { %s20308_s10 = smov %s14786_s16  ;;  %s20309_s11 = smov %s14777_s13 }
0x12b7   :  { %18 = sbr.rel (!%p16_p9) target bundleno = 2 (0x2), region = 162 }

</bundles_post_ra>
